<compile_context>
chip_gen: v7x
topology: tpu7x:2x2x1
jax: 0.10.0
libtpu: 0.0.40
codegen_flags: <defaults>
</compile_context>

<pallas_src>
import numpy as np
import jax
import jax.numpy as jnp
from jax.experimental import pallas as pl
from jax.experimental.pallas import tpu as pltpu

# ----------------------------- geometry ------------------------------------
R0 = 32                              # input row stride (32x32 image)
RP1 = 14                             # pool1 row stride (compact 14x14)
SPAN1 = 29 * R0 + 30                 # conv1 out 30x30, stride 32 -> 958
SPAN2 = 27 * R0 + 28                 # conv2 out 28x28, stride 32 -> 892
SPAN3 = 11 * RP1 + 12                # conv3 out 12x12, stride 14 -> 166
SPAN4 = 9 * RP1 + 10                 # conv4 out 10x10, stride 14 -> 136
SPANV1 = 2 * 13 * R0 + 2 * 13 + 2    # pool1 vertical-max span   -> 860
SPANV2 = 2 * 4 * RP1 + 2 * 4 + 2     # pool2 vertical-max span   -> 122
CIN1_PAD = 8                         # conv1 input channels padded 3 -> 8


# --------------------------- in-kernel stages -------------------------------

def _conv_stage(src_ref, p_ref, w_ref, b_ref, dst_ref, cin, r_in, span):
    """3x3 valid conv + bias + ReLU in channel-major "wide column" layout.

    src_ref : (cin,  S_in) bf16, pixel (h, w) at column h*r_in + w
    p_ref   : (9*cin, span) bf16 im2col scratch, row k = (kh*3+kw)*cin + c
    w_ref   : (cout, 9*cin) bf16
    b_ref   : (cout, 1)     f32
    dst_ref : (cout, span)  bf16, output pixel (h, w) at column h*r_in + w
    """
    for kh in range(3):
        for kw in range(3):
            g = kh * 3 + kw
            off = kh * r_in + kw
            p_ref[g * cin:(g + 1) * cin, :] = src_ref[:, off:off + span]
    acc = jnp.dot(w_ref[...], p_ref[...], preferred_element_type=jnp.float32)
    dst_ref[...] = jnp.maximum(acc + b_ref[...], 0.0).astype(jnp.bfloat16)


def _pool_stage(src_ref, se_ref, so_ref, span_v, r_in):
    """2x2/stride-2 max pool, vectorized: one slab-wide vertical max, then a
    single even and a single odd select-and-compact matmul on the MXU.
    Returns the compact (C, h_out*w_out) f32 result."""
    vm = jnp.maximum(src_ref[:, 0:span_v], src_ref[:, r_in:r_in + span_v])
    even = jnp.dot(vm, se_ref[...], preferred_element_type=jnp.float32)
    odd = jnp.dot(vm, so_ref[...], preferred_element_type=jnp.float32)
    return jnp.maximum(even, odd)


def _make_conv_kernel(tb):
    def kernel(x_ref,
               w1_ref, b1_ref, w2_ref, b2_ref, w3_ref, b3_ref, w4_ref, b4_ref,
               se1_ref, so1_ref, se2_ref, so2_ref,
               out_ref,
               xs_ref, p1_ref, a1_ref, p2_ref, a2_ref, q1_ref,
               p3_ref, a3_ref, p4_ref, a4_ref):
        # Padded input channels 3..7 stay zero for the whole step (their weight
        # columns are also zero) -> 8-row-aligned im2col slabs, no reads of
        # uninitialized scratch.  Refreshed every step (megacore-safe).
        xs_ref[3:CIN1_PAD, :] = jnp.zeros((CIN1_PAD - 3, 1024), jnp.bfloat16)

        @pl.loop(0, tb)
        def _(t):
            # ---- per-image standardization (torch.std is unbiased: /(n-1)) --
            x = x_ref[t]                                   # (3, 1024) f32
            n = float(3 * 32 * 32)
            mean = jnp.sum(x) / n
            diff = x - mean
            var = jnp.sum(diff * diff) / (n - 1.0)
            adj = jnp.maximum(jnp.sqrt(var), 1.0 / np.sqrt(n))
            xs_ref[0:3, :] = (diff / adj).astype(jnp.bfloat16)

            # ---- conv / pool pipeline, all bf16 VMEM-resident ---------------
            _conv_stage(xs_ref, p1_ref, w1_ref, b1_ref, a1_ref,
                        cin=CIN1_PAD, r_in=R0, span=SPAN1)
            _conv_stage(a1_ref, p2_ref, w2_ref, b2_ref, a2_ref,
                        cin=32, r_in=R0, span=SPAN2)
            q1_ref[...] = _pool_stage(a2_ref, se1_ref, so1_ref,
                                      span_v=SPANV1, r_in=R0).astype(jnp.bfloat16)
            _conv_stage(q1_ref, p3_ref, w3_ref, b3_ref, a3_ref,
                        cin=32, r_in=RP1, span=SPAN3)
            _conv_stage(a3_ref, p4_ref, w4_ref, b4_ref, a4_ref,
                        cin=64, r_in=RP1, span=SPAN4)
            # pool2 output (64, 25) is already in torch's view(-1, 64*5*5)
            # order -> write straight out; fc1/fc2 run batched afterwards.
            out_ref[t] = _pool_stage(a4_ref, se2_ref, so2_ref,
                                     span_v=SPANV2, r_in=RP1).astype(jnp.bfloat16)

    return kernel


def _fc_kernel(x_ref, wf1_ref, bf1_ref, wf2_ref, bf2_ref, out_ref):
    # Batched FC head: (B,1600)@(1600,512) + ReLU, then (B,512)@(512,10).
    h1 = jnp.dot(x_ref[...], wf1_ref[...], preferred_element_type=jnp.float32)
    h1 = jnp.maximum(h1 + bf1_ref[...], 0.0)
    out = jnp.dot(h1.astype(jnp.bfloat16), wf2_ref[...],
                  preferred_element_type=jnp.float32) + bf2_ref[...]
    out_ref[...] = out                                     # (B, 10) f32


# ------------------------------- wrapper ------------------------------------

@jax.jit
def cnn_forward(params, x_nchw):
    B = x_nchw.shape[0]
    # Images per grid step: amortize the ~0.35us step overhead but keep >= 2
    # grid steps so v7x's two TensorCores both get work.
    TB = int(min(8, max(1, (B + 1) // 2)))
    B_pad = ((B + TB - 1) // TB) * TB

    x2 = x_nchw.astype(jnp.float32).reshape(B, 3, 32 * 32)   # channel-major rows
    if B_pad != B:
        x2 = jnp.pad(x2, ((0, B_pad - B), (0, 0), (0, 0)))   # zero imgs are safe

    vmem = pl.BlockSpec(memory_space=pltpu.MemorySpace.VMEM)

    pool2 = pl.pallas_call(
        _make_conv_kernel(TB),
        grid=(B_pad // TB,),
        in_specs=[pl.BlockSpec((TB, 3, 1024), lambda b: (b, 0, 0))] + [vmem] * 12,
        out_specs=pl.BlockSpec((TB, 64, 25), lambda b: (b, 0, 0)),
        out_shape=jax.ShapeDtypeStruct((B_pad, 64, 25), jnp.bfloat16),
        scratch_shapes=[
            pltpu.VMEM((CIN1_PAD, 1024), jnp.bfloat16),       # standardized input
            pltpu.VMEM((9 * CIN1_PAD, SPAN1), jnp.bfloat16),  # conv1 patches
            pltpu.VMEM((32, SPAN1), jnp.bfloat16),            # conv1 out
            pltpu.VMEM((288, SPAN2), jnp.bfloat16),           # conv2 patches
            pltpu.VMEM((32, SPAN2), jnp.bfloat16),            # conv2 out
            pltpu.VMEM((32, 14 * 14), jnp.bfloat16),          # pool1 out
            pltpu.VMEM((288, SPAN3), jnp.bfloat16),           # conv3 patches
            pltpu.VMEM((64, SPAN3), jnp.bfloat16),            # conv3 out
            pltpu.VMEM((576, SPAN4), jnp.bfloat16),           # conv4 patches
            pltpu.VMEM((64, SPAN4), jnp.bfloat16),            # conv4 out
        ],
        compiler_params=pltpu.CompilerParams(
            dimension_semantics=("parallel",)),
    )(x2,
      params["w1"], params["b1"], params["w2"], params["b2"],
      params["w3"], params["b3"], params["w4"], params["b4"],
      params["se1"], params["so1"], params["se2"], params["so2"])

    # (B, 64, 25) -> (B, 1600): channel-major rows == torch's view(-1, 64*5*5)
    # order, so the row-major reshape is free.
    feats = pool2[:B].reshape(B, 64 * 5 * 5)

    logits = pl.pallas_call(
        _fc_kernel,
        in_specs=[vmem] * 5,
        out_specs=vmem,
        out_shape=jax.ShapeDtypeStruct((B, 10), jnp.float32),
    )(feats, params["wf1"], params["bf1"], params["wf2"], params["bf2"])
    return logits


# ---------------------------- parameter init --------------------------------

def _pool_selectors(r_in, h_out, w_out):
    """0/1 select-and-compact matrices: even/odd horizontal pick + row compaction."""
    span_v = 2 * (h_out - 1) * r_in + 2 * (w_out - 1) + 2
    se = np.zeros((span_v, h_out * w_out), np.float32)
    so = np.zeros((span_v, h_out * w_out), np.float32)
    for h in range(h_out):
        for w in range(w_out):
            col = h * w_out + w
            se[2 * h * r_in + 2 * w, col] = 1.0
            so[2 * h * r_in + 2 * w + 1, col] = 1.0
    return jnp.asarray(se, jnp.bfloat16), jnp.asarray(so, jnp.bfloat16)


def init_params(key):
    ks = jax.random.split(key, 12)

    def conv(kw_key, kb_key, cin, cout, cin_pitch=None):
        cin_pitch = cin if cin_pitch is None else cin_pitch
        bound = 1.0 / np.sqrt(cin * 9)
        w = jax.random.uniform(kw_key, (cout, cin, 3, 3), jnp.float32, -bound, bound)
        b = jax.random.uniform(kb_key, (cout,), jnp.float32, -bound, bound)
        # torch (cout, cin, kh, kw) -> patch-row order k = (kh*3+kw)*cin_pitch + c,
        # with channels zero-padded up to cin_pitch (matches in-kernel im2col).
        w_t = jnp.transpose(w, (0, 2, 3, 1)).reshape(cout, 9, cin)
        if cin_pitch > cin:
            w_t = jnp.concatenate(
                [w_t, jnp.zeros((cout, 9, cin_pitch - cin), jnp.float32)], axis=2)
        w_k = w_t.reshape(cout, 9 * cin_pitch)
        return w_k.astype(jnp.bfloat16), b.reshape(cout, 1)

    def fc(kw_key, kb_key, fin, fout):
        bound = 1.0 / np.sqrt(fin)
        w = jax.random.uniform(kw_key, (fout, fin), jnp.float32, -bound, bound)
        b = jax.random.uniform(kb_key, (fout,), jnp.float32, -bound, bound)
        return w.T.astype(jnp.bfloat16), b.reshape(1, fout)

    w1, b1 = conv(ks[0], ks[1], 3, 32, cin_pitch=CIN1_PAD)
    w2, b2 = conv(ks[2], ks[3], 32, 32)
    w3, b3 = conv(ks[4], ks[5], 32, 64)
    w4, b4 = conv(ks[6], ks[7], 64, 64)
    wf1, bf1 = fc(ks[8], ks[9], 64 * 5 * 5, 512)
    wf2, bf2 = fc(ks[10], ks[11], 512, 10)
    se1, so1 = _pool_selectors(R0, 14, 14)
    se2, so2 = _pool_selectors(RP1, 5, 5)

    return dict(w1=w1, b1=b1, w2=w2, b2=b2, w3=w3, b3=b3, w4=w4, b4=b4,
                wf1=wf1, bf1=bf1, wf2=wf2, bf2=bf2,
                se1=se1, so1=so1, se2=se2, so2=so2)


# --------------------------------- main --------------------------------------

if __name__ == "__main__":
    key = jax.random.PRNGKey(0)
    pkey, xkey = jax.random.split(key)
    params = init_params(pkey)
    # Input spatial size is fixed by the architecture: fc1 expects 64*5*5 -> 32x32.
    x = jax.random.normal(xkey, (2, 3, 32, 32), dtype=jnp.float32)
    out = cnn_forward(params, x)
    out = jax.block_until_ready(out)
    assert out.shape == (2, 10) and out.dtype == jnp.float32
    assert bool(jnp.all(jnp.isfinite(out)))
    print("KERNEL_OK")
</pallas_src>

<mosaic_0001>
module attributes {stable_mosaic.version = 11 : i64} {
  func.func @kernel(%arg0: i32, %arg1: memref<1x3x1024xf32, #tpu.memory_space<vmem>>, %arg2: memref<32x72xbf16, #tpu.memory_space<vmem>>, %arg3: memref<32x1xf32, #tpu.memory_space<vmem>>, %arg4: memref<32x288xbf16, #tpu.memory_space<vmem>>, %arg5: memref<32x1xf32, #tpu.memory_space<vmem>>, %arg6: memref<64x288xbf16, #tpu.memory_space<vmem>>, %arg7: memref<64x1xf32, #tpu.memory_space<vmem>>, %arg8: memref<64x576xbf16, #tpu.memory_space<vmem>>, %arg9: memref<64x1xf32, #tpu.memory_space<vmem>>, %arg10: memref<860x196xbf16, #tpu.memory_space<vmem>>, %arg11: memref<860x196xbf16, #tpu.memory_space<vmem>>, %arg12: memref<122x25xbf16, #tpu.memory_space<vmem>>, %arg13: memref<122x25xbf16, #tpu.memory_space<vmem>>, %arg14: memref<1x64x25xbf16, #tpu.memory_space<vmem>>, %arg15: memref<8x1024xbf16, #tpu.memory_space<vmem>>, %arg16: memref<72x958xbf16, #tpu.memory_space<vmem>>, %arg17: memref<32x958xbf16, #tpu.memory_space<vmem>>, %arg18: memref<288x892xbf16, #tpu.memory_space<vmem>>, %arg19: memref<32x892xbf16, #tpu.memory_space<vmem>>, %arg20: memref<32x196xbf16, #tpu.memory_space<vmem>>, %arg21: memref<288x166xbf16, #tpu.memory_space<vmem>>, %arg22: memref<64x166xbf16, #tpu.memory_space<vmem>>, %arg23: memref<576x136xbf16, #tpu.memory_space<vmem>>, %arg24: memref<64x136xbf16, #tpu.memory_space<vmem>>) attributes {dimension_semantics = [#tpu.dimension_semantics<parallel>], iteration_bounds = array<i64: 2>, scalar_prefetch = 0 : i64, scratch_operands = 10 : i64, tpu.core_type = #tpu.core_type<tc>, window_params = [{transform_indices = @transform_0, window_bounds = array<i64: 1, 3, 1024>}, {pipeline_mode = #tpu.pipeline_mode<synchronous>, transform_indices = @transform_1, window_bounds = array<i64: 32, 72>}, {pipeline_mode = #tpu.pipeline_mode<synchronous>, transform_indices = @transform_2, window_bounds = array<i64: 32, 1>}, {pipeline_mode = #tpu.pipeline_mode<synchronous>, transform_indices = @transform_3, window_bounds = array<i64: 32, 288>}, {pipeline_mode = #tpu.pipeline_mode<synchronous>, transform_indices = @transform_4, window_bounds = array<i64: 32, 1>}, {pipeline_mode = #tpu.pipeline_mode<synchronous>, transform_indices = @transform_5, window_bounds = array<i64: 64, 288>}, {pipeline_mode = #tpu.pipeline_mode<synchronous>, transform_indices = @transform_6, window_bounds = array<i64: 64, 1>}, {pipeline_mode = #tpu.pipeline_mode<synchronous>, transform_indices = @transform_7, window_bounds = array<i64: 64, 576>}, {pipeline_mode = #tpu.pipeline_mode<synchronous>, transform_indices = @transform_8, window_bounds = array<i64: 64, 1>}, {pipeline_mode = #tpu.pipeline_mode<synchronous>, transform_indices = @transform_9, window_bounds = array<i64: 860, 196>}, {pipeline_mode = #tpu.pipeline_mode<synchronous>, transform_indices = @transform_10, window_bounds = array<i64: 860, 196>}, {pipeline_mode = #tpu.pipeline_mode<synchronous>, transform_indices = @transform_11, window_bounds = array<i64: 122, 25>}, {pipeline_mode = #tpu.pipeline_mode<synchronous>, transform_indices = @transform_12, window_bounds = array<i64: 122, 25>}, {transform_indices = @transform_13, window_bounds = array<i64: 1, 64, 25>}]} {
    %cst = arith.constant 0.000000e+00 : bf16
    %0 = vector.broadcast %cst : bf16 to vector<5x1024xbf16>
    %c3 = arith.constant 3 : index
    %c0 = arith.constant 0 : index
    %1 = vector.load %arg15[%c3, %c0] : memref<8x1024xbf16, #tpu.memory_space<vmem>>, vector<5x1024xbf16>
    tpu.vector_store %arg15[%c3, %c0], %0 {strides = array<i32>} : memref<8x1024xbf16, #tpu.memory_space<vmem>>, vector<5x1024xbf16>,
    %c0_i32 = arith.constant 0 : i32
    %c1_i32 = arith.constant 1 : i32
    %2 = arith.muli %c0_i32, %c1_i32 : i32
    %c0_i32_0 = arith.constant 0 : i32
    %3 = arith.addi %c0_i32_0, %2 : i32
    %4 = arith.index_cast %3 : i32 to index
    %c0_1 = arith.constant 0 : index
    %c0_2 = arith.constant 0 : index
    %5 = vector.load %arg1[%4, %c0_1, %c0_2] : memref<1x3x1024xf32, #tpu.memory_space<vmem>>, vector<1x3x1024xf32>
    %6 = vector.shape_cast %5 : vector<1x3x1024xf32> to vector<3x1024xf32>
    %7 = vector.shape_cast %6 : vector<3x1024xf32> to vector<1x3x1024xf32>
    %cst_3 = arith.constant dense<0.000000e+00> : vector<1xf32>
    %8 = vector.multi_reduction <add>, %7, %cst_3 [1, 2] : vector<1x3x1024xf32> to vector<1xf32>
    %9 = vector.shape_cast %8 : vector<1xf32> to vector<1x1x1xf32>
    %10 = vector.extract %9[0, 0, 0] : f32 from vector<1x1x1xf32>
    %cst_4 = arith.constant 3.072000e+03 : f32
    %11 = arith.divf %10, %cst_4 : f32
    %12 = vector.broadcast %11 : f32 to vector<3x1024xf32>
    %13 = arith.subf %6, %12 : vector<3x1024xf32>
    %14 = arith.mulf %13, %13 : vector<3x1024xf32>
    %15 = vector.shape_cast %14 : vector<3x1024xf32> to vector<1x3x1024xf32>
    %cst_5 = arith.constant dense<0.000000e+00> : vector<1xf32>
    %16 = vector.multi_reduction <add>, %15, %cst_5 [1, 2] : vector<1x3x1024xf32> to vector<1xf32>
    %17 = vector.shape_cast %16 : vector<1xf32> to vector<1x1x1xf32>
    %18 = vector.extract %17[0, 0, 0] : f32 from vector<1x1x1xf32>
    %cst_6 = arith.constant 3.071000e+03 : f32
    %19 = arith.divf %18, %cst_6 : f32
    %20 = math.sqrt %19 : f32
    %cst_7 = arith.constant 0.0180421956 : f32
    %21 = arith.maximumf %20, %cst_7 : f32
    %22 = vector.broadcast %21 : f32 to vector<3x1024xf32>
    %23 = arith.divf %13, %22 : vector<3x1024xf32>
    %24 = arith.truncf %23 : vector<3x1024xf32> to vector<3x1024xbf16>
    %c0_8 = arith.constant 0 : index
    %c0_9 = arith.constant 0 : index
    %25 = vector.load %arg15[%c0_8, %c0_9] : memref<8x1024xbf16, #tpu.memory_space<vmem>>, vector<3x1024xbf16>
    tpu.vector_store %arg15[%c0_8, %c0_9], %24 {strides = array<i32>} : memref<8x1024xbf16, #tpu.memory_space<vmem>>, vector<3x1024xbf16>,
    %c0_10 = arith.constant 0 : index
    %c0_11 = arith.constant 0 : index
    %26 = vector.load %arg15[%c0_10, %c0_11] : memref<8x1024xbf16, #tpu.memory_space<vmem>>, vector<8x958xbf16>
    %c0_12 = arith.constant 0 : index
    %c0_13 = arith.constant 0 : index
    %27 = vector.load %arg16[%c0_12, %c0_13] : memref<72x958xbf16, #tpu.memory_space<vmem>>, vector<8x958xbf16>
    tpu.vector_store %arg16[%c0_12, %c0_13], %26 {strides = array<i32>} : memref<72x958xbf16, #tpu.memory_space<vmem>>, vector<8x958xbf16>,
    %c0_14 = arith.constant 0 : index
    %c1 = arith.constant 1 : index
    %28 = vector.load %arg15[%c0_14, %c1] : memref<8x1024xbf16, #tpu.memory_space<vmem>>, vector<8x958xbf16>
    %c8 = arith.constant 8 : index
    %c0_15 = arith.constant 0 : index
    %29 = vector.load %arg16[%c8, %c0_15] : memref<72x958xbf16, #tpu.memory_space<vmem>>, vector<8x958xbf16>
    tpu.vector_store %arg16[%c8, %c0_15], %28 {strides = array<i32>} : memref<72x958xbf16, #tpu.memory_space<vmem>>, vector<8x958xbf16>,
    %c0_16 = arith.constant 0 : index
    %c2 = arith.constant 2 : index
    %30 = vector.load %arg15[%c0_16, %c2] : memref<8x1024xbf16, #tpu.memory_space<vmem>>, vector<8x958xbf16>
    %c16 = arith.constant 16 : index
    %c0_17 = arith.constant 0 : index
    %31 = vector.load %arg16[%c16, %c0_17] : memref<72x958xbf16, #tpu.memory_space<vmem>>, vector<8x958xbf16>
    tpu.vector_store %arg16[%c16, %c0_17], %30 {strides = array<i32>} : memref<72x958xbf16, #tpu.memory_space<vmem>>, vector<8x958xbf16>,
    %c0_18 = arith.constant 0 : index
    %c32 = arith.constant 32 : index
    %32 = vector.load %arg15[%c0_18, %c32] : memref<8x1024xbf16, #tpu.memory_space<vmem>>, vector<8x958xbf16>
    %c24 = arith.constant 24 : index
    %c0_19 = arith.constant 0 : index
    %33 = vector.load %arg16[%c24, %c0_19] : memref<72x958xbf16, #tpu.memory_space<vmem>>, vector<8x958xbf16>
    tpu.vector_store %arg16[%c24, %c0_19], %32 {strides = array<i32>} : memref<72x958xbf16, #tpu.memory_space<vmem>>, vector<8x958xbf16>,
    %c0_20 = arith.constant 0 : index
    %c33 = arith.constant 33 : index
    %34 = vector.load %arg15[%c0_20, %c33] : memref<8x1024xbf16, #tpu.memory_space<vmem>>, vector<8x958xbf16>
    %c32_21 = arith.constant 32 : index
    %c0_22 = arith.constant 0 : index
    %35 = vector.load %arg16[%c32_21, %c0_22] : memref<72x958xbf16, #tpu.memory_space<vmem>>, vector<8x958xbf16>
    tpu.vector_store %arg16[%c32_21, %c0_22], %34 {strides = array<i32>} : memref<72x958xbf16, #tpu.memory_space<vmem>>, vector<8x958xbf16>,
    %c0_23 = arith.constant 0 : index
    %c34 = arith.constant 34 : index
    %36 = vector.load %arg15[%c0_23, %c34] : memref<8x1024xbf16, #tpu.memory_space<vmem>>, vector<8x958xbf16>
    %c40 = arith.constant 40 : index
    %c0_24 = arith.constant 0 : index
    %37 = vector.load %arg16[%c40, %c0_24] : memref<72x958xbf16, #tpu.memory_space<vmem>>, vector<8x958xbf16>
    tpu.vector_store %arg16[%c40, %c0_24], %36 {strides = array<i32>} : memref<72x958xbf16, #tpu.memory_space<vmem>>, vector<8x958xbf16>,
    %c0_25 = arith.constant 0 : index
    %c64 = arith.constant 64 : index
    %38 = vector.load %arg15[%c0_25, %c64] : memref<8x1024xbf16, #tpu.memory_space<vmem>>, vector<8x958xbf16>
    %c48 = arith.constant 48 : index
    %c0_26 = arith.constant 0 : index
    %39 = vector.load %arg16[%c48, %c0_26] : memref<72x958xbf16, #tpu.memory_space<vmem>>, vector<8x958xbf16>
    tpu.vector_store %arg16[%c48, %c0_26], %38 {strides = array<i32>} : memref<72x958xbf16, #tpu.memory_space<vmem>>, vector<8x958xbf16>,
    %c0_27 = arith.constant 0 : index
    %c65 = arith.constant 65 : index
    %40 = vector.load %arg15[%c0_27, %c65] : memref<8x1024xbf16, #tpu.memory_space<vmem>>, vector<8x958xbf16>
    %c56 = arith.constant 56 : index
    %c0_28 = arith.constant 0 : index
    %41 = vector.load %arg16[%c56, %c0_28] : memref<72x958xbf16, #tpu.memory_space<vmem>>, vector<8x958xbf16>
    tpu.vector_store %arg16[%c56, %c0_28], %40 {strides = array<i32>} : memref<72x958xbf16, #tpu.memory_space<vmem>>, vector<8x958xbf16>,
    %c0_29 = arith.constant 0 : index
    %c66 = arith.constant 66 : index
    %42 = vector.load %arg15[%c0_29, %c66] : memref<8x1024xbf16, #tpu.memory_space<vmem>>, vector<8x958xbf16>
    %c64_30 = arith.constant 64 : index
    %c0_31 = arith.constant 0 : index
    %43 = vector.load %arg16[%c64_30, %c0_31] : memref<72x958xbf16, #tpu.memory_space<vmem>>, vector<8x958xbf16>
    tpu.vector_store %arg16[%c64_30, %c0_31], %42 {strides = array<i32>} : memref<72x958xbf16, #tpu.memory_space<vmem>>, vector<8x958xbf16>,
    %c0_32 = arith.constant 0 : index
    %c0_33 = arith.constant 0 : index
    %44 = vector.load %arg2[%c0_32, %c0_33] : memref<32x72xbf16, #tpu.memory_space<vmem>>, vector<32x72xbf16>
    %c0_34 = arith.constant 0 : index
    %c0_35 = arith.constant 0 : index
    %45 = vector.load %arg16[%c0_34, %c0_35] : memref<72x958xbf16, #tpu.memory_space<vmem>>, vector<72x958xbf16>
    %cst_36 = arith.constant dense<0.000000e+00> : vector<32x958xf32>
    %46 = tpu.matmul %44, %45, %cst_36 {dimension_numbers = #tpu.dot_dimension_numbers<[1], [0], [0], [1], [0, 0, 1, 1], [], []>} : vector<32x72xbf16>, vector<72x958xbf16>, vector<32x958xf32> -> vector<32x958xf32>
    %c0_37 = arith.constant 0 : index
    %c0_38 = arith.constant 0 : index
    %47 = vector.load %arg3[%c0_37, %c0_38] : memref<32x1xf32, #tpu.memory_space<vmem>>, vector<32x1xf32>
    %48 = vector.broadcast %47 : vector<32x1xf32> to vector<32x958xf32>
    %49 = arith.addf %46, %48 : vector<32x958xf32>
    %cst_39 = arith.constant 0.000000e+00 : f32
    %50 = vector.broadcast %cst_39 : f32 to vector<32x958xf32>
    %51 = arith.maximumf %49, %50 : vector<32x958xf32>
    %52 = arith.truncf %51 : vector<32x958xf32> to vector<32x958xbf16>
    %c0_40 = arith.constant 0 : index
    %c0_41 = arith.constant 0 : index
    %53 = vector.load %arg17[%c0_40, %c0_41] : memref<32x958xbf16, #tpu.memory_space<vmem>>, vector<32x958xbf16>
    tpu.vector_store %arg17[%c0_40, %c0_41], %52 {strides = array<i32>} : memref<32x958xbf16, #tpu.memory_space<vmem>>, vector<32x958xbf16>,
    %c0_42 = arith.constant 0 : index
    %c0_43 = arith.constant 0 : index
    %54 = vector.load %arg17[%c0_42, %c0_43] : memref<32x958xbf16, #tpu.memory_space<vmem>>, vector<32x892xbf16>
    %c0_44 = arith.constant 0 : index
    %c0_45 = arith.constant 0 : index
    %55 = vector.load %arg18[%c0_44, %c0_45] : memref<288x892xbf16, #tpu.memory_space<vmem>>, vector<32x892xbf16>
    tpu.vector_store %arg18[%c0_44, %c0_45], %54 {strides = array<i32>} : memref<288x892xbf16, #tpu.memory_space<vmem>>, vector<32x892xbf16>,
    %c0_46 = arith.constant 0 : index
    %c1_47 = arith.constant 1 : index
    %56 = vector.load %arg17[%c0_46, %c1_47] : memref<32x958xbf16, #tpu.memory_space<vmem>>, vector<32x892xbf16>
    %c32_48 = arith.constant 32 : index
    %c0_49 = arith.constant 0 : index
    %57 = vector.load %arg18[%c32_48, %c0_49] : memref<288x892xbf16, #tpu.memory_space<vmem>>, vector<32x892xbf16>
    tpu.vector_store %arg18[%c32_48, %c0_49], %56 {strides = array<i32>} : memref<288x892xbf16, #tpu.memory_space<vmem>>, vector<32x892xbf16>,
    %c0_50 = arith.constant 0 : index
    %c2_51 = arith.constant 2 : index
    %58 = vector.load %arg17[%c0_50, %c2_51] : memref<32x958xbf16, #tpu.memory_space<vmem>>, vector<32x892xbf16>
    %c64_52 = arith.constant 64 : index
    %c0_53 = arith.constant 0 : index
    %59 = vector.load %arg18[%c64_52, %c0_53] : memref<288x892xbf16, #tpu.memory_space<vmem>>, vector<32x892xbf16>
    tpu.vector_store %arg18[%c64_52, %c0_53], %58 {strides = array<i32>} : memref<288x892xbf16, #tpu.memory_space<vmem>>, vector<32x892xbf16>,
    %c0_54 = arith.constant 0 : index
    %c32_55 = arith.constant 32 : index
    %60 = vector.load %arg17[%c0_54, %c32_55] : memref<32x958xbf16, #tpu.memory_space<vmem>>, vector<32x892xbf16>
    %c96 = arith.constant 96 : index
    %c0_56 = arith.constant 0 : index
    %61 = vector.load %arg18[%c96, %c0_56] : memref<288x892xbf16, #tpu.memory_space<vmem>>, vector<32x892xbf16>
    tpu.vector_store %arg18[%c96, %c0_56], %60 {strides = array<i32>} : memref<288x892xbf16, #tpu.memory_space<vmem>>, vector<32x892xbf16>,
    %c0_57 = arith.constant 0 : index
    %c33_58 = arith.constant 33 : index
    %62 = vector.load %arg17[%c0_57, %c33_58] : memref<32x958xbf16, #tpu.memory_space<vmem>>, vector<32x892xbf16>
    %c128 = arith.constant 128 : index
    %c0_59 = arith.constant 0 : index
    %63 = vector.load %arg18[%c128, %c0_59] : memref<288x892xbf16, #tpu.memory_space<vmem>>, vector<32x892xbf16>
    tpu.vector_store %arg18[%c128, %c0_59], %62 {strides = array<i32>} : memref<288x892xbf16, #tpu.memory_space<vmem>>, vector<32x892xbf16>,
    %c0_60 = arith.constant 0 : index
    %c34_61 = arith.constant 34 : index
    %64 = vector.load %arg17[%c0_60, %c34_61] : memref<32x958xbf16, #tpu.memory_space<vmem>>, vector<32x892xbf16>
    %c160 = arith.constant 160 : index
    %c0_62 = arith.constant 0 : index
    %65 = vector.load %arg18[%c160, %c0_62] : memref<288x892xbf16, #tpu.memory_space<vmem>>, vector<32x892xbf16>
    tpu.vector_store %arg18[%c160, %c0_62], %64 {strides = array<i32>} : memref<288x892xbf16, #tpu.memory_space<vmem>>, vector<32x892xbf16>,
    %c0_63 = arith.constant 0 : index
    %c64_64 = arith.constant 64 : index
    %66 = vector.load %arg17[%c0_63, %c64_64] : memref<32x958xbf16, #tpu.memory_space<vmem>>, vector<32x892xbf16>
    %c192 = arith.constant 192 : index
    %c0_65 = arith.constant 0 : index
    %67 = vector.load %arg18[%c192, %c0_65] : memref<288x892xbf16, #tpu.memory_space<vmem>>, vector<32x892xbf16>
    tpu.vector_store %arg18[%c192, %c0_65], %66 {strides = array<i32>} : memref<288x892xbf16, #tpu.memory_space<vmem>>, vector<32x892xbf16>,
    %c0_66 = arith.constant 0 : index
    %c65_67 = arith.constant 65 : index
    %68 = vector.load %arg17[%c0_66, %c65_67] : memref<32x958xbf16, #tpu.memory_space<vmem>>, vector<32x892xbf16>
    %c224 = arith.constant 224 : index
    %c0_68 = arith.constant 0 : index
    %69 = vector.load %arg18[%c224, %c0_68] : memref<288x892xbf16, #tpu.memory_space<vmem>>, vector<32x892xbf16>
    tpu.vector_store %arg18[%c224, %c0_68], %68 {strides = array<i32>} : memref<288x892xbf16, #tpu.memory_space<vmem>>, vector<32x892xbf16>,
    %c0_69 = arith.constant 0 : index
    %c66_70 = arith.constant 66 : index
    %70 = vector.load %arg17[%c0_69, %c66_70] : memref<32x958xbf16, #tpu.memory_space<vmem>>, vector<32x892xbf16>
    %c256 = arith.constant 256 : index
    %c0_71 = arith.constant 0 : index
    %71 = vector.load %arg18[%c256, %c0_71] : memref<288x892xbf16, #tpu.memory_space<vmem>>, vector<32x892xbf16>
    tpu.vector_store %arg18[%c256, %c0_71], %70 {strides = array<i32>} : memref<288x892xbf16, #tpu.memory_space<vmem>>, vector<32x892xbf16>,
    %c0_72 = arith.constant 0 : index
    %c0_73 = arith.constant 0 : index
    %72 = vector.load %arg4[%c0_72, %c0_73] : memref<32x288xbf16, #tpu.memory_space<vmem>>, vector<32x288xbf16>
    %c0_74 = arith.constant 0 : index
    %c0_75 = arith.constant 0 : index
    %73 = vector.load %arg18[%c0_74, %c0_75] : memref<288x892xbf16, #tpu.memory_space<vmem>>, vector<288x892xbf16>
    %cst_76 = arith.constant dense<0.000000e+00> : vector<32x892xf32>
    %74 = tpu.matmul %72, %73, %cst_76 {dimension_numbers = #tpu.dot_dimension_numbers<[1], [0], [0], [1], [0, 0, 1, 1], [], []>} : vector<32x288xbf16>, vector<288x892xbf16>, vector<32x892xf32> -> vector<32x892xf32>
    %c0_77 = arith.constant 0 : index
    %c0_78 = arith.constant 0 : index
    %75 = vector.load %arg5[%c0_77, %c0_78] : memref<32x1xf32, #tpu.memory_space<vmem>>, vector<32x1xf32>
    %76 = vector.broadcast %75 : vector<32x1xf32> to vector<32x892xf32>
    %77 = arith.addf %74, %76 : vector<32x892xf32>
    %cst_79 = arith.constant 0.000000e+00 : f32
    %78 = vector.broadcast %cst_79 : f32 to vector<32x892xf32>
    %79 = arith.maximumf %77, %78 : vector<32x892xf32>
    %80 = arith.truncf %79 : vector<32x892xf32> to vector<32x892xbf16>
    %c0_80 = arith.constant 0 : index
    %c0_81 = arith.constant 0 : index
    %81 = vector.load %arg19[%c0_80, %c0_81] : memref<32x892xbf16, #tpu.memory_space<vmem>>, vector<32x892xbf16>
    tpu.vector_store %arg19[%c0_80, %c0_81], %80 {strides = array<i32>} : memref<32x892xbf16, #tpu.memory_space<vmem>>, vector<32x892xbf16>,
    %c0_82 = arith.constant 0 : index
    %c0_83 = arith.constant 0 : index
    %82 = vector.load %arg19[%c0_82, %c0_83] : memref<32x892xbf16, #tpu.memory_space<vmem>>, vector<32x860xbf16>
    %c0_84 = arith.constant 0 : index
    %c32_85 = arith.constant 32 : index
    %83 = vector.load %arg19[%c0_84, %c32_85] : memref<32x892xbf16, #tpu.memory_space<vmem>>, vector<32x860xbf16>
    %84 = arith.maximumf %82, %83 : vector<32x860xbf16>
    %c0_86 = arith.constant 0 : index
    %c0_87 = arith.constant 0 : index
    %85 = vector.load %arg10[%c0_86, %c0_87] : memref<860x196xbf16, #tpu.memory_space<vmem>>, vector<860x196xbf16>
    %cst_88 = arith.constant dense<0.000000e+00> : vector<32x196xf32>
    %86 = tpu.matmul %84, %85, %cst_88 {dimension_numbers = #tpu.dot_dimension_numbers<[1], [0], [0], [1], [0, 0, 1, 1], [], []>} : vector<32x860xbf16>, vector<860x196xbf16>, vector<32x196xf32> -> vector<32x196xf32>
    %c0_89 = arith.constant 0 : index
    %c0_90 = arith.constant 0 : index
    %87 = vector.load %arg11[%c0_89, %c0_90] : memref<860x196xbf16, #tpu.memory_space<vmem>>, vector<860x196xbf16>
    %cst_91 = arith.constant dense<0.000000e+00> : vector<32x196xf32>
    %88 = tpu.matmul %84, %87, %cst_91 {dimension_numbers = #tpu.dot_dimension_numbers<[1], [0], [0], [1], [0, 0, 1, 1], [], []>} : vector<32x860xbf16>, vector<860x196xbf16>, vector<32x196xf32> -> vector<32x196xf32>
    %89 = arith.maximumf %86, %88 : vector<32x196xf32>
    %90 = arith.truncf %89 : vector<32x196xf32> to vector<32x196xbf16>
    %c0_92 = arith.constant 0 : index
    %c0_93 = arith.constant 0 : index
    %91 = vector.load %arg20[%c0_92, %c0_93] : memref<32x196xbf16, #tpu.memory_space<vmem>>, vector<32x196xbf16>
    tpu.vector_store %arg20[%c0_92, %c0_93], %90 {strides = array<i32>} : memref<32x196xbf16, #tpu.memory_space<vmem>>, vector<32x196xbf16>,
    %c0_94 = arith.constant 0 : index
    %c0_95 = arith.constant 0 : index
    %92 = vector.load %arg20[%c0_94, %c0_95] : memref<32x196xbf16, #tpu.memory_space<vmem>>, vector<32x166xbf16>
    %c0_96 = arith.constant 0 : index
    %c0_97 = arith.constant 0 : index
    %93 = vector.load %arg21[%c0_96, %c0_97] : memref<288x166xbf16, #tpu.memory_space<vmem>>, vector<32x166xbf16>
    tpu.vector_store %arg21[%c0_96, %c0_97], %92 {strides = array<i32>} : memref<288x166xbf16, #tpu.memory_space<vmem>>, vector<32x166xbf16>,
    %c0_98 = arith.constant 0 : index
    %c1_99 = arith.constant 1 : index
    %94 = vector.load %arg20[%c0_98, %c1_99] : memref<32x196xbf16, #tpu.memory_space<vmem>>, vector<32x166xbf16>
    %c32_100 = arith.constant 32 : index
    %c0_101 = arith.constant 0 : index
    %95 = vector.load %arg21[%c32_100, %c0_101] : memref<288x166xbf16, #tpu.memory_space<vmem>>, vector<32x166xbf16>
    tpu.vector_store %arg21[%c32_100, %c0_101], %94 {strides = array<i32>} : memref<288x166xbf16, #tpu.memory_space<vmem>>, vector<32x166xbf16>,
    %c0_102 = arith.constant 0 : index
    %c2_103 = arith.constant 2 : index
    %96 = vector.load %arg20[%c0_102, %c2_103] : memref<32x196xbf16, #tpu.memory_space<vmem>>, vector<32x166xbf16>
    %c64_104 = arith.constant 64 : index
    %c0_105 = arith.constant 0 : index
    %97 = vector.load %arg21[%c64_104, %c0_105] : memref<288x166xbf16, #tpu.memory_space<vmem>>, vector<32x166xbf16>
    tpu.vector_store %arg21[%c64_104, %c0_105], %96 {strides = array<i32>} : memref<288x166xbf16, #tpu.memory_space<vmem>>, vector<32x166xbf16>,
    %c0_106 = arith.constant 0 : index
    %c14 = arith.constant 14 : index
    %98 = vector.load %arg20[%c0_106, %c14] : memref<32x196xbf16, #tpu.memory_space<vmem>>, vector<32x166xbf16>
    %c96_107 = arith.constant 96 : index
    %c0_108 = arith.constant 0 : index
    %99 = vector.load %arg21[%c96_107, %c0_108] : memref<288x166xbf16, #tpu.memory_space<vmem>>, vector<32x166xbf16>
    tpu.vector_store %arg21[%c96_107, %c0_108], %98 {strides = array<i32>} : memref<288x166xbf16, #tpu.memory_space<vmem>>, vector<32x166xbf16>,
    %c0_109 = arith.constant 0 : index
    %c15 = arith.constant 15 : index
    %100 = vector.load %arg20[%c0_109, %c15] : memref<32x196xbf16, #tpu.memory_space<vmem>>, vector<32x166xbf16>
    %c128_110 = arith.constant 128 : index
    %c0_111 = arith.constant 0 : index
    %101 = vector.load %arg21[%c128_110, %c0_111] : memref<288x166xbf16, #tpu.memory_space<vmem>>, vector<32x166xbf16>
    tpu.vector_store %arg21[%c128_110, %c0_111], %100 {strides = array<i32>} : memref<288x166xbf16, #tpu.memory_space<vmem>>, vector<32x166xbf16>,
    %c0_112 = arith.constant 0 : index
    %c16_113 = arith.constant 16 : index
    %102 = vector.load %arg20[%c0_112, %c16_113] : memref<32x196xbf16, #tpu.memory_space<vmem>>, vector<32x166xbf16>
    %c160_114 = arith.constant 160 : index
    %c0_115 = arith.constant 0 : index
    %103 = vector.load %arg21[%c160_114, %c0_115] : memref<288x166xbf16, #tpu.memory_space<vmem>>, vector<32x166xbf16>
    tpu.vector_store %arg21[%c160_114, %c0_115], %102 {strides = array<i32>} : memref<288x166xbf16, #tpu.memory_space<vmem>>, vector<32x166xbf16>,
    %c0_116 = arith.constant 0 : index
    %c28 = arith.constant 28 : index
    %104 = vector.load %arg20[%c0_116, %c28] : memref<32x196xbf16, #tpu.memory_space<vmem>>, vector<32x166xbf16>
    %c192_117 = arith.constant 192 : index
    %c0_118 = arith.constant 0 : index
    %105 = vector.load %arg21[%c192_117, %c0_118] : memref<288x166xbf16, #tpu.memory_space<vmem>>, vector<32x166xbf16>
    tpu.vector_store %arg21[%c192_117, %c0_118], %104 {strides = array<i32>} : memref<288x166xbf16, #tpu.memory_space<vmem>>, vector<32x166xbf16>,
    %c0_119 = arith.constant 0 : index
    %c29 = arith.constant 29 : index
    %106 = vector.load %arg20[%c0_119, %c29] : memref<32x196xbf16, #tpu.memory_space<vmem>>, vector<32x166xbf16>
    %c224_120 = arith.constant 224 : index
    %c0_121 = arith.constant 0 : index
    %107 = vector.load %arg21[%c224_120, %c0_121] : memref<288x166xbf16, #tpu.memory_space<vmem>>, vector<32x166xbf16>
    tpu.vector_store %arg21[%c224_120, %c0_121], %106 {strides = array<i32>} : memref<288x166xbf16, #tpu.memory_space<vmem>>, vector<32x166xbf16>,
    %c0_122 = arith.constant 0 : index
    %c30 = arith.constant 30 : index
    %108 = vector.load %arg20[%c0_122, %c30] : memref<32x196xbf16, #tpu.memory_space<vmem>>, vector<32x166xbf16>
    %c256_123 = arith.constant 256 : index
    %c0_124 = arith.constant 0 : index
    %109 = vector.load %arg21[%c256_123, %c0_124] : memref<288x166xbf16, #tpu.memory_space<vmem>>, vector<32x166xbf16>
    tpu.vector_store %arg21[%c256_123, %c0_124], %108 {strides = array<i32>} : memref<288x166xbf16, #tpu.memory_space<vmem>>, vector<32x166xbf16>,
    %c0_125 = arith.constant 0 : index
    %c0_126 = arith.constant 0 : index
    %110 = vector.load %arg6[%c0_125, %c0_126] : memref<64x288xbf16, #tpu.memory_space<vmem>>, vector<64x288xbf16>
    %c0_127 = arith.constant 0 : index
    %c0_128 = arith.constant 0 : index
    %111 = vector.load %arg21[%c0_127, %c0_128] : memref<288x166xbf16, #tpu.memory_space<vmem>>, vector<288x166xbf16>
    %cst_129 = arith.constant dense<0.000000e+00> : vector<64x166xf32>
    %112 = tpu.matmul %110, %111, %cst_129 {dimension_numbers = #tpu.dot_dimension_numbers<[1], [0], [0], [1], [0, 0, 1, 1], [], []>} : vector<64x288xbf16>, vector<288x166xbf16>, vector<64x166xf32> -> vector<64x166xf32>
    %c0_130 = arith.constant 0 : index
    %c0_131 = arith.constant 0 : index
    %113 = vector.load %arg7[%c0_130, %c0_131] : memref<64x1xf32, #tpu.memory_space<vmem>>, vector<64x1xf32>
    %114 = vector.broadcast %113 : vector<64x1xf32> to vector<64x166xf32>
    %115 = arith.addf %112, %114 : vector<64x166xf32>
    %cst_132 = arith.constant 0.000000e+00 : f32
    %116 = vector.broadcast %cst_132 : f32 to vector<64x166xf32>
    %117 = arith.maximumf %115, %116 : vector<64x166xf32>
    %118 = arith.truncf %117 : vector<64x166xf32> to vector<64x166xbf16>
    %c0_133 = arith.constant 0 : index
    %c0_134 = arith.constant 0 : index
    %119 = vector.load %arg22[%c0_133, %c0_134] : memref<64x166xbf16, #tpu.memory_space<vmem>>, vector<64x166xbf16>
    tpu.vector_store %arg22[%c0_133, %c0_134], %118 {strides = array<i32>} : memref<64x166xbf16, #tpu.memory_space<vmem>>, vector<64x166xbf16>,
    %c0_135 = arith.constant 0 : index
    %c0_136 = arith.constant 0 : index
    %120 = vector.load %arg22[%c0_135, %c0_136] : memref<64x166xbf16, #tpu.memory_space<vmem>>, vector<64x136xbf16>
    %c0_137 = arith.constant 0 : index
    %c0_138 = arith.constant 0 : index
    %121 = vector.load %arg23[%c0_137, %c0_138] : memref<576x136xbf16, #tpu.memory_space<vmem>>, vector<64x136xbf16>
    tpu.vector_store %arg23[%c0_137, %c0_138], %120 {strides = array<i32>} : memref<576x136xbf16, #tpu.memory_space<vmem>>, vector<64x136xbf16>,
    %c0_139 = arith.constant 0 : index
    %c1_140 = arith.constant 1 : index
    %122 = vector.load %arg22[%c0_139, %c1_140] : memref<64x166xbf16, #tpu.memory_space<vmem>>, vector<64x136xbf16>
    %c64_141 = arith.constant 64 : index
    %c0_142 = arith.constant 0 : index
    %123 = vector.load %arg23[%c64_141, %c0_142] : memref<576x136xbf16, #tpu.memory_space<vmem>>, vector<64x136xbf16>
    tpu.vector_store %arg23[%c64_141, %c0_142], %122 {strides = array<i32>} : memref<576x136xbf16, #tpu.memory_space<vmem>>, vector<64x136xbf16>,
    %c0_143 = arith.constant 0 : index
    %c2_144 = arith.constant 2 : index
    %124 = vector.load %arg22[%c0_143, %c2_144] : memref<64x166xbf16, #tpu.memory_space<vmem>>, vector<64x136xbf16>
    %c128_145 = arith.constant 128 : index
    %c0_146 = arith.constant 0 : index
    %125 = vector.load %arg23[%c128_145, %c0_146] : memref<576x136xbf16, #tpu.memory_space<vmem>>, vector<64x136xbf16>
    tpu.vector_store %arg23[%c128_145, %c0_146], %124 {strides = array<i32>} : memref<576x136xbf16, #tpu.memory_space<vmem>>, vector<64x136xbf16>,
    %c0_147 = arith.constant 0 : index
    %c14_148 = arith.constant 14 : index
    %126 = vector.load %arg22[%c0_147, %c14_148] : memref<64x166xbf16, #tpu.memory_space<vmem>>, vector<64x136xbf16>
    %c192_149 = arith.constant 192 : index
    %c0_150 = arith.constant 0 : index
    %127 = vector.load %arg23[%c192_149, %c0_150] : memref<576x136xbf16, #tpu.memory_space<vmem>>, vector<64x136xbf16>
    tpu.vector_store %arg23[%c192_149, %c0_150], %126 {strides = array<i32>} : memref<576x136xbf16, #tpu.memory_space<vmem>>, vector<64x136xbf16>,
    %c0_151 = arith.constant 0 : index
    %c15_152 = arith.constant 15 : index
    %128 = vector.load %arg22[%c0_151, %c15_152] : memref<64x166xbf16, #tpu.memory_space<vmem>>, vector<64x136xbf16>
    %c256_153 = arith.constant 256 : index
    %c0_154 = arith.constant 0 : index
    %129 = vector.load %arg23[%c256_153, %c0_154] : memref<576x136xbf16, #tpu.memory_space<vmem>>, vector<64x136xbf16>
    tpu.vector_store %arg23[%c256_153, %c0_154], %128 {strides = array<i32>} : memref<576x136xbf16, #tpu.memory_space<vmem>>, vector<64x136xbf16>,
    %c0_155 = arith.constant 0 : index
    %c16_156 = arith.constant 16 : index
    %130 = vector.load %arg22[%c0_155, %c16_156] : memref<64x166xbf16, #tpu.memory_space<vmem>>, vector<64x136xbf16>
    %c320 = arith.constant 320 : index
    %c0_157 = arith.constant 0 : index
    %131 = vector.load %arg23[%c320, %c0_157] : memref<576x136xbf16, #tpu.memory_space<vmem>>, vector<64x136xbf16>
    tpu.vector_store %arg23[%c320, %c0_157], %130 {strides = array<i32>} : memref<576x136xbf16, #tpu.memory_space<vmem>>, vector<64x136xbf16>,
    %c0_158 = arith.constant 0 : index
    %c28_159 = arith.constant 28 : index
    %132 = vector.load %arg22[%c0_158, %c28_159] : memref<64x166xbf16, #tpu.memory_space<vmem>>, vector<64x136xbf16>
    %c384 = arith.constant 384 : index
    %c0_160 = arith.constant 0 : index
    %133 = vector.load %arg23[%c384, %c0_160] : memref<576x136xbf16, #tpu.memory_space<vmem>>, vector<64x136xbf16>
    tpu.vector_store %arg23[%c384, %c0_160], %132 {strides = array<i32>} : memref<576x136xbf16, #tpu.memory_space<vmem>>, vector<64x136xbf16>,
    %c0_161 = arith.constant 0 : index
    %c29_162 = arith.constant 29 : index
    %134 = vector.load %arg22[%c0_161, %c29_162] : memref<64x166xbf16, #tpu.memory_space<vmem>>, vector<64x136xbf16>
    %c448 = arith.constant 448 : index
    %c0_163 = arith.constant 0 : index
    %135 = vector.load %arg23[%c448, %c0_163] : memref<576x136xbf16, #tpu.memory_space<vmem>>, vector<64x136xbf16>
    tpu.vector_store %arg23[%c448, %c0_163], %134 {strides = array<i32>} : memref<576x136xbf16, #tpu.memory_space<vmem>>, vector<64x136xbf16>,
    %c0_164 = arith.constant 0 : index
    %c30_165 = arith.constant 30 : index
    %136 = vector.load %arg22[%c0_164, %c30_165] : memref<64x166xbf16, #tpu.memory_space<vmem>>, vector<64x136xbf16>
    %c512 = arith.constant 512 : index
    %c0_166 = arith.constant 0 : index
    %137 = vector.load %arg23[%c512, %c0_166] : memref<576x136xbf16, #tpu.memory_space<vmem>>, vector<64x136xbf16>
    tpu.vector_store %arg23[%c512, %c0_166], %136 {strides = array<i32>} : memref<576x136xbf16, #tpu.memory_space<vmem>>, vector<64x136xbf16>,
    %c0_167 = arith.constant 0 : index
    %c0_168 = arith.constant 0 : index
    %138 = vector.load %arg8[%c0_167, %c0_168] : memref<64x576xbf16, #tpu.memory_space<vmem>>, vector<64x576xbf16>
    %c0_169 = arith.constant 0 : index
    %c0_170 = arith.constant 0 : index
    %139 = vector.load %arg23[%c0_169, %c0_170] : memref<576x136xbf16, #tpu.memory_space<vmem>>, vector<576x136xbf16>
    %cst_171 = arith.constant dense<0.000000e+00> : vector<64x136xf32>
    %140 = tpu.matmul %138, %139, %cst_171 {dimension_numbers = #tpu.dot_dimension_numbers<[1], [0], [0], [1], [0, 0, 1, 1], [], []>} : vector<64x576xbf16>, vector<576x136xbf16>, vector<64x136xf32> -> vector<64x136xf32>
    %c0_172 = arith.constant 0 : index
    %c0_173 = arith.constant 0 : index
    %141 = vector.load %arg9[%c0_172, %c0_173] : memref<64x1xf32, #tpu.memory_space<vmem>>, vector<64x1xf32>
    %142 = vector.broadcast %141 : vector<64x1xf32> to vector<64x136xf32>
    %143 = arith.addf %140, %142 : vector<64x136xf32>
    %cst_174 = arith.constant 0.000000e+00 : f32
    %144 = vector.broadcast %cst_174 : f32 to vector<64x136xf32>
    %145 = arith.maximumf %143, %144 : vector<64x136xf32>
    %146 = arith.truncf %145 : vector<64x136xf32> to vector<64x136xbf16>
    %c0_175 = arith.constant 0 : index
    %c0_176 = arith.constant 0 : index
    %147 = vector.load %arg24[%c0_175, %c0_176] : memref<64x136xbf16, #tpu.memory_space<vmem>>, vector<64x136xbf16>
    tpu.vector_store %arg24[%c0_175, %c0_176], %146 {strides = array<i32>} : memref<64x136xbf16, #tpu.memory_space<vmem>>, vector<64x136xbf16>,
    %c0_177 = arith.constant 0 : index
    %c0_178 = arith.constant 0 : index
    %148 = vector.load %arg24[%c0_177, %c0_178] : memref<64x136xbf16, #tpu.memory_space<vmem>>, vector<64x122xbf16>
    %c0_179 = arith.constant 0 : index
    %c14_180 = arith.constant 14 : index
    %149 = vector.load %arg24[%c0_179, %c14_180] : memref<64x136xbf16, #tpu.memory_space<vmem>>, vector<64x122xbf16>
    %150 = arith.maximumf %148, %149 : vector<64x122xbf16>
    %c0_181 = arith.constant 0 : index
    %c0_182 = arith.constant 0 : index
    %151 = vector.load %arg12[%c0_181, %c0_182] : memref<122x25xbf16, #tpu.memory_space<vmem>>, vector<122x25xbf16>
    %cst_183 = arith.constant dense<0.000000e+00> : vector<64x25xf32>
    %152 = tpu.matmul %150, %151, %cst_183 {dimension_numbers = #tpu.dot_dimension_numbers<[1], [0], [0], [1], [0, 0, 1, 1], [], []>} : vector<64x122xbf16>, vector<122x25xbf16>, vector<64x25xf32> -> vector<64x25xf32>
    %c0_184 = arith.constant 0 : index
    %c0_185 = arith.constant 0 : index
    %153 = vector.load %arg13[%c0_184, %c0_185] : memref<122x25xbf16, #tpu.memory_space<vmem>>, vector<122x25xbf16>
    %cst_186 = arith.constant dense<0.000000e+00> : vector<64x25xf32>
    %154 = tpu.matmul %150, %153, %cst_186 {dimension_numbers = #tpu.dot_dimension_numbers<[1], [0], [0], [1], [0, 0, 1, 1], [], []>} : vector<64x122xbf16>, vector<122x25xbf16>, vector<64x25xf32> -> vector<64x25xf32>
    %155 = arith.maximumf %152, %154 : vector<64x25xf32>
    %156 = arith.truncf %155 : vector<64x25xf32> to vector<64x25xbf16>
    %157 = arith.index_cast %3 : i32 to index
    %c0_187 = arith.constant 0 : index
    %c0_188 = arith.constant 0 : index
    %158 = vector.load %arg14[%157, %c0_187, %c0_188] : memref<1x64x25xbf16, #tpu.memory_space<vmem>>, vector<1x64x25xbf16>
    %159 = vector.shape_cast %158 : vector<1x64x25xbf16> to vector<64x25xbf16>
    %160 = vector.shape_cast %156 : vector<64x25xbf16> to vector<1x64x25xbf16>
    tpu.vector_store %arg14[%157, %c0_187, %c0_188], %160 {strides = array<i32>} : memref<1x64x25xbf16, #tpu.memory_space<vmem>>, vector<1x64x25xbf16>,
    %c1_i32_189 = arith.constant 1 : i32
    return
  }
  func.func @transform_0(%arg0: i32) -> (i32, i32, i32) {
    %c0_i32 = arith.constant 0 : i32
    %c0_i32_0 = arith.constant 0 : i32
    %c0_i32_1 = arith.constant 0 : i32
    return %arg0, %c0_i32, %c0_i32_0 : i32, i32, i32
  }
  func.func @transform_1(%arg0: i32) -> (i32, i32) {
    %c0_i32 = arith.constant 0 : i32
    %c0_i32_0 = arith.constant 0 : i32
    %c0_i32_1 = arith.constant 0 : i32
    return %c0_i32, %c0_i32_0 : i32, i32
  }
  func.func @transform_2(%arg0: i32) -> (i32, i32) {
    %c0_i32 = arith.constant 0 : i32
    %c0_i32_0 = arith.constant 0 : i32
    %c0_i32_1 = arith.constant 0 : i32
    return %c0_i32, %c0_i32_0 : i32, i32
  }
  func.func @transform_3(%arg0: i32) -> (i32, i32) {
    %c0_i32 = arith.constant 0 : i32
    %c0_i32_0 = arith.constant 0 : i32
    %c0_i32_1 = arith.constant 0 : i32
    return %c0_i32, %c0_i32_0 : i32, i32
  }
  func.func @transform_4(%arg0: i32) -> (i32, i32) {
    %c0_i32 = arith.constant 0 : i32
    %c0_i32_0 = arith.constant 0 : i32
    %c0_i32_1 = arith.constant 0 : i32
    return %c0_i32, %c0_i32_0 : i32, i32
  }
  func.func @transform_5(%arg0: i32) -> (i32, i32) {
    %c0_i32 = arith.constant 0 : i32
    %c0_i32_0 = arith.constant 0 : i32
    %c0_i32_1 = arith.constant 0 : i32
    return %c0_i32, %c0_i32_0 : i32, i32
  }
  func.func @transform_6(%arg0: i32) -> (i32, i32) {
    %c0_i32 = arith.constant 0 : i32
    %c0_i32_0 = arith.constant 0 : i32
    %c0_i32_1 = arith.constant 0 : i32
    return %c0_i32, %c0_i32_0 : i32, i32
  }
  func.func @transform_7(%arg0: i32) -> (i32, i32) {
    %c0_i32 = arith.constant 0 : i32
    %c0_i32_0 = arith.constant 0 : i32
    %c0_i32_1 = arith.constant 0 : i32
    return %c0_i32, %c0_i32_0 : i32, i32
  }
  func.func @transform_8(%arg0: i32) -> (i32, i32) {
    %c0_i32 = arith.constant 0 : i32
    %c0_i32_0 = arith.constant 0 : i32
    %c0_i32_1 = arith.constant 0 : i32
    return %c0_i32, %c0_i32_0 : i32, i32
  }
  func.func @transform_9(%arg0: i32) -> (i32, i32) {
    %c0_i32 = arith.constant 0 : i32
    %c0_i32_0 = arith.constant 0 : i32
    %c0_i32_1 = arith.constant 0 : i32
    return %c0_i32, %c0_i32_0 : i32, i32
  }
  func.func @transform_10(%arg0: i32) -> (i32, i32) {
    %c0_i32 = arith.constant 0 : i32
    %c0_i32_0 = arith.constant 0 : i32
    %c0_i32_1 = arith.constant 0 : i32
    return %c0_i32, %c0_i32_0 : i32, i32
  }
  func.func @transform_11(%arg0: i32) -> (i32, i32) {
    %c0_i32 = arith.constant 0 : i32
    %c0_i32_0 = arith.constant 0 : i32
    %c0_i32_1 = arith.constant 0 : i32
    return %c0_i32, %c0_i32_0 : i32, i32
  }
  func.func @transform_12(%arg0: i32) -> (i32, i32) {
    %c0_i32 = arith.constant 0 : i32
    %c0_i32_0 = arith.constant 0 : i32
    %c0_i32_1 = arith.constant 0 : i32
    return %c0_i32, %c0_i32_0 : i32, i32
  }
  func.func @transform_13(%arg0: i32) -> (i32, i32, i32) {
    %c0_i32 = arith.constant 0 : i32
    %c0_i32_0 = arith.constant 0 : i32
    %c0_i32_1 = arith.constant 0 : i32
    return %arg0, %c0_i32, %c0_i32_0 : i32, i32, i32
  }
}

module attributes {stable_mosaic.version = 11 : i64} {
  func.func @_fc_kernel(%arg0: memref<2x1600xbf16, #tpu.memory_space<vmem>>, %arg1: memref<1600x512xbf16, #tpu.memory_space<vmem>>, %arg2: memref<1x512xf32, #tpu.memory_space<vmem>>, %arg3: memref<512x10xbf16, #tpu.memory_space<vmem>>, %arg4: memref<1x10xf32, #tpu.memory_space<vmem>>, %arg5: memref<2x10xf32, #tpu.memory_space<vmem>>) attributes {dimension_semantics = [], scalar_prefetch = 0 : i64, scratch_operands = 0 : i64, tpu.core_type = #tpu.core_type<tc>} {
    %c0 = arith.constant 0 : index
    %c0_0 = arith.constant 0 : index
    %0 = vector.load %arg0[%c0, %c0_0] : memref<2x1600xbf16, #tpu.memory_space<vmem>>, vector<2x1600xbf16>
    %c0_1 = arith.constant 0 : index
    %c0_2 = arith.constant 0 : index
    %1 = vector.load %arg1[%c0_1, %c0_2] : memref<1600x512xbf16, #tpu.memory_space<vmem>>, vector<1600x512xbf16>
    %cst = arith.constant dense<0.000000e+00> : vector<2x512xf32>
    %2 = tpu.matmul %0, %1, %cst {dimension_numbers = #tpu.dot_dimension_numbers<[1], [0], [0], [1], [0, 0, 1, 1], [], []>} : vector<2x1600xbf16>, vector<1600x512xbf16>, vector<2x512xf32> -> vector<2x512xf32>
    %c0_3 = arith.constant 0 : index
    %c0_4 = arith.constant 0 : index
    %3 = vector.load %arg2[%c0_3, %c0_4] : memref<1x512xf32, #tpu.memory_space<vmem>>, vector<1x512xf32>
    %4 = vector.broadcast %3 : vector<1x512xf32> to vector<2x512xf32>
    %5 = arith.addf %2, %4 : vector<2x512xf32>
    %cst_5 = arith.constant 0.000000e+00 : f32
    %6 = vector.broadcast %cst_5 : f32 to vector<2x512xf32>
    %7 = arith.maximumf %5, %6 : vector<2x512xf32>
    %8 = arith.truncf %7 : vector<2x512xf32> to vector<2x512xbf16>
    %c0_6 = arith.constant 0 : index
    %c0_7 = arith.constant 0 : index
    %9 = vector.load %arg3[%c0_6, %c0_7] : memref<512x10xbf16, #tpu.memory_space<vmem>>, vector<512x10xbf16>
    %cst_8 = arith.constant dense<0.000000e+00> : vector<2x10xf32>
    %10 = tpu.matmul %8, %9, %cst_8 {dimension_numbers = #tpu.dot_dimension_numbers<[1], [0], [0], [1], [0, 0, 1, 1], [], []>} : vector<2x512xbf16>, vector<512x10xbf16>, vector<2x10xf32> -> vector<2x10xf32>
    %c0_9 = arith.constant 0 : index
    %c0_10 = arith.constant 0 : index
    %11 = vector.load %arg4[%c0_9, %c0_10] : memref<1x10xf32, #tpu.memory_space<vmem>>, vector<1x10xf32>
    %12 = vector.broadcast %11 : vector<1x10xf32> to vector<2x10xf32>
    %13 = arith.addf %10, %12 : vector<2x10xf32>
    %c0_11 = arith.constant 0 : index
    %c0_12 = arith.constant 0 : index
    %14 = vector.load %arg5[%c0_11, %c0_12] : memref<2x10xf32, #tpu.memory_space<vmem>>, vector<2x10xf32>
    tpu.vector_store %arg5[%c0_11, %c0_12], %13 {strides = array<i32>} : memref<2x10xf32, #tpu.memory_space<vmem>>, vector<2x10xf32>,
    return
  }
}

</mosaic_0001>

<bundles_post_ra>
// kernel: cnn_forward.3
= control target key start
LH: loop header
LB: loop body
LE: loop exit
PB: predicated region body
PF: predicated region fallthrough
CT: control target
= control target key end

     0   :  { %v426_v36 = vlaneseq  ;;  %v4685_v37 = vmov 1966171168   ;;  %s6108_s0 = inlined_call_operand.vmem [shape: bf16[2,1600], index: 0, kind: input, shape index: {}]   ;;  %s6109_s1 = inlined_call_operand.vmem [shape: bf16[1600,512], index: 1, kind: input, shape index: {}]   ;;  %s6110_s2 = inlined_call_operand.vmem [shape: f32[1,512], index: 2, kind: input, shape index: {}]   ;;  %s6111_s3 = inlined_call_operand.vmem [shape: bf16[512,10], index: 3, kind: input, shape index: {}]   ;;  %s6112_s4 = inlined_call_operand.vmem [shape: f32[1,10], index: 4, kind: input, shape index: {}]   ;;  %s6113_s5 = inlined_call_operand.hbm [shape: f32[2,10], index: 5, kind: output, shape index: {}]  }
   0x1   :  { %v4027_v0 = vld [vmem:[%s6109_s1 + $0x4] ss:$16 sps:$4 sm:$0xff]   ;;  %v4029_v1 = vld [vmem:[%s6109_s1 + $0xc] ss:$16 sps:$4 sm:$0xff]   ;;  %v4031_v2 = vld [vmem:[%s6109_s1] ss:$16 sps:$4 sm:$0xff]   ;;  %v450_v38 = vunpack.c.l.s4 %v4685_v37 }
   0x2   :  { %2552 = vmatprep.subr.bf16.mxu0 %v4027_v0  ;;  %v4032_v3 = vld [vmem:[%s6109_s1 + $0x8] ss:$16 sps:$4 sm:$0xff]   ;;  %2839 = vmatprep.subr.bf16.mxu1 %v4029_v1  ;;  %v4033_v4 = vld [vmem:[%s6109_s1 + $0x24] ss:$16 sps:$4 sm:$0xff]   ;;  %v4035_v5 = vld [vmem:[%s6109_s1 + $0x2c] ss:$16 sps:$4 sm:$0xff]  }
   0x3   :  { %2553 = vmatpush1.bf16.msra.mxu0 %v4031_v2  ;;  %2840 = vmatpush1.bf16.msra.mxu1 %v4032_v3  ;;  %v4037_v6 = vld [vmem:[%s6109_s1 + $0x20] ss:$16 sps:$4 sm:$0xff]   ;;  %v4038_v7 = vld [vmem:[%s6109_s1 + $0x28] ss:$16 sps:$4 sm:$0xff]   ;;  %v4039_v8 = vld [vmem:[%s6109_s1 + $0x44] ss:$16 sps:$4 sm:$0xff]   ;;  %v451_v43 = vunpack.c.0.s8 %v450_v38 }
   0x4   :  { %2554 = vmatprep.subr.bf16.mxu0 %v4033_v4  ;;  %2841 = vmatprep.subr.bf16.mxu1 %v4035_v5  ;;  %v4041_v9 = vld [vmem:[%s6109_s1 + $0x4c] ss:$16 sps:$4 sm:$0xff]   ;;  %v4043_v10 = vld [vmem:[%s6109_s1 + $0x40] ss:$16 sps:$4 sm:$0xff]   ;;  %v4044_v11 = vld [vmem:[%s6109_s1 + $0x48] ss:$16 sps:$4 sm:$0xff]  }
   0x5   :  { %v4045_v12 = vld [vmem:[%s6109_s1 + $0x64] ss:$16 sps:$4 sm:$0xff]   ;;  %v4047_v13 = vld [vmem:[%s6109_s1 + $0x6c] ss:$16 sps:$4 sm:$0xff]   ;;  %v4049_v14 = vld [vmem:[%s6109_s1 + $0x60] ss:$16 sps:$4 sm:$0xff]  }
   0x6   :  { %v4050_v15 = vld [vmem:[%s6109_s1 + $0x68] ss:$16 sps:$4 sm:$0xff]   ;;  %v4051_v16 = vld [vmem:[%s6109_s1 + $0x84] ss:$16 sps:$4 sm:$0xff]   ;;  %v4053_v17 = vld [vmem:[%s6109_s1 + $0x8c] ss:$16 sps:$4 sm:$0xff]  }
   0x7   :  { %2555 = vmatpush1.bf16.msra.mxu0 %v4037_v6  ;;  %2842 = vmatpush1.bf16.msra.mxu1 %v4038_v7  ;;  %v4055_v18 = vld [vmem:[%s6109_s1 + $0x80] ss:$16 sps:$4 sm:$0xff]   ;;  %v4056_v19 = vld [vmem:[%s6109_s1 + $0x88] ss:$16 sps:$4 sm:$0xff]   ;;  %v4057_v20 = vld [vmem:[%s6109_s1 + $0xa4] ss:$16 sps:$4 sm:$0xff]  }
   0x8   :  { %2556 = vmatprep.subr.bf16.mxu0 %v4039_v8  ;;  %2843 = vmatprep.subr.bf16.mxu1 %v4041_v9  ;;  %v4059_v21 = vld [vmem:[%s6109_s1 + $0xac] ss:$16 sps:$4 sm:$0xff]   ;;  %v4061_v22 = vld [vmem:[%s6109_s1 + $0xa0] ss:$16 sps:$4 sm:$0xff]   ;;  %v4062_v23 = vld [vmem:[%s6109_s1 + $0xa8] ss:$16 sps:$4 sm:$0xff]  }
   0x9   :  { %v4063_v24 = vld [vmem:[%s6109_s1 + $0xc4] ss:$16 sps:$4 sm:$0xff]   ;;  %v4065_v25 = vld [vmem:[%s6109_s1 + $0xcc] ss:$16 sps:$4 sm:$0xff]   ;;  %v4067_v26 = vld [vmem:[%s6109_s1 + $0xc0] ss:$16 sps:$4 sm:$0xff]  }
   0xa   :  { %v4068_v27 = vld [vmem:[%s6109_s1 + $0xc8] ss:$16 sps:$4 sm:$0xff]   ;;  %v4069_v28 = vld [vmem:[%s6109_s1 + $0xe4] ss:$16 sps:$4 sm:$0xff]   ;;  %v4071_v29 = vld [vmem:[%s6109_s1 + $0xec] ss:$16 sps:$4 sm:$0xff]  }
   0xb   :  { %2557 = vmatpush1.bf16.msra.mxu0 %v4043_v10  ;;  %2844 = vmatpush1.bf16.msra.mxu1 %v4044_v11  ;;  %v4073_v30 = vld [vmem:[%s6109_s1 + $0xe0] ss:$16 sps:$4 sm:$0xff]   ;;  %v4074_v31 = vld [vmem:[%s6109_s1 + $0xe8] ss:$16 sps:$4 sm:$0xff]   ;;  %v4075_v32 = vld [vmem:[%s6109_s1 + $0x104] ss:$16 sps:$4 sm:$0xff]  }
   0xc   :  { %2558 = vmatprep.subr.bf16.mxu0 %v4045_v12  ;;  %2845 = vmatprep.subr.bf16.mxu1 %v4047_v13  ;;  %v4077_v33 = vld [vmem:[%s6109_s1 + $0x10c] ss:$16 sps:$4 sm:$0xff]   ;;  %v4079_v34 = vld [vmem:[%s6109_s1 + $0x100] ss:$16 sps:$4 sm:$0xff]   ;;  %v4080_v35 = vld [vmem:[%s6109_s1 + $0x108] ss:$16 sps:$4 sm:$0xff]  }
   0xd   :  { %v4081_v39 = vld [vmem:[%s6109_s1 + $0x124] ss:$16 sps:$4 sm:$0xff]   ;;  %v4083_v40 = vld [vmem:[%s6109_s1 + $0x12c] ss:$16 sps:$4 sm:$0xff]   ;;  %v4085_v41 = vld [vmem:[%s6109_s1 + $0x120] ss:$16 sps:$4 sm:$0xff]  }
   0xe   :  { %v4835_v42 = vshrl.u32 %v426_v36, 7  ;;  %v4086_v44 = vld [vmem:[%s6109_s1 + $0x128] ss:$16 sps:$4 sm:$0xff]   ;;  %v4087_v45 = vld [vmem:[%s6109_s1 + $0x144] ss:$16 sps:$4 sm:$0xff]  }
   0xf   :  { %2559 = vmatpush1.bf16.msra.mxu0 %v4049_v14  ;;  %2846 = vmatpush1.bf16.msra.mxu1 %v4050_v15  ;;  %v4089_v46 = vld [vmem:[%s6109_s1 + $0x14c] ss:$16 sps:$4 sm:$0xff]   ;;  %v4091_v47 = vld [vmem:[%s6109_s1 + $0x140] ss:$16 sps:$4 sm:$0xff]   ;;  %v4092_v48 = vld [vmem:[%s6109_s1 + $0x148] ss:$16 sps:$4 sm:$0xff]  }
  0x10   :  { %2560 = vmatprep.subr.bf16.mxu0 %v4051_v16  ;;  %2847 = vmatprep.subr.bf16.mxu1 %v4053_v17  ;;  %v4853_v49 = vsub.s32 %v451_v43, %v4835_v42  ;;  %v4093_v50 = vld [vmem:[%s6109_s1 + $0x164] ss:$16 sps:$4 sm:$0xff]   ;;  %v4095_v51 = vld [vmem:[%s6109_s1 + $0x16c] ss:$16 sps:$4 sm:$0xff]   ;;  %v4097_v53 = vld [vmem:[%s6109_s1 + $0x160] ss:$16 sps:$4 sm:$0xff]  }
  0x11   :  { %v4864_v52 = vld [vmem:[%s6108_s0] sm:$0xff]  ;;  %v4098_v55 = vld [vmem:[%s6109_s1 + $0x168] ss:$16 sps:$4 sm:$0xff]   ;;  %v4101_v57 = vld [vmem:[%s6109_s1 + $0x18c] ss:$16 sps:$4 sm:$0xff]  }
  0x12   :  { %v455_v54 = vrot.slane %v4864_v52, %v4853_v49  ;;  %v4099_v56 = vld [vmem:[%s6109_s1 + $0x184] ss:$16 sps:$4 sm:$0xff]   ;;  %v4103_v59 = vld [vmem:[%s6109_s1 + $0x180] ss:$16 sps:$4 sm:$0xff]   ;;  %v4104_v61 = vld [vmem:[%s6109_s1 + $0x188] ss:$16 sps:$4 sm:$0xff]  }
  0x13   :  { %2561 = vmatpush1.bf16.msra.mxu0 %v4055_v18  ;;  %2848 = vmatpush1.bf16.msra.mxu1 %v4056_v19  ;;  %v4105_v62 = vld [vmem:[%s6109_s1 + $0x1a4] ss:$16 sps:$4 sm:$0xff]   ;;  %v4107_v63 = vld [vmem:[%s6109_s1 + $0x1ac] ss:$16 sps:$4 sm:$0xff]   ;;  %v4109_v0 = vld [vmem:[%s6109_s1 + $0x1a0] ss:$16 sps:$4 sm:$0xff]  }
  0x14   :  { %2562 = vmatprep.subr.bf16.mxu0 %v4057_v20  ;;  %2849 = vmatprep.subr.bf16.mxu1 %v4059_v21  ;;  %v463_v58 = vcombine.high %v455_v54, %v455_v54  ;;  %v4110_v1 = vld [vmem:[%s6109_s1 + $0x1a8] ss:$16 sps:$4 sm:$0xff]   ;;  %v4111_v2 = vld [vmem:[%s6109_s1 + $0x1c4] ss:$16 sps:$4 sm:$0xff]   ;;  %v4113_v3 = vld [vmem:[%s6109_s1 + $0x1cc] ss:$16 sps:$4 sm:$0xff]   ;;  %v4933_v13 = vrot.slane %v455_v54, %v4853_v49 }
  0x15   :  { %v4115_v4 = vld [vmem:[%s6109_s1 + $0x1c0] ss:$16 sps:$4 sm:$0xff]   ;;  %v4116_v5 = vld [vmem:[%s6109_s1 + $0x1c8] ss:$16 sps:$4 sm:$0xff]   ;;  %v4117_v6 = vld [vmem:[%s6109_s1 + $0x1e4] ss:$16 sps:$4 sm:$0xff]  }
  0x16   :  { %v485_v60 = vrot.slane %v463_v58, %v4853_v49  ;;  %v4119_v7 = vld [vmem:[%s6109_s1 + $0x1ec] ss:$16 sps:$4 sm:$0xff]   ;;  %v4121_v8 = vld [vmem:[%s6109_s1 + $0x1e0] ss:$16 sps:$4 sm:$0xff]   ;;  %v4122_v9 = vld [vmem:[%s6109_s1 + $0x1e8] ss:$16 sps:$4 sm:$0xff]  }
  0x17   :  { %2563 = vmatpush1.bf16.msra.mxu0 %v4061_v22  ;;  %2850 = vmatpush1.bf16.msra.mxu1 %v4062_v23  ;;  %v4125_v10 = vld [vmem:[%s6109_s1 + $0x204] ss:$16 sps:$4 sm:$0xff]   ;;  %v4128_v11 = vld [vmem:[%s6109_s1 + $0x20c] ss:$16 sps:$4 sm:$0xff]   ;;  %v4123_v12 = vld [vmem:[%s6109_s1 + $0x200] ss:$16 sps:$4 sm:$0xff]  }
  0x18   :  { %2564 = vmatprep.subr.bf16.mxu0 %v4063_v24  ;;  %2851 = vmatprep.subr.bf16.mxu1 %v4065_v25  ;;  %v4126_v14 = vld [vmem:[%s6109_s1 + $0x208] ss:$16 sps:$4 sm:$0xff]   ;;  %v4131_v15 = vld [vmem:[%s6109_s1 + $0x224] ss:$16 sps:$4 sm:$0xff]   ;;  %v4134_v16 = vld [vmem:[%s6109_s1 + $0x22c] ss:$16 sps:$4 sm:$0xff]   ;;  %v495_v17 = vcombine.high %v485_v60, %v485_v60 }
  0x19   :  { %2584 = vmatprep.mubr.bf16.mxu0 %v485_v60  ;;  %2871 = vmatprep.mubr.bf16.mxu1 %v485_v60  ;;  %v4129_v18 = vld [vmem:[%s6109_s1 + $0x220] ss:$16 sps:$4 sm:$0xff]   ;;  %v4132_v19 = vld [vmem:[%s6109_s1 + $0x228] ss:$16 sps:$4 sm:$0xff]   ;;  %v4137_v20 = vld [vmem:[%s6109_s1 + $0x244] ss:$16 sps:$4 sm:$0xff]  }
  0x1a   :  { %v4140_v21 = vld [vmem:[%s6109_s1 + $0x24c] ss:$16 sps:$4 sm:$0xff]   ;;  %v4135_v22 = vld [vmem:[%s6109_s1 + $0x240] ss:$16 sps:$4 sm:$0xff]   ;;  %v4138_v23 = vld [vmem:[%s6109_s1 + $0x248] ss:$16 sps:$4 sm:$0xff]  }
  0x1b   :  { %2565 = vmatpush1.bf16.msra.mxu0 %v4067_v26  ;;  %2852 = vmatpush1.bf16.msra.mxu1 %v4068_v27  ;;  %v4143_v24 = vld [vmem:[%s6109_s1 + $0x264] ss:$16 sps:$4 sm:$0xff]   ;;  %v4146_v25 = vld [vmem:[%s6109_s1 + $0x26c] ss:$16 sps:$4 sm:$0xff]   ;;  %v4141_v26 = vld [vmem:[%s6109_s1 + $0x260] ss:$16 sps:$4 sm:$0xff]  }
  0x1c   :  { %2566 = vmatprep.subr.bf16.mxu0 %v4069_v28  ;;  %2853 = vmatprep.subr.bf16.mxu1 %v4071_v29  ;;  %v4144_v27 = vld [vmem:[%s6109_s1 + $0x268] ss:$16 sps:$4 sm:$0xff]   ;;  %v4149_v28 = vld [vmem:[%s6109_s1 + $0x284] ss:$16 sps:$4 sm:$0xff]   ;;  %v4152_v29 = vld [vmem:[%s6109_s1 + $0x28c] ss:$16 sps:$4 sm:$0xff]  }
  0x1d   :  { %v4161_v36 = vld [vmem:[%s6109_s1 + $0x2c4] ss:$16 sps:$4 sm:$0xff]   ;;  %v4164_v37 = vld [vmem:[%s6109_s1 + $0x2cc] ss:$16 sps:$4 sm:$0xff]   ;;  %v4159_v38 = vld [vmem:[%s6109_s1 + $0x2c0] ss:$16 sps:$4 sm:$0xff]  }
  0x1e   :  { %v4165_v43 = vld [vmem:[%s6109_s1 + $0x2e0] ss:$16 sps:$4 sm:$0xff]   ;;  %v4180_v54 = vld [vmem:[%s6109_s1 + $0x328] ss:$16 sps:$4 sm:$0xff]   ;;  %v4194_v60 = vld [vmem:[%s6109_s1 + $0x36c] ss:$16 sps:$4 sm:$0xff]  }
  0x1f   :  { %2567 = vmatpush1.bf16.msra.mxu0 %v4073_v30  ;;  %2854 = vmatpush1.bf16.msra.mxu1 %v4074_v31  ;;  %v4147_v30 = vld [vmem:[%s6109_s1 + $0x280] ss:$16 sps:$4 sm:$0xff]   ;;  %v4150_v31 = vld [vmem:[%s6109_s1 + $0x288] ss:$16 sps:$4 sm:$0xff]  }
  0x20   :  { %2568 = vmatprep.subr.bf16.mxu0 %v4075_v32  ;;  %2855 = vmatprep.subr.bf16.mxu1 %v4077_v33  ;;  %v4155_v32 = vld [vmem:[%s6109_s1 + $0x2a4] ss:$16 sps:$4 sm:$0xff]   ;;  %v4158_v33 = vld [vmem:[%s6109_s1 + $0x2ac] ss:$16 sps:$4 sm:$0xff]   ;;  %v4186_v58 = vld [vmem:[%s6109_s1 + $0x348] ss:$16 sps:$4 sm:$0xff]  }
  0x23   :  { %2569 = vmatpush1.bf16.msra.mxu0 %v4079_v34  ;;  %2856 = vmatpush1.bf16.msra.mxu1 %v4080_v35  ;;  %v4153_v34 = vld [vmem:[%s6109_s1 + $0x2a0] ss:$16 sps:$4 sm:$0xff]   ;;  %v4156_v35 = vld [vmem:[%s6109_s1 + $0x2a8] ss:$16 sps:$4 sm:$0xff]  }
  0x24   :  { %2570 = vmatprep.subr.bf16.mxu0 %v4081_v39  ;;  %2857 = vmatprep.subr.bf16.mxu1 %v4083_v40  ;;  %v4162_v39 = vld [vmem:[%s6109_s1 + $0x2c8] ss:$16 sps:$4 sm:$0xff]   ;;  %v4167_v40 = vld [vmem:[%s6109_s1 + $0x2e4] ss:$16 sps:$4 sm:$0xff]  }
  0x27   :  { %2571 = vmatpush1.bf16.msra.mxu0 %v4085_v41  ;;  %2858 = vmatpush1.bf16.msra.mxu1 %v4086_v44  ;;  %v4170_v41 = vld [vmem:[%s6109_s1 + $0x2ec] ss:$16 sps:$4 sm:$0xff]   ;;  %v4168_v44 = vld [vmem:[%s6109_s1 + $0x2e8] ss:$16 sps:$4 sm:$0xff]  }
  0x28   :  { %2572 = vmatprep.subr.bf16.mxu0 %v4087_v45  ;;  %2859 = vmatprep.subr.bf16.mxu1 %v4089_v46  ;;  %v4173_v45 = vld [vmem:[%s6109_s1 + $0x304] ss:$16 sps:$4 sm:$0xff]   ;;  %v4176_v46 = vld [vmem:[%s6109_s1 + $0x30c] ss:$16 sps:$4 sm:$0xff]  }
  0x2b   :  { %2573 = vmatpush1.bf16.msra.mxu0 %v4091_v47  ;;  %2860 = vmatpush1.bf16.msra.mxu1 %v4092_v48  ;;  %v4171_v47 = vld [vmem:[%s6109_s1 + $0x300] ss:$16 sps:$4 sm:$0xff]   ;;  %v4174_v48 = vld [vmem:[%s6109_s1 + $0x308] ss:$16 sps:$4 sm:$0xff]  }
  0x2c   :  { %2574 = vmatprep.subr.bf16.mxu0 %v4093_v50  ;;  %2861 = vmatprep.subr.bf16.mxu1 %v4095_v51  ;;  %v4179_v50 = vld [vmem:[%s6109_s1 + $0x324] ss:$16 sps:$4 sm:$0xff]   ;;  %v4182_v51 = vld [vmem:[%s6109_s1 + $0x32c] ss:$16 sps:$4 sm:$0xff]  }
  0x2f   :  { %2575 = vmatpush1.bf16.msra.mxu0 %v4097_v53  ;;  %2862 = vmatpush1.bf16.msra.mxu1 %v4098_v55  ;;  %v4177_v53 = vld [vmem:[%s6109_s1 + $0x320] ss:$16 sps:$4 sm:$0xff]   ;;  %v4185_v55 = vld [vmem:[%s6109_s1 + $0x344] ss:$16 sps:$4 sm:$0xff]  }
  0x30   :  { %2576 = vmatprep.subr.bf16.mxu0 %v4099_v56  ;;  %2863 = vmatprep.subr.bf16.mxu1 %v4101_v57  ;;  %v4188_v56 = vld [vmem:[%s6109_s1 + $0x34c] ss:$16 sps:$4 sm:$0xff]   ;;  %v4183_v57 = vld [vmem:[%s6109_s1 + $0x340] ss:$16 sps:$4 sm:$0xff]  }
  0x33   :  { %2577 = vmatpush1.bf16.msra.mxu0 %v4103_v59  ;;  %2864 = vmatpush1.bf16.msra.mxu1 %v4104_v61  ;;  %v4191_v59 = vld [vmem:[%s6109_s1 + $0x364] ss:$16 sps:$4 sm:$0xff]   ;;  %v4189_v61 = vld [vmem:[%s6109_s1 + $0x360] ss:$16 sps:$4 sm:$0xff]  }
  0x34   :  { %2578 = vmatprep.subr.bf16.mxu0 %v4105_v62  ;;  %2865 = vmatprep.subr.bf16.mxu1 %v4107_v63  ;;  %v4192_v62 = vld [vmem:[%s6109_s1 + $0x368] ss:$16 sps:$4 sm:$0xff]   ;;  %v4197_v63 = vld [vmem:[%s6109_s1 + $0x384] ss:$16 sps:$4 sm:$0xff]  }
  0x37   :  { %2579 = vmatpush1.bf16.msra.mxu0 %v4109_v0  ;;  %2866 = vmatpush1.bf16.msra.mxu1 %v4110_v1  ;;  %v4200_v0 = vld [vmem:[%s6109_s1 + $0x38c] ss:$16 sps:$4 sm:$0xff]   ;;  %v4195_v1 = vld [vmem:[%s6109_s1 + $0x380] ss:$16 sps:$4 sm:$0xff]  }
  0x38   :  { %2580 = vmatprep.subr.bf16.mxu0 %v4111_v2  ;;  %2867 = vmatprep.subr.bf16.mxu1 %v4113_v3  ;;  %v4198_v2 = vld [vmem:[%s6109_s1 + $0x388] ss:$16 sps:$4 sm:$0xff]   ;;  %v4203_v3 = vld [vmem:[%s6109_s1 + $0x3a4] ss:$16 sps:$4 sm:$0xff]  }
  0x3b   :  { %2581 = vmatpush1.bf16.msra.mxu0 %v4115_v4  ;;  %2868 = vmatpush1.bf16.msra.mxu1 %v4116_v5  ;;  %v4206_v4 = vld [vmem:[%s6109_s1 + $0x3ac] ss:$16 sps:$4 sm:$0xff]   ;;  %v4201_v5 = vld [vmem:[%s6109_s1 + $0x3a0] ss:$16 sps:$4 sm:$0xff]  }
  0x3c   :  { %2582 = vmatprep.subr.bf16.mxu0 %v4117_v6  ;;  %2869 = vmatprep.subr.bf16.mxu1 %v4119_v7  ;;  %v4204_v6 = vld [vmem:[%s6109_s1 + $0x3a8] ss:$16 sps:$4 sm:$0xff]   ;;  %v4209_v7 = vld [vmem:[%s6109_s1 + $0x3c4] ss:$16 sps:$4 sm:$0xff]  }
  0x3f   :  { %2583 = vmatpush1.bf16.msra.mxu0 %v4121_v8  ;;  %2870 = vmatpush1.bf16.msra.mxu1 %v4122_v9  ;;  %v4212_v8 = vld [vmem:[%s6109_s1 + $0x3cc] ss:$16 sps:$4 sm:$0xff]   ;;  %v448_v9 = vcombine.high %v4864_v52, %v4864_v52 }
  0x40   :  { %2593 = vmatprep.subr.bf16.mxu0 %v4125_v10  ;;  %2880 = vmatprep.subr.bf16.mxu1 %v4128_v11  ;;  %v4207_v10 = vld [vmem:[%s6109_s1 + $0x3c0] ss:$16 sps:$4 sm:$0xff]   ;;  %v4210_v11 = vld [vmem:[%s6109_s1 + $0x3c8] ss:$16 sps:$4 sm:$0xff]   ;;  %v4218_v52 = vld [vmem:[%s6109_s1 + $0x3ec] ss:$16 sps:$4 sm:$0xff]  }
  0x42   :  { %2585 = vmatmul.mubr.bf16.vlgmr.msra.gmra.mrb[0].mxu0 %v4933_v13  ;;  %2872 = vmatmul.mubr.bf16.vlgmr.msra.gmra.mrb[0].mxu1 %v4933_v13 }
  0x43   :  { %2594 = vmatpush1.bf16.msra.mxu0 %v4123_v12  ;;  %2881 = vmatpush1.bf16.msra.mxu1 %v4126_v14  ;;  %v4215_v12 = vld [vmem:[%s6109_s1 + $0x3e4] ss:$16 sps:$4 sm:$0xff]   ;;  %v5117_v14 = vrot.slane %v448_v9, %v4853_v49  ;;  %v4294_v9 = vld [vmem:[%s6109_s1 + $0x588] ss:$16 sps:$4 sm:$0xff]  }
  0x44   :  { %2595 = vmatprep.subr.bf16.mxu0 %v4131_v15  ;;  %2882 = vmatprep.subr.bf16.mxu1 %v4134_v16  ;;  %v4213_v15 = vld [vmem:[%s6109_s1 + $0x3e0] ss:$16 sps:$4 sm:$0xff]   ;;  %v4216_v16 = vld [vmem:[%s6109_s1 + $0x3e8] ss:$16 sps:$4 sm:$0xff]  }
  0x45   :  { %2625 = vmatprep.mubr.bf16.mxu0 %v495_v17  ;;  %2912 = vmatprep.mubr.bf16.mxu1 %v495_v17  ;;  %v4221_v17 = vld [vmem:[%s6109_s1 + $0x404] ss:$16 sps:$4 sm:$0xff]  }
  0x47   :  { %2596 = vmatpush1.bf16.msra.mxu0 %v4129_v18  ;;  %2883 = vmatpush1.bf16.msra.mxu1 %v4132_v19  ;;  %v4224_v18 = vld [vmem:[%s6109_s1 + $0x40c] ss:$16 sps:$4 sm:$0xff]   ;;  %v464_v19 = vcombine.high %v5117_v14, %v5117_v14 }
  0x48   :  { %2597 = vmatprep.subr.bf16.mxu0 %v4137_v20  ;;  %2884 = vmatprep.subr.bf16.mxu1 %v4140_v21  ;;  %v4219_v20 = vld [vmem:[%s6109_s1 + $0x400] ss:$16 sps:$4 sm:$0xff]   ;;  %v493_v21 = vcombine.high %v4933_v13, %v4933_v13 }
  0x49   :  { %v4225_v13 = vld [vmem:[%s6109_s1 + $0x420] ss:$16 sps:$4 sm:$0xff]  }
  0x4b   :  { %2598 = vmatpush1.bf16.msra.mxu0 %v4135_v22  ;;  %2885 = vmatpush1.bf16.msra.mxu1 %v4138_v23  ;;  %v4222_v22 = vld [vmem:[%s6109_s1 + $0x408] ss:$16 sps:$4 sm:$0xff]   ;;  %v4227_v23 = vld [vmem:[%s6109_s1 + $0x424] ss:$16 sps:$4 sm:$0xff]  }
  0x4c   :  { %2599 = vmatprep.subr.bf16.mxu0 %v4143_v24  ;;  %2886 = vmatprep.subr.bf16.mxu1 %v4146_v25  ;;  %v4230_v24 = vld [vmem:[%s6109_s1 + $0x42c] ss:$16 sps:$4 sm:$0xff]   ;;  %v5148_v25 = vrot.slane %v464_v19, %v4853_v49  ;;  %v4311_v19 = vld [vmem:[%s6109_s1 + $0x5e4] ss:$16 sps:$4 sm:$0xff]  }
  0x4f   :  { %2600 = vmatpush1.bf16.msra.mxu0 %v4141_v26  ;;  %2887 = vmatpush1.bf16.msra.mxu1 %v4144_v27  ;;  %v4228_v26 = vld [vmem:[%s6109_s1 + $0x428] ss:$16 sps:$4 sm:$0xff]   ;;  %v4233_v27 = vld [vmem:[%s6109_s1 + $0x444] ss:$16 sps:$4 sm:$0xff]  }
  0x50   :  { %2601 = vmatprep.subr.bf16.mxu0 %v4149_v28  ;;  %2888 = vmatprep.subr.bf16.mxu1 %v4152_v29  ;;  %v4236_v28 = vld [vmem:[%s6109_s1 + $0x44c] ss:$16 sps:$4 sm:$0xff]   ;;  %v4231_v29 = vld [vmem:[%s6109_s1 + $0x440] ss:$16 sps:$4 sm:$0xff]  }
  0x53   :  { %2602 = vmatpush1.bf16.msra.mxu0 %v4147_v30  ;;  %2889 = vmatpush1.bf16.msra.mxu1 %v4150_v31  ;;  %v4234_v30 = vld [vmem:[%s6109_s1 + $0x448] ss:$16 sps:$4 sm:$0xff]   ;;  %v4239_v31 = vld [vmem:[%s6109_s1 + $0x464] ss:$16 sps:$4 sm:$0xff]  }
  0x54   :  { %2603 = vmatprep.subr.bf16.mxu0 %v4155_v32  ;;  %2890 = vmatprep.subr.bf16.mxu1 %v4158_v33  ;;  %v4242_v32 = vld [vmem:[%s6109_s1 + $0x46c] ss:$16 sps:$4 sm:$0xff]   ;;  %v4237_v33 = vld [vmem:[%s6109_s1 + $0x460] ss:$16 sps:$4 sm:$0xff]  }
  0x57   :  { %2604 = vmatpush1.bf16.msra.mxu0 %v4153_v34  ;;  %2891 = vmatpush1.bf16.msra.mxu1 %v4156_v35  ;;  %v4240_v34 = vld [vmem:[%s6109_s1 + $0x468] ss:$16 sps:$4 sm:$0xff]   ;;  %v4245_v35 = vld [vmem:[%s6109_s1 + $0x484] ss:$16 sps:$4 sm:$0xff]  }
  0x58   :  { %2605 = vmatprep.subr.bf16.mxu0 %v4161_v36  ;;  %2892 = vmatprep.subr.bf16.mxu1 %v4164_v37  ;;  %v4248_v36 = vld [vmem:[%s6109_s1 + $0x48c] ss:$16 sps:$4 sm:$0xff]   ;;  %v4243_v37 = vld [vmem:[%s6109_s1 + $0x480] ss:$16 sps:$4 sm:$0xff]  }
  0x5b   :  { %2606 = vmatpush1.bf16.msra.mxu0 %v4159_v38  ;;  %2893 = vmatpush1.bf16.msra.mxu1 %v4162_v39  ;;  %v4246_v38 = vld [vmem:[%s6109_s1 + $0x488] ss:$16 sps:$4 sm:$0xff]   ;;  %v4251_v39 = vld [vmem:[%s6109_s1 + $0x4a4] ss:$16 sps:$4 sm:$0xff]  }
  0x5c   :  { %2607 = vmatprep.subr.bf16.mxu0 %v4167_v40  ;;  %2894 = vmatprep.subr.bf16.mxu1 %v4170_v41  ;;  %v4254_v40 = vld [vmem:[%s6109_s1 + $0x4ac] ss:$16 sps:$4 sm:$0xff]   ;;  %v4249_v41 = vld [vmem:[%s6109_s1 + $0x4a0] ss:$16 sps:$4 sm:$0xff]  }
  0x5f   :  { %2608 = vmatpush1.bf16.msra.mxu0 %v4165_v43  ;;  %2895 = vmatpush1.bf16.msra.mxu1 %v4168_v44  ;;  %v4252_v43 = vld [vmem:[%s6109_s1 + $0x4a8] ss:$16 sps:$4 sm:$0xff]   ;;  %v4257_v44 = vld [vmem:[%s6109_s1 + $0x4c4] ss:$16 sps:$4 sm:$0xff]  }
  0x60   :  { %2609 = vmatprep.subr.bf16.mxu0 %v4173_v45  ;;  %2896 = vmatprep.subr.bf16.mxu1 %v4176_v46  ;;  %v4260_v45 = vld [vmem:[%s6109_s1 + $0x4cc] ss:$16 sps:$4 sm:$0xff]   ;;  %v4255_v46 = vld [vmem:[%s6109_s1 + $0x4c0] ss:$16 sps:$4 sm:$0xff]  }
  0x63   :  { %2610 = vmatpush1.bf16.msra.mxu0 %v4171_v47  ;;  %2897 = vmatpush1.bf16.msra.mxu1 %v4174_v48  ;;  %v4258_v47 = vld [vmem:[%s6109_s1 + $0x4c8] ss:$16 sps:$4 sm:$0xff]   ;;  %v4263_v48 = vld [vmem:[%s6109_s1 + $0x4e4] ss:$16 sps:$4 sm:$0xff]  }
  0x64   :  { %2611 = vmatprep.subr.bf16.mxu0 %v4179_v50  ;;  %2898 = vmatprep.subr.bf16.mxu1 %v4182_v51  ;;  %v4266_v50 = vld [vmem:[%s6109_s1 + $0x4ec] ss:$16 sps:$4 sm:$0xff]   ;;  %v4261_v51 = vld [vmem:[%s6109_s1 + $0x4e0] ss:$16 sps:$4 sm:$0xff]  }
  0x67   :  { %2612 = vmatpush1.bf16.msra.mxu0 %v4177_v53  ;;  %2899 = vmatpush1.bf16.msra.mxu1 %v4180_v54  ;;  %v4264_v53 = vld [vmem:[%s6109_s1 + $0x4e8] ss:$16 sps:$4 sm:$0xff]   ;;  %v4269_v54 = vld [vmem:[%s6109_s1 + $0x504] ss:$16 sps:$4 sm:$0xff]  }
  0x68   :  { %2613 = vmatprep.subr.bf16.mxu0 %v4185_v55  ;;  %2900 = vmatprep.subr.bf16.mxu1 %v4188_v56  ;;  %v4272_v55 = vld [vmem:[%s6109_s1 + $0x50c] ss:$16 sps:$4 sm:$0xff]   ;;  %v4267_v56 = vld [vmem:[%s6109_s1 + $0x500] ss:$16 sps:$4 sm:$0xff]  }
  0x6b   :  { %2614 = vmatpush1.bf16.msra.mxu0 %v4183_v57  ;;  %2901 = vmatpush1.bf16.msra.mxu1 %v4186_v58  ;;  %v4270_v57 = vld [vmem:[%s6109_s1 + $0x508] ss:$16 sps:$4 sm:$0xff]   ;;  %v4275_v58 = vld [vmem:[%s6109_s1 + $0x524] ss:$16 sps:$4 sm:$0xff]  }
  0x6c   :  { %2615 = vmatprep.subr.bf16.mxu0 %v4191_v59  ;;  %2902 = vmatprep.subr.bf16.mxu1 %v4194_v60  ;;  %v4278_v59 = vld [vmem:[%s6109_s1 + $0x52c] ss:$16 sps:$4 sm:$0xff]   ;;  %v4273_v60 = vld [vmem:[%s6109_s1 + $0x520] ss:$16 sps:$4 sm:$0xff]  }
  0x6f   :  { %2616 = vmatpush1.bf16.msra.mxu0 %v4189_v61  ;;  %2903 = vmatpush1.bf16.msra.mxu1 %v4192_v62  ;;  %v4276_v61 = vld [vmem:[%s6109_s1 + $0x528] ss:$16 sps:$4 sm:$0xff]   ;;  %v4281_v62 = vld [vmem:[%s6109_s1 + $0x544] ss:$16 sps:$4 sm:$0xff]  }
  0x70   :  { %2617 = vmatprep.subr.bf16.mxu0 %v4197_v63  ;;  %2904 = vmatprep.subr.bf16.mxu1 %v4200_v0  ;;  %v4284_v63 = vld [vmem:[%s6109_s1 + $0x54c] ss:$16 sps:$4 sm:$0xff]   ;;  %v4279_v0 = vld [vmem:[%s6109_s1 + $0x540] ss:$16 sps:$4 sm:$0xff]  }
  0x73   :  { %2618 = vmatpush1.bf16.msra.mxu0 %v4195_v1  ;;  %2905 = vmatpush1.bf16.msra.mxu1 %v4198_v2  ;;  %v4282_v1 = vld [vmem:[%s6109_s1 + $0x548] ss:$16 sps:$4 sm:$0xff]   ;;  %v4287_v2 = vld [vmem:[%s6109_s1 + $0x564] ss:$16 sps:$4 sm:$0xff]  }
  0x74   :  { %2619 = vmatprep.subr.bf16.mxu0 %v4203_v3  ;;  %2906 = vmatprep.subr.bf16.mxu1 %v4206_v4  ;;  %v4290_v3 = vld [vmem:[%s6109_s1 + $0x56c] ss:$16 sps:$4 sm:$0xff]   ;;  %v4285_v4 = vld [vmem:[%s6109_s1 + $0x560] ss:$16 sps:$4 sm:$0xff]  }
  0x77   :  { %2620 = vmatpush1.bf16.msra.mxu0 %v4201_v5  ;;  %2907 = vmatpush1.bf16.msra.mxu1 %v4204_v6  ;;  %v4288_v5 = vld [vmem:[%s6109_s1 + $0x568] ss:$16 sps:$4 sm:$0xff]   ;;  %v4293_v6 = vld [vmem:[%s6109_s1 + $0x584] ss:$16 sps:$4 sm:$0xff]  }
  0x78   :  { %2621 = vmatprep.subr.bf16.mxu0 %v4209_v7  ;;  %2908 = vmatprep.subr.bf16.mxu1 %v4212_v8  ;;  %v4296_v7 = vld [vmem:[%s6109_s1 + $0x58c] ss:$16 sps:$4 sm:$0xff]   ;;  %v4291_v8 = vld [vmem:[%s6109_s1 + $0x580] ss:$16 sps:$4 sm:$0xff]  }
  0x7b   :  { %2622 = vmatpush1.bf16.msra.mxu0 %v4207_v10  ;;  %2909 = vmatpush1.bf16.msra.mxu1 %v4210_v11  ;;  %v4299_v10 = vld [vmem:[%s6109_s1 + $0x5a4] ss:$16 sps:$4 sm:$0xff]   ;;  %v4302_v11 = vld [vmem:[%s6109_s1 + $0x5ac] ss:$16 sps:$4 sm:$0xff]  }
  0x7c   :  { %2623 = vmatprep.subr.bf16.mxu0 %v4215_v12  ;;  %2910 = vmatprep.subr.bf16.mxu1 %v4218_v52  ;;  %v4297_v12 = vld [vmem:[%s6109_s1 + $0x5a0] ss:$16 sps:$4 sm:$0xff]   ;;  %v4300_v52 = vld [vmem:[%s6109_s1 + $0x5a8] ss:$16 sps:$4 sm:$0xff]  }
  0x7f   :  { %2624 = vmatpush1.bf16.msra.mxu0 %v4213_v15  ;;  %2911 = vmatpush1.bf16.msra.mxu1 %v4216_v16  ;;  %v4305_v15 = vld [vmem:[%s6109_s1 + $0x5c4] ss:$16 sps:$4 sm:$0xff]   ;;  %v4308_v16 = vld [vmem:[%s6109_s1 + $0x5cc] ss:$16 sps:$4 sm:$0xff]  }
  0x80   :  { %2634 = vmatprep.subr.bf16.mxu0 %v4221_v17  ;;  %2921 = vmatprep.subr.bf16.mxu1 %v4224_v18  ;;  %v4303_v17 = vld [vmem:[%s6109_s1 + $0x5c0] ss:$16 sps:$4 sm:$0xff]   ;;  %v4306_v18 = vld [vmem:[%s6109_s1 + $0x5c8] ss:$16 sps:$4 sm:$0xff]  }
  0x82   :  { %2626 = vmatmul.mubr.bf16.vlgmr.msra.gmra.mrb[0].mxu0 %v493_v21  ;;  %2913 = vmatmul.mubr.bf16.vlgmr.msra.gmra.mrb[0].mxu1 %v493_v21  ;;  %v4309_v21 = vld [vmem:[%s6109_s1 + $0x5e0] ss:$16 sps:$4 sm:$0xff]  }
  0x83   :  { %2635 = vmatpush1.bf16.msra.mxu0 %v4219_v20  ;;  %2922 = vmatpush1.bf16.msra.mxu1 %v4222_v22  ;;  %v4314_v20 = vld [vmem:[%s6109_s1 + $0x5ec] ss:$16 sps:$4 sm:$0xff]   ;;  %v4312_v22 = vld [vmem:[%s6109_s1 + $0x5e8] ss:$16 sps:$4 sm:$0xff]  }
  0x84   :  { %2636 = vmatprep.subr.bf16.mxu0 %v4227_v23  ;;  %2923 = vmatprep.subr.bf16.mxu1 %v4230_v24  ;;  %v4318_v23 = vld [vmem:[%s6109_s1 + $0x604] ss:$16 sps:$4 sm:$0xff]   ;;  %v4321_v24 = vld [vmem:[%s6109_s1 + $0x60c] ss:$16 sps:$4 sm:$0xff]  }
  0x85   :  { %2666 = vmatprep.mubr.bf16.mxu0 %v5148_v25  ;;  %2953 = vmatprep.mubr.bf16.mxu1 %v5148_v25 }
  0x87   :  { %2637 = vmatpush1.bf16.msra.mxu0 %v4225_v13  ;;  %2924 = vmatpush1.bf16.msra.mxu1 %v4228_v26  ;;  %v4316_v13 = vld [vmem:[%s6109_s1 + $0x600] ss:$16 sps:$4 sm:$0xff]   ;;  %v5337_v26 = vrot.slane %v5117_v14, %v4853_v49  ;;  %v496_v14 = vcombine.high %v5148_v25, %v5148_v25  ;;  %v4330_v25 = vld [vmem:[%s6109_s1 + $0x644] ss:$16 sps:$4 sm:$0xff]  }
  0x88   :  { %2638 = vmatprep.subr.bf16.mxu0 %v4233_v27  ;;  %2925 = vmatprep.subr.bf16.mxu1 %v4236_v28  ;;  %v4319_v27 = vld [vmem:[%s6109_s1 + $0x608] ss:$16 sps:$4 sm:$0xff]   ;;  %v4324_v28 = vld [vmem:[%s6109_s1 + $0x624] ss:$16 sps:$4 sm:$0xff]  }
  0x8b   :  { %2639 = vmatpush1.bf16.msra.mxu0 %v4231_v29  ;;  %2926 = vmatpush1.bf16.msra.mxu1 %v4234_v30  ;;  %v4327_v29 = vld [vmem:[%s6109_s1 + $0x62c] ss:$16 sps:$4 sm:$0xff]   ;;  %v4322_v30 = vld [vmem:[%s6109_s1 + $0x620] ss:$16 sps:$4 sm:$0xff]  }
  0x8c   :  { %2640 = vmatprep.subr.bf16.mxu0 %v4239_v31  ;;  %2927 = vmatprep.subr.bf16.mxu1 %v4242_v32  ;;  %v4325_v31 = vld [vmem:[%s6109_s1 + $0x628] ss:$16 sps:$4 sm:$0xff]   ;;  %v4333_v32 = vld [vmem:[%s6109_s1 + $0x64c] ss:$16 sps:$4 sm:$0xff]  }
  0x8f   :  { %2641 = vmatpush1.bf16.msra.mxu0 %v4237_v33  ;;  %2928 = vmatpush1.bf16.msra.mxu1 %v4240_v34  ;;  %v4328_v33 = vld [vmem:[%s6109_s1 + $0x640] ss:$16 sps:$4 sm:$0xff]   ;;  %v4331_v34 = vld [vmem:[%s6109_s1 + $0x648] ss:$16 sps:$4 sm:$0xff]  }
  0x90   :  { %2642 = vmatprep.subr.bf16.mxu0 %v4245_v35  ;;  %2929 = vmatprep.subr.bf16.mxu1 %v4248_v36  ;;  %v4336_v35 = vld [vmem:[%s6109_s1 + $0x664] ss:$16 sps:$4 sm:$0xff]   ;;  %v4339_v36 = vld [vmem:[%s6109_s1 + $0x66c] ss:$16 sps:$4 sm:$0xff]  }
  0x93   :  { %2643 = vmatpush1.bf16.msra.mxu0 %v4243_v37  ;;  %2930 = vmatpush1.bf16.msra.mxu1 %v4246_v38  ;;  %v4334_v37 = vld [vmem:[%s6109_s1 + $0x660] ss:$16 sps:$4 sm:$0xff]   ;;  %v4337_v38 = vld [vmem:[%s6109_s1 + $0x668] ss:$16 sps:$4 sm:$0xff]  }
  0x94   :  { %2644 = vmatprep.subr.bf16.mxu0 %v4251_v39  ;;  %2931 = vmatprep.subr.bf16.mxu1 %v4254_v40  ;;  %v4342_v39 = vld [vmem:[%s6109_s1 + $0x684] ss:$16 sps:$4 sm:$0xff]   ;;  %v4345_v40 = vld [vmem:[%s6109_s1 + $0x68c] ss:$16 sps:$4 sm:$0xff]  }
  0x97   :  { %2645 = vmatpush1.bf16.msra.mxu0 %v4249_v41  ;;  %2932 = vmatpush1.bf16.msra.mxu1 %v4252_v43  ;;  %v4340_v41 = vld [vmem:[%s6109_s1 + $0x680] ss:$16 sps:$4 sm:$0xff]   ;;  %v4343_v43 = vld [vmem:[%s6109_s1 + $0x688] ss:$16 sps:$4 sm:$0xff]  }
  0x98   :  { %2646 = vmatprep.subr.bf16.mxu0 %v4257_v44  ;;  %2933 = vmatprep.subr.bf16.mxu1 %v4260_v45  ;;  %v4348_v44 = vld [vmem:[%s6109_s1 + $0x6a4] ss:$16 sps:$4 sm:$0xff]   ;;  %v4351_v45 = vld [vmem:[%s6109_s1 + $0x6ac] ss:$16 sps:$4 sm:$0xff]  }
  0x9b   :  { %2647 = vmatpush1.bf16.msra.mxu0 %v4255_v46  ;;  %2934 = vmatpush1.bf16.msra.mxu1 %v4258_v47  ;;  %v4346_v46 = vld [vmem:[%s6109_s1 + $0x6a0] ss:$16 sps:$4 sm:$0xff]   ;;  %v4349_v47 = vld [vmem:[%s6109_s1 + $0x6a8] ss:$16 sps:$4 sm:$0xff]  }
  0x9c   :  { %2648 = vmatprep.subr.bf16.mxu0 %v4263_v48  ;;  %2935 = vmatprep.subr.bf16.mxu1 %v4266_v50  ;;  %v4354_v48 = vld [vmem:[%s6109_s1 + $0x6c4] ss:$16 sps:$4 sm:$0xff]   ;;  %v4357_v50 = vld [vmem:[%s6109_s1 + $0x6cc] ss:$16 sps:$4 sm:$0xff]  }
  0x9f   :  { %2649 = vmatpush1.bf16.msra.mxu0 %v4261_v51  ;;  %2936 = vmatpush1.bf16.msra.mxu1 %v4264_v53  ;;  %v4352_v51 = vld [vmem:[%s6109_s1 + $0x6c0] ss:$16 sps:$4 sm:$0xff]   ;;  %v4355_v53 = vld [vmem:[%s6109_s1 + $0x6c8] ss:$16 sps:$4 sm:$0xff]  }
  0xa0   :  { %2650 = vmatprep.subr.bf16.mxu0 %v4269_v54  ;;  %2937 = vmatprep.subr.bf16.mxu1 %v4272_v55  ;;  %v4360_v54 = vld [vmem:[%s6109_s1 + $0x6e4] ss:$16 sps:$4 sm:$0xff]   ;;  %v4363_v55 = vld [vmem:[%s6109_s1 + $0x6ec] ss:$16 sps:$4 sm:$0xff]  }
  0xa3   :  { %2651 = vmatpush1.bf16.msra.mxu0 %v4267_v56  ;;  %2938 = vmatpush1.bf16.msra.mxu1 %v4270_v57  ;;  %v4358_v56 = vld [vmem:[%s6109_s1 + $0x6e0] ss:$16 sps:$4 sm:$0xff]   ;;  %v4361_v57 = vld [vmem:[%s6109_s1 + $0x6e8] ss:$16 sps:$4 sm:$0xff]  }
  0xa4   :  { %2652 = vmatprep.subr.bf16.mxu0 %v4275_v58  ;;  %2939 = vmatprep.subr.bf16.mxu1 %v4278_v59  ;;  %v4366_v58 = vld [vmem:[%s6109_s1 + $0x704] ss:$16 sps:$4 sm:$0xff]   ;;  %v4369_v59 = vld [vmem:[%s6109_s1 + $0x70c] ss:$16 sps:$4 sm:$0xff]  }
  0xa7   :  { %2653 = vmatpush1.bf16.msra.mxu0 %v4273_v60  ;;  %2940 = vmatpush1.bf16.msra.mxu1 %v4276_v61  ;;  %v4364_v60 = vld [vmem:[%s6109_s1 + $0x700] ss:$16 sps:$4 sm:$0xff]   ;;  %v4367_v61 = vld [vmem:[%s6109_s1 + $0x708] ss:$16 sps:$4 sm:$0xff]  }
  0xa8   :  { %2654 = vmatprep.subr.bf16.mxu0 %v4281_v62  ;;  %2941 = vmatprep.subr.bf16.mxu1 %v4284_v63  ;;  %v4372_v62 = vld [vmem:[%s6109_s1 + $0x724] ss:$16 sps:$4 sm:$0xff]   ;;  %v4375_v63 = vld [vmem:[%s6109_s1 + $0x72c] ss:$16 sps:$4 sm:$0xff]  }
  0xab   :  { %2655 = vmatpush1.bf16.msra.mxu0 %v4279_v0  ;;  %2942 = vmatpush1.bf16.msra.mxu1 %v4282_v1  ;;  %v4370_v0 = vld [vmem:[%s6109_s1 + $0x720] ss:$16 sps:$4 sm:$0xff]   ;;  %v4373_v1 = vld [vmem:[%s6109_s1 + $0x728] ss:$16 sps:$4 sm:$0xff]  }
  0xac   :  { %2656 = vmatprep.subr.bf16.mxu0 %v4287_v2  ;;  %2943 = vmatprep.subr.bf16.mxu1 %v4290_v3  ;;  %v4378_v2 = vld [vmem:[%s6109_s1 + $0x744] ss:$16 sps:$4 sm:$0xff]   ;;  %v4381_v3 = vld [vmem:[%s6109_s1 + $0x74c] ss:$16 sps:$4 sm:$0xff]  }
  0xaf   :  { %2657 = vmatpush1.bf16.msra.mxu0 %v4285_v4  ;;  %2944 = vmatpush1.bf16.msra.mxu1 %v4288_v5  ;;  %v4376_v4 = vld [vmem:[%s6109_s1 + $0x740] ss:$16 sps:$4 sm:$0xff]   ;;  %v4379_v5 = vld [vmem:[%s6109_s1 + $0x748] ss:$16 sps:$4 sm:$0xff]  }
  0xb0   :  { %2658 = vmatprep.subr.bf16.mxu0 %v4293_v6  ;;  %2945 = vmatprep.subr.bf16.mxu1 %v4296_v7  ;;  %v4384_v6 = vld [vmem:[%s6109_s1 + $0x764] ss:$16 sps:$4 sm:$0xff]   ;;  %v4387_v7 = vld [vmem:[%s6109_s1 + $0x76c] ss:$16 sps:$4 sm:$0xff]  }
  0xb3   :  { %2659 = vmatpush1.bf16.msra.mxu0 %v4291_v8  ;;  %2946 = vmatpush1.bf16.msra.mxu1 %v4294_v9  ;;  %v4382_v8 = vld [vmem:[%s6109_s1 + $0x760] ss:$16 sps:$4 sm:$0xff]   ;;  %v4385_v9 = vld [vmem:[%s6109_s1 + $0x768] ss:$16 sps:$4 sm:$0xff]  }
  0xb4   :  { %2660 = vmatprep.subr.bf16.mxu0 %v4299_v10  ;;  %2947 = vmatprep.subr.bf16.mxu1 %v4302_v11  ;;  %v4390_v10 = vld [vmem:[%s6109_s1 + $0x784] ss:$16 sps:$4 sm:$0xff]   ;;  %v4393_v11 = vld [vmem:[%s6109_s1 + $0x78c] ss:$16 sps:$4 sm:$0xff]  }
  0xb7   :  { %2661 = vmatpush1.bf16.msra.mxu0 %v4297_v12  ;;  %2948 = vmatpush1.bf16.msra.mxu1 %v4300_v52  ;;  %v4388_v12 = vld [vmem:[%s6109_s1 + $0x780] ss:$16 sps:$4 sm:$0xff]   ;;  %v4391_v52 = vld [vmem:[%s6109_s1 + $0x788] ss:$16 sps:$4 sm:$0xff]  }
  0xb8   :  { %2662 = vmatprep.subr.bf16.mxu0 %v4305_v15  ;;  %2949 = vmatprep.subr.bf16.mxu1 %v4308_v16  ;;  %v4396_v15 = vld [vmem:[%s6109_s1 + $0x7a4] ss:$16 sps:$4 sm:$0xff]   ;;  %v4399_v16 = vld [vmem:[%s6109_s1 + $0x7ac] ss:$16 sps:$4 sm:$0xff]  }
  0xbb   :  { %2663 = vmatpush1.bf16.msra.mxu0 %v4303_v17  ;;  %2950 = vmatpush1.bf16.msra.mxu1 %v4306_v18  ;;  %v4394_v17 = vld [vmem:[%s6109_s1 + $0x7a0] ss:$16 sps:$4 sm:$0xff]   ;;  %v4397_v18 = vld [vmem:[%s6109_s1 + $0x7a8] ss:$16 sps:$4 sm:$0xff]  }
  0xbc   :  { %2664 = vmatprep.subr.bf16.mxu0 %v4311_v19  ;;  %2951 = vmatprep.subr.bf16.mxu1 %v4314_v20  ;;  %v4402_v19 = vld [vmem:[%s6109_s1 + $0x7c4] ss:$16 sps:$4 sm:$0xff]   ;;  %v4405_v20 = vld [vmem:[%s6109_s1 + $0x7cc] ss:$16 sps:$4 sm:$0xff]  }
  0xbf   :  { %2665 = vmatpush1.bf16.msra.mxu0 %v4309_v21  ;;  %2952 = vmatpush1.bf16.msra.mxu1 %v4312_v22  ;;  %v5511_v21 = vld [vmem:[%s6108_s0 + $0x8] sm:$0x1f]  ;;  %v4400_v22 = vld [vmem:[%s6109_s1 + $0x7c0] ss:$16 sps:$4 sm:$0xff]  }
  0xc0   :  { %2675 = vmatprep.subr.bf16.mxu0 %v4318_v23  ;;  %2962 = vmatprep.subr.bf16.mxu1 %v4321_v24  ;;  %v4403_v23 = vld [vmem:[%s6109_s1 + $0x7c8] ss:$16 sps:$4 sm:$0xff]   ;;  %v4408_v24 = vld [vmem:[%s6109_s1 + $0x7e4] ss:$16 sps:$4 sm:$0xff]  }
  0xc2   :  { %2667 = vmatmul.mubr.bf16.vlgmr.msra.gmra.mrb[0].mxu0 %v5337_v26  ;;  %2954 = vmatmul.mubr.bf16.vlgmr.msra.gmra.mrb[0].mxu1 %v5337_v26 }
  0xc3   :  { %2676 = vmatpush1.bf16.msra.mxu0 %v4316_v13  ;;  %2963 = vmatpush1.bf16.msra.mxu1 %v4319_v27  ;;  %v4411_v13 = vld [vmem:[%s6109_s1 + $0x7ec] ss:$16 sps:$4 sm:$0xff]   ;;  %v5527_v27 = vrot.slane %v5511_v21, %v4853_v49 }
  0xc4   :  { %2677 = vmatprep.subr.bf16.mxu0 %v4324_v28  ;;  %2964 = vmatprep.subr.bf16.mxu1 %v4327_v29  ;;  %v4406_v28 = vld [vmem:[%s6109_s1 + $0x7e0] ss:$16 sps:$4 sm:$0xff]   ;;  %v4409_v29 = vld [vmem:[%s6109_s1 + $0x7e8] ss:$16 sps:$4 sm:$0xff]  }
  0xc5   :  { %2707 = vmatprep.mubr.bf16.mxu0 %v496_v14  ;;  %2994 = vmatprep.mubr.bf16.mxu1 %v496_v14  ;;  %v4414_v14 = vld [vmem:[%s6109_s1 + $0x804] ss:$16 sps:$4 sm:$0xff]  }
  0xc7   :  { %2678 = vmatpush1.bf16.msra.mxu0 %v4322_v30  ;;  %2965 = vmatpush1.bf16.msra.mxu1 %v4325_v31  ;;  %v4417_v30 = vld [vmem:[%s6109_s1 + $0x80c] ss:$16 sps:$4 sm:$0xff]   ;;  %v512_v31 = vcombine.high %v5527_v27, %v5527_v27 }
  0xc8   :  { %2679 = vmatprep.subr.bf16.mxu0 %v4330_v25  ;;  %2966 = vmatprep.subr.bf16.mxu1 %v4333_v32  ;;  %v494_v25 = vcombine.high %v5337_v26, %v5337_v26  ;;  %v4412_v32 = vld [vmem:[%s6109_s1 + $0x800] ss:$16 sps:$4 sm:$0xff]   ;;  %v4423_v26 = vld [vmem:[%s6109_s1 + $0x82c] ss:$16 sps:$4 sm:$0xff]  }
  0xcb   :  { %2680 = vmatpush1.bf16.msra.mxu0 %v4328_v33  ;;  %2967 = vmatpush1.bf16.msra.mxu1 %v4331_v34  ;;  %v4415_v33 = vld [vmem:[%s6109_s1 + $0x808] ss:$16 sps:$4 sm:$0xff]   ;;  %v4420_v34 = vld [vmem:[%s6109_s1 + $0x824] ss:$16 sps:$4 sm:$0xff]  }
  0xcc   :  { %2681 = vmatprep.subr.bf16.mxu0 %v4336_v35  ;;  %2968 = vmatprep.subr.bf16.mxu1 %v4339_v36  ;;  %v5558_v35 = vrot.slane %v512_v31, %v4853_v49  ;;  %v4418_v36 = vld [vmem:[%s6109_s1 + $0x820] ss:$16 sps:$4 sm:$0xff]  }
  0xcf   :  { %2682 = vmatpush1.bf16.msra.mxu0 %v4334_v37  ;;  %2969 = vmatpush1.bf16.msra.mxu1 %v4337_v38  ;;  %v4421_v37 = vld [vmem:[%s6109_s1 + $0x828] ss:$16 sps:$4 sm:$0xff]   ;;  %v4426_v38 = vld [vmem:[%s6109_s1 + $0x844] ss:$16 sps:$4 sm:$0xff]  }
  0xd0   :  { %2683 = vmatprep.subr.bf16.mxu0 %v4342_v39  ;;  %2970 = vmatprep.subr.bf16.mxu1 %v4345_v40  ;;  %v4429_v39 = vld [vmem:[%s6109_s1 + $0x84c] ss:$16 sps:$4 sm:$0xff]   ;;  %v4424_v40 = vld [vmem:[%s6109_s1 + $0x840] ss:$16 sps:$4 sm:$0xff]  }
  0xd3   :  { %2684 = vmatpush1.bf16.msra.mxu0 %v4340_v41  ;;  %2971 = vmatpush1.bf16.msra.mxu1 %v4343_v43  ;;  %v4427_v41 = vld [vmem:[%s6109_s1 + $0x848] ss:$16 sps:$4 sm:$0xff]   ;;  %v4432_v43 = vld [vmem:[%s6109_s1 + $0x864] ss:$16 sps:$4 sm:$0xff]  }
  0xd4   :  { %2685 = vmatprep.subr.bf16.mxu0 %v4348_v44  ;;  %2972 = vmatprep.subr.bf16.mxu1 %v4351_v45  ;;  %v4435_v44 = vld [vmem:[%s6109_s1 + $0x86c] ss:$16 sps:$4 sm:$0xff]   ;;  %v4430_v45 = vld [vmem:[%s6109_s1 + $0x860] ss:$16 sps:$4 sm:$0xff]  }
  0xd7   :  { %2686 = vmatpush1.bf16.msra.mxu0 %v4346_v46  ;;  %2973 = vmatpush1.bf16.msra.mxu1 %v4349_v47  ;;  %v4433_v46 = vld [vmem:[%s6109_s1 + $0x868] ss:$16 sps:$4 sm:$0xff]   ;;  %v4438_v47 = vld [vmem:[%s6109_s1 + $0x884] ss:$16 sps:$4 sm:$0xff]  }
  0xd8   :  { %2687 = vmatprep.subr.bf16.mxu0 %v4354_v48  ;;  %2974 = vmatprep.subr.bf16.mxu1 %v4357_v50  ;;  %v4441_v48 = vld [vmem:[%s6109_s1 + $0x88c] ss:$16 sps:$4 sm:$0xff]   ;;  %v4436_v50 = vld [vmem:[%s6109_s1 + $0x880] ss:$16 sps:$4 sm:$0xff]  }
  0xdb   :  { %2688 = vmatpush1.bf16.msra.mxu0 %v4352_v51  ;;  %2975 = vmatpush1.bf16.msra.mxu1 %v4355_v53  ;;  %v4439_v51 = vld [vmem:[%s6109_s1 + $0x888] ss:$16 sps:$4 sm:$0xff]   ;;  %v4444_v53 = vld [vmem:[%s6109_s1 + $0x8a4] ss:$16 sps:$4 sm:$0xff]  }
  0xdc   :  { %2689 = vmatprep.subr.bf16.mxu0 %v4360_v54  ;;  %2976 = vmatprep.subr.bf16.mxu1 %v4363_v55  ;;  %v4447_v54 = vld [vmem:[%s6109_s1 + $0x8ac] ss:$16 sps:$4 sm:$0xff]   ;;  %v4442_v55 = vld [vmem:[%s6109_s1 + $0x8a0] ss:$16 sps:$4 sm:$0xff]  }
  0xdf   :  { %2690 = vmatpush1.bf16.msra.mxu0 %v4358_v56  ;;  %2977 = vmatpush1.bf16.msra.mxu1 %v4361_v57  ;;  %v4445_v56 = vld [vmem:[%s6109_s1 + $0x8a8] ss:$16 sps:$4 sm:$0xff]   ;;  %v4450_v57 = vld [vmem:[%s6109_s1 + $0x8c4] ss:$16 sps:$4 sm:$0xff]  }
  0xe0   :  { %2691 = vmatprep.subr.bf16.mxu0 %v4366_v58  ;;  %2978 = vmatprep.subr.bf16.mxu1 %v4369_v59  ;;  %v4453_v58 = vld [vmem:[%s6109_s1 + $0x8cc] ss:$16 sps:$4 sm:$0xff]   ;;  %v4448_v59 = vld [vmem:[%s6109_s1 + $0x8c0] ss:$16 sps:$4 sm:$0xff]  }
  0xe3   :  { %2692 = vmatpush1.bf16.msra.mxu0 %v4364_v60  ;;  %2979 = vmatpush1.bf16.msra.mxu1 %v4367_v61  ;;  %v4451_v60 = vld [vmem:[%s6109_s1 + $0x8c8] ss:$16 sps:$4 sm:$0xff]   ;;  %v4456_v61 = vld [vmem:[%s6109_s1 + $0x8e4] ss:$16 sps:$4 sm:$0xff]  }
  0xe4   :  { %2693 = vmatprep.subr.bf16.mxu0 %v4372_v62  ;;  %2980 = vmatprep.subr.bf16.mxu1 %v4375_v63  ;;  %v4459_v62 = vld [vmem:[%s6109_s1 + $0x8ec] ss:$16 sps:$4 sm:$0xff]   ;;  %v4454_v63 = vld [vmem:[%s6109_s1 + $0x8e0] ss:$16 sps:$4 sm:$0xff]  }
  0xe7   :  { %2694 = vmatpush1.bf16.msra.mxu0 %v4370_v0  ;;  %2981 = vmatpush1.bf16.msra.mxu1 %v4373_v1  ;;  %v4457_v0 = vld [vmem:[%s6109_s1 + $0x8e8] ss:$16 sps:$4 sm:$0xff]   ;;  %v4462_v1 = vld [vmem:[%s6109_s1 + $0x904] ss:$16 sps:$4 sm:$0xff]  }
  0xe8   :  { %2695 = vmatprep.subr.bf16.mxu0 %v4378_v2  ;;  %2982 = vmatprep.subr.bf16.mxu1 %v4381_v3  ;;  %v4465_v2 = vld [vmem:[%s6109_s1 + $0x90c] ss:$16 sps:$4 sm:$0xff]   ;;  %v4460_v3 = vld [vmem:[%s6109_s1 + $0x900] ss:$16 sps:$4 sm:$0xff]  }
  0xeb   :  { %2696 = vmatpush1.bf16.msra.mxu0 %v4376_v4  ;;  %2983 = vmatpush1.bf16.msra.mxu1 %v4379_v5  ;;  %v4463_v4 = vld [vmem:[%s6109_s1 + $0x908] ss:$16 sps:$4 sm:$0xff]   ;;  %v4468_v5 = vld [vmem:[%s6109_s1 + $0x924] ss:$16 sps:$4 sm:$0xff]  }
  0xec   :  { %2697 = vmatprep.subr.bf16.mxu0 %v4384_v6  ;;  %2984 = vmatprep.subr.bf16.mxu1 %v4387_v7  ;;  %v4471_v6 = vld [vmem:[%s6109_s1 + $0x92c] ss:$16 sps:$4 sm:$0xff]   ;;  %v4466_v7 = vld [vmem:[%s6109_s1 + $0x920] ss:$16 sps:$4 sm:$0xff]  }
  0xef   :  { %2698 = vmatpush1.bf16.msra.mxu0 %v4382_v8  ;;  %2985 = vmatpush1.bf16.msra.mxu1 %v4385_v9  ;;  %v4469_v8 = vld [vmem:[%s6109_s1 + $0x928] ss:$16 sps:$4 sm:$0xff]   ;;  %v4474_v9 = vld [vmem:[%s6109_s1 + $0x944] ss:$16 sps:$4 sm:$0xff]  }
  0xf0   :  { %2699 = vmatprep.subr.bf16.mxu0 %v4390_v10  ;;  %2986 = vmatprep.subr.bf16.mxu1 %v4393_v11  ;;  %v4477_v10 = vld [vmem:[%s6109_s1 + $0x94c] ss:$16 sps:$4 sm:$0xff]   ;;  %v4472_v11 = vld [vmem:[%s6109_s1 + $0x940] ss:$16 sps:$4 sm:$0xff]  }
  0xf3   :  { %2700 = vmatpush1.bf16.msra.mxu0 %v4388_v12  ;;  %2987 = vmatpush1.bf16.msra.mxu1 %v4391_v52  ;;  %v4475_v12 = vld [vmem:[%s6109_s1 + $0x948] ss:$16 sps:$4 sm:$0xff]   ;;  %v4480_v52 = vld [vmem:[%s6109_s1 + $0x964] ss:$16 sps:$4 sm:$0xff]  }
  0xf4   :  { %2701 = vmatprep.subr.bf16.mxu0 %v4396_v15  ;;  %2988 = vmatprep.subr.bf16.mxu1 %v4399_v16  ;;  %v4483_v15 = vld [vmem:[%s6109_s1 + $0x96c] ss:$16 sps:$4 sm:$0xff]  }
  0xf7   :  { %2702 = vmatpush1.bf16.msra.mxu0 %v4394_v17  ;;  %2989 = vmatpush1.bf16.msra.mxu1 %v4397_v18 }
  0xf8   :  { %2703 = vmatprep.subr.bf16.mxu0 %v4402_v19  ;;  %2990 = vmatprep.subr.bf16.mxu1 %v4405_v20 }
  0xfb   :  { %2704 = vmatpush1.bf16.msra.mxu0 %v4400_v22  ;;  %2991 = vmatpush1.bf16.msra.mxu1 %v4403_v23 }
  0xfc   :  { %2705 = vmatprep.subr.bf16.mxu0 %v4408_v24  ;;  %2992 = vmatprep.subr.bf16.mxu1 %v4411_v13 }
  0xff   :  { %2706 = vmatpush1.bf16.msra.mxu0 %v4406_v28  ;;  %2993 = vmatpush1.bf16.msra.mxu1 %v4409_v29 }
 0x100   :  { %2716 = vmatprep.subr.bf16.mxu0 %v4414_v14  ;;  %3003 = vmatprep.subr.bf16.mxu1 %v4417_v30 }
 0x102   :  { %2708 = vmatmul.mubr.bf16.vlgmr.msra.gmra.mrb[0].mxu0 %v494_v25  ;;  %2995 = vmatmul.mubr.bf16.vlgmr.msra.gmra.mrb[0].mxu1 %v494_v25 }
 0x103   :  { %2717 = vmatpush1.bf16.msra.mxu0 %v4412_v32  ;;  %3004 = vmatpush1.bf16.msra.mxu1 %v4415_v33 }
 0x104   :  { %2718 = vmatprep.subr.bf16.mxu0 %v4420_v34  ;;  %3005 = vmatprep.subr.bf16.mxu1 %v4423_v26 }
 0x105   :  { %2748 = vmatprep.mubr.bf16.mxu0 %v5558_v35  ;;  %3035 = vmatprep.mubr.bf16.mxu1 %v5558_v35 }
 0x107   :  { %2719 = vmatpush1.bf16.msra.mxu0 %v4418_v36  ;;  %3006 = vmatpush1.bf16.msra.mxu1 %v4421_v37 }
 0x108   :  { %2720 = vmatprep.subr.bf16.mxu0 %v4426_v38  ;;  %3007 = vmatprep.subr.bf16.mxu1 %v4429_v39 }
 0x10b   :  { %2721 = vmatpush1.bf16.msra.mxu0 %v4424_v40  ;;  %3008 = vmatpush1.bf16.msra.mxu1 %v4427_v41 }
 0x10c   :  { %2722 = vmatprep.subr.bf16.mxu0 %v4432_v43  ;;  %3009 = vmatprep.subr.bf16.mxu1 %v4435_v44 }
 0x10f   :  { %2723 = vmatpush1.bf16.msra.mxu0 %v4430_v45  ;;  %3010 = vmatpush1.bf16.msra.mxu1 %v4433_v46 }
 0x110   :  { %2724 = vmatprep.subr.bf16.mxu0 %v4438_v47  ;;  %3011 = vmatprep.subr.bf16.mxu1 %v4441_v48 }
 0x113   :  { %2725 = vmatpush1.bf16.msra.mxu0 %v4436_v50  ;;  %3012 = vmatpush1.bf16.msra.mxu1 %v4439_v51 }
 0x114   :  { %2726 = vmatprep.subr.bf16.mxu0 %v4444_v53  ;;  %3013 = vmatprep.subr.bf16.mxu1 %v4447_v54 }
 0x117   :  { %2727 = vmatpush1.bf16.msra.mxu0 %v4442_v55  ;;  %3014 = vmatpush1.bf16.msra.mxu1 %v4445_v56 }
 0x118   :  { %2728 = vmatprep.subr.bf16.mxu0 %v4450_v57  ;;  %3015 = vmatprep.subr.bf16.mxu1 %v4453_v58 }
 0x11b   :  { %2729 = vmatpush1.bf16.msra.mxu0 %v4448_v59  ;;  %3016 = vmatpush1.bf16.msra.mxu1 %v4451_v60 }
 0x11c   :  { %2730 = vmatprep.subr.bf16.mxu0 %v4456_v61  ;;  %3017 = vmatprep.subr.bf16.mxu1 %v4459_v62 }
 0x11f   :  { %2731 = vmatpush1.bf16.msra.mxu0 %v4454_v63  ;;  %3018 = vmatpush1.bf16.msra.mxu1 %v4457_v0 }
 0x120   :  { %2732 = vmatprep.subr.bf16.mxu0 %v4462_v1  ;;  %3019 = vmatprep.subr.bf16.mxu1 %v4465_v2 }
 0x123   :  { %2733 = vmatpush1.bf16.msra.mxu0 %v4460_v3  ;;  %3020 = vmatpush1.bf16.msra.mxu1 %v4463_v4 }
 0x124   :  { %2734 = vmatprep.subr.bf16.mxu0 %v4468_v5  ;;  %3021 = vmatprep.subr.bf16.mxu1 %v4471_v6 }
 0x127   :  { %2735 = vmatpush1.bf16.msra.mxu0 %v4466_v7  ;;  %3022 = vmatpush1.bf16.msra.mxu1 %v4469_v8 }
 0x128   :  { %2736 = vmatprep.subr.bf16.mxu0 %v4474_v9  ;;  %3023 = vmatprep.subr.bf16.mxu1 %v4477_v10 }
 0x129   :  { %10 = vsyncpa [#allocation3], 0  ;;  %v4478_v16 = vld [vmem:[%s6109_s1 + $0x960] ss:$16 sps:$4 sm:$0xff]   ;;  %v4481_v17 = vld [vmem:[%s6109_s1 + $0x968] ss:$16 sps:$4 sm:$0xff]   ;;  %v5744_v37 = vrot.slane %v5527_v27, %v4853_v49  ;;  %v535_v41 = vcombine.high %v5558_v35, %v5558_v35 }
 0x12a   :  { %v4486_v18 = vld [vmem:[%s6109_s1 + $0x984] ss:$16 sps:$4 sm:$0xff]   ;;  %v4489_v19 = vld [vmem:[%s6109_s1 + $0x98c] ss:$16 sps:$4 sm:$0xff]   ;;  %v4484_v20 = vld [vmem:[%s6109_s1 + $0x980] ss:$16 sps:$4 sm:$0xff]  }
 0x12b   :  { %2737 = vmatpush1.bf16.msra.mxu0 %v4472_v11  ;;  %3024 = vmatpush1.bf16.msra.mxu1 %v4475_v12  ;;  %v4487_v22 = vld [vmem:[%s6109_s1 + $0x988] ss:$16 sps:$4 sm:$0xff]   ;;  %v4492_v23 = vld [vmem:[%s6109_s1 + $0x9a4] ss:$16 sps:$4 sm:$0xff]   ;;  %v4495_v24 = vld [vmem:[%s6109_s1 + $0x9ac] ss:$16 sps:$4 sm:$0xff]  }
 0x12c   :  { %2738 = vmatprep.subr.bf16.mxu0 %v4480_v52  ;;  %3025 = vmatprep.subr.bf16.mxu1 %v4483_v15  ;;  %v4490_v13 = vld [vmem:[%s6109_s1 + $0x9a0] ss:$16 sps:$4 sm:$0xff]   ;;  %v4493_v28 = vld [vmem:[%s6109_s1 + $0x9a8] ss:$16 sps:$4 sm:$0xff]   ;;  %v4498_v29 = vld [vmem:[%s6109_s1 + $0x9c4] ss:$16 sps:$4 sm:$0xff]  }
 0x12d   :  { %v4501_v14 = vld [vmem:[%s6109_s1 + $0x9cc] ss:$16 sps:$4 sm:$0xff]   ;;  %v4496_v30 = vld [vmem:[%s6109_s1 + $0x9c0] ss:$16 sps:$4 sm:$0xff]   ;;  %v4499_v31 = vld [vmem:[%s6109_s1 + $0x9c8] ss:$16 sps:$4 sm:$0xff]  }
 0x12e   :  { %v4504_v25 = vld [vmem:[%s6109_s1 + $0x9e4] ss:$16 sps:$4 sm:$0xff]   ;;  %v4507_v32 = vld [vmem:[%s6109_s1 + $0x9ec] ss:$16 sps:$4 sm:$0xff]   ;;  %v4502_v33 = vld [vmem:[%s6109_s1 + $0x9e0] ss:$16 sps:$4 sm:$0xff]  }
 0x12f   :  { %2739 = vmatpush1.bf16.msra.mxu0 %v4478_v16  ;;  %3026 = vmatpush1.bf16.msra.mxu1 %v4481_v17  ;;  %v4505_v34 = vld [vmem:[%s6109_s1 + $0x9e8] ss:$16 sps:$4 sm:$0xff]   ;;  %v4511_v26 = vld [vmem:[%s6109_s1 + $0xa04] ss:$16 sps:$4 sm:$0xff]   ;;  %v4514_v36 = vld [vmem:[%s6109_s1 + $0xa0c] ss:$16 sps:$4 sm:$0xff]  }
 0x130   :  { %2740 = vmatprep.subr.bf16.mxu0 %v4486_v18  ;;  %3027 = vmatprep.subr.bf16.mxu1 %v4489_v19  ;;  %v4509_v38 = vld [vmem:[%s6109_s1 + $0xa00] ss:$16 sps:$4 sm:$0xff]   ;;  %v4512_v39 = vld [vmem:[%s6109_s1 + $0xa08] ss:$16 sps:$4 sm:$0xff]   ;;  %v4517_v40 = vld [vmem:[%s6109_s1 + $0xa24] ss:$16 sps:$4 sm:$0xff]  }
 0x131   :  { %v4520_v27 = vld [vmem:[%s6109_s1 + $0xa2c] ss:$16 sps:$4 sm:$0xff]   ;;  %v4515_v43 = vld [vmem:[%s6109_s1 + $0xa20] ss:$16 sps:$4 sm:$0xff]   ;;  %v4518_v44 = vld [vmem:[%s6109_s1 + $0xa28] ss:$16 sps:$4 sm:$0xff]  }
 0x132   :  { %v4523_v35 = vld [vmem:[%s6109_s1 + $0xa44] ss:$16 sps:$4 sm:$0xff]   ;;  %v4526_v45 = vld [vmem:[%s6109_s1 + $0xa4c] ss:$16 sps:$4 sm:$0xff]   ;;  %v4521_v46 = vld [vmem:[%s6109_s1 + $0xa40] ss:$16 sps:$4 sm:$0xff]  }
 0x133   :  { %2741 = vmatpush1.bf16.msra.mxu0 %v4484_v20  ;;  %3028 = vmatpush1.bf16.msra.mxu1 %v4487_v22  ;;  %v4524_v47 = vld [vmem:[%s6109_s1 + $0xa48] ss:$16 sps:$4 sm:$0xff]   ;;  %v4529_v48 = vld [vmem:[%s6109_s1 + $0xa64] ss:$16 sps:$4 sm:$0xff]   ;;  %v4532_v50 = vld [vmem:[%s6109_s1 + $0xa6c] ss:$16 sps:$4 sm:$0xff]  }
 0x134   :  { %2742 = vmatprep.subr.bf16.mxu0 %v4492_v23  ;;  %3029 = vmatprep.subr.bf16.mxu1 %v4495_v24  ;;  %v4527_v51 = vld [vmem:[%s6109_s1 + $0xa60] ss:$16 sps:$4 sm:$0xff]   ;;  %v4530_v53 = vld [vmem:[%s6109_s1 + $0xa68] ss:$16 sps:$4 sm:$0xff]   ;;  %v4535_v54 = vld [vmem:[%s6109_s1 + $0xa84] ss:$16 sps:$4 sm:$0xff]  }
 0x135   :  { %v4538_v55 = vld [vmem:[%s6109_s1 + $0xa8c] ss:$16 sps:$4 sm:$0xff]   ;;  %v4533_v56 = vld [vmem:[%s6109_s1 + $0xa80] ss:$16 sps:$4 sm:$0xff]   ;;  %v4536_v57 = vld [vmem:[%s6109_s1 + $0xa88] ss:$16 sps:$4 sm:$0xff]  }
 0x136   :  { %v4541_v58 = vld [vmem:[%s6109_s1 + $0xaa4] ss:$16 sps:$4 sm:$0xff]   ;;  %v4544_v59 = vld [vmem:[%s6109_s1 + $0xaac] ss:$16 sps:$4 sm:$0xff]   ;;  %v4539_v60 = vld [vmem:[%s6109_s1 + $0xaa0] ss:$16 sps:$4 sm:$0xff]  }
 0x137   :  { %2743 = vmatpush1.bf16.msra.mxu0 %v4490_v13  ;;  %3030 = vmatpush1.bf16.msra.mxu1 %v4493_v28  ;;  %v4542_v61 = vld [vmem:[%s6109_s1 + $0xaa8] ss:$16 sps:$4 sm:$0xff]   ;;  %v4547_v62 = vld [vmem:[%s6109_s1 + $0xac4] ss:$16 sps:$4 sm:$0xff]   ;;  %v4550_v63 = vld [vmem:[%s6109_s1 + $0xacc] ss:$16 sps:$4 sm:$0xff]  }
 0x138   :  { %2744 = vmatprep.subr.bf16.mxu0 %v4498_v29  ;;  %3031 = vmatprep.subr.bf16.mxu1 %v4501_v14  ;;  %v4545_v0 = vld [vmem:[%s6109_s1 + $0xac0] ss:$16 sps:$4 sm:$0xff]   ;;  %v4548_v1 = vld [vmem:[%s6109_s1 + $0xac8] ss:$16 sps:$4 sm:$0xff]   ;;  %v4553_v2 = vld [vmem:[%s6109_s1 + $0xae4] ss:$16 sps:$4 sm:$0xff]  }
 0x139   :  { %v4556_v3 = vld [vmem:[%s6109_s1 + $0xaec] ss:$16 sps:$4 sm:$0xff]   ;;  %v4551_v4 = vld [vmem:[%s6109_s1 + $0xae0] ss:$16 sps:$4 sm:$0xff]   ;;  %v4554_v5 = vld [vmem:[%s6109_s1 + $0xae8] ss:$16 sps:$4 sm:$0xff]  }
 0x13a   :  { %v4559_v6 = vld [vmem:[%s6109_s1 + $0xb04] ss:$16 sps:$4 sm:$0xff]   ;;  %v4562_v7 = vld [vmem:[%s6109_s1 + $0xb0c] ss:$16 sps:$4 sm:$0xff]   ;;  %v4557_v8 = vld [vmem:[%s6109_s1 + $0xb00] ss:$16 sps:$4 sm:$0xff]  }
 0x13b   :  { %2745 = vmatpush1.bf16.msra.mxu0 %v4496_v30  ;;  %3032 = vmatpush1.bf16.msra.mxu1 %v4499_v31  ;;  %v4560_v9 = vld [vmem:[%s6109_s1 + $0xb08] ss:$16 sps:$4 sm:$0xff]   ;;  %v4565_v10 = vld [vmem:[%s6109_s1 + $0xb24] ss:$16 sps:$4 sm:$0xff]   ;;  %v4568_v11 = vld [vmem:[%s6109_s1 + $0xb2c] ss:$16 sps:$4 sm:$0xff]  }
 0x13c   :  { %2746 = vmatprep.subr.bf16.mxu0 %v4504_v25  ;;  %3033 = vmatprep.subr.bf16.mxu1 %v4507_v32  ;;  %v4563_v12 = vld [vmem:[%s6109_s1 + $0xb20] ss:$16 sps:$4 sm:$0xff]   ;;  %v4566_v52 = vld [vmem:[%s6109_s1 + $0xb28] ss:$16 sps:$4 sm:$0xff]   ;;  %v4571_v15 = vld [vmem:[%s6109_s1 + $0xb44] ss:$16 sps:$4 sm:$0xff]  }
 0x13d   :  { %v4574_v16 = vld [vmem:[%s6109_s1 + $0xb4c] ss:$16 sps:$4 sm:$0xff]   ;;  %v4569_v17 = vld [vmem:[%s6109_s1 + $0xb40] ss:$16 sps:$4 sm:$0xff]   ;;  %v4572_v18 = vld [vmem:[%s6109_s1 + $0xb48] ss:$16 sps:$4 sm:$0xff]  }
 0x13e   :  { %v4577_v19 = vld [vmem:[%s6109_s1 + $0xb64] ss:$16 sps:$4 sm:$0xff]   ;;  %v4580_v20 = vld [vmem:[%s6109_s1 + $0xb6c] ss:$16 sps:$4 sm:$0xff]   ;;  %v4575_v22 = vld [vmem:[%s6109_s1 + $0xb60] ss:$16 sps:$4 sm:$0xff]  }
 0x13f   :  { %2747 = vmatpush1.bf16.msra.mxu0 %v4502_v33  ;;  %3034 = vmatpush1.bf16.msra.mxu1 %v4505_v34  ;;  %v4578_v23 = vld [vmem:[%s6109_s1 + $0xb68] ss:$16 sps:$4 sm:$0xff]   ;;  %v4583_v24 = vld [vmem:[%s6109_s1 + $0xb84] ss:$16 sps:$4 sm:$0xff]   ;;  %v4586_v13 = vld [vmem:[%s6109_s1 + $0xb8c] ss:$16 sps:$4 sm:$0xff]  }
 0x140   :  { %2757 = vmatprep.subr.bf16.mxu0 %v4511_v26  ;;  %3044 = vmatprep.subr.bf16.mxu1 %v4514_v36  ;;  %v4581_v28 = vld [vmem:[%s6109_s1 + $0xb80] ss:$16 sps:$4 sm:$0xff]   ;;  %v4584_v29 = vld [vmem:[%s6109_s1 + $0xb88] ss:$16 sps:$4 sm:$0xff]   ;;  %v4589_v14 = vld [vmem:[%s6109_s1 + $0xba4] ss:$16 sps:$4 sm:$0xff]  }
 0x141   :  { %v4592_v30 = vld [vmem:[%s6109_s1 + $0xbac] ss:$16 sps:$4 sm:$0xff]   ;;  %v4587_v31 = vld [vmem:[%s6109_s1 + $0xba0] ss:$16 sps:$4 sm:$0xff]   ;;  %v4590_v25 = vld [vmem:[%s6109_s1 + $0xba8] ss:$16 sps:$4 sm:$0xff]  }
 0x142   :  { %2749 = vmatmul.mubr.bf16.vlgmr.msra.gmra.mrb[0].mxu0 %v5744_v37  ;;  %3036 = vmatmul.mubr.bf16.vlgmr.msra.gmra.mrb[0].mxu1 %v5744_v37  ;;  %v4595_v32 = vld [vmem:[%s6109_s1 + $0xbc4] ss:$16 sps:$4 sm:$0xff]   ;;  %v4598_v33 = vld [vmem:[%s6109_s1 + $0xbcc] ss:$16 sps:$4 sm:$0xff]   ;;  %v4593_v34 = vld [vmem:[%s6109_s1 + $0xbc0] ss:$16 sps:$4 sm:$0xff]  }
 0x143   :  { %2758 = vmatpush1.bf16.msra.mxu0 %v4509_v38  ;;  %3045 = vmatpush1.bf16.msra.mxu1 %v4512_v39  ;;  %v4596_v26 = vld [vmem:[%s6109_s1 + $0xbc8] ss:$16 sps:$4 sm:$0xff]   ;;  %v4601_v36 = vld [vmem:[%s6109_s1 + $0xbe4] ss:$16 sps:$4 sm:$0xff]   ;;  %v4604_v38 = vld [vmem:[%s6109_s1 + $0xbec] ss:$16 sps:$4 sm:$0xff]  }
 0x144   :  { %2759 = vmatprep.subr.bf16.mxu0 %v4517_v40  ;;  %3046 = vmatprep.subr.bf16.mxu1 %v4520_v27  ;;  %v4599_v39 = vld [vmem:[%s6109_s1 + $0xbe0] ss:$16 sps:$4 sm:$0xff]   ;;  %v4602_v40 = vld [vmem:[%s6109_s1 + $0xbe8] ss:$16 sps:$4 sm:$0xff]   ;;  %v4607_v27 = vld [vmem:[%s6109_s1 + $0xc04] ss:$16 sps:$4 sm:$0xff]  }
 0x145   :  { %2789 = vmatprep.mubr.bf16.mxu0 %v535_v41  ;;  %3076 = vmatprep.mubr.bf16.mxu1 %v535_v41  ;;  %v4610_v41 = vld [vmem:[%s6109_s1 + $0xc0c] ss:$16 sps:$4 sm:$0xff]   ;;  %vm2548_vm0 = vcmask 523264   ;;  %s4687_s21 = smov [#allocation2]   ;;  %vm3477_vm1 = vcmask 74752  }
 0x146   :  { %s3485_s22 = sshll.u32 %s4687_s21, 4  ;;  %s3486_s22 = int_to_ptr.vmem [resolvable:$true] %s3485_s22 }
 0x147   :  { %2760 = vmatpush1.bf16.msra.mxu0 %v4515_v43  ;;  %3047 = vmatpush1.bf16.msra.mxu1 %v4518_v44  ;;  %v534_v43 = vcombine.high %v5744_v37, %v5744_v37  ;;  %v4605_v44 = vld [vmem:[%s6109_s1 + $0xc00] ss:$16 sps:$4 sm:$0xff]   ;;  %v4616_v37 = vld [vmem:[%s6109_s1 + $0xc2c] ss:$16 sps:$4 sm:$0xff]   ;;  %s4661_s23 = scalar_lea.vmem %s3486_s22, 32  ;;  %p4666_p1 = scmp.lt.s32.totalorder %s3486_s22, %s3486_s22 }
 0x148   :  { %2761 = vmatprep.subr.bf16.mxu0 %v4523_v35  ;;  %3048 = vmatprep.subr.bf16.mxu1 %v4526_v45  ;;  %v4608_v35 = vld [vmem:[%s6109_s1 + $0xc08] ss:$16 sps:$4 sm:$0xff]   ;;  %v4613_v45 = vld [vmem:[%s6109_s1 + $0xc24] ss:$16 sps:$4 sm:$0xff]   ;;  %p4662_p0 = scmp.ne.s32.totalorder %s3486_s22, %s4661_s23  ;;  %p4667_p2 = scmp.lt.s32.totalorder %s4661_s23, %s4661_s23 }
 0x14a   :  { %p4668_p3 = por %p4667_p2, %p4666_p1 }
 0x14b   :  { %2762 = vmatpush1.bf16.msra.mxu0 %v4521_v46  ;;  %3049 = vmatpush1.bf16.msra.mxu1 %v4524_v47  ;;  %v4611_v46 = vld [vmem:[%s6109_s1 + $0xc20] ss:$16 sps:$4 sm:$0xff]   ;;  %v4614_v47 = vld [vmem:[%s6109_s1 + $0xc28] ss:$16 sps:$4 sm:$0xff]  }
 0x14c   :  { %2763 = vmatprep.subr.bf16.mxu0 %v4529_v48  ;;  %3050 = vmatprep.subr.bf16.mxu1 %v4532_v50  ;;  %v4619_v48 = vld [vmem:[%s6109_s1 + $0xc44] ss:$16 sps:$4 sm:$0xff]   ;;  %v4622_v50 = vld [vmem:[%s6109_s1 + $0xc4c] ss:$16 sps:$4 sm:$0xff]   ;;  %p4669_p4 = pnand %p4668_p3, %p4662_p0 }
 0x14f   :  { %2764 = vmatpush1.bf16.msra.mxu0 %v4527_v51  ;;  %3051 = vmatpush1.bf16.msra.mxu1 %v4530_v53  ;;  %v4686_v51 = vmov 0   ;;  %v497_v53 = vcombine.high %v5511_v21, %v5511_v21  ;;  %v4628_v21 = vld [vmem:[%s6109_s1 + $0xc6c] ss:$16 sps:$4 sm:$0xff]  }
 0x150   :  { %2765 = vmatprep.subr.bf16.mxu0 %v4535_v54  ;;  %3052 = vmatprep.subr.bf16.mxu1 %v4538_v55  ;;  %v4617_v54 = vld [vmem:[%s6109_s1 + $0xc40] ss:$16 sps:$4 sm:$0xff]   ;;  %v4620_v55 = vld [vmem:[%s6109_s1 + $0xc48] ss:$16 sps:$4 sm:$0xff]  }
 0x153   :  { %2766 = vmatpush1.bf16.msra.mxu0 %v4533_v56  ;;  %3053 = vmatpush1.bf16.msra.mxu1 %v4536_v57  ;;  %v4625_v56 = vld [vmem:[%s6109_s1 + $0xc64] ss:$16 sps:$4 sm:$0xff]   ;;  %v511_v57 = vrot.slane %v497_v53, %v4853_v49 }
 0x154   :  { %2767 = vmatprep.subr.bf16.mxu0 %v4541_v58  ;;  %3054 = vmatprep.subr.bf16.mxu1 %v4544_v59  ;;  %v4623_v58 = vld [vmem:[%s6109_s1 + $0xc60] ss:$16 sps:$4 sm:$0xff]   ;;  %v4626_v59 = vld [vmem:[%s6109_s1 + $0xc68] ss:$16 sps:$4 sm:$0xff]  }
 0x157   :  { %2768 = vmatpush1.bf16.msra.mxu0 %v4539_v60  ;;  %3055 = vmatpush1.bf16.msra.mxu1 %v4542_v61  ;;  %v4629_v60 = vld [vmem:[%s6111_s3 + $0x40] sm:$0xff]  }
 0x158   :  { %2769 = vmatprep.subr.bf16.mxu0 %v4547_v62  ;;  %3056 = vmatprep.subr.bf16.mxu1 %v4550_v63  ;;  %v4630_v61 = vld [vmem:[%s6111_s3 + $0xc0] sm:$0xff]   ;;  %v526_v62 = vrot.slane %v511_v57, %v4853_v49  ;;  %v4634_v49 = vld [vmem:[%s6111_s3 + $0xc8] sm:$0xff]  }
 0x159   :  { %v4631_v63 = vld [vmem:[%s6111_s3] sm:$0xff]  }
 0x15b   :  { %2770 = vmatpush1.bf16.msra.mxu0 %v4545_v0  ;;  %3057 = vmatpush1.bf16.msra.mxu1 %v4548_v1  ;;  %v4632_v0 = vld [vmem:[%s6111_s3 + $0x80] sm:$0xff]   ;;  %v4633_v1 = vld [vmem:[%s6111_s3 + $0x48] sm:$0xff]  }
 0x15c   :  { %2771 = vmatprep.subr.bf16.mxu0 %v4553_v2  ;;  %3058 = vmatprep.subr.bf16.mxu1 %v4556_v3  ;;  %v4635_v2 = vld [vmem:[%s6111_s3 + $0x8] sm:$0xff]  }
 0x15d   :  { %v4636_v3 = vld [vmem:[%s6111_s3 + $0x88] sm:$0xff]  }
 0x15f   :  { %2772 = vmatpush1.bf16.msra.mxu0 %v4551_v4  ;;  %3059 = vmatpush1.bf16.msra.mxu1 %v4554_v5  ;;  %v4637_v4 = vld [vmem:[%s6111_s3 + $0x50] sm:$0xff]  }
 0x160   :  { %2773 = vmatprep.subr.bf16.mxu0 %v4559_v6  ;;  %3060 = vmatprep.subr.bf16.mxu1 %v4562_v7  ;;  %v4638_v5 = vld [vmem:[%s6111_s3 + $0xd0] sm:$0xff]  }
 0x161   :  { %v4639_v6 = vld [vmem:[%s6111_s3 + $0x10] sm:$0xff]  }
 0x162   :  { %v4640_v7 = vld [vmem:[%s6111_s3 + $0x90] sm:$0xff]  }
 0x163   :  { %2774 = vmatpush1.bf16.msra.mxu0 %v4557_v8  ;;  %3061 = vmatpush1.bf16.msra.mxu1 %v4560_v9  ;;  %v4641_v8 = vld [vmem:[%s6111_s3 + $0x58] sm:$0xff]  }
 0x164   :  { %2775 = vmatprep.subr.bf16.mxu0 %v4565_v10  ;;  %3062 = vmatprep.subr.bf16.mxu1 %v4568_v11  ;;  %v4642_v9 = vld [vmem:[%s6111_s3 + $0xd8] sm:$0xff]  }
 0x165   :  { %v4643_v10 = vld [vmem:[%s6111_s3 + $0x18] sm:$0xff]  }
 0x166   :  { %v4644_v11 = vld [vmem:[%s6111_s3 + $0x98] sm:$0xff]  }
 0x167   :  { %2776 = vmatpush1.bf16.msra.mxu0 %v4563_v12  ;;  %3063 = vmatpush1.bf16.msra.mxu1 %v4566_v52  ;;  %v4645_v12 = vld [vmem:[%s6111_s3 + $0x60] sm:$0xff]  }
 0x168   :  { %2777 = vmatprep.subr.bf16.mxu0 %v4571_v15  ;;  %3064 = vmatprep.subr.bf16.mxu1 %v4574_v16  ;;  %v4646_v52 = vld [vmem:[%s6111_s3 + $0xe0] sm:$0xff]  }
 0x169   :  { %v4647_v15 = vld [vmem:[%s6111_s3 + $0x20] sm:$0xff]  }
 0x16a   :  { %v4648_v16 = vld [vmem:[%s6111_s3 + $0xa0] sm:$0xff]  }
 0x16b   :  { %2778 = vmatpush1.bf16.msra.mxu0 %v4569_v17  ;;  %3065 = vmatpush1.bf16.msra.mxu1 %v4572_v18  ;;  %v4649_v17 = vld [vmem:[%s6111_s3 + $0x68] sm:$0xff]  }
 0x16c   :  { %2779 = vmatprep.subr.bf16.mxu0 %v4577_v19  ;;  %3066 = vmatprep.subr.bf16.mxu1 %v4580_v20  ;;  %v4650_v18 = vld [vmem:[%s6111_s3 + $0xe8] sm:$0xff]  }
 0x16d   :  { %v4651_v19 = vld [vmem:[%s6111_s3 + $0x28] sm:$0xff]  }
 0x16e   :  { %v4652_v20 = vld [vmem:[%s6111_s3 + $0xa8] sm:$0xff]  }
 0x16f   :  { %2780 = vmatpush1.bf16.msra.mxu0 %v4575_v22  ;;  %3067 = vmatpush1.bf16.msra.mxu1 %v4578_v23  ;;  %v4653_v22 = vld [vmem:[%s6111_s3 + $0x70] sm:$0xff]  }
 0x170   :  { %2781 = vmatprep.subr.bf16.mxu0 %v4583_v24  ;;  %3068 = vmatprep.subr.bf16.mxu1 %v4586_v13  ;;  %v4654_v23 = vld [vmem:[%s6111_s3 + $0xf0] sm:$0xff]  }
 0x171   :  { %v4655_v24 = vld [vmem:[%s6111_s3 + $0x30] sm:$0xff]  }
 0x172   :  { %v4656_v13 = vld [vmem:[%s6111_s3 + $0xb0] sm:$0xff]  }
 0x173   :  { %2782 = vmatpush1.bf16.msra.mxu0 %v4581_v28  ;;  %3069 = vmatpush1.bf16.msra.mxu1 %v4584_v29  ;;  %v4657_v28 = vld [vmem:[%s6111_s3 + $0x78] sm:$0xff]  }
 0x174   :  { %2783 = vmatprep.subr.bf16.mxu0 %v4589_v14  ;;  %3070 = vmatprep.subr.bf16.mxu1 %v4592_v30  ;;  %v4658_v29 = vld [vmem:[%s6111_s3 + $0xf8] sm:$0xff]  }
 0x175   :  { %v4659_v14 = vld [vmem:[%s6111_s3 + $0x38] sm:$0xff]  }
 0x176   :  { %v4660_v30 = vld [vmem:[%s6111_s3 + $0xb8] sm:$0xff]  }
 0x177   :  { %2784 = vmatpush1.bf16.msra.mxu0 %v4587_v31  ;;  %3071 = vmatpush1.bf16.msra.mxu1 %v4590_v25  ;;  %v428_v31 = vsub.s32 0, %v4835_v42  ;;  %v436_v25 = vsub.s32 2, %v4835_v42 }
 0x178   :  { %2785 = vmatprep.subr.bf16.mxu0 %v4595_v32  ;;  %3072 = vmatprep.subr.bf16.mxu1 %v4598_v33  ;;  %v424_v32 = vld [vmem:[%s6110_s2] sm:$0xf]  ;;  %v432_v33 = vsub.s32 1, %v4835_v42 }
 0x17b   :  { %2786 = vmatpush1.bf16.msra.mxu0 %v4593_v34  ;;  %3073 = vmatpush1.bf16.msra.mxu1 %v4596_v26  ;;  %v440_v34 = vsub.s32 3, %v4835_v42  ;;  %v429_v26 = vrot.slane %v424_v32, %v428_v31 }
 0x17c   :  { %2787 = vmatprep.subr.bf16.mxu0 %v4601_v36  ;;  %3074 = vmatprep.subr.bf16.mxu1 %v4604_v38  ;;  %v437_v36 = vrot.slane %v424_v32, %v436_v25  ;;  %v433_v38 = vrot.slane %v424_v32, %v432_v33 }
 0x17f   :  { %2788 = vmatpush1.bf16.msra.mxu0 %v4599_v39  ;;  %3075 = vmatpush1.bf16.msra.mxu1 %v4602_v40  ;;  %v441_v39 = vrot.slane %v424_v32, %v440_v34 }
 0x180   :  { %2798 = vmatprep.subr.bf16.mxu0 %v4607_v27  ;;  %3085 = vmatprep.subr.bf16.mxu1 %v4610_v41 }
 0x182   :  { %2790 = vmatmul.mubr.bf16.vlgmr.msra.gmra.mrb[0].mxu0 %v534_v43  ;;  %3077 = vmatmul.mubr.bf16.vlgmr.msra.gmra.mrb[0].mxu1 %v534_v43 }
 0x183   :  { %2799 = vmatpush1.bf16.msra.mxu0 %v4605_v44  ;;  %3086 = vmatpush1.bf16.msra.mxu1 %v4608_v35 }
 0x184   :  { %2800 = vmatprep.subr.bf16.mxu0 %v4613_v45  ;;  %3087 = vmatprep.subr.bf16.mxu1 %v4616_v37 }
 0x185   :  { %2830 = vmatprep.mubr.bf16.mxu0 %v4686_v51  ;;  %3117 = vmatprep.mubr.bf16.mxu1 %v4686_v51 }
 0x187   :  { %2801 = vmatpush1.bf16.msra.mxu0 %v4611_v46  ;;  %3088 = vmatpush1.bf16.msra.mxu1 %v4614_v47 }
 0x188   :  { %2802 = vmatprep.subr.bf16.mxu0 %v4619_v48  ;;  %3089 = vmatprep.subr.bf16.mxu1 %v4622_v50 }
 0x18b   :  { %2803 = vmatpush1.bf16.msra.mxu0 %v4617_v54  ;;  %3090 = vmatpush1.bf16.msra.mxu1 %v4620_v55 }
 0x18c   :  { %2804 = vmatprep.subr.bf16.mxu0 %v4625_v56  ;;  %3091 = vmatprep.subr.bf16.mxu1 %v4628_v21 }
 0x18f   :  { %2805 = vmatpush1.bf16.msra.mxu0 %v4623_v58  ;;  %3092 = vmatpush1.bf16.msra.mxu1 %v4626_v59 }
 0x190   :  { %3928 = vmatprep.subr.bf16.mxu0 %v4629_v60  ;;  %3950 = vmatprep.subr.bf16.mxu1 %v4630_v61  ;;  %v3895_v60 = vld [vmem:[%s6112_s4] ss:$0 sm:$0xff] }
 0x192   :  { %3893 = vmatmul.mubr.msk.bf16.vlgmr.msra.gmra.mrb[0].mxu0 %vm2548_vm0, %v526_v62  ;;  %3894 = vmatmul.mubr.msk.bf16.vlgmr.msra.gmra.mrb[0].mxu1 %vm2548_vm0, %v526_v62 }
 0x193   :  { %3929 = vmatpush3.bf16.msra.mxu0 %v4631_v63  ;;  %3951 = vmatpush3.bf16.msra.mxu1 %v4632_v0 }
 0x194   :  { %3930 = vmatprep.subr.bf16.mxu0 %v4633_v1  ;;  %3952 = vmatprep.subr.bf16.mxu1 %v4634_v49 }
 0x197   :  { %3931 = vmatpush3.bf16.msra.mxu0 %v4635_v2  ;;  %3953 = vmatpush3.bf16.msra.mxu1 %v4636_v3 }
 0x198   :  { %3932 = vmatprep.subr.bf16.mxu0 %v4637_v4  ;;  %3954 = vmatprep.subr.bf16.mxu1 %v4638_v5 }
 0x19b   :  { %3933 = vmatpush3.bf16.msra.mxu0 %v4639_v6  ;;  %3955 = vmatpush3.bf16.msra.mxu1 %v4640_v7 }
 0x19c   :  { %3934 = vmatprep.subr.bf16.mxu0 %v4641_v8  ;;  %3956 = vmatprep.subr.bf16.mxu1 %v4642_v9 }
 0x19f   :  { %3935 = vmatpush3.bf16.msra.mxu0 %v4643_v10  ;;  %3957 = vmatpush3.bf16.msra.mxu1 %v4644_v11 }
 0x1a0   :  { %3936 = vmatprep.subr.bf16.mxu0 %v4645_v12  ;;  %3958 = vmatprep.subr.bf16.mxu1 %v4646_v52 }
 0x1a3   :  { %3937 = vmatpush3.bf16.msra.mxu0 %v4647_v15  ;;  %3959 = vmatpush3.bf16.msra.mxu1 %v4648_v16 }
 0x1a4   :  { %3938 = vmatprep.subr.bf16.mxu0 %v4649_v17  ;;  %3960 = vmatprep.subr.bf16.mxu1 %v4650_v18 }
 0x1a7   :  { %3939 = vmatpush3.bf16.msra.mxu0 %v4651_v19  ;;  %3961 = vmatpush3.bf16.msra.mxu1 %v4652_v20 }
 0x1a8   :  { %3940 = vmatprep.subr.bf16.mxu0 %v4653_v22  ;;  %3962 = vmatprep.subr.bf16.mxu1 %v4654_v23 }
 0x1ab   :  { %3941 = vmatpush3.bf16.msra.mxu0 %v4655_v24  ;;  %3963 = vmatpush3.bf16.msra.mxu1 %v4656_v13 }
 0x1ac   :  { %3942 = vmatprep.subr.bf16.mxu0 %v4657_v28  ;;  %3964 = vmatprep.subr.bf16.mxu1 %v4658_v29 }
 0x1af   :  { %3943 = vmatpush3.bf16.msra.mxu0 %v4659_v14  ;;  %3965 = vmatpush3.bf16.msra.mxu1 %v4660_v30 }
 0x265   :  { %v2832_v40 = vpop.f32.mrb[0].mxu0  ;;  %v3119_v27 = vpop.f32.mrb[0].mxu1 }
 0x266   :  { %v3972_v41 = vadd.f32 %v2832_v40, %v429_v26  ;;  %v3974_v43 = vadd.f32 %v3119_v27, %v437_v36  ;;  %v2834_v44 = vpop.f32.mrb[1].mxu0  ;;  %v3121_v35 = vpop.f32.mrb[1].mxu1 }
 0x267   :  { %v3973_v45 = vadd.f32 %v2834_v44, %v433_v38  ;;  %v3975_v37 = vadd.f32 %v3121_v35, %v441_v39  ;;  %v2836_v46 = vpop.f32.mrb[2].mxu0  ;;  %v3123_v47 = vpop.f32.mrb[2].mxu1 }
 0x268   :  { %v3126_v48 = vmax.f32 %v3972_v41, 0.0  ;;  %v3128_v50 = vmax.f32 %v3974_v43, 0.0  ;;  %v2837_v51 = vpop.f32.mrb[3].mxu0  ;;  %v3124_v53 = vpop.f32.mrb[3].mxu1 }
 0x269   :  { %v3127_v54 = vmax.f32 %v3973_v45, 0.0  ;;  %v3129_v42 = vmax.f32 %v3975_v37, 0.0 }
 0x26a   :  { %v3130_v21 = vpack.c.bf16 %v3126_v48, %v3126_v48  ;;  %v3132_v57 = vpack.c.bf16 %v3128_v50, %v3128_v50 }
 0x26b   :  { %v3131_v55 = vpack.c.bf16 %v3127_v54, %v3127_v54  ;;  %v3133_v56 = vpack.c.bf16 %v3129_v42, %v3129_v42 }
 0x26d   :  { %3429 = vmatprep.mubr.bf16.mxu0 %v3131_v55  ;;  %3469 = vmatprep.mubr.bf16.mxu1 %v3133_v56 }
 0x26e   :  { %3430 = vmatmul.mubr.bf16.vlgmr.msra.gmra.mrb[4].mxu0 %v3130_v21  ;;  %3470 = vmatmul.mubr.bf16.vlgmr.msra.gmra.mrb[4].mxu1 %v3132_v57 }
 0x341   :  { %v3944_v58 = vpop.f32.mrb[4].mxu0  ;;  %v3966_v59 = vpop.f32.mrb[4].mxu1 }
 0x342   :  { %v3945_v61 = vpop.f32.mrb[5].mxu0  ;;  %v3967_v62 = vpop.f32.mrb[5].mxu1 }
 0x343   :  { %v3946_v63 = vadd.f32 %v3945_v61, %v3944_v58  ;;  %v3968_v0 = vadd.f32 %v3967_v62, %v3966_v59  ;;  %v3947_v1 = vpop.f32.mrb[6].mxu0  ;;  %v3969_v49 = vpop.f32.mrb[6].mxu1 }
 0x344   :  { %v3948_v2 = vpop.f32.mrb[7].mxu0  ;;  %v3970_v3 = vpop.f32.mrb[7].mxu1 }
 0x345   :  { %v3432_v4 = vadd.f32 %v3946_v63, %v3895_v60 }
 0x347   :  { %v3472_v5 = vadd.f32 %v3968_v0, %v3432_v4 }
 0x349   :  { %3478 = vst.msk [vmem:[#allocation2] sm:$0x3] %vm3477_vm1, %v3472_v5 }
 0x34a   :  { %4672 = shalt.err (!%p4669_p4)
}
 0x34b   :  { %s4673_s25 = scalar_lea.hbm %s6113_s5, 32 }
 0x34c   :  { %p4674_p5 = scmp.ne.s32.totalorder %s6113_s5, %s4673_s25  ;;  %p4677_p6 = scmp.lt.u32.totalorder %s4673_s25, %s6113_s5 }
 0x34e   :  { %p4679_p7 = pnand %p4677_p6, %p4674_p5 }
 0x350   :  { %4682 = shalt.err (!%p4679_p7)
}
 0x351   :  { %3488 = dma.vmem_to_hbm [thread:$0]  %s3486_s22, 32, %s6113_s5, [#allocation3]  }
 0x352   :  { %4683 = dma.done.wait [#allocation3], 32  }
 0x353   :  { %4684 = vsyncadd [#allocation3], 4294967264 }
 0x354   :  { %3492 = vsyncpa [#allocation3], 1 }

// kernel: cnn_forward.2
= control target key start
LH: loop header
LB: loop body
LE: loop exit
PB: predicated region body
PF: predicated region fallthrough
CT: control target
= control target key end

     0   :  { %s8016_s25 = smov 0   ;;  %s10465_s0 = inlined_call_operand.vmem [shape: f32[2,3,1024], index: 0, kind: input, shape index: {}]   ;;  %s10466_s1 = inlined_call_operand.vmem [shape: bf16[32,72], index: 1, kind: input, shape index: {}]   ;;  %s10467_s2 = inlined_call_operand.vmem [shape: f32[32,1], index: 2, kind: input, shape index: {}]   ;;  %s10468_s3 = inlined_call_operand.vmem [shape: bf16[32,288], index: 3, kind: input, shape index: {}]   ;;  %s10469_s4 = inlined_call_operand.vmem [shape: f32[32,1], index: 4, kind: input, shape index: {}]   ;;  %s10470_s5 = inlined_call_operand.vmem [shape: bf16[64,288], index: 5, kind: input, shape index: {}]   ;;  %s10471_s6 = inlined_call_operand.vmem [shape: f32[64,1], index: 6, kind: input, shape index: {}]   ;;  %s10472_s7 = inlined_call_operand.vmem [shape: bf16[64,576], index: 7, kind: input, shape index: {}]   ;;  %s10473_s8 = inlined_call_operand.vmem [shape: f32[64,1], index: 8, kind: input, shape index: {}]   ;;  %s10474_s9 = inlined_call_operand.vmem [shape: bf16[860,196], index: 9, kind: input, shape index: {}]   ;;  %s10475_s10 = inlined_call_operand.vmem [shape: bf16[860,196], index: 10, kind: input, shape index: {}]   ;;  %s10476_s11 = inlined_call_operand.vmem [shape: bf16[122,25], index: 11, kind: input, shape index: {}]   ;;  %s10477_s12 = inlined_call_operand.vmem [shape: bf16[122,25], index: 12, kind: input, shape index: {}]   ;;  %s10478_s13 = inlined_call_operand.vmem [shape: bf16[2,64,25], index: 13, kind: output, shape index: {}]  }
   0x1 LB: > { %s6805_s26 = sadd.s32 4294967295, %s7928_s25   ;;  %p6809_p0 = scmp.ge.s32.totalorder %s7928_s25, 1  ;;  %s7928_s25 = sphi %s8016_s25, %s23_s25  }
   0x2   : > { %p387_p1 = scmp.lt.s32.totalorder %s7928_s25, 3 }
   0x4   : > { %p388_p2 = pnand %p6809_p0, %p387_p1 }
   0x5   : > { %p431_p3 = scmp.lt.s32.totalorder (!%p388_p2), %s6805_s26, 1  ;;  %vm477_vm0 = vcmask (!%p388_p2), 1042432   ;;  %vm442_vm1 = vcmask (!%p388_p2), 1043457   ;;  %vm443_vm2 = vsmask.f32 (!%p388_p2), 7942  ;;  %vm445_vm3 = vcmask (!%p388_p2), 1047557  }
   0x6   : > { %391 = sbr.rel (%p388_p2) target bundleno = 3335 (0xd07), region = 72  ;;  %vm444_vm4 = vmand (!%p388_p2), %vm442_vm1, %vm443_vm2  ;;  %vm446_vm5 = vsmask.f32 (!%p388_p2), 7958  ;;  %v449_v62 = vld [vmem:[#allocation2] sm:$0xee] (!%p388_p2)  ;;  %vm613_vm10 = vcmask (!%p388_p2), 1041408  }
   0x7   : > { %vm447_vm6 = vmand (!%p388_p2), %vm445_vm3, %vm446_vm5  ;;  %s7930_s19 = smov (!%p388_p2), 0.018042196   ;;  %vm614_vm11 = vsmask.f32 (!%p388_p2), 1280  ;;  %vm616_vm12 = vcmask (!%p388_p2), 1045508   ;;  %vm639_vm1 = vcmask (!%p388_p2), 1043456  }
   0x8   : > { %vm448_vm7 = vmor (!%p388_p2), %vm447_vm6, %vm444_vm4  ;;  %vm617_vm13 = vsmask.f32 (!%p388_p2), 5376  ;;  %vm640_vm2 = vcmask (!%p388_p2), 506884   ;;  %s7931_s21 = smov (!%p388_p2), 126   ;;  %s7932_s22 = smov (!%p388_p2), 127   ;;  %vm665_vm4 = vcmask (!%p388_p2), 1039360  }
   0x9   : > { %vm615_vm14 = vmand (!%p388_p2), %vm613_vm10, %vm614_vm11  ;;  %s7933_s23 = smov (!%p388_p2), 94   ;;  %s7934_s24 = smov (!%p388_p2), 64   ;;  %vm701_vm5 = vcmask (!%p388_p2), 1031168   ;;  %vm737_vm6 = vcmask (!%p388_p2), 785408   ;;  %vm881_vm10 = vcmask (!%p388_p2), 515072   ;;  %vm917_vm11 = vcmask (!%p388_p2), 506880  }
   0xa   : > { %vm618_vm15 = vmand (!%p388_p2), %vm616_vm12, %vm617_vm13  ;;  %s7935_s28 = smov (!%p388_p2), 96   ;;  %s7936_s29 = smov (!%p388_p2), 63   ;;  %vm1186_vm12 = vcmask (!%p388_p2), 588800   ;;  %vm1514_vm13 = vcmask (!%p388_p2), 1014784  }
   0xb   : > { %vm8069_vm3 = vmor (!%p388_p2), %vm640_vm2, %vm639_vm1  ;;  %vm4872_vm2 = vcmask (!%p388_p2), 310272  }
   0xd   : > { %s10496_s26 = smov (!%p431_p3, %s6805_s26), 1 }
   0xe   : > { %s10479_s27 = sshll.u32 %s10496_s26, 5 }
   0xf   : > { %s435_s30 = scalar_lea.vmem %s10465_s0, %s10479_s27 }
  0x10   : > { %v461_v0 = vld [vmem:[%s435_s30] sm:$0x77]  ;;  %v462_v1 = vld [vmem:[%s435_s30 + $0x8] sm:$0x77]  ;;  %v463_v2 = vld [vmem:[%s435_s30 + $0x10] sm:$0x77] }
  0x11   : > { %v469_v3 = vcombine.high %v461_v0, %v461_v0  ;;  %v470_v4 = vcombine.high %v462_v1, %v462_v1  ;;  %v478_v5 = vsel %vm477_vm0, %v461_v0, 0.0  ;;  %v481_v7 = vsel %vm477_vm0, %v462_v1, 0.0  ;;  %v464_v8 = vld [vmem:[%s435_s30 + $0x18] sm:$0x77]  ;;  %s7937_s30 = smov 95  }
  0x12   : > { %v471_v10 = vcombine.high %v463_v2, %v463_v2  ;;  %v485_v13 = vsel %vm477_vm0, %v463_v2, 0.0  ;;  %v472_v15 = vcombine.high %v464_v8, %v464_v8  ;;  %v489_v18 = vsel %vm477_vm0, %v464_v8, 0.0 }
  0x13   : > { %v479_v6 = vsel %vm477_vm0, %v469_v3, 0.0  ;;  %v483_v11 = vsel %vm477_vm0, %v470_v4, 0.0  ;;  %v452_v3 = vld [vmem:[#allocation2 + $0x8] sm:$0xee]  ;;  %v455_v4 = vld [vmem:[#allocation2 + $0x10] sm:$0xee] }
  0x14   : > { %v480_v9 = vadd.f32 %v479_v6, %v478_v5  ;;  %v487_v16 = vsel %vm477_vm0, %v471_v10, 0.0  ;;  %v491_v20 = vsel %vm477_vm0, %v472_v15, 0.0  ;;  %v458_v5 = vld [vmem:[#allocation2 + $0x18] sm:$0xee]  ;;  %v453_v6 = vsel %vm448_vm7, 0, %v452_v3 }
  0x15   : > { %454 = vst [vmem:[#allocation2 + $0x8] sm:$0xee] %v453_v6 }
  0x16   : > { %v482_v12 = vadd.f32 %v481_v7, %v480_v9  ;;  %v456_v7 = vsel %vm448_vm7, 0, %v455_v4 }
  0x17   : > { %457 = vst [vmem:[#allocation2 + $0x10] sm:$0xee] %v456_v7 }
  0x18   : > { %v484_v14 = vadd.f32 %v483_v11, %v482_v12 }
  0x1a   : > { %v486_v17 = vadd.f32 %v485_v13, %v484_v14 }
  0x1c   : > { %v488_v19 = vadd.f32 %v487_v16, %v486_v17 }
  0x1e   : > { %v490_v21 = vadd.f32 %v489_v18, %v488_v19 }
  0x20   : > { %v492_v22 = vadd.f32 %v491_v20, %v490_v21 }
  0x22   : > { %493 = vadd.xlane.f32.xlu0 %v492_v22 }
  0xaf   : > { %v494_v23 = vpop.xlane.xlu0 %493 }
  0xb0   : > { %v495_v24 = vrot.slane %v494_v23, 4 }
  0xb2   : > { %v496_v25 = vadd.f32 %v495_v24, %v494_v23  ;;  %v623_v24 = vld [vmem:[#allocation2 + $0x8] sm:$0x33] }
  0xb4   : > { %v497_v26 = vrot.slane %v496_v25, 2 }
  0xb6   : > { %v498_v27 = vadd.f32 %v497_v26, %v496_v25 }
  0xb8   : > { %v499_v28 = vrot.slane %v498_v27, 1 }
  0xba   : > { %v500_v29 = vadd.f32 %v499_v28, %v498_v27  ;;  %v626_v27 = vld [vmem:[#allocation2 + $0x10] sm:$0x33] }
  0xbc   : > { %7486 = vpush %v500_v29 }
  0xed   : > { %s7487_s14 = spop %7486 }
  0xee   : > { %s504_s15 = smul.f32 0.00032552084, %s7487_s14  ;;  %s10480_s14 = smov 62  }
  0xf0   : > { %v505_v30 = vstv %s504_s15 }
  0xf1   : > { %v8040_v31 = vsub.f32 %v461_v0, %v505_v30  ;;  %v8042_v32 = vsub.f32 %v462_v1, %v505_v30  ;;  %v8044_v33 = vsub.f32 %v463_v2, %v505_v30  ;;  %v8050_v37 = vsub.f32 %v464_v8, %v505_v30 }
  0xf2   : > { %v450_v1 = vsel %vm448_vm7, 0, %v449_v62  ;;  %v459_v8 = vsel %vm448_vm7, 0, %v458_v5  ;;  %vm773_vm7 = vcmask 777216  }
  0xf3   : > { %v510_v34 = vmul.f32 %v8040_v31, %v8040_v31  ;;  %v511_v35 = vmul.f32 %v8042_v32, %v8042_v32  ;;  %v512_v38 = vmul.f32 %v8044_v33, %v8044_v33  ;;  %v513_v45 = vmul.f32 %v8050_v37, %v8050_v37  ;;  %451 = vst [vmem:[#allocation2] sm:$0xee] %v450_v1 }
  0xf4   : > { %460 = vst [vmem:[#allocation2 + $0x18] sm:$0xee] %v459_v8 }
  0xf5   : > { %v518_v36 = vcombine.high %v510_v34, %v510_v34  ;;  %v519_v39 = vcombine.high %v511_v35, %v511_v35  ;;  %v526_v40 = vsel %vm477_vm0, %v510_v34, 0.0  ;;  %v529_v43 = vsel %vm477_vm0, %v511_v35, 0.0 }
  0xf6   : > { %v520_v46 = vcombine.high %v512_v38, %v512_v38  ;;  %v533_v49 = vsel %vm477_vm0, %v512_v38, 0.0  ;;  %v521_v51 = vcombine.high %v513_v45, %v513_v45  ;;  %v537_v54 = vsel %vm477_vm0, %v513_v45, 0.0  ;;  %v974_v45 = vld [vmem:[%s10467_s2 + $0x10] sm:$0xff] }
  0xf7   : > { %v527_v41 = vsel %vm477_vm0, %v518_v36, 0.0  ;;  %v531_v47 = vsel %vm477_vm0, %v519_v39, 0.0 }
  0xf8   : > { %v528_v42 = vadd.f32 %v527_v41, %v526_v40  ;;  %v535_v52 = vsel %vm477_vm0, %v520_v46, 0.0  ;;  %v539_v56 = vsel %vm477_vm0, %v521_v51, 0.0  ;;  %vm619_vm0 = vmor %vm618_vm15, %vm615_vm14  ;;  %v975_v46 = vld [vmem:[%s10467_s2 + $0x18] sm:$0xff]  ;;  %vm2539_vm14 = vcmask 261120  }
  0xf9   : > { %vm3767_vm15 = vcmask 1045504  }
  0xfa   : > { %v530_v44 = vadd.f32 %v529_v43, %v528_v42  ;;  %v620_v22 = vld [vmem:[#allocation2] sm:$0x33]  ;;  %v7939_v42 = vmov 0   ;;  %v973_v43 = vld [vmem:[%s10467_s2 + $0x8] sm:$0xff] }
  0xfb   : > { %v629_v28 = vld [vmem:[#allocation2 + $0x18] sm:$0x33]  ;;  %1249 = vmatprep.mubr.bf16.mxu0 %v7939_v42  ;;  %1302 = vmatprep.mubr.bf16.mxu1 %v7939_v42 }
  0xfc   : > { %v532_v48 = vadd.f32 %v531_v47, %v530_v44  ;;  %7517 = vset.pattern.permute.xlu0 %v7939_v42  ;;  %7516 = vset.pattern.permute.xlu1 %v7939_v42  ;;  %v972_v44 = vld [vmem:[%s10467_s2] sm:$0xff] }
  0xfe   : > { %v534_v50 = vadd.f32 %v533_v49, %v532_v48 }
 0x100   : > { %v536_v53 = vadd.f32 %v535_v52, %v534_v50 }
 0x102   : > { %v538_v55 = vadd.f32 %v537_v54, %v536_v53 }
 0x104   : > { %v540_v57 = vadd.f32 %v539_v56, %v538_v55 }
 0x106   : > { %541 = vadd.xlane.f32.xlu0 %v540_v57 }
 0x193   : > { %v542_v58 = vpop.xlane.xlu0 %541 }
 0x194   : > { %v543_v59 = vrot.slane %v542_v58, 4 }
 0x196   : > { %v544_v60 = vadd.f32 %v543_v59, %v542_v58 }
 0x198   : > { %v545_v61 = vrot.slane %v544_v60, 2 }
 0x19a   : > { %v546_v63 = vadd.f32 %v545_v61, %v544_v60 }
 0x19c   : > { %v547_v0 = vrot.slane %v546_v63, 1 }
 0x19e   : > { %v548_v2 = vadd.f32 %v547_v0, %v546_v63 }
 0x1a0   : > { %7488 = vpush %v548_v2 }
 0x1d1   : > { %s7489_s16 = spop %7488 }
 0x1d2   : > { %s552_s17 = smul.f32 0.00032562684, %s7489_s16  ;;  %s7941_s16 = smov 113  }
 0x1d4   : > { %v553_v9 = vstv %s552_s17  ;;  %s7942_s17 = smov 112  }
 0x1d5   : > { %7918 = vrsqrt.f32 %v553_v9  ;;  %vm556_vm8 = vcmp.eq.f32.partialorder %v553_v9, inf  ;;  %v559_v12 = vand.u32 2147483648, %v553_v9  ;;  %vm558_vm9 = vcmp.eq.f32.partialorder %v553_v9, 0.0 }
 0x1df   : > { %v7919_v10 = vpop.eup %7918 }
 0x1e0   : > { %v555_v11 = vmul.f32 %v7919_v10, %v553_v9 }
 0x1e2   : > { %v557_v13 = vsel %vm556_vm8, %v553_v9, %v555_v11  ;;  %vm809_vm8 = vcmask 769024  }
 0x1e3   : > { %v560_v14 = vsel %vm558_vm9, %v559_v12, %v557_v13  ;;  %vm845_vm9 = vcmask 523264  }
 0x1e4   : > { %7490 = vpush %v560_v14 }
 0x215   : > { %s7491_s18 = spop %7490 }
 0x216   : > { %s562_s20 = smax.f32 %s7930_s19, %s7491_s18  ;;  %s10490_s19 = smov 62  }
 0x217   : > { %v563_v15 = vstv %s562_s20  ;;  %s10484_s18 = smov 100  }
 0x218   : > { %7920 = vrcp.f32 %v563_v15 }
 0x222   : > { %v7921_v16 = vpop.eup %7920 }
 0x223   : > { %v565_v17 = vmul.f32 %v7921_v16, %v8040_v31  ;;  %v566_v18 = vmul.f32 %v7921_v16, %v8042_v32  ;;  %v567_v19 = vmul.f32 %v7921_v16, %v8044_v33  ;;  %v568_v20 = vmul.f32 %v7921_v16, %v8050_v37 }
 0x225   : > { %v573_v21 = vcombine.high %v565_v17, %v565_v17  ;;  %v574_v23 = vcombine.high %v566_v18, %v566_v18  ;;  %v575_v25 = vcombine.high %v567_v19, %v567_v19  ;;  %v576_v26 = vcombine.high %v568_v20, %v568_v20 }
 0x227   : > { %v7184_v29 = vpack.c.bf16 %v573_v21, %v565_v17  ;;  %v7185_v30 = vpack.c.bf16 %v574_v23, %v566_v18  ;;  %v7186_v34 = vpack.c.bf16 %v575_v25, %v567_v19  ;;  %v7187_v31 = vpack.c.bf16 %v576_v26, %v568_v20 }
 0x229   : > { %v621_v35 = vsel %vm619_vm0, %v7184_v29, %v620_v22  ;;  %v624_v36 = vsel %vm619_vm0, %v7185_v30, %v623_v24  ;;  %v627_v32 = vsel %vm619_vm0, %v7186_v34, %v626_v27  ;;  %v630_v38 = vsel %vm619_vm0, %v7187_v31, %v629_v28 }
 0x22a   : > { %622 = vst [vmem:[#allocation2] sm:$0x33] %v621_v35  ;;  %625 = vst [vmem:[#allocation2 + $0x8] sm:$0x33] %v624_v36  ;;  %vm3760_vm0 = vcmask 752640  }
 0x22b   : > { %628 = vst [vmem:[#allocation2 + $0x10] sm:$0x33] %v627_v32  ;;  %631 = vst [vmem:[#allocation2 + $0x18] sm:$0x33] %v630_v38 }
 0x231   : > { %v8073_v37 = vld [vmem:[#allocation2] sm:$0xff]  ;;  %v8075_v39 = vld [vmem:[#allocation2 + $0x8] sm:$0xff] }
 0x232   : > { %v8077_v40 = vld [vmem:[#allocation2 + $0x10] sm:$0xff]  ;;  %688 = vrot.lane.b32.xlu0 %v8073_v37, %s7931_s21  ;;  %651 = vrot.lane.b32.xlu1 %v8073_v37, %s7932_s22  ;;  %v646_v41 = vld [vmem:[#allocation2 + $0x18] sm:$0xff] }
 0x233   : > { %642 = vst.msk [vmem:[#allocation3 + $0x18] sm:$0xff] %vm8069_vm3, %v646_v41 }
 0x236   : > { %796 = vrot.lane.b32.xlu0 %v8073_v37, %s7933_s23  ;;  %653 = vrot.lane.b32.xlu1 %v8075_v39, %s7932_s22 }
 0x23a   : > { %692 = vrot.lane.b32.xlu0 %v8077_v40, %s7931_s21  ;;  %690 = vrot.lane.b32.xlu1 %v8075_v39, %s7931_s21 }
 0x23e   : > { %832 = vrot.lane.b32.xlu0 %v8073_v37, %s7934_s24  ;;  %724 = vrot.lane.b32.xlu1 %v8073_v37, %s7935_s28 }
 0x242   : > { %868 = vrot.lane.b32.xlu0 %v8073_v37, %s7936_s29  ;;  %726 = vrot.lane.b32.xlu1 %v8075_v39, %s7935_s28 }
 0x246   : > { %764 = vrot.lane.b32.xlu0 %v8077_v40, %s7937_s30  ;;  %655 = vrot.lane.b32.xlu1 %v8077_v40, %s7932_s22 }
 0x24a   : > { %904 = vrot.lane.b32.xlu0 %v8073_v37, %s10480_s14  ;;  %760 = vrot.lane.b32.xlu1 %v8073_v37, %s7937_s30 }
 0x24e   : > { %836 = vrot.lane.b32.xlu0 %v8077_v40, %s7934_s24  ;;  %762 = vrot.lane.b32.xlu1 %v8075_v39, %s7937_s30 }
 0x252   : > { %657 = vrot.lane.b32.xlu0 %v646_v41, %s7932_s22  ;;  %798 = vrot.lane.b32.xlu1 %v8075_v39, %s7933_s23 }
 0x256   : > { %694 = vrot.lane.b32.xlu0 %v646_v41, %s7931_s21  ;;  %728 = vrot.lane.b32.xlu1 %v8077_v40, %s7935_s28 }
 0x25a   : > { %766 = vrot.lane.b32.xlu0 %v646_v41, %s7937_s30  ;;  %834 = vrot.lane.b32.xlu1 %v8075_v39, %s7934_s24 }
 0x25e   : > { %838 = vrot.lane.b32.xlu0 %v646_v41, %s7934_s24  ;;  %870 = vrot.lane.b32.xlu1 %v8075_v39, %s7936_s29 }
 0x262   : > { %910 = vrot.lane.b32.xlu0 %v646_v41, %s10480_s14  ;;  %800 = vrot.lane.b32.xlu1 %v8077_v40, %s7933_s23 }
 0x266   : > { %906 = vrot.lane.b32.xlu1 %v8075_v39, %s10480_s14  ;;  %983 = vperm.xlu0 %7517, %v973_v43  }
 0x26a   : > { %872 = vrot.lane.b32.xlu1 %v8077_v40, %s7936_s29 }
 0x26e   : > { %908 = vrot.lane.b32.xlu1 %v8077_v40, %s10480_s14 }
 0x272   : > { %730 = vrot.lane.b32.xlu1 %v646_v41, %s7935_s28 }
 0x276   : > { %802 = vrot.lane.b32.xlu1 %v646_v41, %s7933_s23 }
 0x27a   : > { %874 = vrot.lane.b32.xlu1 %v646_v41, %s7936_s29 }
 0x27e   : > { %978 = vperm.xlu1 %7516, %v972_v44  }
 0x282   : > { %988 = vperm.xlu1 %7516, %v974_v45  }
 0x286   : > { %993 = vperm.xlu1 %7516, %v975_v46  }
 0x2a4   : > { %v689_v47 = vpop.permute.xlu0 %688  ;;  %v652_v48 = vpop.permute.xlu1 %651 }
 0x2a5   : > { %v659_v51 = vrot.slane %v652_v48, 4  ;;  %v696_v54 = vrot.slane %v689_v47, 4 }
 0x2a8   : > { %v8153_v49 = vpop.permute.xlu0 %796  ;;  %v654_v50 = vpop.permute.xlu1 %653 }
 0x2a9   : > { %v660_v52 = vrot.slane %v654_v50, 4  ;;  %v804_v31 = vrot.slane %v8153_v49, 4 }
 0x2ab   : > { %v664_v53 = vsel %vm639_vm1, %v659_v51, %v660_v52 }
 0x2ac   : > { %v666_v55 = vsel %vm665_vm4, %v652_v48, %v664_v53  ;;  %v8157_v56 = vpop.permute.xlu0 %692  ;;  %v691_v57 = vpop.permute.xlu1 %690 }
 0x2ad   : > { %v698_v58 = vrot.slane %v8157_v56, 4  ;;  %v697_v59 = vrot.slane %v691_v57, 4  ;;  %v6821_v60 = vcombine.high %v8073_v37, %v666_v55  ;;  %v6820_v61 = vcombine.low %v8073_v37, %v666_v55 }
 0x2af   : > { %v700_v62 = vsel %vm639_vm1, %v696_v54, %v697_v59  ;;  %v703_v63 = vsel %vm639_vm1, %v697_v59, %v698_v58  ;;  %1217 = vmatprep.subr.bf16.mxu0 %v6821_v60 }
 0x2b0   : > { %v702_v0 = vsel %vm701_vm5, %v689_v47, %v700_v62  ;;  %v8168_v1 = vsel %vm701_vm5, %v691_v57, %v703_v63  ;;  %v8170_v2 = vpop.permute.xlu0 %832  ;;  %v725_v3 = vpop.permute.xlu1 %724  ;;  %1218 = vmatpush1.bf16.msra.mxu0 %v6820_v61 }
 0x2b1   : > { %v732_v6 = vrot.slane %v725_v3, 4 }
 0x2b4   : > { %v8172_v4 = vpop.permute.xlu0 %868  ;;  %v727_v5 = vpop.permute.xlu1 %726 }
 0x2b5   : > { %v733_v7 = vrot.slane %v727_v5, 4 }
 0x2b7   : > { %v736_v8 = vsel %vm639_vm1, %v732_v6, %v733_v7 }
 0x2b8   : > { %v738_v9 = vsel %vm737_vm6, %v725_v3, %v736_v8  ;;  %v8176_v10 = vpop.permute.xlu0 %764  ;;  %v656_v11 = vpop.permute.xlu1 %655 }
 0x2b9   : > { %v661_v12 = vrot.slane %v656_v11, 4  ;;  %v6829_v13 = vcombine.high %v702_v0, %v738_v9  ;;  %v6828_v14 = vcombine.low %v702_v0, %v738_v9  ;;  %v770_v23 = vrot.slane %v8176_v10, 4 }
 0x2ba   : > { %v876_v9 = vrot.slane %v8172_v4, 4 }
 0x2bb   : > { %v667_v15 = vsel %vm639_vm1, %v660_v52, %v661_v12  ;;  %1219 = vmatprep.subr.bf16.mxu0 %v6829_v13 }
 0x2bc   : > { %v668_v16 = vsel %vm665_vm4, %v654_v50, %v667_v15  ;;  %v8180_v17 = vpop.permute.xlu0 %904  ;;  %v761_v18 = vpop.permute.xlu1 %760  ;;  %1220 = vmatpush1.bf16.msra.mxu0 %v6828_v14 }
 0x2bd   : > { %v6823_v19 = vcombine.high %v8075_v39, %v668_v16  ;;  %v6822_v20 = vcombine.low %v8075_v39, %v668_v16  ;;  %v768_v24 = vrot.slane %v761_v18, 4 }
 0x2bf   : > { %1270 = vmatprep.subr.bf16.mxu1 %v6823_v19 }
 0x2c0   : > { %v8184_v21 = vpop.permute.xlu0 %836  ;;  %v763_v22 = vpop.permute.xlu1 %762  ;;  %1271 = vmatpush1.bf16.msra.mxu1 %v6822_v20 }
 0x2c1   : > { %v769_v25 = vrot.slane %v763_v22, 4  ;;  %v842_v53 = vrot.slane %v8184_v21, 4 }
 0x2c3   : > { %v772_v26 = vsel %vm639_vm1, %v768_v24, %v769_v25  ;;  %v775_v27 = vsel %vm639_vm1, %v769_v25, %v770_v23 }
 0x2c4   : > { %v774_v28 = vsel %vm773_vm7, %v761_v18, %v772_v26  ;;  %v8191_v29 = vsel %vm773_vm7, %v763_v22, %v775_v27  ;;  %v658_v30 = vpop.permute.xlu0 %657  ;;  %v8193_v34 = vpop.permute.xlu1 %798  ;;  %v912_v26 = vrot.slane %v8180_v17, 4 }
 0x2c5   : > { %v662_v35 = vrot.slane %v658_v30, 4  ;;  %v805_v36 = vrot.slane %v8193_v34, 4 }
 0x2c7   : > { %v669_v32 = vsel %vm639_vm1, %v661_v12, %v662_v35  ;;  %v671_v38 = vsel %vm665_vm4, %v658_v30, %v662_v35  ;;  %v808_v37 = vsel %vm639_vm1, %v804_v31, %v805_v36 }
 0x2c8   : > { %v8201_v39 = vsel %vm665_vm4, %v656_v11, %v669_v32  ;;  %679 = vst.msk [vmem:[#allocation3 + $0x38] sm:$0xff] %vm8069_vm3, %v671_v38  ;;  %v810_v41 = vsel %vm809_vm8, %v8153_v49, %v808_v37  ;;  %v695_v43 = vpop.permute.xlu0 %694  ;;  %v8207_v44 = vpop.permute.xlu1 %728  ;;  %v840_v49 = vrot.slane %v8170_v2, 4 }
 0x2c9   : > { %v699_v45 = vrot.slane %v695_v43, 4  ;;  %v734_v46 = vrot.slane %v8207_v44, 4  ;;  %v6837_v47 = vcombine.high %v774_v28, %v810_v41  ;;  %v6836_v48 = vcombine.low %v774_v28, %v810_v41 }
 0x2ca   : > { %v6825_v41 = vcombine.high %v8077_v40, %v8201_v39 }
 0x2cb   : > { %v705_v50 = vsel %vm639_vm1, %v698_v58, %v699_v45  ;;  %v707_v51 = vsel %vm701_vm5, %v695_v43, %v699_v45  ;;  %v739_v52 = vsel %vm639_vm1, %v733_v7, %v734_v46  ;;  %1221 = vmatprep.subr.bf16.mxu0 %v6837_v47 }
 0x2cc   : > { %v8221_v54 = vsel %vm701_vm5, %v8157_v56, %v705_v50  ;;  %715 = vst.msk [vmem:[#allocation3 + $0x58] sm:$0xff] %vm8069_vm3, %v707_v51  ;;  %v740_v55 = vsel %vm737_vm6, %v727_v5, %v739_v52  ;;  %v767_v57 = vpop.permute.xlu0 %766  ;;  %v835_v58 = vpop.permute.xlu1 %834  ;;  %1222 = vmatpush1.bf16.msra.mxu0 %v6836_v48  ;;  %v6824_v51 = vcombine.low %v8077_v40, %v8201_v39  ;;  %v939_v39 = vld [vmem:[#allocation3 + $0x18] sm:$0xff] }
 0x2cd   : > { %v771_v59 = vrot.slane %v767_v57, 4  ;;  %v841_v60 = vrot.slane %v835_v58, 4  ;;  %v6831_v61 = vcombine.high %v8168_v1, %v740_v55  ;;  %v6830_v62 = vcombine.low %v8168_v1, %v740_v55 }
 0x2cf   : > { %v777_v63 = vsel %vm639_vm1, %v770_v23, %v771_v59  ;;  %v779_v0 = vsel %vm773_vm7, %v767_v57, %v771_v59  ;;  %v844_v56 = vsel %vm639_vm1, %v840_v49, %v841_v60  ;;  %v847_v3 = vsel %vm639_vm1, %v841_v60, %v842_v53  ;;  %1272 = vmatprep.subr.bf16.mxu1 %v6831_v61 }
 0x2d0   : > { %v8234_v5 = vsel %vm773_vm7, %v8176_v10, %v777_v63  ;;  %787 = vst.msk [vmem:[#allocation3 + $0x98] sm:$0xff] %vm8069_vm3, %v779_v0  ;;  %v846_v6 = vsel %vm845_vm9, %v8170_v2, %v844_v56  ;;  %v848_v1 = vsel %vm845_vm9, %v835_v58, %v847_v3  ;;  %v839_v7 = vpop.permute.xlu0 %838  ;;  %v871_v8 = vpop.permute.xlu1 %870  ;;  %1273 = vmatpush1.bf16.msra.mxu1 %v6830_v62  ;;  %v943_v58 = vld [vmem:[#allocation3 + $0x38] sm:$0xff]  ;;  %v8306_v56 = vld [vmem:[%s10466_s1 + $0x8] sm:$0xff]  }
 0x2d1   : > { %v843_v11 = vrot.slane %v839_v7, 4  ;;  %v877_v12 = vrot.slane %v871_v8, 4  ;;  %v6827_v0 = vcombine.high %v939_v39, %v943_v58 }
 0x2d3   : > { %v849_v13 = vsel %vm639_vm1, %v842_v53, %v843_v11  ;;  %v851_v10 = vsel %vm845_vm9, %v839_v7, %v843_v11  ;;  %v880_v14 = vsel %vm639_vm1, %v876_v9, %v877_v12 }
 0x2d4   : > { %v8247_v15 = vsel %vm845_vm9, %v8184_v21, %v849_v13  ;;  %859 = vst.msk [vmem:[#allocation3 + $0xd8] sm:$0xff] %vm8069_vm3, %v851_v10  ;;  %v882_v2 = vsel %vm881_vm10, %v8172_v4, %v880_v14  ;;  %v911_v16 = vpop.permute.xlu0 %910  ;;  %v8253_v18 = vpop.permute.xlu1 %800 }
 0x2d5   : > { %v915_v19 = vrot.slane %v911_v16, 4  ;;  %v806_v20 = vrot.slane %v8253_v18, 4  ;;  %v6845_v22 = vcombine.high %v846_v6, %v882_v2  ;;  %v6844_v23 = vcombine.low %v846_v6, %v882_v2 }
 0x2d7   : > { %v923_v24 = vsel %vm917_vm11, %v911_v16, %v915_v19  ;;  %v811_v21 = vsel %vm639_vm1, %v805_v36, %v806_v20  ;;  %1223 = vmatprep.subr.bf16.mxu0 %v6845_v22  ;;  %v947_v16 = vld [vmem:[#allocation3 + $0x58] sm:$0xff] }
 0x2d8   : > { %931 = vst.msk [vmem:[#allocation3 + $0x118] sm:$0xff] %vm8069_vm3, %v923_v24  ;;  %v812_v4 = vsel %vm809_vm8, %v8193_v34, %v811_v21  ;;  %v907_v25 = vpop.permute.xlu1 %906  ;;  %1224 = vmatpush1.bf16.msra.mxu0 %v6844_v23  ;;  %v955_v24 = vld [vmem:[#allocation3 + $0x98] sm:$0xff] }
 0x2d9   : > { %v913_v27 = vrot.slane %v907_v25, 4  ;;  %v6839_v28 = vcombine.high %v8191_v29, %v812_v4  ;;  %v6838_v30 = vcombine.low %v8191_v29, %v812_v4 }
 0x2db   : > { %v916_v31 = vsel %vm639_vm1, %v912_v26, %v913_v27  ;;  %1274 = vmatprep.subr.bf16.mxu1 %v6839_v28 }
 0x2dc   : > { %v918_v35 = vsel %vm917_vm11, %v8180_v17, %v916_v31  ;;  %v8270_v36 = vpop.permute.xlu1 %872  ;;  %1275 = vmatpush1.bf16.msra.mxu1 %v6838_v30  ;;  %v8283_v17 = vld [vmem:[%s10466_s1] sm:$0xff]  }
 0x2dd   : > { %v878_v34 = vrot.slane %v8270_v36, 4  ;;  %v6853_v32 = vcombine.high %v918_v35, %v918_v35  ;;  %v6852_v38 = vcombine.low %v918_v35, %v918_v35 }
 0x2df   : > { %v883_v37 = vsel %vm639_vm1, %v877_v12, %v878_v34  ;;  %6860 = vmatprep.subr.msk.bf16.mxu0 %vm639_vm1, %v6853_v32  ;;  %v1194_v29 = vsel %vm639_vm1, %v6852_v38, 0  ;;  %v971_v28 = vld [vmem:[#allocation3 + $0x118] sm:$0xff] }
 0x2e0   : > { %v884_v43 = vsel %vm881_vm10, %v871_v8, %v883_v37  ;;  %v909_v45 = vpop.permute.xlu1 %908  ;;  %1226 = vmatpush1.bf16.msra.mxu0 %v1194_v29  ;;  %v6826_v8 = vcombine.low %v939_v39, %v943_v58 }
 0x2e1   : > { %v914_v47 = vrot.slane %v909_v45, 4  ;;  %1323 = vmatprep.subr.bf16.mxu0 %v6825_v41  ;;  %v6847_v48 = vcombine.high %v848_v1, %v884_v43  ;;  %v6846_v50 = vcombine.low %v848_v1, %v884_v43 }
 0x2e3   : > { %v919_v52 = vsel %vm639_vm1, %v913_v27, %v914_v47  ;;  %v921_v49 = vsel %vm639_vm1, %v914_v47, %v915_v19  ;;  %6861 = vmatmul.mubr.msk.bf16.vlgmr.msra.gmra.mrb[0].mxu0 %vm1186_vm12, %v8283_v17  ;;  %1276 = vmatprep.subr.bf16.mxu1 %v6847_v48 }
 0x2e4   : > { %v920_v53 = vsel %vm917_vm11, %v907_v25, %v919_v52  ;;  %v8294_v55 = vsel %vm917_vm11, %v909_v45, %v921_v49  ;;  %v731_v57 = vpop.permute.xlu1 %730  ;;  %1277 = vmatpush1.bf16.msra.mxu1 %v6846_v50  ;;  %1324 = vmatpush1.bf16.msra.mxu0 %v6824_v51 }
 0x2e5   : > { %v735_v59 = vrot.slane %v731_v57, 4  ;;  %v6855_v60 = vcombine.high %v920_v53, %v920_v53  ;;  %v6854_v40 = vcombine.low %v920_v53, %v920_v53  ;;  %1259 = vmatprep.mubr.bf16.mxu0 %v7939_v42  ;;  %v6857_v33 = vcombine.high %v8294_v55, %v8294_v55  ;;  %v8363_v29 = vpop.permute.xlu0 %983 }
 0x2e6   : > { %v6856_v26 = vcombine.low %v8294_v55, %v8294_v55 }
 0x2e7   : > { %v741_v61 = vsel %vm639_vm1, %v734_v46, %v735_v59  ;;  %v743_v62 = vsel %vm737_vm6, %v731_v57, %v735_v59  ;;  %6863 = vmatprep.subr.msk.bf16.mxu1 %vm639_vm1, %v6855_v60  ;;  %v1200_v63 = vsel %vm639_vm1, %v6854_v40, 0 }
 0x2e8   : > { %v742_v3 = vsel %vm737_vm6, %v8207_v44, %v741_v61  ;;  %751 = vst.msk [vmem:[#allocation3 + $0x78] sm:$0xff] %vm8069_vm3, %v743_v62  ;;  %v803_v6 = vpop.permute.xlu1 %802  ;;  %1279 = vmatpush1.bf16.msra.mxu1 %v1200_v63  ;;  %v1206_v35 = vsel %vm639_vm1, %v6856_v26, 0 }
 0x2e9   : > { %v807_v46 = vrot.slane %v803_v6, 4  ;;  %1376 = vmatprep.subr.bf16.mxu1 %v6827_v0  ;;  %v6832_v1 = vcombine.low %v8221_v54, %v742_v3  ;;  %v6833_v7 = vcombine.high %v8221_v54, %v742_v3 }
 0x2eb   : > { %v813_v9 = vsel %vm639_vm1, %v806_v20, %v807_v46  ;;  %v815_v11 = vsel %vm809_vm8, %v803_v6, %v807_v46  ;;  %6862 = vmatmul.mubr.msk.bf16.gmra.mrb[4].mxu0 %vm1186_vm12, %v8306_v56  ;;  %6864 = vmatmul.mubr.msk.bf16.vlgmr.msra.gmra.mrb[0].mxu1 %vm1186_vm12, %v8283_v17 }
 0x2ec   : > { %v814_v44 = vsel %vm809_vm8, %v8253_v18, %v813_v9  ;;  %823 = vst.msk [vmem:[#allocation3 + $0xb8] sm:$0xff] %vm8069_vm3, %v815_v11  ;;  %v875_v54 = vpop.permute.xlu1 %874  ;;  %1325 = vmatprep.subr.bf16.mxu0 %v6833_v7  ;;  %1377 = vmatpush1.bf16.msra.mxu1 %v6826_v8 }
 0x2ed   : > { %v879_v12 = vrot.slane %v875_v54, 4  ;;  %1326 = vmatpush1.bf16.msra.mxu0 %v6832_v1  ;;  %v6840_v13 = vcombine.low %v8234_v5, %v814_v44  ;;  %v6841_v10 = vcombine.high %v8234_v5, %v814_v44  ;;  %1312 = vmatprep.mubr.bf16.mxu1 %v7939_v42 }
 0x2ee   : > { %1355 = vmatprep.mubr.bf16.mxu0 %v7939_v42 }
 0x2ef   : > { %v885_v14 = vsel %vm639_vm1, %v878_v34, %v879_v12  ;;  %v887_v2 = vsel %vm881_vm10, %v875_v54, %v879_v12  ;;  %v951_v18 = vld [vmem:[#allocation3 + $0x78] sm:$0xff]  ;;  %1327 = vmatprep.subr.bf16.mxu0 %v6841_v10  ;;  %v6858_v34 = vcombine.low %v971_v28, %v971_v28 }
 0x2f0   : > { %v886_v19 = vsel %vm881_vm10, %v8270_v36, %v885_v14  ;;  %895 = vst.msk [vmem:[#allocation3 + $0xf8] sm:$0xff] %vm8069_vm3, %v887_v2  ;;  %v6834_v5 = vcombine.low %v947_v16, %v951_v18  ;;  %v6835_v20 = vcombine.high %v947_v16, %v951_v18  ;;  %v6859_v36 = vcombine.high %v971_v28, %v971_v28 }
 0x2f1   : > { %1328 = vmatpush1.bf16.msra.mxu0 %v6840_v13  ;;  %v6848_v22 = vcombine.low %v8247_v15, %v886_v19  ;;  %v6849_v23 = vcombine.high %v8247_v15, %v886_v19  ;;  %v963_v15 = vld [vmem:[#allocation3 + $0xd8] sm:$0xff]  ;;  %v1212_v32 = vsel %vm639_vm1, %v6858_v34, 0  ;;  %vm4944_vm3 = vcmask 932864  }
 0x2f2   : > { %1378 = vmatprep.subr.bf16.mxu1 %v6835_v20 }
 0x2f3   : > { %1379 = vmatpush1.bf16.msra.mxu1 %v6834_v5  ;;  %v959_v21 = vld [vmem:[#allocation3 + $0xb8] sm:$0xff]  ;;  %1329 = vmatprep.subr.bf16.mxu0 %v6849_v23 }
 0x2f4   : > { %v6842_v4 = vcombine.low %v955_v24, %v959_v21  ;;  %v6843_v25 = vcombine.high %v955_v24, %v959_v21  ;;  %6865 = vmatmul.mubr.msk.bf16.gmra.mrb[4].mxu1 %vm1186_vm12, %v8306_v56 }
 0x2f5   : > { %1330 = vmatpush1.bf16.msra.mxu0 %v6848_v22  ;;  %1408 = vmatprep.mubr.bf16.mxu1 %v7939_v42 }
 0x2f6   : > { %1380 = vmatprep.subr.bf16.mxu1 %v6843_v25  ;;  %6866 = vmatprep.subr.msk.bf16.mxu0 %vm639_vm1, %v6857_v33 }
 0x2f7   : > { %1381 = vmatpush1.bf16.msra.mxu1 %v6842_v4  ;;  %v967_v27 = vld [vmem:[#allocation3 + $0xf8] sm:$0xff] }
 0x2f8   : > { %v6850_v30 = vcombine.low %v963_v15, %v967_v27  ;;  %v6851_v31 = vcombine.high %v963_v15, %v967_v27 }
 0x2f9   : > { %1332 = vmatpush1.bf16.msra.mxu0 %v1206_v35 }
 0x2fa   : > { %1382 = vmatprep.subr.bf16.mxu1 %v6851_v31 }
 0x2fb   : > { %1383 = vmatpush1.bf16.msra.mxu1 %v6850_v30 }
 0x2fc   : > { %6869 = vmatprep.subr.msk.bf16.mxu1 %vm639_vm1, %v6859_v36  ;;  %6867 = vmatmul.mubr.msk.bf16.vlgmr.msra.gmra.mrb[8].mxu0 %vm1186_vm12, %v8283_v17  ;;  %vm4863_vm1 = vcmask 556032  }
 0x2fd   : > { %1365 = vmatprep.mubr.bf16.mxu0 %v7939_v42  ;;  %v8361_v38 = vpop.permute.xlu1 %978 }
 0x2ff   : > { %1385 = vmatpush1.bf16.msra.mxu1 %v1212_v32 }
 0x301   : > { %v8366_v45 = vpop.permute.xlu1 %988 }
 0x302   : > { %6870 = vmatmul.mubr.msk.bf16.vlgmr.msra.gmra.mrb[8].mxu1 %vm1186_vm12, %v8283_v17 }
 0x303   : > { %1418 = vmatprep.mubr.bf16.mxu1 %v7939_v42 }
 0x304   : > { %6868 = vmatmul.mubr.msk.bf16.gmra.mrb[12].mxu0 %vm1186_vm12, %v8306_v56 }
 0x305   : > { %v8373_v58 = vpop.permute.xlu1 %993 }
 0x30a   : > { %6871 = vmatmul.mubr.msk.bf16.gmra.mrb[12].mxu1 %vm1186_vm12, %v8306_v56  ;;  %vm5449_vm12 = vcmask 64512  }
 0x3b6   : > { %v1251_v37 = vpop.f32.mrb[0].mxu0 }
 0x3b7   : > { %v1253_v41 = vpop.f32.mrb[1].mxu0  ;;  %v1252_v43 = vadd.f32 %v1251_v37, %v8361_v38 }
 0x3b8   : > { %v1255_v47 = vpop.f32.mrb[2].mxu0  ;;  %v1254_v17 = vadd.f32 %v1253_v41, %v8361_v38 }
 0x3b9   : > { %v1256_v48 = vadd.f32 %v1255_v47, %v8363_v29  ;;  %v1429_v50 = vmax.f32 %v1252_v43, 0.0  ;;  %v1257_v51 = vpop.f32.mrb[3].mxu0 }
 0x3ba   : > { %v1258_v52 = vadd.f32 %v1257_v51, %v8363_v29  ;;  %v1430_v49 = vmax.f32 %v1254_v17, 0.0 }
 0x3bb   : > { %v1437_v53 = vmax.f32 %v1256_v48, 0.0 }
 0x3bc   : > { %v1438_v55 = vmax.f32 %v1258_v52, 0.0 }
 0x3bd   : > { %v8371_v57 = vpack.c.bf16 %v1437_v53, %v1429_v50 }
 0x3be   : > { %v8375_v59 = vpack.c.bf16 %v1438_v55, %v1430_v49  ;;  %v1261_v60 = vpop.f32.mrb[4].mxu0  ;;  %v1304_v40 = vpop.f32.mrb[0].mxu1 }
 0x3bf   : > { %v1262_v39 = vadd.f32 %v1261_v60, %v8366_v45  ;;  %v1305_v61 = vadd.f32 %v1304_v40, %v8361_v38  ;;  %v1263_v62 = vpop.f32.mrb[5].mxu0  ;;  %v1306_v63 = vpop.f32.mrb[1].mxu1  ;;  %1551 = vrot.lane.b32.xlu0 %v8371_v57, %s7932_s22 }
 0x3c0   : > { %v1264_v0 = vadd.f32 %v1263_v62, %v8366_v45  ;;  %v1307_v56 = vadd.f32 %v1306_v63, %v8361_v38  ;;  %v1308_v3 = vpop.f32.mrb[2].mxu1  ;;  %v1265_v6 = vpop.f32.mrb[6].mxu0  ;;  %2546 = vmatprep.subr.bf16.mxu0 %v8375_v59 }
 0x3c1   : > { %v1445_v46 = vmax.f32 %v1262_v39, 0.0  ;;  %v1309_v1 = vadd.f32 %v1308_v3, %v8363_v29  ;;  %v1266_v7 = vadd.f32 %v1265_v6, %v8373_v58  ;;  %v1267_v8 = vpop.f32.mrb[7].mxu0  ;;  %v1310_v9 = vpop.f32.mrb[3].mxu1  ;;  %2547 = vmatpush1.bf16.msra.mxu0 %v8371_v57  ;;  %v1431_v12 = vmax.f32 %v1305_v61, 0.0 }
 0x3c2   : > { %v1446_v11 = vmax.f32 %v1264_v0, 0.0  ;;  %v1268_v44 = vadd.f32 %v1267_v8, %v8373_v58  ;;  %v1311_v54 = vadd.f32 %v1310_v9, %v8363_v29  ;;  %v1432_v14 = vmax.f32 %v1307_v56, 0.0 }
 0x3c3   : > { %v1439_v13 = vmax.f32 %v1309_v1, 0.0  ;;  %v1453_v10 = vmax.f32 %v1266_v7, 0.0  ;;  %1647 = vrot.lane.b32.xlu0 %v8371_v57, %s7931_s21 }
 0x3c4   : > { %v1454_v2 = vmax.f32 %v1268_v44, 0.0  ;;  %v1440_v16 = vmax.f32 %v1311_v54, 0.0 }
 0x3c5   : > { %v8391_v18 = vpack.c.bf16 %v1439_v13, %v1431_v12  ;;  %v8393_v19 = vpack.c.bf16 %v1453_v10, %v1445_v46 }
 0x3c6   : > { %v8395_v5 = vpack.c.bf16 %v1454_v2, %v1446_v11  ;;  %v8397_v20 = vpack.c.bf16 %v1440_v16, %v1432_v14 }
 0x3c7   : > { %v1314_v22 = vpop.f32.mrb[4].mxu1  ;;  %1555 = vrot.lane.b32.xlu1 %v8391_v18, %s7932_s22  ;;  %1747 = vrot.lane.b32.xlu0 %v8371_v57, %s7935_s28 }
 0x3c8   : > { %v1315_v23 = vadd.f32 %v1314_v22, %v8366_v45  ;;  %v1316_v24 = vpop.f32.mrb[5].mxu1  ;;  %2548 = vmatprep.subr.bf16.mxu0 %v8395_v5  ;;  %2652 = vmatprep.subr.bf16.mxu1 %v8397_v20 }
 0x3c9   : > { %v1317_v21 = vadd.f32 %v1316_v24, %v8366_v45  ;;  %v1318_v4 = vpop.f32.mrb[6].mxu1  ;;  %2549 = vmatpush1.bf16.msra.mxu0 %v8393_v19  ;;  %2653 = vmatpush1.bf16.msra.mxu1 %v8391_v18 }
 0x3ca   : > { %v1319_v25 = vadd.f32 %v1318_v4, %v8373_v58  ;;  %v1320_v33 = vpop.f32.mrb[7].mxu1  ;;  %v1447_v15 = vmax.f32 %v1315_v23, 0.0 }
 0x3cb   : > { %v1321_v26 = vadd.f32 %v1320_v33, %v8373_v58  ;;  %1651 = vrot.lane.b32.xlu1 %v8391_v18, %s7931_s21  ;;  %1853 = vrot.lane.b32.xlu0 %v8371_v57, %s7937_s30  ;;  %v1448_v28 = vmax.f32 %v1317_v21, 0.0 }
 0x3cc   : > { %v1455_v27 = vmax.f32 %v1319_v25, 0.0 }
 0x3cd   : > { %v1456_v30 = vmax.f32 %v1321_v26, 0.0 }
 0x3ce   : > { %v8415_v31 = vpack.c.bf16 %v1455_v27, %v1447_v15 }
 0x3cf   : > { %v8417_v35 = vpack.c.bf16 %v1456_v30, %v1448_v28  ;;  %v1357_v36 = vpop.f32.mrb[8].mxu0  ;;  %1751 = vrot.lane.b32.xlu1 %v8391_v18, %s7935_s28  ;;  %1959 = vrot.lane.b32.xlu0 %v8371_v57, %s7933_s23 }
 0x3d0   : > { %v1358_v34 = vadd.f32 %v1357_v36, %v8361_v38  ;;  %v1359_v32 = vpop.f32.mrb[9].mxu0 }
 0x3d1   : > { %v1360_v37 = vadd.f32 %v1359_v32, %v8361_v38  ;;  %v1361_v41 = vpop.f32.mrb[10].mxu0  ;;  %2654 = vmatprep.subr.bf16.mxu1 %v8417_v35 }
 0x3d2   : > { %v1362_v43 = vadd.f32 %v1361_v41, %v8363_v29  ;;  %v1363_v47 = vpop.f32.mrb[11].mxu0  ;;  %2655 = vmatpush1.bf16.msra.mxu1 %v8415_v31  ;;  %v1433_v48 = vmax.f32 %v1358_v34, 0.0 }
 0x3d3   : > { %v1364_v17 = vadd.f32 %v1363_v47, %v8363_v29  ;;  %1857 = vrot.lane.b32.xlu1 %v8391_v18, %s7937_s30  ;;  %2065 = vrot.lane.b32.xlu0 %v8371_v57, %s7934_s24  ;;  %v1434_v51 = vmax.f32 %v1360_v37, 0.0 }
 0x3d4   : > { %v1441_v50 = vmax.f32 %v1362_v43, 0.0 }
 0x3d5   : > { %v1442_v52 = vmax.f32 %v1364_v17, 0.0  ;;  %v1410_v49 = vpop.f32.mrb[8].mxu1 }
 0x3d6   : > { %v8433_v53 = vpack.c.bf16 %v1441_v50, %v1433_v48  ;;  %v1411_v55 = vadd.f32 %v1410_v49, %v8361_v38  ;;  %v1412_v60 = vpop.f32.mrb[9].mxu1  ;;  %v8578_v50 = vld [vmem:[%s10468_s3 + $0x4] ss:$12 sps:$4 sm:$0xff]  }
 0x3d7   : > { %v8436_v40 = vpack.c.bf16 %v1442_v52, %v1434_v51  ;;  %v1413_v39 = vadd.f32 %v1412_v60, %v8361_v38  ;;  %v1414_v61 = vpop.f32.mrb[10].mxu1  ;;  %v1367_v62 = vpop.f32.mrb[12].mxu0  ;;  %1963 = vrot.lane.b32.xlu1 %v8391_v18, %s7933_s23  ;;  %2171 = vrot.lane.b32.xlu0 %v8371_v57, %s7936_s29 }
 0x3d8   : > { %1512 = vst [vmem:[#allocation5 + $0x20] sm:$0xff] %v8433_v53  ;;  %v1415_v63 = vadd.f32 %v1414_v61, %v8363_v29  ;;  %v1416_v0 = vpop.f32.mrb[11].mxu1  ;;  %v1368_v56 = vadd.f32 %v1367_v62, %v8366_v45  ;;  %v1369_v3 = vpop.f32.mrb[13].mxu0  ;;  %v1435_v1 = vmax.f32 %v1411_v55, 0.0  ;;  %2578 = vmatprep.mubr.bf16.mxu0 %v8578_v50  ;;  %2684 = vmatprep.mubr.bf16.mxu1 %v8578_v50 }
 0x3d9   : > { %1482 = vst [vmem:[#allocation4 + $0x28] sm:$0xff] %v8436_v40  ;;  %v1417_v38 = vadd.f32 %v1416_v0, %v8363_v29  ;;  %v1370_v6 = vadd.f32 %v1369_v3, %v8366_v45  ;;  %v1371_v46 = vpop.f32.mrb[14].mxu0  ;;  %v1436_v11 = vmax.f32 %v1413_v39, 0.0 }
 0x3da   : > { %v1443_v7 = vmax.f32 %v1415_v63, 0.0  ;;  %v1372_v8 = vadd.f32 %v1371_v46, %v8373_v58  ;;  %v1373_v9 = vpop.f32.mrb[15].mxu0  ;;  %v1449_v12 = vmax.f32 %v1368_v56, 0.0 }
 0x3db   : > { %v1444_v44 = vmax.f32 %v1417_v38, 0.0  ;;  %v1374_v54 = vadd.f32 %v1373_v9, %v8373_v58  ;;  %2069 = vrot.lane.b32.xlu1 %v8391_v18, %s7934_s24  ;;  %1553 = vrot.lane.b32.xlu0 %v8375_v59, %s7932_s22  ;;  %v1450_v14 = vmax.f32 %v1370_v6, 0.0 }
 0x3dc   : > { %v8455_v29 = vpack.c.bf16 %v1443_v7, %v1435_v1  ;;  %v1457_v13 = vmax.f32 %v1372_v8, 0.0 }
 0x3dd   : > { %v1468_v10 = vpack.c.bf16 %v1444_v44, %v1436_v11  ;;  %v1458_v2 = vmax.f32 %v1374_v54, 0.0  ;;  %v1420_v16 = vpop.f32.mrb[12].mxu1 }
 0x3de   : > { %v8457_v22 = vpack.c.bf16 %v1457_v13, %v1449_v12  ;;  %v1421_v23 = vadd.f32 %v1420_v16, %v8366_v45  ;;  %v1422_v24 = vpop.f32.mrb[13].mxu1  ;;  %1515 = vst.msk [vmem:[#allocation5 + $0x30] sm:$0xff] %vm1514_vm13, %v8455_v29 }
 0x3df   : > { %1485 = vst.msk [vmem:[#allocation4 + $0x38] sm:$0xff] %vm917_vm11, %v1468_v10  ;;  %v8463_v21 = vpack.c.bf16 %v1458_v2, %v1450_v14  ;;  %v1423_v4 = vadd.f32 %v1422_v24, %v8366_v45  ;;  %v1424_v25 = vpop.f32.mrb[14].mxu1  ;;  %2175 = vrot.lane.b32.xlu1 %v8391_v18, %s7936_s29  ;;  %1649 = vrot.lane.b32.xlu0 %v8375_v59, %s7931_s21 }
 0x3e0   : > { %1520 = vst [vmem:[#allocation5 + $0x58] sm:$0xff] %v8457_v22  ;;  %v1425_v33 = vadd.f32 %v1424_v25, %v8373_v58  ;;  %v1426_v26 = vpop.f32.mrb[15].mxu1  ;;  %v8472_v15 = vld [vmem:[#allocation4 + $0x28] sm:$0xff]  ;;  %v1451_v28 = vmax.f32 %v1421_v23, 0.0 }
 0x3e1   : > { %1491 = vst [vmem:[#allocation4 + $0x68] sm:$0xff] %v8463_v21  ;;  %v1427_v27 = vadd.f32 %v1426_v26, %v8373_v58  ;;  %v1452_v30 = vmax.f32 %v1423_v4, 0.0 }
 0x3e2   : > { %v1459_v45 = vmax.f32 %v1425_v33, 0.0 }
 0x3e3   : > { %v1460_v36 = vmax.f32 %v1427_v27, 0.0  ;;  %1565 = vrot.lane.b32.xlu1 %v8393_v19, %s7932_s22  ;;  %1557 = vrot.lane.b32.xlu0 %v8397_v20, %s7932_s22 }
 0x3e4   : > { %v8480_v34 = vpack.c.bf16 %v1459_v45, %v1451_v28 }
 0x3e5   : > { %v1476_v32 = vpack.c.bf16 %v1460_v36, %v1452_v30 }
 0x3e6   : > { %1522 = vst.msk [vmem:[#allocation5 + $0x68] sm:$0xff] %vm1514_vm13, %v8480_v34 }
 0x3e7   : > { %1493 = vst.msk [vmem:[#allocation4 + $0x78] sm:$0xff] %vm917_vm11, %v1476_v32  ;;  %1661 = vrot.lane.b32.xlu1 %v8393_v19, %s7931_s21  ;;  %1749 = vrot.lane.b32.xlu0 %v8375_v59, %s7935_s28 }
 0x3e8   : > { %v8489_v58 = vld [vmem:[#allocation4 + $0x68] sm:$0xff] }
 0x3eb   : > { %1763 = vrot.lane.b32.xlu1 %v8393_v19, %s7935_s28  ;;  %1653 = vrot.lane.b32.xlu0 %v8397_v20, %s7931_s21 }
 0x3ef   : > { %1869 = vrot.lane.b32.xlu1 %v8393_v19, %s7937_s30  ;;  %1855 = vrot.lane.b32.xlu0 %v8375_v59, %s7937_s30 }
 0x3f3   : > { %1975 = vrot.lane.b32.xlu1 %v8393_v19, %s7933_s23  ;;  %1753 = vrot.lane.b32.xlu0 %v8397_v20, %s7935_s28 }
 0x3f7   : > { %2081 = vrot.lane.b32.xlu1 %v8393_v19, %s7934_s24  ;;  %1961 = vrot.lane.b32.xlu0 %v8375_v59, %s7933_s23 }
 0x3fb   : > { %1567 = vrot.lane.b32.xlu1 %v8395_v5, %s7932_s22  ;;  %1859 = vrot.lane.b32.xlu0 %v8397_v20, %s7937_s30 }
 0x3ff   : > { %1663 = vrot.lane.b32.xlu1 %v8395_v5, %s7931_s21  ;;  %2067 = vrot.lane.b32.xlu0 %v8375_v59, %s7934_s24 }
 0x403   : > { %1571 = vrot.lane.b32.xlu1 %v8417_v35, %s7932_s22  ;;  %1965 = vrot.lane.b32.xlu0 %v8397_v20, %s7933_s23 }
 0x407   : > { %1765 = vrot.lane.b32.xlu1 %v8395_v5, %s7935_s28  ;;  %2173 = vrot.lane.b32.xlu0 %v8375_v59, %s7936_s29 }
 0x40b   : > { %1667 = vrot.lane.b32.xlu1 %v8417_v35, %s7931_s21  ;;  %1569 = vrot.lane.b32.xlu0 %v8415_v31, %s7932_s22 }
 0x40f   : > { %1871 = vrot.lane.b32.xlu1 %v8395_v5, %s7937_s30  ;;  %1665 = vrot.lane.b32.xlu0 %v8415_v31, %s7931_s21 }
 0x413   : > { %1769 = vrot.lane.b32.xlu1 %v8417_v35, %s7935_s28  ;;  %1767 = vrot.lane.b32.xlu0 %v8415_v31, %s7935_s28 }
 0x417   : > { %1977 = vrot.lane.b32.xlu1 %v8395_v5, %s7933_s23  ;;  %1873 = vrot.lane.b32.xlu0 %v8415_v31, %s7937_s30 }
 0x41b   : > { %1875 = vrot.lane.b32.xlu1 %v8417_v35, %s7937_s30  ;;  %1979 = vrot.lane.b32.xlu0 %v8415_v31, %s7933_s23 }
 0x41f   : > { %2083 = vrot.lane.b32.xlu1 %v8395_v5, %s7934_s24  ;;  %2085 = vrot.lane.b32.xlu0 %v8415_v31, %s7934_s24 }
 0x423   : > { %1981 = vrot.lane.b32.xlu1 %v8417_v35, %s7933_s23  ;;  %1573 = vrot.lane.b32.xlu0 %v8457_v22, %s7932_s22 }
 0x427   : > { %1559 = vrot.lane.b32.xlu1 %v8433_v53, %s7932_s22  ;;  %2191 = vrot.lane.b32.xlu0 %v8415_v31, %s7936_s29 }
 0x42b   : > { %2189 = vrot.lane.b32.xlu1 %v8395_v5, %s7936_s29  ;;  %1669 = vrot.lane.b32.xlu0 %v8457_v22, %s7931_s21 }
 0x42f   : > { %1655 = vrot.lane.b32.xlu1 %v8433_v53, %s7931_s21  ;;  %2071 = vrot.lane.b32.xlu0 %v8397_v20, %s7934_s24 }
 0x431   : > { %v1552_v37 = vpop.permute.xlu0 %1551 }
 0x433   : > { %1755 = vrot.lane.b32.xlu1 %v8433_v53, %s7935_s28  ;;  %1771 = vrot.lane.b32.xlu0 %v8457_v22, %s7935_s28 }
 0x435   : > { %v1648_v41 = vpop.permute.xlu0 %1647 }
 0x437   : > { %1861 = vrot.lane.b32.xlu1 %v8433_v53, %s7937_s30  ;;  %2087 = vrot.lane.b32.xlu0 %v8417_v35, %s7934_s24 }
 0x439   : > { %v1556_v43 = vpop.permute.xlu1 %1555  ;;  %v1748_v47 = vpop.permute.xlu0 %1747 }
 0x43b   : > { %1967 = vrot.lane.b32.xlu1 %v8433_v53, %s7933_s23  ;;  %1877 = vrot.lane.b32.xlu0 %v8457_v22, %s7937_s30 }
 0x43d   : > { %v1652_v17 = vpop.permute.xlu1 %1651  ;;  %v1854_v48 = vpop.permute.xlu0 %1853 }
 0x43f   : > { %2187 = vrot.lane.b32.xlu1 %v8393_v19, %s7936_s29  ;;  %2177 = vrot.lane.b32.xlu0 %v8397_v20, %s7936_s29 }
 0x441   : > { %v1752_v51 = vpop.permute.xlu1 %1751  ;;  %v1960_v52 = vpop.permute.xlu0 %1959 }
 0x443   : > { %2073 = vrot.lane.b32.xlu1 %v8433_v53, %s7934_s24  ;;  %1983 = vrot.lane.b32.xlu0 %v8457_v22, %s7933_s23 }
 0x445   : > { %v1858_v49 = vpop.permute.xlu1 %1857  ;;  %v8590_v55 = vpop.permute.xlu0 %2065 }
 0x447   : > { %2179 = vrot.lane.b32.xlu1 %v8433_v53, %s7936_s29  ;;  %2279 = vrot.lane.b32.xlu0 %v8375_v59, %s10490_s19 }
 0x449   : > { %v8596_v60 = vpop.permute.xlu1 %1963  ;;  %v8598_v39 = vpop.permute.xlu0 %2171 }
 0x44b   : > { %2281 = vrot.lane.b32.xlu1 %v8391_v18, %s10490_s19  ;;  %2277 = vrot.lane.b32.xlu0 %v8371_v57, %s10490_s19 }
 0x44d   : > { %v8604_v61 = vpop.permute.xlu1 %2069  ;;  %v1554_v62 = vpop.permute.xlu0 %1553 }
 0x44e   : > { %v1579_v63 = vsel %vm665_vm4, %v1552_v37, %v1554_v62  ;;  %v1580_v0 = vsel %vm665_vm4, %v1554_v62, %v1556_v43 }
 0x44f   : > { %2193 = vrot.lane.b32.xlu1 %v8417_v35, %s7936_s29  ;;  %2297 = vrot.lane.b32.xlu0 %v8415_v31, %s10490_s19 }
 0x450   : > { %2550 = vmatprep.subr.bf16.mxu0 %v1580_v0 }
 0x451   : > { %v8612_v59 = vpop.permute.xlu1 %2175  ;;  %v1650_v18 = vpop.permute.xlu0 %1649  ;;  %2551 = vmatpush1.bf16.msra.mxu0 %v1579_v63 }
 0x452   : > { %v8615_v57 = vsel %vm701_vm5, %v1648_v41, %v1650_v18  ;;  %v8618_v56 = vsel %vm701_vm5, %v1650_v18, %v1652_v17 }
 0x453   : > { %2089 = vrot.lane.b32.xlu1 %v8457_v22, %s7934_s24  ;;  %2195 = vrot.lane.b32.xlu0 %v8457_v22, %s7936_s29 }
 0x455   : > { %v1566_v3 = vpop.permute.xlu1 %1565  ;;  %v8624_v38 = vpop.permute.xlu0 %1557 }
 0x456   : > { %v8628_v31 = vsel %vm665_vm4, %v1556_v43, %v8624_v38 }
 0x457   : > { %2295 = vrot.lane.b32.xlu1 %v8395_v5, %s10490_s19  ;;  %1561 = vrot.lane.b32.xlu0 %v8436_v40, %s7932_s22 }
 0x459   : > { %v1662_v6 = vpop.permute.xlu1 %1661  ;;  %v1750_v46 = vpop.permute.xlu0 %1749 }
 0x45a   : > { %v8635_v1 = vsel %vm737_vm6, %v1748_v47, %v1750_v46  ;;  %v8638_v7 = vsel %vm737_vm6, %v1750_v46, %v1752_v51 }
 0x45b   : > { %2293 = vrot.lane.b32.xlu1 %v8393_v19, %s10490_s19  ;;  %2283 = vrot.lane.b32.xlu0 %v8397_v20, %s10490_s19 }
 0x45d   : > { %v1764_v8 = vpop.permute.xlu1 %1763  ;;  %v8644_v9 = vpop.permute.xlu0 %1653 }
 0x45e   : > { %v8648_v5 = vsel %vm701_vm5, %v1652_v17, %v8644_v9 }
 0x45f   : > { %1563 = vrot.lane.b32.xlu1 %v8455_v29, %s7932_s22  ;;  %2299 = vrot.lane.b32.xlu0 %v8417_v35, %s10490_s19 }
 0x461   : > { %v1870_v11 = vpop.permute.xlu1 %1869  ;;  %v1856_v44 = vpop.permute.xlu0 %1855 }
 0x462   : > { %v8655_v19 = vsel %vm773_vm7, %v1854_v48, %v1856_v44  ;;  %v8658_v20 = vsel %vm773_vm7, %v1856_v44, %v1858_v49 }
 0x463   : > { %2285 = vrot.lane.b32.xlu1 %v8433_v53, %s10490_s19  ;;  %1575 = vrot.lane.b32.xlu0 %v8463_v21, %s7932_s22 }
 0x465   : > { %v8664_v54 = vpop.permute.xlu1 %1975  ;;  %v8666_v12 = vpop.permute.xlu0 %1753 }
 0x466   : > { %v8670_v35 = vsel %vm737_vm6, %v1752_v51, %v8666_v12 }
 0x467   : > { %1577 = vrot.lane.b32.xlu1 %v8480_v34, %s7932_s22  ;;  %1657 = vrot.lane.b32.xlu0 %v8436_v40, %s7931_s21 }
 0x469   : > { %v8676_v13 = vpop.permute.xlu1 %2081  ;;  %v1962_v53 = vpop.permute.xlu0 %1961 }
 0x46a   : > { %v8679_v10 = vsel %vm809_vm8, %v1960_v52, %v1962_v53  ;;  %v8683_v14 = vsel %vm809_vm8, %v1962_v53, %v8596_v60 }
 0x46b   : > { %2301 = vrot.lane.b32.xlu1 %v8457_v22, %s10490_s19  ;;  %1671 = vrot.lane.b32.xlu0 %v8463_v21, %s7931_s21 }
 0x46d   : > { %v1568_v2 = vpop.permute.xlu1 %1567  ;;  %v8689_v16 = vpop.permute.xlu0 %1859 }
 0x46e   : > { %v1585_v23 = vsel %vm665_vm4, %v1566_v3, %v1568_v2  ;;  %v8694_v24 = vsel %vm773_vm7, %v1858_v49, %v8689_v16 }
 0x46f   : > { %1659 = vrot.lane.b32.xlu1 %v8455_v29, %s7931_s21  ;;  %1757 = vrot.lane.b32.xlu0 %v8436_v40, %s7935_s28 }
 0x471   : > { %v1664_v4 = vpop.permute.xlu1 %1663  ;;  %v2068_v22 = vpop.permute.xlu0 %2067 }
 0x472   : > { %v1681_v25 = vsel %vm701_vm5, %v1662_v6, %v1664_v4  ;;  %v8703_v33 = vsel %vm845_vm9, %v8590_v55, %v2068_v22  ;;  %v8707_v26 = vsel %vm845_vm9, %v2068_v22, %v8604_v61 }
 0x473   : > { %1673 = vrot.lane.b32.xlu1 %v8480_v34, %s7931_s21  ;;  %1773 = vrot.lane.b32.xlu0 %v8463_v21, %s7935_s28 }
 0x475   : > { %v8713_v27 = vpop.permute.xlu1 %1571  ;;  %v8715_v28 = vpop.permute.xlu0 %1965 }
 0x476   : > { %v8720_v45 = vsel %vm809_vm8, %v8596_v60, %v8715_v28 }
 0x477   : > { %1759 = vrot.lane.b32.xlu1 %v8455_v29, %s7935_s28  ;;  %1863 = vrot.lane.b32.xlu0 %v8436_v40, %s7937_s30 }
 0x479   : > { %v1766_v30 = vpop.permute.xlu1 %1765  ;;  %v2174_v36 = vpop.permute.xlu0 %2173 }
 0x47a   : > { %v1786_v32 = vsel %vm737_vm6, %v1764_v8, %v1766_v30  ;;  %v8729_v37 = vsel %vm881_vm10, %v8598_v39, %v2174_v36  ;;  %v8733_v41 = vsel %vm881_vm10, %v2174_v36, %v8612_v59 }
 0x47b   : > { %1775 = vrot.lane.b32.xlu1 %v8480_v34, %s7935_s28  ;;  %1879 = vrot.lane.b32.xlu0 %v8463_v21, %s7937_s30 }
 0x47d   : > { %v8739_v43 = vpop.permute.xlu1 %1667  ;;  %v1570_v47 = vpop.permute.xlu0 %1569 }
 0x47e   : > { %v1586_v17 = vsel %vm665_vm4, %v1568_v2, %v1570_v47  ;;  %v8744_v48 = vsel %vm665_vm4, %v1570_v47, %v8713_v27 }
 0x47f   : > { %1865 = vrot.lane.b32.xlu1 %v8455_v29, %s7937_s30  ;;  %1969 = vrot.lane.b32.xlu0 %v8436_v40, %s7933_s23 }
 0x480   : > { %2552 = vmatprep.subr.bf16.mxu0 %v1586_v17  ;;  %v8910_v17 = vld [vmem:[%s10468_s3] ss:$12 sps:$4 sm:$0xff]  }
 0x481   : > { %v1872_v51 = vpop.permute.xlu1 %1871  ;;  %v1666_v52 = vpop.permute.xlu0 %1665  ;;  %2553 = vmatpush1.bf16.msra.mxu0 %v1585_v23 }
 0x482   : > { %v1892_v49 = vsel %vm773_vm7, %v1870_v11, %v1872_v51  ;;  %v1682_v55 = vsel %vm701_vm5, %v1664_v4, %v1666_v52  ;;  %v8754_v60 = vsel %vm701_vm5, %v1666_v52, %v8739_v43  ;;  %2554 = vmatprep.subr.bf16.mxu0 %v8618_v56 }
 0x483   : > { %1881 = vrot.lane.b32.xlu1 %v8480_v34, %s7937_s30  ;;  %1985 = vrot.lane.b32.xlu0 %v8463_v21, %s7933_s23 }
 0x485   : > { %v8761_v39 = vpop.permute.xlu1 %1769  ;;  %v1768_v62 = vpop.permute.xlu0 %1767  ;;  %2555 = vmatpush1.bf16.msra.mxu0 %v8615_v57 }
 0x486   : > { %v1787_v63 = vsel %vm737_vm6, %v1766_v30, %v1768_v62  ;;  %v8767_v0 = vsel %vm737_vm6, %v1768_v62, %v8761_v39  ;;  %2556 = vmatprep.subr.bf16.mxu0 %v1682_v55  ;;  %v2486_v62 = vld [vmem:[%s10469_s4 + $0x8] sm:$0xff] }
 0x487   : > { %1971 = vrot.lane.b32.xlu1 %v8455_v29, %s7933_s23  ;;  %2075 = vrot.lane.b32.xlu0 %v8436_v40, %s7934_s24 }
 0x489   : > { %v1978_v18 = vpop.permute.xlu1 %1977  ;;  %v1874_v56 = vpop.permute.xlu0 %1873  ;;  %2557 = vmatpush1.bf16.msra.mxu0 %v1681_v25 }
 0x48a   : > { %v1998_v3 = vsel %vm809_vm8, %v8664_v54, %v1978_v18  ;;  %v1893_v57 = vsel %vm773_vm7, %v1872_v51, %v1874_v56  ;;  %2558 = vmatprep.subr.bf16.mxu0 %v8638_v7 }
 0x48b   : > { %1987 = vrot.lane.b32.xlu1 %v8480_v34, %s7933_s23  ;;  %2091 = vrot.lane.b32.xlu0 %v8463_v21, %s7934_s24 }
 0x48d   : > { %v8781_v6 = vpop.permute.xlu1 %1875  ;;  %v1980_v46 = vpop.permute.xlu0 %1979  ;;  %2559 = vmatpush1.bf16.msra.mxu0 %v8635_v1 }
 0x48e   : > { %v8786_v8 = vsel %vm773_vm7, %v1874_v56, %v8781_v6  ;;  %v1999_v11 = vsel %vm809_vm8, %v1978_v18, %v1980_v46  ;;  %2560 = vmatprep.subr.bf16.mxu0 %v1787_v63  ;;  %v8946_v18 = vld [vmem:[%s10468_s3 + $0x18] ss:$12 sps:$4 sm:$0xff]  }
 0x48f   : > { %2077 = vrot.lane.b32.xlu1 %v8455_v29, %s7934_s24  ;;  %2181 = vrot.lane.b32.xlu0 %v8436_v40, %s7936_s29 }
 0x491   : > { %v2084_v7 = vpop.permute.xlu1 %2083  ;;  %v2086_v44 = vpop.permute.xlu0 %2085  ;;  %2561 = vmatpush1.bf16.msra.mxu0 %v1786_v32 }
 0x492   : > { %v2104_v54 = vsel %vm845_vm9, %v8676_v13, %v2084_v7  ;;  %v2105_v1 = vsel %vm845_vm9, %v2084_v7, %v2086_v44  ;;  %2562 = vmatprep.subr.bf16.mxu0 %v8658_v20 }
 0x493   : > { %2093 = vrot.lane.b32.xlu1 %v8480_v34, %s7934_s24  ;;  %2197 = vrot.lane.b32.xlu0 %v8463_v21, %s7936_s29 }
 0x495   : > { %v8801_v53 = vpop.permute.xlu1 %1981  ;;  %v8803_v2 = vpop.permute.xlu0 %1573  ;;  %2563 = vmatpush1.bf16.msra.mxu0 %v8655_v19 }
 0x496   : > { %v8808_v23 = vsel %vm809_vm8, %v1980_v46, %v8801_v53  ;;  %v1588_v20 = vsel %vm665_vm4, %v8713_v27, %v8803_v2  ;;  %2564 = vmatprep.subr.bf16.mxu0 %v1893_v57  ;;  %v2488_v57 = vld [vmem:[%s10469_s4 + $0x18] sm:$0xff] }
 0x497   : > { %2183 = vrot.lane.b32.xlu1 %v8455_v29, %s7936_s29  ;;  %2287 = vrot.lane.b32.xlu0 %v8436_v40, %s10490_s19 }
 0x499   : > { %v8817_v13 = vpop.permute.xlu1 %1559  ;;  %v8819_v4 = vpop.permute.xlu0 %2191  ;;  %2565 = vmatpush1.bf16.msra.mxu0 %v1892_v49 }
 0x49a   : > { %v1582_v19 = vsel %vm665_vm4, %v8624_v38, %v8817_v13  ;;  %2566 = vmatprep.subr.bf16.mxu0 %v8683_v14  ;;  %v1828_v14 = vld [vmem:[#allocation4 + $0x38] sm:$0xff] }
 0x49b   : > { %2199 = vrot.lane.b32.xlu1 %v8480_v34, %s7936_s29  ;;  %2303 = vrot.lane.b32.xlu0 %v8463_v21, %s10490_s19 }
 0x49c   : > { %2656 = vmatprep.subr.bf16.mxu1 %v1582_v19 }
 0x49d   : > { %v2190_v22 = vpop.permute.xlu1 %2189  ;;  %v8829_v40 = vpop.permute.xlu0 %1669  ;;  %2567 = vmatpush1.bf16.msra.mxu0 %v8679_v10  ;;  %2657 = vmatpush1.bf16.msra.mxu1 %v8628_v31 }
 0x49e   : > { %v2211_v25 = vsel %vm881_vm10, %v2190_v22, %v8819_v4  ;;  %v1684_v38 = vsel %vm701_vm5, %v8739_v43, %v8829_v40  ;;  %2658 = vmatprep.subr.bf16.mxu1 %v1588_v20  ;;  %2568 = vmatprep.subr.bf16.mxu0 %v1999_v11 }
 0x49f   : > { %2289 = vrot.lane.b32.xlu1 %v8455_v29, %s10490_s19  ;;  %1867 = vrot.lane.b32.xlu0 %v1828_v14, %s7937_s30 }
 0x4a1   : > { %v8841_v21 = vpop.permute.xlu1 %1655  ;;  %v2072_v10 = vpop.permute.xlu0 %2071  ;;  %2569 = vmatpush1.bf16.msra.mxu0 %v1998_v3  ;;  %2659 = vmatpush1.bf16.msra.mxu1 %v8744_v48 }
 0x4a2   : > { %v1678_v31 = vsel %vm701_vm5, %v8644_v9, %v8841_v21  ;;  %v8849_v27 = vsel %vm845_vm9, %v8604_v61, %v2072_v10  ;;  %2570 = vmatprep.subr.bf16.mxu0 %v8707_v26 }
 0x4a3   : > { %2305 = vrot.lane.b32.xlu1 %v8480_v34, %s10490_s19  ;;  %1973 = vrot.lane.b32.xlu0 %v1828_v14, %s7933_s23  ;;  %v1836_v34 = vld [vmem:[#allocation4 + $0x78] sm:$0xff] }
 0x4a4   : > { %2660 = vmatprep.subr.bf16.mxu1 %v1678_v31  ;;  %v2363_v31 = vld [vmem:[#allocation5 + $0x20] sm:$0xff] }
 0x4a5   : > { %v8855_v29 = vpop.permute.xlu1 %1755  ;;  %v8857_v30 = vpop.permute.xlu0 %1771  ;;  %2571 = vmatpush1.bf16.msra.mxu0 %v8703_v33  ;;  %2661 = vmatpush1.bf16.msra.mxu1 %v8648_v5 }
 0x4a6   : > { %v1782_v61 = vsel %vm737_vm6, %v8666_v12, %v8855_v29  ;;  %v1789_v9 = vsel %vm737_vm6, %v8761_v39, %v8857_v30  ;;  %2662 = vmatprep.subr.bf16.mxu1 %v1684_v38  ;;  %2572 = vmatprep.subr.bf16.mxu0 %v2105_v1 }
 0x4a7   : > { %1883 = vrot.lane.b32.xlu1 %v1836_v34, %s7937_s30  ;;  %2079 = vrot.lane.b32.xlu0 %v1828_v14, %s7934_s24  ;;  %s10491_s30 = smov 100  }
 0x4a9   : > { %v8869_v26 = vpop.permute.xlu1 %1861  ;;  %v8871_v33 = vpop.permute.xlu0 %2087  ;;  %2573 = vmatpush1.bf16.msra.mxu0 %v2104_v54  ;;  %2663 = vmatpush1.bf16.msra.mxu1 %v8754_v60 }
 0x4aa   : > { %v1888_v5 = vsel %vm773_vm7, %v8689_v16, %v8869_v26  ;;  %v8879_v12 = vsel %vm845_vm9, %v2086_v44, %v8871_v33  ;;  %2664 = vmatprep.subr.bf16.mxu1 %v1782_v61  ;;  %2574 = vmatprep.subr.bf16.mxu0 %v8733_v41 }
 0x4ab   : > { %1989 = vrot.lane.b32.xlu1 %v1836_v34, %s7933_s23  ;;  %2185 = vrot.lane.b32.xlu0 %v1828_v14, %s7936_s29  ;;  %s10482_s23 = smov 99  }
 0x4ad   : > { %v8884_v36 = vpop.permute.xlu1 %1967  ;;  %v8886_v32 = vpop.permute.xlu0 %1877  ;;  %2575 = vmatpush1.bf16.msra.mxu0 %v8729_v37  ;;  %2665 = vmatpush1.bf16.msra.mxu1 %v8670_v35 }
 0x4ae   : > { %v1994_v16 = vsel %vm809_vm8, %v8715_v28, %v8884_v36  ;;  %v1895_v41 = vsel %vm773_vm7, %v8781_v6, %v8886_v32  ;;  %2666 = vmatprep.subr.bf16.mxu1 %v1789_v9  ;;  %2576 = vmatprep.subr.bf16.mxu0 %v2211_v25  ;;  %v2485_v28 = vld [vmem:[%s10469_s4] sm:$0xff]  ;;  %v8977_v25 = vld [vmem:[%s10468_s3 + $0x8] ss:$12 sps:$4 sm:$0xff]  }
 0x4af   : > { %2095 = vrot.lane.b32.xlu1 %v1836_v34, %s7934_s24  ;;  %2201 = vrot.lane.b32.xlu0 %v1836_v34, %s7936_s29  ;;  %s10494_s29 = sshll.u32 %s10496_s26, 5 }
 0x4b1   : > { %v2188_v43 = vpop.permute.xlu1 %2187  ;;  %v2178_v47 = vpop.permute.xlu0 %2177  ;;  %2667 = vmatpush1.bf16.msra.mxu1 %v8767_v0 }
 0x4b2   : > { %v2210_v35 = vsel %vm881_vm10, %v2188_v43, %v2190_v22  ;;  %v2205_v37 = vsel %vm881_vm10, %v8612_v59, %v2178_v47  ;;  %2668 = vmatprep.subr.bf16.mxu1 %v1888_v5  ;;  %v8920_v59 = vld [vmem:[%s10468_s3 + $0x1c] ss:$12 sps:$4 sm:$0xff]  }
 0x4b3   : > { %1761 = vrot.lane.b32.xlu1 %v1828_v14, %s7935_s28  ;;  %2291 = vrot.lane.b32.xlu0 %v1828_v14, %s10490_s19 }
 0x4b4   : > { %2577 = vmatpush1.bf16.msra.mxu0 %v2210_v35 }
 0x4b5   : > { %v8912_v48 = vpop.permute.xlu1 %2073  ;;  %v8914_v51 = vpop.permute.xlu0 %1983  ;;  %2669 = vmatpush1.bf16.msra.mxu1 %v8694_v24  ;;  %v2487_v24 = vld [vmem:[%s10469_s4 + $0x10] sm:$0xff] }
 0x4b6   : > { %v2100_v52 = vsel %vm845_vm9, %v2072_v10, %v8912_v48  ;;  %v2001_v49 = vsel %vm809_vm8, %v8801_v53, %v8914_v51  ;;  %2670 = vmatprep.subr.bf16.mxu1 %v1895_v41 }
 0x4b7   : > { %1777 = vrot.lane.b32.xlu1 %v1836_v34, %s7935_s28  ;;  %2491 = vperm.xlu0 %7517, %v2485_v28  }
 0x4b8   : > { %2579 = vmatmul.mubr.bf16.vlgmr.msra.gmra.mrb[16].mxu0 %v8910_v17 }
 0x4b9   : > { %v8932_v55 = vpop.permute.xlu1 %2179  ;;  %v2280_v60 = vpop.permute.xlu0 %2279  ;;  %2671 = vmatpush1.bf16.msra.mxu1 %v8786_v8  ;;  %2588 = vmatprep.mubr.bf16.mxu0 %v8920_v59 }
 0x4ba   : > { %v2206_v39 = vsel %vm881_vm10, %v2178_v47, %v8932_v55  ;;  %2672 = vmatprep.subr.bf16.mxu1 %v1994_v16 }
 0x4bb   : > { %2307 = vrot.lane.b32.xlu1 %v1836_v34, %s10490_s19  ;;  %2501 = vperm.xlu0 %7517, %v2487_v24   ;;  %v2370_v34 = vld [vmem:[#allocation5 + $0x58] sm:$0xff]  ;;  %s10486_s19 = smov 98  }
 0x4bd   : > { %v2282_v63 = vpop.permute.xlu1 %2281  ;;  %v2278_v0 = vpop.permute.xlu0 %2277  ;;  %2673 = vmatpush1.bf16.msra.mxu1 %v8720_v45 }
 0x4be   : > { %v2310_v56 = vsel %vm917_vm11, %v2280_v60, %v2282_v63  ;;  %v2309_v3 = vsel %vm917_vm11, %v2278_v0, %v2280_v60  ;;  %2674 = vmatprep.subr.bf16.mxu1 %v2001_v49 }
 0x4bf   : > { %2496 = vperm.xlu1 %7516, %v2486_v62   ;;  %2599 = vmatprep.subr.bf16.mxu0 %v2310_v56 }
 0x4c0   : > { %2600 = vmatpush1.bf16.msra.mxu0 %v2309_v3 }
 0x4c1   : > { %v2194_v6 = vpop.permute.xlu1 %2193  ;;  %v2298_v46 = vpop.permute.xlu0 %2297  ;;  %2675 = vmatpush1.bf16.msra.mxu1 %v8808_v23  ;;  %2589 = vmatmul.mubr.bf16.gmra.mrb[20].mxu0 %v8946_v18 }
 0x4c2   : > { %v2212_v45 = vsel %vm881_vm10, %v8819_v4, %v2194_v6  ;;  %2676 = vmatprep.subr.bf16.mxu1 %v2100_v52  ;;  %2631 = vmatprep.mubr.bf16.mxu0 %v7939_v42 }
 0x4c3   : > { %2506 = vperm.xlu1 %7516, %v2488_v57  }
 0x4c5   : > { %v8958_v8 = vpop.permute.xlu1 %2089  ;;  %v8960_v11 = vpop.permute.xlu0 %2195  ;;  %2677 = vmatpush1.bf16.msra.mxu1 %v8849_v27 }
 0x4c6   : > { %v2107_v7 = vsel %vm845_vm9, %v8871_v33, %v8958_v8  ;;  %v2213_v44 = vsel %vm881_vm10, %v2194_v6, %v8960_v11  ;;  %v8998_v33 = vld [vmem:[%s10468_s3 + $0x20] ss:$12 sps:$4 sm:$0xff]  }
 0x4c7   : > { %2678 = vmatprep.subr.bf16.mxu1 %v2107_v7 }
 0x4c9   : > { %v2296_v54 = vpop.permute.xlu1 %2295  ;;  %v1562_v1 = vpop.permute.xlu0 %1561  ;;  %2679 = vmatpush1.bf16.msra.mxu1 %v8879_v12 }
 0x4ca   : > { %v2317_v53 = vsel %vm917_vm11, %v2296_v54, %v2298_v46  ;;  %v1583_v23 = vsel %vm665_vm4, %v8817_v13, %v1562_v1  ;;  %2680 = vmatprep.subr.bf16.mxu1 %v2206_v39 }
 0x4cb   : > { %2601 = vmatprep.subr.bf16.mxu0 %v2317_v53 }
 0x4cd   : > { %v2294_v20 = vpop.permute.xlu1 %2293  ;;  %v2284_v4 = vpop.permute.xlu0 %2283  ;;  %2681 = vmatpush1.bf16.msra.mxu1 %v2205_v37 }
 0x4ce   : > { %v2316_v19 = vsel %vm917_vm11, %v2294_v20, %v2296_v54  ;;  %v2311_v22 = vsel %vm917_vm11, %v2282_v63, %v2284_v4  ;;  %2682 = vmatprep.subr.bf16.mxu1 %v2213_v44 }
 0x4cf   : > { %2602 = vmatpush1.bf16.msra.mxu0 %v2316_v19 }
 0x4d0   : > { %2758 = vmatprep.subr.bf16.mxu0 %v8472_v15 }
 0x4d1   : > { %v1564_v13 = vpop.permute.xlu1 %1563  ;;  %v2300_v38 = vpop.permute.xlu0 %2299  ;;  %2683 = vmatpush1.bf16.msra.mxu1 %v2212_v45 }
 0x4d2   : > { %v1584_v14 = vsel %vm665_vm4, %v1562_v1, %v1564_v13  ;;  %1611 = vst.msk [vmem:[#allocation5 + $0xa0] sm:$0xff] %vm1514_vm13, %v1564_v13  ;;  %v2318_v10 = vsel %vm917_vm11, %v2298_v46, %v2300_v38  ;;  %6878 = vmatmul.mubr.msk.bf16.vlgmr.msra.gmra.mrb[16].mxu0 %vm2539_vm14, %v8977_v25 }
 0x4d3   : > { %2759 = vmatpush1.bf16.msra.mxu0 %v2363_v31  ;;  %2641 = vmatprep.mubr.bf16.mxu0 %v7939_v42 }
 0x4d4   : > { %2685 = vmatmul.mubr.bf16.vlgmr.msra.gmra.mrb[16].mxu1 %v8910_v17  ;;  %2760 = vmatprep.subr.bf16.mxu0 %v8489_v58 }
 0x4d5   : > { %v8988_v15 = vpop.permute.xlu1 %2285  ;;  %v1576_v27 = vpop.permute.xlu0 %1575  ;;  %2694 = vmatprep.mubr.bf16.mxu1 %v8920_v59 }
 0x4d6   : > { %v2312_v61 = vsel %vm917_vm11, %v2284_v4, %v8988_v15  ;;  %v1589_v9 = vsel %vm665_vm4, %v8803_v2, %v1576_v27 }
 0x4d7   : > { %2705 = vmatprep.subr.bf16.mxu1 %v2312_v61  ;;  %2761 = vmatpush1.bf16.msra.mxu0 %v2370_v34 }
 0x4d8   : > { %2706 = vmatpush1.bf16.msra.mxu1 %v2311_v22  ;;  %2762 = vmatprep.subr.bf16.mxu0 %v1584_v14 }
 0x4d9   : > { %v1578_v58 = vpop.permute.xlu1 %1577  ;;  %v1658_v5 = vpop.permute.xlu0 %1657 }
 0x4da   : > { %v1590_v12 = vsel %vm665_vm4, %v1576_v27, %v1578_v58  ;;  %1618 = vst.msk [vmem:[#allocation5 + $0xd8] sm:$0xff] %vm1514_vm13, %v1578_v58  ;;  %v1679_v16 = vsel %vm701_vm5, %v8841_v21, %v1658_v5  ;;  %6879 = vmatmul.mubr.msk.bf16.gmra.mrb[20].mxu0 %vm2539_vm14, %v8998_v33 }
 0x4db   : > { %2763 = vmatpush1.bf16.msra.mxu0 %v1583_v23  ;;  %2790 = vmatprep.mubr.bf16.mxu0 %v8578_v50 }
 0x4dc   : > { %2695 = vmatmul.mubr.bf16.gmra.mrb[20].mxu1 %v8946_v18  ;;  %2764 = vmatprep.subr.bf16.mxu0 %v1590_v12 }
 0x4dd   : > { %v9008_v2 = vpop.permute.xlu1 %2301  ;;  %v1672_v41 = vpop.permute.xlu0 %1671  ;;  %2737 = vmatprep.mubr.bf16.mxu1 %v7939_v42 }
 0x4de   : > { %v2319_v43 = vsel %vm917_vm11, %v2300_v38, %v9008_v2  ;;  %v1685_v21 = vsel %vm701_vm5, %v8829_v40, %v1672_v41 }
 0x4df   : > { %2707 = vmatprep.subr.bf16.mxu1 %v2319_v43  ;;  %2765 = vmatpush1.bf16.msra.mxu0 %v1589_v9 }
 0x4e0   : > { %2708 = vmatpush1.bf16.msra.mxu1 %v2318_v10 }
 0x4e1   : > { %v1660_v47 = vpop.permute.xlu1 %1659  ;;  %v1758_v35 = vpop.permute.xlu0 %1757 }
 0x4e2   : > { %v1680_v37 = vsel %vm701_vm5, %v1658_v5, %v1660_v47  ;;  %1707 = vst.msk [vmem:[#allocation5 + $0x110] sm:$0xff] %vm1514_vm13, %v1660_v47  ;;  %v1783_v28 = vsel %vm737_vm6, %v8855_v29, %v1758_v35 }
 0x4e3   : > { %2766 = vmatprep.subr.bf16.mxu0 %v1680_v37 }
 0x4e4   : > { %6880 = vmatmul.mubr.msk.bf16.vlgmr.msra.gmra.mrb[16].mxu1 %vm2539_vm14, %v8977_v25  ;;  %2767 = vmatpush1.bf16.msra.mxu0 %v1679_v16 }
 0x4e5   : > { %v1674_v52 = vpop.permute.xlu1 %1673  ;;  %v1774_v49 = vpop.permute.xlu0 %1773  ;;  %2747 = vmatprep.mubr.bf16.mxu1 %v7939_v42 }
 0x4e6   : > { %v1686_v40 = vsel %vm701_vm5, %v1672_v41, %v1674_v52  ;;  %1714 = vst.msk [vmem:[#allocation5 + $0x148] sm:$0xff] %vm1514_vm13, %v1674_v52  ;;  %v1790_v24 = vsel %vm737_vm6, %v8857_v30, %v1774_v49 }
 0x4e7   : > { %2768 = vmatprep.subr.bf16.mxu0 %v1686_v40 }
 0x4e8   : > { %2769 = vmatpush1.bf16.msra.mxu0 %v1685_v21 }
 0x4e9   : > { %v9026_v60 = vpop.permute.xlu1 %1759  ;;  %v1864_v29 = vpop.permute.xlu0 %1863 }
 0x4ea   : > { %v1784_v39 = vsel %vm737_vm6, %v1758_v35, %v9026_v60  ;;  %v1889_v62 = vsel %vm773_vm7, %v8869_v26, %v1864_v29 }
 0x4eb   : > { %2770 = vmatprep.subr.bf16.mxu0 %v1784_v39 }
 0x4ec   : > { %6881 = vmatmul.mubr.msk.bf16.gmra.mrb[20].mxu1 %vm2539_vm14, %v8998_v33  ;;  %2771 = vmatpush1.bf16.msra.mxu0 %v1783_v28  ;;  %v2365_v28 = vld [vmem:[#allocation5 + $0x30] sm:$0xff] }
 0x4ed   : > { %v9034_v63 = vpop.permute.xlu1 %1775  ;;  %v1880_v0 = vpop.permute.xlu0 %1879  ;;  %2896 = vmatprep.mubr.bf16.mxu1 %v8578_v50 }
 0x4ee   : > { %v1791_v30 = vsel %vm737_vm6, %v1774_v49, %v9034_v63  ;;  %v1896_v56 = vsel %vm773_vm7, %v8886_v32, %v1880_v0 }
 0x4ef   : > { %2772 = vmatprep.subr.bf16.mxu0 %v1791_v30 }
 0x4f0   : > { %2773 = vmatpush1.bf16.msra.mxu0 %v1790_v24 }
 0x4f1   : > { %v1866_v3 = vpop.permute.xlu1 %1865  ;;  %v1970_v26 = vpop.permute.xlu0 %1969 }
 0x4f2   : > { %v1890_v57 = vsel %vm773_vm7, %v1864_v29, %v1866_v3  ;;  %v1995_v6 = vsel %vm809_vm8, %v8884_v36, %v1970_v26 }
 0x4f3   : > { %2774 = vmatprep.subr.bf16.mxu0 %v1890_v57 }
 0x4f4   : > { %2775 = vmatpush1.bf16.msra.mxu0 %v1889_v62 }
 0x4f5   : > { %v1882_v46 = vpop.permute.xlu1 %1881  ;;  %v1986_v45 = vpop.permute.xlu0 %1985 }
 0x4f6   : > { %v1897_v50 = vsel %vm773_vm7, %v1880_v0, %v1882_v46  ;;  %v2002_v7 = vsel %vm809_vm8, %v8914_v51, %v1986_v45 }
 0x4f7   : > { %2776 = vmatprep.subr.bf16.mxu0 %v1897_v50 }
 0x4f8   : > { %2777 = vmatpush1.bf16.msra.mxu0 %v1896_v56  ;;  %v2372_v56 = vld [vmem:[#allocation5 + $0x68] sm:$0xff] }
 0x4f9   : > { %v1972_v32 = vpop.permute.xlu1 %1971  ;;  %v2076_v44 = vpop.permute.xlu0 %2075 }
 0x4fa   : > { %v1996_v54 = vsel %vm809_vm8, %v1970_v26, %v1972_v32  ;;  %v2101_v1 = vsel %vm845_vm9, %v8912_v48, %v2076_v44 }
 0x4fb   : > { %2778 = vmatprep.subr.bf16.mxu0 %v1996_v54 }
 0x4fc   : > { %2779 = vmatpush1.bf16.msra.mxu0 %v1995_v6 }
 0x4fd   : > { %v1988_v36 = vpop.permute.xlu1 %1987  ;;  %v2092_v53 = vpop.permute.xlu0 %2091 }
 0x4fe   : > { %v2003_v23 = vsel %vm809_vm8, %v1986_v45, %v1988_v36  ;;  %v2108_v20 = vsel %vm845_vm9, %v8958_v8, %v2092_v53  ;;  %v2379_v45 = vld [vmem:[#allocation5 + $0xa0] sm:$0xff] }
 0x4ff   : > { %2780 = vmatprep.subr.bf16.mxu0 %v2003_v23  ;;  %v2400_v23 = vld [vmem:[#allocation5 + $0x148] sm:$0xff] }
 0x500   : > { %2781 = vmatpush1.bf16.msra.mxu0 %v2002_v7 }
 0x501   : > { %v2078_v51 = vpop.permute.xlu1 %2077  ;;  %v2182_v4 = vpop.permute.xlu0 %2181 }
 0x502   : > { %v2102_v19 = vsel %vm845_vm9, %v2076_v44, %v2078_v51  ;;  %v2207_v22 = vsel %vm881_vm10, %v8932_v55, %v2182_v4  ;;  %v2386_v44 = vld [vmem:[#allocation5 + $0xd8] sm:$0xff] }
 0x503   : > { %2782 = vmatprep.subr.bf16.mxu0 %v2102_v19 }
 0x504   : > { %2783 = vmatpush1.bf16.msra.mxu0 %v2101_v1 }
 0x505   : > { %v2094_v48 = vpop.permute.xlu1 %2093  ;;  %v2198_v13 = vpop.permute.xlu0 %2197 }
 0x506   : > { %v2109_v38 = vsel %vm845_vm9, %v2092_v53, %v2094_v48  ;;  %v2214_v14 = vsel %vm881_vm10, %v8960_v11, %v2198_v13 }
 0x507   : > { %2784 = vmatprep.subr.bf16.mxu0 %v2109_v38  ;;  %v7543_v38 = vld [vmem:[%s10475_s10 + $0x10] ss:$8 sps:$4 sm:$0xff]  }
 0x508   : > { %2785 = vmatpush1.bf16.msra.mxu0 %v2108_v20 }
 0x509   : > { %v2184_v8 = vpop.permute.xlu1 %2183  ;;  %v2288_v10 = vpop.permute.xlu0 %2287 }
 0x50a   : > { %v2208_v31 = vsel %vm881_vm10, %v2182_v4, %v2184_v8  ;;  %v2313_v27 = vsel %vm917_vm11, %v8988_v15, %v2288_v10 }
 0x50b   : > { %2786 = vmatprep.subr.bf16.mxu0 %v2208_v31  ;;  %v7549_v31 = vld [vmem:[%s10475_s10 + $0x20] ss:$8 sps:$4 sm:$0xff]  }
 0x50c   : > { %2787 = vmatpush1.bf16.msra.mxu0 %v2207_v22 }
 0x50d   : > { %v2200_v55 = vpop.permute.xlu1 %2199  ;;  %v2304_v61 = vpop.permute.xlu0 %2303 }
 0x50e   : > { %v2215_v9 = vsel %vm881_vm10, %v2198_v13, %v2200_v55  ;;  %v2320_v34 = vsel %vm917_vm11, %v9008_v2, %v2304_v61  ;;  %v7540_v13 = vld [vmem:[%s10474_s9 + $0x10] ss:$8 sps:$4 sm:$0xff]  }
 0x50f   : > { %2788 = vmatprep.subr.bf16.mxu0 %v2215_v9  ;;  %v7555_v9 = vld [vmem:[%s10475_s10 + $0x30] ss:$8 sps:$4 sm:$0xff]  }
 0x510   : > { %2789 = vmatpush1.bf16.msra.mxu0 %v2214_v14  ;;  %v7548_v14 = vld [vmem:[%s10474_s9 + $0x24] ss:$8 sps:$4 sm:$0xff]  }
 0x511   : > { %v2290_v11 = vpop.permute.xlu1 %2289  ;;  %v1868_v58 = vpop.permute.xlu0 %1867 }
 0x512   : > { %v2314_v5 = vsel %vm917_vm11, %v2288_v10, %v2290_v11  ;;  %v1891_v12 = vsel %vm773_vm7, %v1866_v3, %v1868_v58  ;;  %v7546_v10 = vld [vmem:[%s10474_s9 + $0x20] ss:$8 sps:$4 sm:$0xff]  }
 0x513   : > { %1919 = vst.msk [vmem:[#allocation5 + $0x1f0] sm:$0xff] %vm1514_vm13, %v1891_v12  ;;  %2791 = vmatmul.mubr.bf16.vlgmr.msra.gmra.mrb[24].mxu0 %v8910_v17  ;;  %2811 = vmatprep.subr.bf16.mxu0 %v2314_v5  ;;  %v7558_v58 = vld [vmem:[%s10474_s9 + $0x40] ss:$8 sps:$4 sm:$0xff]   ;;  %v7566_v12 = vld [vmem:[%s10474_s9 + $0x54] ss:$8 sps:$4 sm:$0xff]  }
 0x514   : > { %2812 = vmatpush1.bf16.msra.mxu0 %v2313_v27  ;;  %2800 = vmatprep.mubr.bf16.mxu0 %v8920_v59  ;;  %v7554_v27 = vld [vmem:[%s10474_s9 + $0x34] ss:$8 sps:$4 sm:$0xff]   ;;  %v7561_v5 = vld [vmem:[%s10475_s10 + $0x40] ss:$8 sps:$4 sm:$0xff]  }
 0x515   : > { %v2306_v15 = vpop.permute.xlu1 %2305  ;;  %v1974_v16 = vpop.permute.xlu0 %1973 }
 0x516   : > { %v2321_v2 = vsel %vm917_vm11, %v2304_v61, %v2306_v15  ;;  %v1997_v41 = vsel %vm809_vm8, %v1972_v32, %v1974_v16  ;;  %v7552_v61 = vld [vmem:[%s10474_s9 + $0x30] ss:$8 sps:$4 sm:$0xff]  }
 0x517   : > { %2025 = vst.msk [vmem:[#allocation5 + $0x260] sm:$0xff] %vm1514_vm13, %v1997_v41  ;;  %2813 = vmatprep.subr.bf16.mxu0 %v2321_v2  ;;  %v7564_v16 = vld [vmem:[%s10474_s9 + $0x50] ss:$8 sps:$4 sm:$0xff]   ;;  %v7572_v41 = vld [vmem:[%s10474_s9 + $0x64] ss:$8 sps:$4 sm:$0xff]  }
 0x518   : > { %2814 = vmatpush1.bf16.msra.mxu0 %v2320_v34  ;;  %v7560_v34 = vld [vmem:[%s10474_s9 + $0x44] ss:$8 sps:$4 sm:$0xff]   ;;  %v7567_v2 = vld [vmem:[%s10475_s10 + $0x50] ss:$8 sps:$4 sm:$0xff]  }
 0x519   : > { %v1884_v43 = vpop.permute.xlu1 %1883  ;;  %v2080_v21 = vpop.permute.xlu0 %2079 }
 0x51a   : > { %v1898_v47 = vsel %vm773_vm7, %v1882_v46, %v1884_v43  ;;  %v2103_v35 = vsel %vm845_vm9, %v2078_v51, %v2080_v21  ;;  %v2421_v37 = vld [vmem:[#allocation5 + $0x1f0] sm:$0xff]  ;;  %v7575_v43 = vld [vmem:[%s10475_s10 + $0x64] ss:$8 sps:$4 sm:$0xff]   ;;  %v7570_v21 = vld [vmem:[%s10474_s9 + $0x60] ss:$8 sps:$4 sm:$0xff]   ;;  %vm4998_vm7 = vcmask 916480  }
 0x51b   : > { %1926 = vst.msk [vmem:[#allocation5 + $0x228] sm:$0xff] %vm1514_vm13, %v1898_v47  ;;  %2131 = vst.msk [vmem:[#allocation5 + $0x2d0] sm:$0xff] %vm1514_vm13, %v2103_v35  ;;  %7196 = vmatprep.subr.bf16.mxu1 %v2421_v37  ;;  %2801 = vmatmul.mubr.bf16.gmra.mrb[28].mxu0 %v8946_v18  ;;  %v7573_v47 = vld [vmem:[%s10475_s10 + $0x60] ss:$8 sps:$4 sm:$0xff]   ;;  %v7578_v35 = vld [vmem:[%s10474_s9 + $0x74] ss:$8 sps:$4 sm:$0xff]  }
 0x51c   : > { %7197 = vmatpush3.bf16.msra.mxu1 %v2365_v28  ;;  %2843 = vmatprep.mubr.bf16.mxu0 %v7939_v42  ;;  %v7581_v37 = vld [vmem:[%s10475_s10 + $0x74] ss:$8 sps:$4 sm:$0xff]   ;;  %v7576_v28 = vld [vmem:[%s10474_s9 + $0x70] ss:$8 sps:$4 sm:$0xff]  }
 0x51d   : > { %v1990_v52 = vpop.permute.xlu1 %1989  ;;  %v2186_v49 = vpop.permute.xlu0 %2185 }
 0x51e   : > { %v2004_v40 = vsel %vm809_vm8, %v1988_v36, %v1990_v52  ;;  %v2209_v24 = vsel %vm881_vm10, %v2184_v8, %v2186_v49  ;;  %v2435_v3 = vld [vmem:[#allocation5 + $0x260] sm:$0xff]  ;;  %v2393_v36 = vld [vmem:[#allocation5 + $0x110] sm:$0xff]  ;;  %vm5025_vm8 = vcmask 818176  }
 0x51f   : > { %2032 = vst.msk [vmem:[#allocation5 + $0x298] sm:$0xff] %vm1514_vm13, %v2004_v40  ;;  %2237 = vst.msk [vmem:[#allocation5 + $0x340] sm:$0xff] %vm1514_vm13, %v2209_v24  ;;  %v7551_v8 = vld [vmem:[%s10475_s10 + $0x24] ss:$8 sps:$4 sm:$0xff]   ;;  %v7579_v52 = vld [vmem:[%s10475_s10 + $0x70] ss:$8 sps:$4 sm:$0xff]  }
 0x520   : > { %v7584_v49 = vld [vmem:[%s10474_s9 + $0x84] ss:$8 sps:$4 sm:$0xff]   ;;  %v7582_v24 = vld [vmem:[%s10474_s9 + $0x80] ss:$8 sps:$4 sm:$0xff]  }
 0x521   : > { %v2096_v29 = vpop.permute.xlu1 %2095  ;;  %v2202_v39 = vpop.permute.xlu0 %2201  ;;  %v7587_v40 = vld [vmem:[%s10475_s10 + $0x84] ss:$8 sps:$4 sm:$0xff]  }
 0x522   : > { %v2110_v62 = vsel %vm845_vm9, %v2094_v48, %v2096_v29  ;;  %v2216_v0 = vsel %vm881_vm10, %v2200_v55, %v2202_v39  ;;  %v2428_v30 = vld [vmem:[#allocation5 + $0x228] sm:$0xff]  ;;  %v7557_v55 = vld [vmem:[%s10475_s10 + $0x34] ss:$8 sps:$4 sm:$0xff]   ;;  %vm5052_vm10 = vcmask 809984  }
 0x523   : > { %2138 = vst.msk [vmem:[#allocation5 + $0x308] sm:$0xff] %vm1514_vm13, %v2110_v62  ;;  %2244 = vst.msk [vmem:[#allocation5 + $0x378] sm:$0xff] %vm1514_vm13, %v2216_v0  ;;  %7198 = vmatprep.subr.bf16.mxu1 %v2428_v30  ;;  %6882 = vmatmul.mubr.msk.bf16.vlgmr.msra.gmra.mrb[24].mxu0 %vm2539_vm14, %v8977_v25  ;;  %v7536_v48 = vld [vmem:[%s10474_s9 + $0x4] ss:$8 sps:$4 sm:$0xff]   ;;  %v7585_v29 = vld [vmem:[%s10475_s10 + $0x80] ss:$8 sps:$4 sm:$0xff]  }
 0x524   : > { %7199 = vmatpush3.bf16.msra.mxu1 %v2372_v56  ;;  %2853 = vmatprep.mubr.bf16.mxu0 %v7939_v42  ;;  %v7590_v39 = vld [vmem:[%s10474_s9 + $0x94] ss:$8 sps:$4 sm:$0xff]   ;;  %v7588_v0 = vld [vmem:[%s10474_s9 + $0x90] ss:$8 sps:$4 sm:$0xff]   ;;  %v7596_v56 = vld [vmem:[%s10474_s9 + $0xa4] ss:$8 sps:$4 sm:$0xff]  }
 0x525   : > { %v1762_v26 = vpop.permute.xlu1 %1761  ;;  %7200 = vmatprep.subr.bf16.mxu1 %v2435_v3  ;;  %v2292_v57 = vpop.permute.xlu0 %2291  ;;  %v7593_v62 = vld [vmem:[%s10475_s10 + $0x94] ss:$8 sps:$4 sm:$0xff]   ;;  %v7591_v30 = vld [vmem:[%s10475_s10 + $0x90] ss:$8 sps:$4 sm:$0xff]   ;;  %v7599_v3 = vld [vmem:[%s10475_s10 + $0xa4] ss:$8 sps:$4 sm:$0xff]  }
 0x526   : > { %v1785_v6 = vsel %vm737_vm6, %v9026_v60, %v1762_v26  ;;  %v2315_v46 = vsel %vm917_vm11, %v2290_v11, %v2292_v57  ;;  %v2442_v50 = vld [vmem:[#allocation5 + $0x298] sm:$0xff]  ;;  %v2449_v60 = vld [vmem:[#allocation5 + $0x2d0] sm:$0xff]  ;;  %v7563_v11 = vld [vmem:[%s10475_s10 + $0x44] ss:$8 sps:$4 sm:$0xff]  }
 0x527   : > { %1813 = vst.msk [vmem:[#allocation5 + $0x180] sm:$0xff] %vm1514_vm13, %v1785_v6  ;;  %2343 = vst.msk [vmem:[#allocation5 + $0x3b0] sm:$0xff] %vm1514_vm13, %v2315_v46  ;;  %v7594_v26 = vld [vmem:[%s10474_s9 + $0xa0] ss:$8 sps:$4 sm:$0xff]   ;;  %v7602_v6 = vld [vmem:[%s10474_s9 + $0xb4] ss:$8 sps:$4 sm:$0xff]  }
 0x528   : > { %7201 = vmatpush3.bf16.msra.mxu1 %v2379_v45  ;;  %v7597_v57 = vld [vmem:[%s10475_s10 + $0xa0] ss:$8 sps:$4 sm:$0xff]   ;;  %v7605_v46 = vld [vmem:[%s10475_s10 + $0xb4] ss:$8 sps:$4 sm:$0xff]   ;;  %v7600_v45 = vld [vmem:[%s10474_s9 + $0xb0] ss:$8 sps:$4 sm:$0xff]  }
 0x529   : > { %v1778_v7 = vpop.permute.xlu1 %1777  ;;  %7202 = vmatprep.subr.bf16.mxu1 %v2442_v50  ;;  %v7603_v50 = vld [vmem:[%s10475_s10 + $0xb0] ss:$8 sps:$4 sm:$0xff]  }
 0x52a   : > { %v1792_v32 = vsel %vm737_vm6, %v9034_v63, %v1778_v7  ;;  %v2456_v53 = vld [vmem:[#allocation5 + $0x308] sm:$0xff]  ;;  %v2463_v63 = vld [vmem:[#allocation5 + $0x340] sm:$0xff]  ;;  %v2470_v51 = vld [vmem:[#allocation5 + $0x378] sm:$0xff] }
 0x52b   : > { %1820 = vst.msk [vmem:[#allocation5 + $0x1b8] sm:$0xff] %vm1514_vm13, %v1792_v32  ;;  %6883 = vmatmul.mubr.msk.bf16.gmra.mrb[28].mxu0 %vm2539_vm14, %v8998_v33  ;;  %v7608_v7 = vld [vmem:[%s10474_s9 + $0xc4] ss:$8 sps:$4 sm:$0xff]  }
 0x52c   : > { %7203 = vmatpush3.bf16.msra.mxu1 %v2386_v44  ;;  %v7611_v32 = vld [vmem:[%s10475_s10 + $0xc4] ss:$8 sps:$4 sm:$0xff]  }
 0x52d   : > { %v2308_v54 = vpop.permute.xlu1 %2307  ;;  %7204 = vmatprep.subr.bf16.mxu1 %v2449_v60 }
 0x52e   : > { %v2322_v1 = vsel %vm917_vm11, %v2306_v15, %v2308_v54  ;;  %v2407_v20 = vld [vmem:[#allocation5 + $0x180] sm:$0xff]  ;;  %v2477_v19 = vld [vmem:[#allocation5 + $0x3b0] sm:$0xff]  ;;  %vm5079_vm11 = vcmask 801792  }
 0x52f   : > { %2350 = vst.msk [vmem:[#allocation5 + $0x3e8] sm:$0xff] %vm1514_vm13, %v2322_v1  ;;  %v7569_v15 = vld [vmem:[%s10475_s10 + $0x54] ss:$8 sps:$4 sm:$0xff]   ;;  %v7606_v54 = vld [vmem:[%s10474_s9 + $0xc0] ss:$8 sps:$4 sm:$0xff]  }
 0x530   : > { %7205 = vmatpush3.bf16.msra.mxu1 %v2393_v36  ;;  %v7609_v1 = vld [vmem:[%s10475_s10 + $0xc0] ss:$8 sps:$4 sm:$0xff]  }
 0x531   : > { %7206 = vmatprep.subr.bf16.mxu1 %v2456_v53 }
 0x532   : > { %v2414_v4 = vld [vmem:[#allocation5 + $0x1b8] sm:$0xff] }
 0x534   : > { %7207 = vmatpush3.bf16.msra.mxu1 %v2400_v23 }
 0x535   : > { %7208 = vmatprep.subr.bf16.mxu1 %v2463_v63 }
 0x536   : > { %v2484_v22 = vld [vmem:[#allocation5 + $0x3e8] sm:$0xff]  ;;  %v9259_v44 = vpop.permute.xlu0 %2491 }
 0x538   : > { %7209 = vmatpush3.bf16.msra.mxu1 %v2407_v20 }
 0x539   : > { %7210 = vmatprep.subr.bf16.mxu1 %v2470_v51 }
 0x53c   : > { %7211 = vmatpush3.bf16.msra.mxu1 %v2414_v4 }
 0x53d   : > { %7252 = vmatprep.subr.bf16.mxu1 %v2477_v19 }
 0x53e   : > { %v9268_v23 = vpop.permute.xlu1 %2496 }
 0x53f   : > { %2897 = vmatmul.mubr.bf16.vlgmr.msra.gmra.mrb[24].mxu1 %v8910_v17  ;;  %v7539_v17 = vld [vmem:[%s10475_s10 + $0x4] ss:$8 sps:$4 sm:$0xff]  }
 0x540   : > { %7253 = vmatpush3.bf16.msra.mxu1 %v2477_v19  ;;  %2904 = vmatprep.mubr.bf16.mxu1 %v8920_v59  ;;  %v7534_v59 = vld [vmem:[%s10474_s9] ss:$8 sps:$4 sm:$0xff]   ;;  %v7614_v19 = vld [vmem:[%s10474_s9 + $0xd4] ss:$8 sps:$4 sm:$0xff]  }
 0x541   : > { %7254 = vmatprep.subr.bf16.mxu1 %v2484_v22  ;;  %4638 = vmatprep.subr.bf16.mxu0 %v7539_v17  ;;  %v7612_v17 = vld [vmem:[%s10474_s9 + $0xd0] ss:$8 sps:$4 sm:$0xff]  }
 0x544   : > { %7255 = vmatpush3.bf16.msra.mxu1 %v2484_v22  ;;  %v7617_v22 = vld [vmem:[%s10475_s10 + $0xd4] ss:$8 sps:$4 sm:$0xff]  }
 0x545   : > { %3774 = vmatprep.subr.bf16.mxu1 %v7536_v48 }
 0x547   : > { %2905 = vmatmul.mubr.bf16.gmra.mrb[28].mxu1 %v8946_v18  ;;  %v7537_v18 = vld [vmem:[%s10475_s10] ss:$8 sps:$4 sm:$0xff]  }
 0x548   : > { %7256 = vmatprep.mubr.msk.bf16.mxu1 %vm2539_vm14, %v8977_v25  ;;  %4639 = vmatpush1.bf16.msra.mxu0 %v7537_v18  ;;  %v7542_v25 = vld [vmem:[%s10474_s9 + $0x14] ss:$8 sps:$4 sm:$0xff]  }
 0x54f   : > { %7257 = vmatmul.mubr.msk.bf16.vlgmr.msra.gmra.mrb[32].mxu1 %vm2539_vm14, %v8998_v33  ;;  %v7545_v33 = vld [vmem:[%s10475_s10 + $0x14] ss:$8 sps:$4 sm:$0xff]  }
 0x550   : > { %3775 = vmatpush1.bf16.msra.mxu1 %v7534_v59  ;;  %4640 = vmatprep.subr.bf16.mxu0 %v7545_v33  ;;  %v7615_v59 = vld [vmem:[%s10475_s10 + $0xd0] ss:$8 sps:$4 sm:$0xff]  }
 0x551   : > { %3776 = vmatprep.subr.bf16.mxu1 %v7542_v25  ;;  %4641 = vmatpush1.bf16.msra.mxu0 %v7543_v38 }
 0x552   : > { %4642 = vmatprep.subr.bf16.mxu0 %v7551_v8  ;;  %v7623_v8 = vld [vmem:[%s10475_s10 + $0xe4] ss:$8 sps:$4 sm:$0xff]  }
 0x554   : > { %3777 = vmatpush1.bf16.msra.mxu1 %v7540_v13 }
 0x555   : > { %3778 = vmatprep.subr.bf16.mxu1 %v7548_v14  ;;  %4643 = vmatpush1.bf16.msra.mxu0 %v7549_v31  ;;  %v7620_v14 = vld [vmem:[%s10474_s9 + $0xe4] ss:$8 sps:$4 sm:$0xff]  }
 0x556   : > { %4644 = vmatprep.subr.bf16.mxu0 %v7557_v55  ;;  %v7618_v55 = vld [vmem:[%s10474_s9 + $0xe0] ss:$8 sps:$4 sm:$0xff]  }
 0x558   : > { %3779 = vmatpush1.bf16.msra.mxu1 %v7546_v10  ;;  %v9293_v10 = vpop.permute.xlu0 %2501 }
 0x559   : > { %3780 = vmatprep.subr.bf16.mxu1 %v7554_v27  ;;  %4645 = vmatpush1.bf16.msra.mxu0 %v7555_v9 }
 0x55a   : > { %4646 = vmatprep.subr.bf16.mxu0 %v7563_v11  ;;  %v9304_v11 = vpop.permute.xlu1 %2506 }
 0x55c   : > { %3781 = vmatpush1.bf16.msra.mxu1 %v7552_v61  ;;  %v7621_v61 = vld [vmem:[%s10475_s10 + $0xe0] ss:$8 sps:$4 sm:$0xff]  }
 0x55d   : > { %3782 = vmatprep.subr.bf16.mxu1 %v7560_v34  ;;  %4647 = vmatpush1.bf16.msra.mxu0 %v7561_v5 }
 0x55e   : > { %4648 = vmatprep.subr.bf16.mxu0 %v7569_v15 }
 0x560   : > { %3783 = vmatpush1.bf16.msra.mxu1 %v7558_v58 }
 0x561   : > { %3784 = vmatprep.subr.bf16.mxu1 %v7566_v12  ;;  %4649 = vmatpush1.bf16.msra.mxu0 %v7567_v2  ;;  %v7629_v2 = vld [vmem:[%s10475_s10 + $0xf4] ss:$8 sps:$4 sm:$0xff]  }
 0x562   : > { %4650 = vmatprep.subr.bf16.mxu0 %v7575_v43  ;;  %v7624_v43 = vld [vmem:[%s10474_s9 + $0xf0] ss:$8 sps:$4 sm:$0xff]  }
 0x564   : > { %3785 = vmatpush1.bf16.msra.mxu1 %v7564_v16  ;;  %v7626_v16 = vld [vmem:[%s10474_s9 + $0xf4] ss:$8 sps:$4 sm:$0xff]  }
 0x565   : > { %3786 = vmatprep.subr.bf16.mxu1 %v7572_v41  ;;  %4651 = vmatpush1.bf16.msra.mxu0 %v7573_v47 }
 0x566   : > { %4652 = vmatprep.subr.bf16.mxu0 %v7581_v37 }
 0x568   : > { %3787 = vmatpush1.bf16.msra.mxu1 %v7570_v21  ;;  %v7627_v21 = vld [vmem:[%s10475_s10 + $0xf0] ss:$8 sps:$4 sm:$0xff]  }
 0x569   : > { %3788 = vmatprep.subr.bf16.mxu1 %v7578_v35  ;;  %4653 = vmatpush1.bf16.msra.mxu0 %v7579_v52 }
 0x56a   : > { %4654 = vmatprep.subr.bf16.mxu0 %v7587_v40  ;;  %v7635_v40 = vld [vmem:[%s10475_s10 + $0x104] ss:$8 sps:$4 sm:$0xff]  }
 0x56c   : > { %3789 = vmatpush1.bf16.msra.mxu1 %v7576_v28 }
 0x56d   : > { %3790 = vmatprep.subr.bf16.mxu1 %v7584_v49  ;;  %4655 = vmatpush1.bf16.msra.mxu0 %v7585_v29  ;;  %v7632_v49 = vld [vmem:[%s10474_s9 + $0x104] ss:$8 sps:$4 sm:$0xff]  }
 0x56e   : > { %4656 = vmatprep.subr.bf16.mxu0 %v7593_v62 }
 0x570   : > { %3791 = vmatpush1.bf16.msra.mxu1 %v7582_v24 }
 0x571   : > { %3792 = vmatprep.subr.bf16.mxu1 %v7590_v39  ;;  %4657 = vmatpush1.bf16.msra.mxu0 %v7591_v30 }
 0x572   : > { %4658 = vmatprep.subr.bf16.mxu0 %v7599_v3 }
 0x574   : > { %3793 = vmatpush1.bf16.msra.mxu1 %v7588_v0 }
 0x575   : > { %3794 = vmatprep.subr.bf16.mxu1 %v7596_v56  ;;  %4659 = vmatpush1.bf16.msra.mxu0 %v7597_v57 }
 0x576   : > { %4660 = vmatprep.subr.bf16.mxu0 %v7605_v46 }
 0x578   : > { %3795 = vmatpush1.bf16.msra.mxu1 %v7594_v26 }
 0x579   : > { %3796 = vmatprep.subr.bf16.mxu1 %v7602_v6  ;;  %4661 = vmatpush1.bf16.msra.mxu0 %v7603_v50 }
 0x57a   : > { %4662 = vmatprep.subr.bf16.mxu0 %v7611_v32 }
 0x57c   : > { %3797 = vmatpush1.bf16.msra.mxu1 %v7600_v45 }
 0x57d   : > { %3798 = vmatprep.subr.bf16.mxu1 %v7608_v7  ;;  %4663 = vmatpush1.bf16.msra.mxu0 %v7609_v1 }
 0x57e   : > { %4664 = vmatprep.subr.bf16.mxu0 %v7617_v22 }
 0x580   : > { %3799 = vmatpush1.bf16.msra.mxu1 %v7606_v54 }
 0x581   : > { %3800 = vmatprep.subr.bf16.mxu1 %v7614_v19  ;;  %4665 = vmatpush1.bf16.msra.mxu0 %v7615_v59 }
 0x582   : > { %4666 = vmatprep.subr.bf16.mxu0 %v7623_v8 }
 0x584   : > { %3801 = vmatpush1.bf16.msra.mxu1 %v7612_v17 }
 0x585   : > { %3802 = vmatprep.subr.bf16.mxu1 %v7620_v14  ;;  %4667 = vmatpush1.bf16.msra.mxu0 %v7621_v61 }
 0x586   : > { %4668 = vmatprep.subr.bf16.mxu0 %v7629_v2 }
 0x588   : > { %3803 = vmatpush1.bf16.msra.mxu1 %v7618_v55 }
 0x589   : > { %3804 = vmatprep.subr.bf16.mxu1 %v7626_v16  ;;  %4669 = vmatpush1.bf16.msra.mxu0 %v7627_v21 }
 0x58a   : > { %4691 = vmatprep.subr.bf16.mxu0 %v7635_v40 }
 0x58c   : > { %3805 = vmatpush1.bf16.msra.mxu1 %v7624_v43 }
 0x58d   : > { %3827 = vmatprep.subr.bf16.mxu1 %v7632_v49 }
 0x5a5   : > { %v2633_v60 = vpop.f32.mrb[16].mxu0 }
 0x5a6   : > { %v7308_v36 = vadd.f32 %v2633_v60, %v9259_v44  ;;  %v2635_v53 = vpop.f32.mrb[17].mxu0 }
 0x5a7   : > { %v7309_v63 = vadd.f32 %v2635_v53, %v9259_v44  ;;  %v2637_v20 = vpop.f32.mrb[18].mxu0 }
 0x5a8   : > { %v7310_v51 = vadd.f32 %v2637_v20, %v9268_v23  ;;  %v2639_v4 = vpop.f32.mrb[19].mxu0  ;;  %v2962_v18 = vmax.f32 %v7308_v36, 0.0 }
 0x5a9   : > { %v7311_v48 = vadd.f32 %v2639_v4, %v9268_v23  ;;  %v2963_v33 = vmax.f32 %v7309_v63, 0.0 }
 0x5aa   : > { %v2969_v25 = vmax.f32 %v7310_v51, 0.0 }
 0x5ab   : > { %v2970_v13 = vmax.f32 %v7311_v48, 0.0 }
 0x5ac   : > { %v9285_v38 = vpack.c.bf16 %v2969_v25, %v2962_v18 }
 0x5ad   : > { %v9295_v31 = vpack.c.bf16 %v2970_v13, %v2963_v33  ;;  %v2643_v27 = vpop.f32.mrb[20].mxu0 }
 0x5ae   : > { %v7312_v9 = vadd.f32 %v2643_v27, %v9293_v10  ;;  %v2645_v34 = vpop.f32.mrb[21].mxu0 }
 0x5af   : > { %v7313_v58 = vadd.f32 %v2645_v34, %v9293_v10  ;;  %v2647_v5 = vpop.f32.mrb[22].mxu0  ;;  %3048 = vrot.lane.b32.xlu0 %v9295_v31, %s7935_s28 }
 0x5b0   : > { %v7314_v12 = vadd.f32 %v2647_v5, %v9304_v11  ;;  %v2649_v15 = vpop.f32.mrb[23].mxu0  ;;  %v2976_v47 = vmax.f32 %v7312_v9, 0.0 }
 0x5b1   : > { %v7315_v41 = vadd.f32 %v2649_v15, %v9304_v11  ;;  %v2977_v37 = vmax.f32 %v7313_v58, 0.0 }
 0x5b2   : > { %v2983_v35 = vmax.f32 %v7314_v12, 0.0 }
 0x5b3   : > { %v2984_v28 = vmax.f32 %v7315_v41, 0.0  ;;  %3046 = vrot.lane.b32.xlu0 %v9285_v38, %s7935_s28 }
 0x5b4   : > { %v9325_v52 = vpack.c.bf16 %v2983_v35, %v2976_v47 }
 0x5b5   : > { %v9333_v24 = vpack.c.bf16 %v2984_v28, %v2977_v37 }
 0x5b7   : > { %v2739_v29 = vpop.f32.mrb[16].mxu1 }
 0x5b8   : > { %v7316_v39 = vadd.f32 %v2739_v29, %v9259_v44  ;;  %v2741_v62 = vpop.f32.mrb[17].mxu1 }
 0x5b9   : > { %v7317_v0 = vadd.f32 %v2741_v62, %v9259_v44  ;;  %v2743_v30 = vpop.f32.mrb[18].mxu1 }
 0x5ba   : > { %v7318_v56 = vadd.f32 %v2743_v30, %v9268_v23  ;;  %v2745_v3 = vpop.f32.mrb[19].mxu1  ;;  %v2964_v57 = vmax.f32 %v7316_v39, 0.0 }
 0x5bb   : > { %v7319_v26 = vadd.f32 %v2745_v3, %v9268_v23  ;;  %v2965_v46 = vmax.f32 %v7317_v0, 0.0 }
 0x5bc   : > { %v2971_v6 = vmax.f32 %v7318_v56, 0.0 }
 0x5bd   : > { %v2972_v45 = vmax.f32 %v7319_v26, 0.0 }
 0x5be   : > { %v9339_v50 = vpack.c.bf16 %v2971_v6, %v2964_v57 }
 0x5bf   : > { %v9341_v7 = vpack.c.bf16 %v2972_v45, %v2965_v46  ;;  %v2749_v32 = vpop.f32.mrb[20].mxu1 }
 0x5c0   : > { %v7320_v60 = vadd.f32 %v2749_v32, %v9293_v10  ;;  %v2751_v54 = vpop.f32.mrb[21].mxu1  ;;  %3050 = vrot.lane.b32.xlu1 %v9339_v50, %s7935_s28 }
 0x5c1   : > { %v7321_v1 = vadd.f32 %v2751_v54, %v9293_v10  ;;  %v2753_v36 = vpop.f32.mrb[22].mxu1 }
 0x5c2   : > { %v7322_v53 = vadd.f32 %v2753_v36, %v9304_v11  ;;  %v2755_v63 = vpop.f32.mrb[23].mxu1  ;;  %v2978_v51 = vmax.f32 %v7320_v60, 0.0 }
 0x5c3   : > { %v7323_v20 = vadd.f32 %v2755_v63, %v9304_v11  ;;  %v2979_v19 = vmax.f32 %v7321_v1, 0.0 }
 0x5c4   : > { %v2985_v4 = vmax.f32 %v7322_v53, 0.0  ;;  %3062 = vrot.lane.b32.xlu1 %v9333_v24, %s7935_s28 }
 0x5c5   : > { %v2986_v22 = vmax.f32 %v7323_v20, 0.0 }
 0x5c6   : > { %v9351_v48 = vpack.c.bf16 %v2985_v4, %v2978_v51 }
 0x5c7   : > { %v9353_v17 = vpack.c.bf16 %v2986_v22, %v2979_v19 }
 0x5c8   : > { %3060 = vrot.lane.b32.xlu1 %v9325_v52, %s7935_s28  ;;  %3064 = vrot.lane.b32.xlu0 %v9351_v48, %s7935_s28 }
 0x5cc   : > { %3052 = vrot.lane.b32.xlu0 %v9341_v7, %s7935_s28 }
 0x5d0   : > { %3066 = vrot.lane.b32.xlu0 %v9353_v17, %s7935_s28 }
 0x5f6   : > { %v2845_v59 = vpop.f32.mrb[24].mxu0 }
 0x5f7   : > { %v7324_v18 = vadd.f32 %v2845_v59, %v9259_v44  ;;  %v2847_v25 = vpop.f32.mrb[25].mxu0 }
 0x5f8   : > { %v7325_v33 = vadd.f32 %v2847_v25, %v9259_v44  ;;  %v2849_v13 = vpop.f32.mrb[26].mxu0 }
 0x5f9   : > { %v7326_v14 = vadd.f32 %v2849_v13, %v9268_v23  ;;  %v2851_v8 = vpop.f32.mrb[27].mxu0  ;;  %v2966_v55 = vmax.f32 %v7324_v18, 0.0 }
 0x5fa   : > { %v7327_v27 = vadd.f32 %v2851_v8, %v9268_v23  ;;  %v2967_v9 = vmax.f32 %v7325_v33, 0.0 }
 0x5fb   : > { %v2973_v61 = vmax.f32 %v7326_v14, 0.0 }
 0x5fc   : > { %v2974_v34 = vmax.f32 %v7327_v27, 0.0 }
 0x5fd   : > { %v9367_v58 = vpack.c.bf16 %v2973_v61, %v2966_v55  ;;  %v7630_v61 = vld [vmem:[%s10474_s9 + $0x100] ss:$8 sps:$4 sm:$0xff]  }
 0x5fe   : > { %v9369_v5 = vpack.c.bf16 %v2974_v34, %v2967_v9  ;;  %v2855_v12 = vpop.f32.mrb[28].mxu0 }
 0x5ff   : > { %v7328_v15 = vadd.f32 %v2855_v12, %v9293_v10  ;;  %v2857_v16 = vpop.f32.mrb[29].mxu0  ;;  %3054 = vrot.lane.b32.xlu1 %v9367_v58, %s7935_s28  ;;  %v7633_v12 = vld [vmem:[%s10475_s10 + $0x100] ss:$8 sps:$4 sm:$0xff]  }
 0x600   : > { %v7329_v2 = vadd.f32 %v2857_v16, %v9293_v10  ;;  %v2859_v41 = vpop.f32.mrb[30].mxu0  ;;  %3056 = vrot.lane.b32.xlu0 %v9369_v5, %s7935_s28 }
 0x601   : > { %v7330_v43 = vadd.f32 %v2859_v41, %v9304_v11  ;;  %v2861_v21 = vpop.f32.mrb[31].mxu0  ;;  %v2980_v35 = vmax.f32 %v7328_v15, 0.0  ;;  %v7638_v15 = vld [vmem:[%s10474_s9 + $0x114] ss:$8 sps:$4 sm:$0xff]  }
 0x602   : > { %v7331_v47 = vadd.f32 %v2861_v21, %v9304_v11  ;;  %v2981_v28 = vmax.f32 %v7329_v2, 0.0  ;;  %v7641_v2 = vld [vmem:[%s10475_s10 + $0x114] ss:$8 sps:$4 sm:$0xff]  }
 0x603   : > { %v2987_v37 = vmax.f32 %v7330_v43, 0.0  ;;  %v7644_v43 = vld [vmem:[%s10474_s9 + $0x124] ss:$8 sps:$4 sm:$0xff]  }
 0x604   : > { %v2988_v49 = vmax.f32 %v7331_v47, 0.0 }
 0x605   : > { %v9379_v40 = vpack.c.bf16 %v2987_v37, %v2980_v35 }
 0x606   : > { %v9381_v29 = vpack.c.bf16 %v2988_v49, %v2981_v28  ;;  %v7647_v28 = vld [vmem:[%s10475_s10 + $0x124] ss:$8 sps:$4 sm:$0xff]  }
 0x607   : > { %3068 = vrot.lane.b32.xlu1 %v9379_v40, %s7935_s28 }
 0x608   : > { %3070 = vrot.lane.b32.xlu0 %v9381_v29, %s7935_s28 }
 0x612   : > { %v7212_v39 = vpop.f32.mrb[24].mxu1 }
 0x613   : > { %v7213_v62 = vpop.f32.mrb[25].mxu1 }
 0x614   : > { %v7214_v0 = vadd.f32 %v7213_v62, %v7212_v39  ;;  %v7215_v30 = vpop.f32.mrb[26].mxu1  ;;  %v7642_v62 = vld [vmem:[%s10474_s9 + $0x120] ss:$8 sps:$4 sm:$0xff]  }
 0x615   : > { %v7216_v56 = vpop.f32.mrb[27].mxu1 }
 0x616   : > { %v7217_v3 = vadd.f32 %v7216_v56, %v7215_v30  ;;  %v2899_v1 = vadd.f32 %v7214_v0, %v9259_v44  ;;  %v7645_v0 = vld [vmem:[%s10475_s10 + $0x120] ss:$8 sps:$4 sm:$0xff]   ;;  %v7650_v30 = vld [vmem:[%s10474_s9 + $0x134] ss:$8 sps:$4 sm:$0xff]   ;;  %v7651_v56 = vld [vmem:[%s10475_s10 + $0x130] ss:$8 sps:$4 sm:$0xff]  }
 0x618   : > { %v2902_v4 = vadd.f32 %v7217_v3, %v9268_v23  ;;  %v7656_v3 = vld [vmem:[%s10474_s9 + $0x144] ss:$8 sps:$4 sm:$0xff]  }
 0x61a   : > { %v7218_v26 = vpop.f32.mrb[28].mxu1 }
 0x61b   : > { %v7219_v57 = vpop.f32.mrb[29].mxu1 }
 0x61c   : > { %v7220_v6 = vadd.f32 %v7219_v57, %v7218_v26  ;;  %v7221_v46 = vpop.f32.mrb[30].mxu1  ;;  %v7659_v26 = vld [vmem:[%s10475_s10 + $0x144] ss:$8 sps:$4 sm:$0xff]   ;;  %v7654_v57 = vld [vmem:[%s10474_s9 + $0x140] ss:$8 sps:$4 sm:$0xff]  }
 0x61d   : > { %v7222_v45 = vpop.f32.mrb[31].mxu1 }
 0x61e   : > { %v7223_v32 = vadd.f32 %v7222_v45, %v7221_v46  ;;  %v2907_v60 = vadd.f32 %v7220_v6, %v9293_v10  ;;  %v7657_v6 = vld [vmem:[%s10475_s10 + $0x140] ss:$8 sps:$4 sm:$0xff]   ;;  %v7662_v46 = vld [vmem:[%s10474_s9 + $0x154] ss:$8 sps:$4 sm:$0xff]  }
 0x61f   : > { %v7665_v45 = vld [vmem:[%s10475_s10 + $0x154] ss:$8 sps:$4 sm:$0xff]  }
 0x620   : > { %v2910_v63 = vadd.f32 %v7223_v32, %v9304_v11  ;;  %v7660_v32 = vld [vmem:[%s10474_s9 + $0x150] ss:$8 sps:$4 sm:$0xff]  }
 0x621   : > { %v3049_v10 = vpop.permute.xlu0 %3048 }
 0x622   : > { %v7258_v54 = vpop.f32.mrb[32].mxu1 }
 0x623   : > { %v2956_v36 = vadd.f32 %v7258_v54, %v2907_v60  ;;  %v2947_v53 = vpop.f32.mrb[33].mxu1  ;;  %v7663_v60 = vld [vmem:[%s10475_s10 + $0x150] ss:$8 sps:$4 sm:$0xff]   ;;  %v7668_v54 = vld [vmem:[%s10474_s9 + $0x164] ss:$8 sps:$4 sm:$0xff]  }
 0x624   : > { %v2948_v20 = vadd.f32 %v2947_v53, %v2899_v1  ;;  %v7259_v51 = vpop.f32.mrb[34].mxu1  ;;  %v7671_v1 = vld [vmem:[%s10475_s10 + $0x164] ss:$8 sps:$4 sm:$0xff]   ;;  %v7669_v53 = vld [vmem:[%s10475_s10 + $0x160] ss:$8 sps:$4 sm:$0xff]  }
 0x625   : > { %v2959_v19 = vadd.f32 %v7259_v51, %v2910_v63  ;;  %v2950_v22 = vpop.f32.mrb[35].mxu1  ;;  %v2982_v18 = vmax.f32 %v2956_v36, 0.0  ;;  %v3047_v44 = vpop.permute.xlu0 %3046  ;;  %v7666_v36 = vld [vmem:[%s10474_s9 + $0x160] ss:$8 sps:$4 sm:$0xff]   ;;  %v7674_v63 = vld [vmem:[%s10474_s9 + $0x174] ss:$8 sps:$4 sm:$0xff]  }
 0x626   : > { %v2951_v59 = vadd.f32 %v2950_v22, %v2902_v4  ;;  %v2968_v33 = vmax.f32 %v2948_v20, 0.0  ;;  %v3074_v11 = vsel %vm737_vm6, %v3047_v44, %v3049_v10  ;;  %v7677_v20 = vld [vmem:[%s10475_s10 + $0x174] ss:$8 sps:$4 sm:$0xff]   ;;  %v7672_v51 = vld [vmem:[%s10474_s9 + $0x170] ss:$8 sps:$4 sm:$0xff]  }
 0x627   : > { %v2989_v25 = vmax.f32 %v2959_v19, 0.0  ;;  %v3100_v34 = vmax.bf16 %v3074_v11, %v9285_v38  ;;  %v7636_v38 = vld [vmem:[%s10474_s9 + $0x110] ss:$8 sps:$4 sm:$0xff]   ;;  %v7680_v19 = vld [vmem:[%s10474_s9 + $0x184] ss:$8 sps:$4 sm:$0xff]  }
 0x628   : > { %v2975_v13 = vmax.f32 %v2951_v59, 0.0  ;;  %v7675_v4 = vld [vmem:[%s10475_s10 + $0x170] ss:$8 sps:$4 sm:$0xff]   ;;  %v7683_v22 = vld [vmem:[%s10475_s10 + $0x184] ss:$8 sps:$4 sm:$0xff]  }
 0x629   : > { %v3003_v14 = vpack.c.bf16 %v2989_v25, %v2982_v18  ;;  %v7678_v59 = vld [vmem:[%s10474_s9 + $0x180] ss:$8 sps:$4 sm:$0xff]   ;;  %v7686_v25 = vld [vmem:[%s10474_s9 + $0x194] ss:$8 sps:$4 sm:$0xff]  }
 0x62a   : > { %v2996_v8 = vpack.c.bf16 %v2975_v13, %v2968_v33  ;;  %v7681_v18 = vld [vmem:[%s10475_s10 + $0x180] ss:$8 sps:$4 sm:$0xff]   ;;  %v7689_v33 = vld [vmem:[%s10475_s10 + $0x194] ss:$8 sps:$4 sm:$0xff]   ;;  %v7684_v13 = vld [vmem:[%s10474_s9 + $0x190] ss:$8 sps:$4 sm:$0xff]  }
 0x62b   : > { %3017 = vst.msk [vmem:[#allocation6 + $0x68] sm:$0xff] %vm1514_vm13, %v3003_v14  ;;  %v7687_v14 = vld [vmem:[%s10475_s10 + $0x190] ss:$8 sps:$4 sm:$0xff]   ;;  %v7690_v44 = vld [vmem:[%s10474_s9 + $0x1a0] ss:$8 sps:$4 sm:$0xff]  }
 0x62c   : > { %3010 = vst.msk [vmem:[#allocation6 + $0x30] sm:$0xff] %vm1514_vm13, %v2996_v8  ;;  %v7695_v8 = vld [vmem:[%s10475_s10 + $0x1a4] ss:$8 sps:$4 sm:$0xff]   ;;  %v7693_v11 = vld [vmem:[%s10475_s10 + $0x1a0] ss:$8 sps:$4 sm:$0xff]  }
 0x632   : > { %v9394_v27 = vpop.permute.xlu1 %3050  ;;  %v9416_v41 = vld [vmem:[#allocation6 + $0x68] sm:$0xff] }
 0x633   : > { %v9396_v23 = vld [vmem:[#allocation6 + $0x30] sm:$0xff]  ;;  %v3075_v55 = vsel %vm737_vm6, %v3049_v10, %v9394_v27 }
 0x634   : > { %3058 = vrot.lane.b32.xlu1 %v9396_v23, %s7935_s28  ;;  %v3101_v9 = vmax.bf16 %v3075_v55, %v9295_v31  ;;  %v7639_v31 = vld [vmem:[%s10475_s10 + $0x110] ss:$8 sps:$4 sm:$0xff]   ;;  %v7692_v10 = vld [vmem:[%s10474_s9 + $0x1a4] ss:$8 sps:$4 sm:$0xff]   ;;  %v7698_v55 = vld [vmem:[%s10474_s9 + $0x1b4] ss:$8 sps:$4 sm:$0xff]  }
 0x636   : > { %v3063_v16 = vpop.permute.xlu1 %3062  ;;  %3806 = vmatprep.mubr.bf16.mxu1 %v3101_v9  ;;  %4670 = vmatprep.mubr.bf16.mxu0 %v3101_v9  ;;  %v7696_v9 = vld [vmem:[%s10474_s9 + $0x1b0] ss:$8 sps:$4 sm:$0xff]  }
 0x637   : > { %3807 = vmatmul.mubr.bf16.vlgmr.msra.gmra.mrb[36].mxu1 %v3100_v34  ;;  %4671 = vmatmul.mubr.bf16.vlgmr.msra.gmra.mrb[32].mxu0 %v3100_v34  ;;  %v7699_v34 = vld [vmem:[%s10475_s10 + $0x1b0] ss:$8 sps:$4 sm:$0xff]  }
 0x638   : > { %3072 = vrot.lane.b32.xlu1 %v9416_v41, %s7935_s28  ;;  %3828 = vmatpush1.bf16.msra.mxu1 %v7630_v61  ;;  %v7701_v61 = vld [vmem:[%s10475_s10 + $0x1b4] ss:$8 sps:$4 sm:$0xff]   ;;  %s7940_s28 = smov 114  }
 0x639   : > { %4692 = vmatpush1.bf16.msra.mxu0 %v7633_v12  ;;  %3829 = vmatprep.subr.bf16.mxu1 %v7638_v15  ;;  %v7704_v12 = vld [vmem:[%s10474_s9 + $0x1c4] ss:$8 sps:$4 sm:$0xff]  }
 0x63a   : > { %v3061_v21 = vpop.permute.xlu1 %3060  ;;  %4693 = vmatprep.subr.bf16.mxu0 %v7641_v2  ;;  %v9429_v47 = vpop.permute.xlu0 %3064  ;;  %v7707_v15 = vld [vmem:[%s10475_s10 + $0x1c4] ss:$8 sps:$4 sm:$0xff]   ;;  %v7705_v2 = vld [vmem:[%s10475_s10 + $0x1c0] ss:$8 sps:$4 sm:$0xff]  }
 0x63b   : > { %v3080_v35 = vsel %vm737_vm6, %v3061_v21, %v3063_v16  ;;  %v3081_v37 = vsel %vm737_vm6, %v3063_v16, %v9429_v47  ;;  %v7702_v16 = vld [vmem:[%s10474_s9 + $0x1c0] ss:$8 sps:$4 sm:$0xff]   ;;  %v7711_v21 = vld [vmem:[%s10475_s10 + $0x1d0] ss:$8 sps:$4 sm:$0xff]  }
 0x63c   : > { %v3107_v49 = vmax.bf16 %v3080_v35, %v9325_v52  ;;  %3830 = vmatpush1.bf16.msra.mxu1 %v7636_v38  ;;  %v3108_v39 = vmax.bf16 %v3081_v37, %v9333_v24  ;;  %v7653_v52 = vld [vmem:[%s10475_s10 + $0x134] ss:$8 sps:$4 sm:$0xff]   ;;  %v7648_v24 = vld [vmem:[%s10474_s9 + $0x130] ss:$8 sps:$4 sm:$0xff]   ;;  %v7716_v35 = vld [vmem:[%s10474_s9 + $0x1e4] ss:$8 sps:$4 sm:$0xff]  }
 0x63d   : > { %4694 = vmatpush1.bf16.msra.mxu0 %v7639_v31  ;;  %3831 = vmatprep.subr.bf16.mxu1 %v7644_v43  ;;  %v7710_v38 = vld [vmem:[%s10474_s9 + $0x1d4] ss:$8 sps:$4 sm:$0xff]   ;;  %v7708_v43 = vld [vmem:[%s10474_s9 + $0x1d0] ss:$8 sps:$4 sm:$0xff]   ;;  %v7719_v37 = vld [vmem:[%s10475_s10 + $0x1e4] ss:$8 sps:$4 sm:$0xff]  }
 0x63e   : > { %3816 = vmatprep.mubr.bf16.mxu1 %v3108_v39  ;;  %4680 = vmatprep.mubr.bf16.mxu0 %v3108_v39  ;;  %v7713_v31 = vld [vmem:[%s10475_s10 + $0x1d4] ss:$8 sps:$4 sm:$0xff]  }
 0x63f   : > { %4695 = vmatprep.subr.bf16.mxu0 %v7647_v28  ;;  %3817 = vmatmul.mubr.bf16.gmra.mrb[40].mxu1 %v3107_v49  ;;  %v7714_v28 = vld [vmem:[%s10474_s9 + $0x1e0] ss:$8 sps:$4 sm:$0xff]   ;;  %v7722_v39 = vld [vmem:[%s10474_s9 + $0x1f4] ss:$8 sps:$4 sm:$0xff]  }
 0x640   : > { %3832 = vmatpush1.bf16.msra.mxu1 %v7642_v62  ;;  %4681 = vmatmul.mubr.bf16.gmra.mrb[36].mxu0 %v3107_v49  ;;  %v7717_v49 = vld [vmem:[%s10475_s10 + $0x1e0] ss:$8 sps:$4 sm:$0xff]   ;;  %v7725_v62 = vld [vmem:[%s10475_s10 + $0x1f4] ss:$8 sps:$4 sm:$0xff]  }
 0x641   : > { %4696 = vmatpush1.bf16.msra.mxu0 %v7645_v0  ;;  %3833 = vmatprep.subr.bf16.mxu1 %v7650_v30  ;;  %v3053_v0 = vpop.permute.xlu0 %3052  ;;  %v7720_v30 = vld [vmem:[%s10474_s9 + $0x1f0] ss:$8 sps:$4 sm:$0xff]  }
 0x642   : > { %4697 = vmatprep.subr.bf16.mxu0 %v7653_v52 }
 0x644   : > { %3834 = vmatpush1.bf16.msra.mxu1 %v7648_v24  ;;  %v7723_v24 = vld [vmem:[%s10475_s10 + $0x1f0] ss:$8 sps:$4 sm:$0xff]  }
 0x645   : > { %4698 = vmatpush1.bf16.msra.mxu0 %v7651_v56  ;;  %3835 = vmatprep.subr.bf16.mxu1 %v7656_v3  ;;  %v3076_v56 = vsel %vm737_vm6, %v9394_v27, %v3053_v0 }
 0x646   : > { %4699 = vmatprep.subr.bf16.mxu0 %v7659_v26  ;;  %v7728_v26 = vld [vmem:[%s10474_s9 + $0x204] ss:$8 sps:$4 sm:$0xff]   ;;  %v3102_v27 = vmax.bf16 %v3076_v56, %v9339_v50  ;;  %v7732_v50 = vld [vmem:[%s10474_s9 + $0x210] ss:$8 sps:$4 sm:$0xff]  }
 0x647   : > { %v7792_v56 = vld [vmem:[%s10474_s9 + $0x2b0] ss:$8 sps:$4 sm:$0xff]  }
 0x648   : > { %3836 = vmatpush1.bf16.msra.mxu1 %v7654_v57 }
 0x649   : > { %4700 = vmatpush1.bf16.msra.mxu0 %v7657_v6  ;;  %3837 = vmatprep.subr.bf16.mxu1 %v7662_v46  ;;  %v7731_v6 = vld [vmem:[%s10475_s10 + $0x204] ss:$8 sps:$4 sm:$0xff]   ;;  %v7726_v46 = vld [vmem:[%s10474_s9 + $0x200] ss:$8 sps:$4 sm:$0xff]  }
 0x64a   : > { %4701 = vmatprep.subr.bf16.mxu0 %v7665_v45  ;;  %v7729_v45 = vld [vmem:[%s10475_s10 + $0x200] ss:$8 sps:$4 sm:$0xff]  }
 0x64c   : > { %3838 = vmatpush1.bf16.msra.mxu1 %v7660_v32  ;;  %v7737_v32 = vld [vmem:[%s10475_s10 + $0x214] ss:$8 sps:$4 sm:$0xff]  }
 0x64d   : > { %4702 = vmatpush1.bf16.msra.mxu0 %v7663_v60  ;;  %3839 = vmatprep.subr.bf16.mxu1 %v7668_v54  ;;  %v3067_v60 = vpop.permute.xlu0 %3066 }
 0x64e   : > { %4703 = vmatprep.subr.bf16.mxu0 %v7671_v1  ;;  %v7735_v1 = vld [vmem:[%s10475_s10 + $0x210] ss:$8 sps:$4 sm:$0xff]  }
 0x650   : > { %3840 = vmatpush1.bf16.msra.mxu1 %v7666_v36  ;;  %v3082_v36 = vsel %vm737_vm6, %v9429_v47, %v3067_v60  ;;  %v7741_v47 = vld [vmem:[%s10475_s10 + $0x220] ss:$8 sps:$4 sm:$0xff]  }
 0x651   : > { %4704 = vmatpush1.bf16.msra.mxu0 %v7669_v53  ;;  %3841 = vmatprep.subr.bf16.mxu1 %v7674_v63  ;;  %v7740_v63 = vld [vmem:[%s10474_s9 + $0x224] ss:$8 sps:$4 sm:$0xff]  }
 0x652   : > { %4705 = vmatprep.subr.bf16.mxu0 %v7677_v20 }
 0x654   : > { %3842 = vmatpush1.bf16.msra.mxu1 %v7672_v51  ;;  %v7743_v51 = vld [vmem:[%s10475_s10 + $0x224] ss:$8 sps:$4 sm:$0xff]  }
 0x655   : > { %4706 = vmatpush1.bf16.msra.mxu0 %v7675_v4  ;;  %3843 = vmatprep.subr.bf16.mxu1 %v7680_v19  ;;  %v7738_v4 = vld [vmem:[%s10474_s9 + $0x220] ss:$8 sps:$4 sm:$0xff]   ;;  %v3109_v19 = vmax.bf16 %v3082_v36, %v9351_v48  ;;  %v7747_v48 = vld [vmem:[%s10475_s10 + $0x230] ss:$8 sps:$4 sm:$0xff]  }
 0x656   : > { %4707 = vmatprep.subr.bf16.mxu0 %v7683_v22  ;;  %v7749_v22 = vld [vmem:[%s10475_s10 + $0x234] ss:$8 sps:$4 sm:$0xff]   ;;  %v7807_v36 = vld [vmem:[%s10475_s10 + $0x2d0] ss:$8 sps:$4 sm:$0xff]  }
 0x658   : > { %3844 = vmatpush1.bf16.msra.mxu1 %v7678_v59  ;;  %v7744_v59 = vld [vmem:[%s10474_s9 + $0x230] ss:$8 sps:$4 sm:$0xff]  }
 0x659   : > { %4708 = vmatpush1.bf16.msra.mxu0 %v7681_v18  ;;  %3845 = vmatprep.subr.bf16.mxu1 %v7686_v25  ;;  %v7752_v18 = vld [vmem:[%s10474_s9 + $0x244] ss:$8 sps:$4 sm:$0xff]  }
 0x65a   : > { %4709 = vmatprep.subr.bf16.mxu0 %v7689_v33  ;;  %v7755_v25 = vld [vmem:[%s10475_s10 + $0x244] ss:$8 sps:$4 sm:$0xff]   ;;  %v7750_v33 = vld [vmem:[%s10474_s9 + $0x240] ss:$8 sps:$4 sm:$0xff]  }
 0x65c   : > { %3846 = vmatpush1.bf16.msra.mxu1 %v7684_v13  ;;  %v7753_v13 = vld [vmem:[%s10475_s10 + $0x240] ss:$8 sps:$4 sm:$0xff]  }
 0x65d   : > { %4710 = vmatpush1.bf16.msra.mxu0 %v7687_v14  ;;  %3847 = vmatprep.subr.bf16.mxu1 %v7692_v10  ;;  %v7758_v14 = vld [vmem:[%s10474_s9 + $0x254] ss:$8 sps:$4 sm:$0xff]  }
 0x65e   : > { %4711 = vmatprep.subr.bf16.mxu0 %v7695_v8  ;;  %v7761_v10 = vld [vmem:[%s10475_s10 + $0x254] ss:$8 sps:$4 sm:$0xff]   ;;  %v7756_v8 = vld [vmem:[%s10474_s9 + $0x250] ss:$8 sps:$4 sm:$0xff]  }
 0x660   : > { %3848 = vmatpush1.bf16.msra.mxu1 %v7690_v44  ;;  %v7759_v44 = vld [vmem:[%s10475_s10 + $0x250] ss:$8 sps:$4 sm:$0xff]  }
 0x661   : > { %4712 = vmatpush1.bf16.msra.mxu0 %v7693_v11  ;;  %3849 = vmatprep.subr.bf16.mxu1 %v7698_v55  ;;  %v7764_v11 = vld [vmem:[%s10474_s9 + $0x264] ss:$8 sps:$4 sm:$0xff]  }
 0x662   : > { %4713 = vmatprep.subr.bf16.mxu0 %v7701_v61  ;;  %v7767_v55 = vld [vmem:[%s10475_s10 + $0x264] ss:$8 sps:$4 sm:$0xff]   ;;  %v7762_v61 = vld [vmem:[%s10474_s9 + $0x260] ss:$8 sps:$4 sm:$0xff]  }
 0x664   : > { %3850 = vmatpush1.bf16.msra.mxu1 %v7696_v9  ;;  %v7765_v9 = vld [vmem:[%s10475_s10 + $0x260] ss:$8 sps:$4 sm:$0xff]  }
 0x665   : > { %4714 = vmatpush1.bf16.msra.mxu0 %v7699_v34  ;;  %3851 = vmatprep.subr.bf16.mxu1 %v7704_v12  ;;  %v7770_v34 = vld [vmem:[%s10474_s9 + $0x274] ss:$8 sps:$4 sm:$0xff]  }
 0x666   : > { %4715 = vmatprep.subr.bf16.mxu0 %v7707_v15  ;;  %v7773_v12 = vld [vmem:[%s10475_s10 + $0x274] ss:$8 sps:$4 sm:$0xff]   ;;  %v7768_v15 = vld [vmem:[%s10474_s9 + $0x270] ss:$8 sps:$4 sm:$0xff]  }
 0x668   : > { %3852 = vmatpush1.bf16.msra.mxu1 %v7702_v16  ;;  %v7771_v16 = vld [vmem:[%s10475_s10 + $0x270] ss:$8 sps:$4 sm:$0xff]  }
 0x669   : > { %4716 = vmatpush1.bf16.msra.mxu0 %v7705_v2  ;;  %3853 = vmatprep.subr.bf16.mxu1 %v7710_v38  ;;  %v7776_v2 = vld [vmem:[%s10474_s9 + $0x284] ss:$8 sps:$4 sm:$0xff]  }
 0x66a   : > { %4717 = vmatprep.subr.bf16.mxu0 %v7713_v31  ;;  %v7779_v38 = vld [vmem:[%s10475_s10 + $0x284] ss:$8 sps:$4 sm:$0xff]   ;;  %v7774_v31 = vld [vmem:[%s10474_s9 + $0x280] ss:$8 sps:$4 sm:$0xff]  }
 0x66c   : > { %3854 = vmatpush1.bf16.msra.mxu1 %v7708_v43  ;;  %v7777_v43 = vld [vmem:[%s10475_s10 + $0x280] ss:$8 sps:$4 sm:$0xff]  }
 0x66d   : > { %4718 = vmatpush1.bf16.msra.mxu0 %v7711_v21  ;;  %3855 = vmatprep.subr.bf16.mxu1 %v7716_v35  ;;  %v7782_v21 = vld [vmem:[%s10474_s9 + $0x294] ss:$8 sps:$4 sm:$0xff]  }
 0x66e   : > { %4719 = vmatprep.subr.bf16.mxu0 %v7719_v37  ;;  %v7785_v35 = vld [vmem:[%s10475_s10 + $0x294] ss:$8 sps:$4 sm:$0xff]   ;;  %v7780_v37 = vld [vmem:[%s10474_s9 + $0x290] ss:$8 sps:$4 sm:$0xff]  }
 0x670   : > { %3856 = vmatpush1.bf16.msra.mxu1 %v7714_v28  ;;  %v7783_v28 = vld [vmem:[%s10475_s10 + $0x290] ss:$8 sps:$4 sm:$0xff]  }
 0x671   : > { %4720 = vmatpush1.bf16.msra.mxu0 %v7717_v49  ;;  %v9598_v52 = vpop.permute.xlu1 %3054  ;;  %3857 = vmatprep.subr.bf16.mxu1 %v7722_v39  ;;  %v7788_v49 = vld [vmem:[%s10474_s9 + $0x2a4] ss:$8 sps:$4 sm:$0xff]  }
 0x672   : > { %v3077_v3 = vsel %vm737_vm6, %v3053_v0, %v9598_v52  ;;  %4721 = vmatprep.subr.bf16.mxu0 %v7725_v62  ;;  %v7791_v39 = vld [vmem:[%s10475_s10 + $0x2a4] ss:$8 sps:$4 sm:$0xff]   ;;  %v7786_v62 = vld [vmem:[%s10474_s9 + $0x2a0] ss:$8 sps:$4 sm:$0xff]  }
 0x673   : > { %v3103_v57 = vmax.bf16 %v3077_v3, %v9341_v7  ;;  %v7734_v7 = vld [vmem:[%s10474_s9 + $0x214] ss:$8 sps:$4 sm:$0xff]   ;;  %v7789_v0 = vld [vmem:[%s10475_s10 + $0x2a0] ss:$8 sps:$4 sm:$0xff]   ;;  %v7795_v3 = vld [vmem:[%s10475_s10 + $0x2b0] ss:$8 sps:$4 sm:$0xff]  }
 0x674   : > { %3858 = vmatpush1.bf16.msra.mxu1 %v7720_v30  ;;  %v7794_v30 = vld [vmem:[%s10474_s9 + $0x2b4] ss:$8 sps:$4 sm:$0xff]  }
 0x675   : > { %4722 = vmatpush1.bf16.msra.mxu0 %v7723_v24  ;;  %3859 = vmatprep.mubr.bf16.mxu1 %v3103_v57  ;;  %v7797_v24 = vld [vmem:[%s10475_s10 + $0x2b4] ss:$8 sps:$4 sm:$0xff]  }
 0x676   : > { %3880 = vmatprep.subr.bf16.mxu1 %v7728_v26  ;;  %4723 = vmatprep.mubr.bf16.mxu0 %v3103_v57  ;;  %v7800_v26 = vld [vmem:[%s10474_s9 + $0x2c4] ss:$8 sps:$4 sm:$0xff]  }
 0x677   : > { %4744 = vmatprep.subr.bf16.mxu0 %v7731_v6  ;;  %3860 = vmatmul.mubr.bf16.vlgmr.msra.gmra.mrb[36].mxu1 %v3102_v27  ;;  %v7803_v57 = vld [vmem:[%s10475_s10 + $0x2c4] ss:$8 sps:$4 sm:$0xff]   ;;  %v7798_v6 = vld [vmem:[%s10474_s9 + $0x2c0] ss:$8 sps:$4 sm:$0xff]  }
 0x678   : > { %3881 = vmatpush1.bf16.msra.mxu1 %v7726_v46  ;;  %4724 = vmatmul.mubr.bf16.vlgmr.msra.gmra.mrb[32].mxu0 %v3102_v27  ;;  %v7801_v46 = vld [vmem:[%s10475_s10 + $0x2c0] ss:$8 sps:$4 sm:$0xff]   ;;  %v7806_v27 = vld [vmem:[%s10474_s9 + $0x2d4] ss:$8 sps:$4 sm:$0xff]  }
 0x679   : > { %4745 = vmatpush1.bf16.msra.mxu0 %v7729_v45  ;;  %v9630_v54 = vpop.permute.xlu1 %3068  ;;  %3882 = vmatprep.subr.bf16.mxu1 %v7734_v7  ;;  %v3057_v45 = vpop.permute.xlu0 %3056 }
 0x67a   : > { %v3083_v53 = vsel %vm737_vm6, %v3067_v60, %v9630_v54  ;;  %4746 = vmatprep.subr.bf16.mxu0 %v7737_v32  ;;  %v7809_v60 = vld [vmem:[%s10475_s10 + $0x2d4] ss:$8 sps:$4 sm:$0xff]  }
 0x67b   : > { %v3110_v20 = vmax.bf16 %v3083_v53, %v9353_v17  ;;  %v7746_v17 = vld [vmem:[%s10474_s9 + $0x234] ss:$8 sps:$4 sm:$0xff]   ;;  %v7812_v53 = vld [vmem:[%s10474_s9 + $0x2e4] ss:$8 sps:$4 sm:$0xff]  }
 0x67c   : > { %3883 = vmatpush1.bf16.msra.mxu1 %v7732_v50 }
 0x67d   : > { %4747 = vmatpush1.bf16.msra.mxu0 %v7735_v1  ;;  %3869 = vmatprep.mubr.bf16.mxu1 %v3110_v20  ;;  %v7804_v1 = vld [vmem:[%s10474_s9 + $0x2d0] ss:$8 sps:$4 sm:$0xff]  }
 0x67e   : > { %3884 = vmatprep.subr.bf16.mxu1 %v7740_v63  ;;  %4733 = vmatprep.mubr.bf16.mxu0 %v3110_v20  ;;  %v7810_v63 = vld [vmem:[%s10474_s9 + $0x2e0] ss:$8 sps:$4 sm:$0xff]  }
 0x67f   : > { %4748 = vmatprep.subr.bf16.mxu0 %v7743_v51  ;;  %3870 = vmatmul.mubr.bf16.gmra.mrb[40].mxu1 %v3109_v19  ;;  %v7813_v20 = vld [vmem:[%s10475_s10 + $0x2e0] ss:$8 sps:$4 sm:$0xff]   ;;  %v7818_v51 = vld [vmem:[%s10474_s9 + $0x2f4] ss:$8 sps:$4 sm:$0xff]  }
 0x680   : > { %3885 = vmatpush1.bf16.msra.mxu1 %v7738_v4  ;;  %4734 = vmatmul.mubr.bf16.gmra.mrb[36].mxu0 %v3109_v19  ;;  %v7821_v4 = vld [vmem:[%s10475_s10 + $0x2f4] ss:$8 sps:$4 sm:$0xff]   ;;  %v7816_v19 = vld [vmem:[%s10474_s9 + $0x2f0] ss:$8 sps:$4 sm:$0xff]  }
 0x681   : > { %4749 = vmatpush1.bf16.msra.mxu0 %v7741_v47  ;;  %3886 = vmatprep.subr.bf16.mxu1 %v7746_v17  ;;  %v7819_v17 = vld [vmem:[%s10475_s10 + $0x2f0] ss:$8 sps:$4 sm:$0xff]  }
 0x682   : > { %4750 = vmatprep.subr.bf16.mxu0 %v7749_v22  ;;  %v7824_v22 = vld [vmem:[%s10474_s9 + $0x304] ss:$8 sps:$4 sm:$0xff]  }
 0x684   : > { %3887 = vmatpush1.bf16.msra.mxu1 %v7744_v59  ;;  %v3078_v59 = vsel %vm737_vm6, %v9598_v52, %v3057_v45  ;;  %v7827_v52 = vld [vmem:[%s10474_s9 + $0x314] ss:$8 sps:$4 sm:$0xff]  }
 0x685   : > { %4751 = vmatpush1.bf16.msra.mxu0 %v7747_v48  ;;  %3888 = vmatprep.subr.bf16.mxu1 %v7752_v18  ;;  %v3071_v48 = vpop.permute.xlu0 %3070 }
 0x686   : > { %4752 = vmatprep.subr.bf16.mxu0 %v7755_v25  ;;  %v3104_v25 = vmax.bf16 %v3078_v59, %v9367_v58  ;;  %v7825_v58 = vld [vmem:[%s10474_s9 + $0x310] ss:$8 sps:$4 sm:$0xff]  }
 0x688   : > { %3889 = vmatpush1.bf16.msra.mxu1 %v7750_v33  ;;  %v7822_v33 = vld [vmem:[%s10474_s9 + $0x300] ss:$8 sps:$4 sm:$0xff]  }
 0x689   : > { %4753 = vmatpush1.bf16.msra.mxu0 %v7753_v13  ;;  %3890 = vmatprep.subr.bf16.mxu1 %v7758_v14  ;;  %v3084_v14 = vsel %vm737_vm6, %v9630_v54, %v3071_v48  ;;  %v7831_v54 = vld [vmem:[%s10474_s9 + $0x330] ss:$8 sps:$4 sm:$0xff]  }
 0x68a   : > { %4754 = vmatprep.subr.bf16.mxu0 %v7761_v10  ;;  %v3111_v10 = vmax.bf16 %v3084_v14, %v9379_v40  ;;  %v7836_v40 = vld [vmem:[%s10474_s9 + $0x344] ss:$8 sps:$4 sm:$0xff]  }
 0x68c   : > { %3891 = vmatpush1.bf16.msra.mxu1 %v7756_v8  ;;  %v7828_v8 = vld [vmem:[%s10474_s9 + $0x320] ss:$8 sps:$4 sm:$0xff]  }
 0x68d   : > { %4755 = vmatpush1.bf16.msra.mxu0 %v7759_v44  ;;  %3892 = vmatprep.subr.bf16.mxu1 %v7764_v11  ;;  %v7833_v44 = vld [vmem:[%s10474_s9 + $0x334] ss:$8 sps:$4 sm:$0xff]   ;;  %v7834_v11 = vld [vmem:[%s10474_s9 + $0x340] ss:$8 sps:$4 sm:$0xff]  }
 0x68e   : > { %4756 = vmatprep.subr.bf16.mxu0 %v7767_v55  ;;  %v7837_v55 = vld [vmem:[%s10474_s9 + $0x354] ss:$8 sps:$4 sm:$0x3f]  }
 0x690   : > { %3893 = vmatpush1.bf16.msra.mxu1 %v7762_v61  ;;  %v7839_v61 = vld [vmem:[%s10474_s9 + $0x350] ss:$8 sps:$4 sm:$0x3f]  }
 0x691   : > { %4757 = vmatpush1.bf16.msra.mxu0 %v7765_v9  ;;  %3894 = vmatprep.subr.bf16.mxu1 %v7770_v34  ;;  %v3769_v9 = vsel %vm3767_vm15, %v7839_v61, 0  ;;  %v7842_v34 = vld [vmem:[%s10475_s10 + $0x304] ss:$8 sps:$4 sm:$0xff]  }
 0x692   : > { %4758 = vmatprep.subr.bf16.mxu0 %v7773_v12  ;;  %v7840_v12 = vld [vmem:[%s10475_s10 + $0x300] ss:$8 sps:$4 sm:$0xff]  }
 0x694   : > { %3895 = vmatpush1.bf16.msra.mxu1 %v7768_v15 }
 0x695   : > { %4759 = vmatpush1.bf16.msra.mxu0 %v7771_v16  ;;  %3896 = vmatprep.subr.bf16.mxu1 %v7776_v2  ;;  %v7845_v16 = vld [vmem:[%s10475_s10 + $0x314] ss:$8 sps:$4 sm:$0xff]   ;;  %v7843_v2 = vld [vmem:[%s10475_s10 + $0x310] ss:$8 sps:$4 sm:$0xff]  }
 0x696   : > { %4760 = vmatprep.subr.bf16.mxu0 %v7779_v38  ;;  %v7848_v38 = vld [vmem:[%s10475_s10 + $0x324] ss:$8 sps:$4 sm:$0xff]  }
 0x698   : > { %3897 = vmatpush1.bf16.msra.mxu1 %v7774_v31 }
 0x699   : > { %4761 = vmatpush1.bf16.msra.mxu0 %v7777_v43  ;;  %3898 = vmatprep.subr.bf16.mxu1 %v7782_v21  ;;  %v7851_v43 = vld [vmem:[%s10475_s10 + $0x334] ss:$8 sps:$4 sm:$0xff]   ;;  %v7849_v21 = vld [vmem:[%s10475_s10 + $0x330] ss:$8 sps:$4 sm:$0xff]  }
 0x69a   : > { %4762 = vmatprep.subr.bf16.mxu0 %v7785_v35  ;;  %v7854_v35 = vld [vmem:[%s10475_s10 + $0x344] ss:$8 sps:$4 sm:$0xff]  }
 0x69c   : > { %3899 = vmatpush1.bf16.msra.mxu1 %v7780_v37  ;;  %v7855_v37 = vld [vmem:[%s10475_s10 + $0x354] ss:$8 sps:$4 sm:$0x3f]  }
 0x69d   : > { %4763 = vmatpush1.bf16.msra.mxu0 %v7783_v28  ;;  %3900 = vmatprep.subr.bf16.mxu1 %v7788_v49  ;;  %v7857_v28 = vld [vmem:[%s10475_s10 + $0x350] ss:$8 sps:$4 sm:$0x3f]  }
 0x69e   : > { %4764 = vmatprep.subr.bf16.mxu0 %v7791_v39  ;;  %v4633_v49 = vsel %vm3767_vm15, %v7857_v28, 0 }
 0x6a0   : > { %3901 = vmatpush1.bf16.msra.mxu1 %v7786_v62 }
 0x6a1   : > { %4765 = vmatpush1.bf16.msra.mxu0 %v7789_v0  ;;  %3902 = vmatprep.subr.bf16.mxu1 %v7794_v30 }
 0x6a2   : > { %4766 = vmatprep.subr.bf16.mxu0 %v7797_v24 }
 0x6a4   : > { %3903 = vmatpush1.bf16.msra.mxu1 %v7792_v56 }
 0x6a5   : > { %4767 = vmatpush1.bf16.msra.mxu0 %v7795_v3  ;;  %3904 = vmatprep.subr.bf16.mxu1 %v7800_v26 }
 0x6a6   : > { %v9776_v7 = vpop.permute.xlu1 %3058  ;;  %4768 = vmatprep.subr.bf16.mxu0 %v7803_v57 }
 0x6a7   : > { %v3079_v32 = vsel %vm737_vm6, %v3057_v45, %v9776_v7  ;;  %v3106_v15 = vmax.bf16 %v9776_v7, %v9396_v23  ;;  %v7846_v23 = vld [vmem:[%s10475_s10 + $0x320] ss:$8 sps:$4 sm:$0xff]  }
 0x6a8   : > { %v3105_v50 = vmax.bf16 %v3079_v32, %v9369_v5  ;;  %3905 = vmatpush1.bf16.msra.mxu1 %v7798_v6  ;;  %v7815_v5 = vld [vmem:[%s10475_s10 + $0x2e4] ss:$8 sps:$4 sm:$0xff]  }
 0x6a9   : > { %4769 = vmatpush1.bf16.msra.mxu0 %v7801_v46  ;;  %3906 = vmatprep.subr.bf16.mxu1 %v7806_v27 }
 0x6aa   : > { %3912 = vmatprep.mubr.bf16.mxu1 %v3105_v50  ;;  %4776 = vmatprep.mubr.bf16.mxu0 %v3105_v50  ;;  %v9808_v47 = vpop.permute.xlu1 %3072 }
 0x6ab   : > { %4770 = vmatprep.subr.bf16.mxu0 %v7809_v60  ;;  %v3085_v18 = vsel %vm737_vm6, %v3071_v48, %v9808_v47  ;;  %v3113_v31 = vmax.bf16 %v9808_v47, %v9416_v41  ;;  %v7852_v41 = vld [vmem:[%s10475_s10 + $0x340] ss:$8 sps:$4 sm:$0xff]   ;;  %vm4971_vm6 = vcmask 924672  }
 0x6ac   : > { %3907 = vmatpush1.bf16.msra.mxu1 %v7804_v1  ;;  %v3112_v13 = vmax.bf16 %v3085_v18, %v9381_v29  ;;  %v7830_v29 = vld [vmem:[%s10474_s9 + $0x324] ss:$8 sps:$4 sm:$0xff]  }
 0x6ad   : > { %4771 = vmatpush1.bf16.msra.mxu0 %v7807_v36  ;;  %3908 = vmatprep.subr.bf16.mxu1 %v7812_v53 }
 0x6ae   : > { %4772 = vmatprep.subr.bf16.mxu0 %v7815_v5 }
 0x6b0   : > { %3909 = vmatpush1.bf16.msra.mxu1 %v7810_v63 }
 0x6b1   : > { %4773 = vmatpush1.bf16.msra.mxu0 %v7813_v20  ;;  %3910 = vmatprep.subr.bf16.mxu1 %v7818_v51 }
 0x6b2   : > { %4774 = vmatprep.subr.bf16.mxu0 %v7821_v4 }
 0x6b4   : > { %3911 = vmatpush1.bf16.msra.mxu1 %v7816_v19 }
 0x6b5   : > { %4775 = vmatpush1.bf16.msra.mxu0 %v7819_v17  ;;  %3933 = vmatprep.subr.bf16.mxu1 %v7824_v22 }
 0x6b7   : > { %3913 = vmatmul.mubr.bf16.vlgmr.msra.gmra.mrb[36].mxu1 %v3104_v25 }
 0x6b8   : > { %4777 = vmatmul.mubr.bf16.vlgmr.msra.gmra.mrb[32].mxu0 %v3104_v25  ;;  %3922 = vmatprep.mubr.bf16.mxu1 %v3112_v13 }
 0x6b9   : > { %3934 = vmatpush1.bf16.msra.mxu1 %v7822_v33  ;;  %4786 = vmatprep.mubr.bf16.mxu0 %v3112_v13 }
 0x6ba   : > { %3935 = vmatprep.subr.bf16.mxu1 %v7827_v52 }
 0x6bd   : > { %3936 = vmatpush1.bf16.msra.mxu1 %v7825_v58 }
 0x6be   : > { %3937 = vmatprep.subr.bf16.mxu1 %v7830_v29 }
 0x6bf   : > { %3923 = vmatmul.mubr.bf16.gmra.mrb[40].mxu1 %v3111_v10 }
 0x6c0   : > { %4787 = vmatmul.mubr.bf16.gmra.mrb[36].mxu0 %v3111_v10  ;;  %3965 = vmatprep.mubr.bf16.mxu1 %v7939_v42 }
 0x6c1   : > { %3938 = vmatpush1.bf16.msra.mxu1 %v7828_v8 }
 0x6c2   : > { %3939 = vmatprep.subr.bf16.mxu1 %v7833_v44 }
 0x6c5   : > { %3940 = vmatpush1.bf16.msra.mxu1 %v7831_v54 }
 0x6c6   : > { %3941 = vmatprep.subr.bf16.mxu1 %v7836_v40 }
 0x6c9   : > { %3942 = vmatpush1.bf16.msra.mxu1 %v7834_v11 }
 0x6ca   : > { %6994 = vmatprep.subr.msk.bf16.mxu1 %vm3767_vm15, %v7837_v55 }
 0x6cd   : > { %3944 = vmatpush1.bf16.msra.mxu1 %v3769_v9 }
 0x6ce   : > { %4797 = vmatprep.subr.bf16.mxu1 %v7842_v34  ;;  %v7860_v34 = vld [vmem:[%s10470_s5 + $0x4] ss:$12 sps:$4 sm:$0xff]  }
 0x6d0   : > { %6995 = vmatmul.mubr.msk.bf16.vlgmr.msra.gmra.mrb[36].mxu1 %vm3760_vm0, %v3106_v15 }
 0x6d1   : > { %4798 = vmatpush1.bf16.msra.mxu1 %v7840_v12  ;;  %3975 = vmatprep.mubr.bf16.mxu1 %v7939_v42  ;;  %v5142_v12 = vld [vmem:[%s10471_s6] sm:$0xff] }
 0x6d2   : > { %4799 = vmatprep.subr.bf16.mxu1 %v7845_v16  ;;  %v5146_v16 = vld [vmem:[%s10471_s6 + $0x20] sm:$0xff] }
 0x6d5   : > { %4800 = vmatpush1.bf16.msra.mxu1 %v7843_v2  ;;  %v5143_v2 = vld [vmem:[%s10471_s6 + $0x8] sm:$0xff] }
 0x6d6   : > { %4801 = vmatprep.subr.bf16.mxu1 %v7848_v38  ;;  %v5148_v38 = vld [vmem:[%s10471_s6 + $0x30] sm:$0xff] }
 0x6d8   : > { %6996 = vmatmul.mubr.msk.bf16.gmra.mrb[40].mxu1 %vm3760_vm0, %v3113_v31 }
 0x6d9   : > { %4802 = vmatpush1.bf16.msra.mxu1 %v7846_v23  ;;  %4829 = vmatprep.mubr.bf16.mxu1 %v7939_v42  ;;  %v5145_v23 = vld [vmem:[%s10471_s6 + $0x18] sm:$0xff] }
 0x6da   : > { %4803 = vmatprep.subr.bf16.mxu1 %v7851_v43  ;;  %v5149_v43 = vld [vmem:[%s10471_s6 + $0x38] sm:$0xff] }
 0x6dd   : > { %4804 = vmatpush1.bf16.msra.mxu1 %v7849_v21 }
 0x6de   : > { %4805 = vmatprep.subr.bf16.mxu1 %v7854_v35 }
 0x6e1   : > { %4806 = vmatpush1.bf16.msra.mxu1 %v7852_v41 }
 0x6e2   : > { %7105 = vmatprep.subr.msk.bf16.mxu1 %vm3767_vm15, %v7855_v37 }
 0x6e5   : > { %4808 = vmatpush1.bf16.msra.mxu1 %v4633_v49 }
 0x6e8   : > { %7106 = vmatmul.mubr.msk.bf16.vlgmr.msra.gmra.mrb[44].mxu1 %vm3760_vm0, %v3106_v15  ;;  %v5144_v15 = vld [vmem:[%s10471_s6 + $0x10] sm:$0xff] }
 0x6e9   : > { %4839 = vmatprep.mubr.bf16.mxu1 %v7939_v42 }
 0x6f0   : > { %7107 = vmatmul.mubr.msk.bf16.gmra.mrb[48].mxu1 %vm3760_vm0, %v3113_v31  ;;  %v5147_v31 = vld [vmem:[%s10471_s6 + $0x28] sm:$0xff] }
 0x6f1   : > { %5294 = vmatprep.mubr.bf16.mxu1 %v7860_v34 }
 0x78b   : > { %v4778_v39 = vpop.f32.mrb[32].mxu0 }
 0x78c   : > { %v4780_v62 = vpop.f32.mrb[33].mxu0 }
 0x78d   : > { %v4782_v0 = vpop.f32.mrb[34].mxu0 }
 0x78e   : > { %v4784_v30 = vpop.f32.mrb[35].mxu0 }
 0x793   : > { %v4788_v24 = vpop.f32.mrb[36].mxu0 }
 0x794   : > { %v4790_v56 = vpop.f32.mrb[37].mxu0 }
 0x795   : > { %v4792_v3 = vpop.f32.mrb[38].mxu0 }
 0x796   : > { %v4794_v26 = vpop.f32.mrb[39].mxu0 }
 0x7a3   : > { %v3967_v57 = vpop.f32.mrb[36].mxu1 }
 0x7a4   : > { %v3969_v6 = vpop.f32.mrb[37].mxu1 }
 0x7a5   : > { %v3971_v46 = vpop.f32.mrb[38].mxu1 }
 0x7a6   : > { %v3973_v27 = vpop.f32.mrb[39].mxu1 }
 0x7ab   : > { %v3977_v45 = vpop.f32.mrb[40].mxu1 }
 0x7ac   : > { %v3979_v7 = vpop.f32.mrb[41].mxu1 }
 0x7ad   : > { %v3981_v32 = vpop.f32.mrb[42].mxu1 }
 0x7ae   : > { %v3983_v60 = vpop.f32.mrb[43].mxu1 }
 0x7bb   : > { %v4831_v50 = vpop.f32.mrb[44].mxu1 }
 0x7bc   : > { %v7332_v1 = vadd.f32 %v4831_v50, %v4778_v39  ;;  %v4833_v36 = vpop.f32.mrb[45].mxu1 }
 0x7bd   : > { %v7333_v53 = vadd.f32 %v4833_v36, %v4780_v62  ;;  %v4835_v5 = vpop.f32.mrb[46].mxu1 }
 0x7be   : > { %v4850_v63 = vmax.f32 %v3967_v57, %v7332_v1  ;;  %v7334_v20 = vadd.f32 %v4835_v5, %v4782_v0  ;;  %v4837_v51 = vpop.f32.mrb[47].mxu1 }
 0x7bf   : > { %v4851_v4 = vmax.f32 %v3969_v6, %v7333_v53  ;;  %v7335_v47 = vadd.f32 %v4837_v51, %v4784_v30 }
 0x7c0   : > { %v4852_v19 = vmax.f32 %v3971_v46, %v7334_v20 }
 0x7c1   : > { %v4853_v17 = vmax.f32 %v3973_v27, %v7335_v47 }
 0x7c2   : > { %v4858_v22 = vpack.c.bf16 %v4852_v19, %v4850_v63 }
 0x7c3   : > { %v4859_v59 = vpack.c.bf16 %v4853_v17, %v4851_v4  ;;  %v4841_v48 = vpop.f32.mrb[48].mxu1 }
 0x7c4   : > { %v7336_v18 = vadd.f32 %v4841_v48, %v4788_v24  ;;  %v4843_v25 = vpop.f32.mrb[49].mxu1  ;;  %4884 = vrot.lane.b32.xlu0 %v4858_v22, %s7932_s22 }
 0x7c5   : > { %4864 = vst.msk [vmem:[#allocation7 + $0x8] sm:$0xff] %vm4863_vm1, %v4859_v59  ;;  %v7337_v33 = vadd.f32 %v4843_v25, %v4790_v56  ;;  %v4845_v13 = vpop.f32.mrb[50].mxu1 }
 0x7c6   : > { %v4854_v52 = vmax.f32 %v3977_v45, %v7336_v18  ;;  %v7338_v58 = vadd.f32 %v4845_v13, %v4792_v3  ;;  %v4847_v14 = vpop.f32.mrb[51].mxu1 }
 0x7c7   : > { %v4855_v29 = vmax.f32 %v3979_v7, %v7337_v33  ;;  %v7339_v10 = vadd.f32 %v4847_v14, %v4794_v26 }
 0x7c8   : > { %v4856_v8 = vmax.f32 %v3981_v32, %v7338_v58 }
 0x7c9   : > { %v4857_v44 = vmax.f32 %v3983_v60, %v7339_v10 }
 0x7ca   : > { %v4860_v54 = vpack.c.bf16 %v4856_v8, %v4854_v52 }
 0x7cb   : > { %v4861_v40 = vpack.c.bf16 %v4857_v44, %v4855_v29 }
 0x7cc   : > { %v4877_v11 = vld [vmem:[#allocation7 + $0x8] sm:$0xff]  ;;  %4888 = vrot.lane.b32.xlu0 %v4860_v54, %s7932_s22 }
 0x7cd   : > { %4866 = vst.msk [vmem:[#allocation7 + $0x18] sm:$0xff] %vm4863_vm1, %v4861_v40  ;;  %4886 = vrot.lane.b32.xlu1 %v4877_v11, %s7932_s22 }
 0x7ce   : > { %4873 = vst.msk [vmem:[#allocation8 + $0x8] sm:$0xff] %vm4872_vm2, %v4877_v11 }
 0x7d0   : > { %4910 = vrot.lane.b32.xlu0 %v4858_v22, %s7931_s21 }
 0x7d4   : > { %v4879_v55 = vld [vmem:[#allocation7 + $0x18] sm:$0xff]  ;;  %4914 = vrot.lane.b32.xlu0 %v4860_v54, %s7931_s21 }
 0x7d5   : > { %v5107_v61 = vld [vmem:[#allocation8 + $0x8] sm:$0xff]  ;;  %4890 = vrot.lane.b32.xlu1 %v4879_v55, %s7932_s22  ;;  %4875 = vst.msk [vmem:[#allocation8 + $0x18] sm:$0xff] %vm4872_vm2, %v4879_v55 }
 0x7d6   : > { %5262 = vmatprep.subr.bf16.mxu1 %v5107_v61 }
 0x7d7   : > { %5263 = vmatpush1.bf16.msra.mxu1 %v4858_v22 }
 0x7d8   : > { %4936 = vrot.lane.b32.xlu0 %v4858_v22, %s7940_s28 }
 0x7d9   : > { %4912 = vrot.lane.b32.xlu1 %v4877_v11, %s7931_s21 }
 0x7dc   : > { %v5109_v9 = vld [vmem:[#allocation8 + $0x18] sm:$0xff]  ;;  %4940 = vrot.lane.b32.xlu0 %v4860_v54, %s7940_s28 }
 0x7dd   : > { %4916 = vrot.lane.b32.xlu1 %v4879_v55, %s7931_s21  ;;  %5264 = vmatprep.subr.bf16.mxu1 %v5109_v9 }
 0x7de   : > { %5265 = vmatpush1.bf16.msra.mxu1 %v4860_v54 }
 0x7e0   : > { %4963 = vrot.lane.b32.xlu0 %v4858_v22, %s7941_s16 }
 0x7e1   : > { %4938 = vrot.lane.b32.xlu1 %v4877_v11, %s7940_s28 }
 0x7e4   : > { %4967 = vrot.lane.b32.xlu0 %v4860_v54, %s7941_s16 }
 0x7e5   : > { %4942 = vrot.lane.b32.xlu1 %v4879_v55, %s7940_s28 }
 0x7e8   : > { %4990 = vrot.lane.b32.xlu0 %v4858_v22, %s7942_s17 }
 0x7e9   : > { %4965 = vrot.lane.b32.xlu1 %v4877_v11, %s7941_s16 }
 0x7ec   : > { %4994 = vrot.lane.b32.xlu0 %v4860_v54, %s7942_s17 }
 0x7ed   : > { %4969 = vrot.lane.b32.xlu1 %v4879_v55, %s7941_s16 }
 0x7f0   : > { %5017 = vrot.lane.b32.xlu0 %v4858_v22, %s10484_s18 }
 0x7f1   : > { %4992 = vrot.lane.b32.xlu1 %v4877_v11, %s7942_s17 }
 0x7f4   : > { %5021 = vrot.lane.b32.xlu0 %v4860_v54, %s10484_s18 }
 0x7f5   : > { %4996 = vrot.lane.b32.xlu1 %v4879_v55, %s7942_s17 }
 0x7f8   : > { %5044 = vrot.lane.b32.xlu0 %v4858_v22, %s10482_s23 }
 0x7f9   : > { %5019 = vrot.lane.b32.xlu1 %v4877_v11, %s10484_s18 }
 0x7fc   : > { %5048 = vrot.lane.b32.xlu0 %v4860_v54, %s10482_s23 }
 0x7fd   : > { %5023 = vrot.lane.b32.xlu1 %v4879_v55, %s10484_s18 }
 0x800   : > { %5071 = vrot.lane.b32.xlu0 %v4858_v22, %s10486_s19 }
 0x801   : > { %5046 = vrot.lane.b32.xlu1 %v4877_v11, %s10482_s23 }
 0x804   : > { %5075 = vrot.lane.b32.xlu0 %v4860_v54, %s10486_s19 }
 0x805   : > { %5050 = vrot.lane.b32.xlu1 %v4879_v55, %s10482_s23 }
 0x808   : > { %5152 = vperm.xlu0 %7517, %v5142_v12  }
 0x809   : > { %5073 = vrot.lane.b32.xlu1 %v4877_v11, %s10486_s19 }
 0x80c   : > { %5162 = vperm.xlu0 %7517, %v5144_v15  }
 0x80d   : > { %5077 = vrot.lane.b32.xlu1 %v4879_v55, %s10486_s19 }
 0x810   : > { %5172 = vperm.xlu0 %7517, %v5146_v16  }
 0x811   : > { %5157 = vperm.xlu1 %7516, %v5143_v2  }
 0x814   : > { %5182 = vperm.xlu0 %7517, %v5148_v38  }
 0x815   : > { %5167 = vperm.xlu1 %7516, %v5145_v23  }
 0x819   : > { %5177 = vperm.xlu1 %7516, %v5147_v31  }
 0x81d   : > { %5187 = vperm.xlu1 %7516, %v5149_v43   ;;  %v7858_v43 = vld [vmem:[%s10470_s5] ss:$12 sps:$4 sm:$0xff]  }
 0x836   : > { %v4885_v21 = vpop.permute.xlu0 %4884 }
 0x83e   : > { %v4889_v35 = vpop.permute.xlu0 %4888 }
 0x83f   : > { %v4887_v41 = vpop.permute.xlu1 %4886 }
 0x840   : > { %v4892_v37 = vsel %vm665_vm4, %v4885_v21, %v4887_v41  ;;  %4899 = vst.msk [vmem:[#allocation8 + $0x28] sm:$0xff] %vm4872_vm2, %v4887_v41  ;;  %v7861_v21 = vld [vmem:[%s10470_s5 + $0x1c] ss:$12 sps:$4 sm:$0xff]  }
 0x842   : > { %v4911_v28 = vpop.permute.xlu0 %4910 }
 0x846   : > { %v4915_v49 = vpop.permute.xlu0 %4914 }
 0x847   : > { %v4891_v39 = vpop.permute.xlu1 %4890  ;;  %v5111_v62 = vld [vmem:[#allocation8 + $0x28] sm:$0xff] }
 0x848   : > { %v4893_v0 = vsel %vm665_vm4, %v4889_v35, %v4891_v39  ;;  %4901 = vst.msk [vmem:[#allocation8 + $0x38] sm:$0xff] %vm4872_vm2, %v4891_v39  ;;  %5266 = vmatprep.subr.bf16.mxu1 %v5111_v62  ;;  %v7867_v39 = vld [vmem:[%s10470_s5 + $0x4c] ss:$12 sps:$4 sm:$0xff]   ;;  %v7869_v62 = vld [vmem:[%s10470_s5 + $0x48] ss:$12 sps:$4 sm:$0xff]  }
 0x849   : > { %5267 = vmatpush1.bf16.msra.mxu1 %v4892_v37  ;;  %v7863_v37 = vld [vmem:[%s10470_s5 + $0x18] ss:$12 sps:$4 sm:$0xff]  }
 0x84a   : > { %v4937_v30 = vpop.permute.xlu0 %4936 }
 0x84b   : > { %v4913_v24 = vpop.permute.xlu1 %4912 }
 0x84c   : > { %v4918_v56 = vsel %vm701_vm5, %v4911_v28, %v4913_v24  ;;  %4925 = vst.msk [vmem:[#allocation8 + $0x48] sm:$0xff] %vm4872_vm2, %v4913_v24  ;;  %v7864_v28 = vld [vmem:[%s10470_s5 + $0x34] ss:$12 sps:$4 sm:$0xff]   ;;  %v7872_v24 = vld [vmem:[%s10470_s5 + $0x38] ss:$12 sps:$4 sm:$0xff]  }
 0x84e   : > { %v4941_v3 = vpop.permute.xlu0 %4940 }
 0x84f   : > { %v4917_v26 = vpop.permute.xlu1 %4916  ;;  %v5113_v57 = vld [vmem:[#allocation8 + $0x38] sm:$0xff] }
 0x850   : > { %v4919_v6 = vsel %vm701_vm5, %v4915_v49, %v4917_v26  ;;  %4927 = vst.msk [vmem:[#allocation8 + $0x58] sm:$0xff] %vm4872_vm2, %v4917_v26  ;;  %5268 = vmatprep.subr.bf16.mxu1 %v5113_v57  ;;  %v7866_v49 = vld [vmem:[%s10470_s5 + $0x30] ss:$12 sps:$4 sm:$0xff]  }
 0x851   : > { %5269 = vmatpush1.bf16.msra.mxu1 %v4893_v0  ;;  %v7870_v0 = vld [vmem:[%s10470_s5 + $0x8] ss:$12 sps:$4 sm:$0xff]  }
 0x852   : > { %v4964_v46 = vpop.permute.xlu0 %4963 }
 0x853   : > { %v4939_v27 = vpop.permute.xlu1 %4938  ;;  %v5115_v45 = vld [vmem:[#allocation8 + $0x48] sm:$0xff] }
 0x854   : > { %v4945_v7 = vsel %vm4944_vm3, %v4937_v30, %v4939_v27  ;;  %4952 = vst.msk [vmem:[#allocation8 + $0x68] sm:$0xff] %vm4872_vm2, %v4939_v27  ;;  %5270 = vmatprep.subr.bf16.mxu1 %v5115_v45  ;;  %v7871_v30 = vld [vmem:[%s10470_s5 + $0x20] ss:$12 sps:$4 sm:$0xff]  }
 0x855   : > { %5271 = vmatpush1.bf16.msra.mxu1 %v4918_v56  ;;  %v7873_v56 = vld [vmem:[%s10470_s5 + $0x50] ss:$12 sps:$4 sm:$0xff]  }
 0x856   : > { %v4968_v32 = vpop.permute.xlu0 %4967 }
 0x857   : > { %v4943_v60 = vpop.permute.xlu1 %4942  ;;  %v5117_v50 = vld [vmem:[#allocation8 + $0x58] sm:$0xff] }
 0x858   : > { %v4946_v1 = vsel %vm4944_vm3, %v4941_v3, %v4943_v60  ;;  %4954 = vst.msk [vmem:[#allocation8 + $0x78] sm:$0xff] %vm4872_vm2, %v4943_v60  ;;  %5272 = vmatprep.subr.bf16.mxu1 %v5117_v50 }
 0x859   : > { %5273 = vmatpush1.bf16.msra.mxu1 %v4919_v6 }
 0x85a   : > { %v4991_v36 = vpop.permute.xlu0 %4990 }
 0x85b   : > { %v4966_v53 = vpop.permute.xlu1 %4965  ;;  %v5119_v5 = vld [vmem:[#allocation8 + $0x68] sm:$0xff] }
 0x85c   : > { %v4972_v63 = vsel %vm4971_vm6, %v4964_v46, %v4966_v53  ;;  %4979 = vst.msk [vmem:[#allocation8 + $0x88] sm:$0xff] %vm4872_vm2, %v4966_v53  ;;  %5274 = vmatprep.subr.bf16.mxu1 %v5119_v5 }
 0x85d   : > { %5275 = vmatpush1.bf16.msra.mxu1 %v4945_v7 }
 0x85e   : > { %v4995_v20 = vpop.permute.xlu0 %4994 }
 0x85f   : > { %v4970_v51 = vpop.permute.xlu1 %4969  ;;  %v5121_v4 = vld [vmem:[#allocation8 + $0x78] sm:$0xff] }
 0x860   : > { %v4973_v47 = vsel %vm4971_vm6, %v4968_v32, %v4970_v51  ;;  %4981 = vst.msk [vmem:[#allocation8 + $0x98] sm:$0xff] %vm4872_vm2, %v4970_v51  ;;  %5276 = vmatprep.subr.bf16.mxu1 %v5121_v4 }
 0x861   : > { %5277 = vmatpush1.bf16.msra.mxu1 %v4946_v1 }
 0x862   : > { %v5018_v19 = vpop.permute.xlu0 %5017 }
 0x863   : > { %v4993_v17 = vpop.permute.xlu1 %4992  ;;  %v5123_v22 = vld [vmem:[#allocation8 + $0x88] sm:$0xff] }
 0x864   : > { %v4999_v59 = vsel %vm4998_vm7, %v4991_v36, %v4993_v17  ;;  %5006 = vst.msk [vmem:[#allocation8 + $0xa8] sm:$0xff] %vm4872_vm2, %v4993_v17  ;;  %5278 = vmatprep.subr.bf16.mxu1 %v5123_v22 }
 0x865   : > { %5279 = vmatpush1.bf16.msra.mxu1 %v4972_v63 }
 0x866   : > { %v5022_v25 = vpop.permute.xlu0 %5021 }
 0x867   : > { %v4997_v48 = vpop.permute.xlu1 %4996  ;;  %v5125_v18 = vld [vmem:[#allocation8 + $0x98] sm:$0xff] }
 0x868   : > { %v5000_v33 = vsel %vm4998_vm7, %v4995_v20, %v4997_v48  ;;  %5008 = vst.msk [vmem:[#allocation8 + $0xb8] sm:$0xff] %vm4872_vm2, %v4997_v48  ;;  %5280 = vmatprep.subr.bf16.mxu1 %v5125_v18 }
 0x869   : > { %5281 = vmatpush1.bf16.msra.mxu1 %v4973_v47 }
 0x86a   : > { %v5045_v14 = vpop.permute.xlu0 %5044 }
 0x86b   : > { %v5020_v13 = vpop.permute.xlu1 %5019  ;;  %v5127_v52 = vld [vmem:[#allocation8 + $0xa8] sm:$0xff] }
 0x86c   : > { %v5026_v58 = vsel %vm5025_vm8, %v5018_v19, %v5020_v13  ;;  %5033 = vst.msk [vmem:[#allocation8 + $0xc8] sm:$0xff] %vm4872_vm2, %v5020_v13  ;;  %5282 = vmatprep.subr.bf16.mxu1 %v5127_v52 }
 0x86d   : > { %5283 = vmatpush1.bf16.msra.mxu1 %v4999_v59 }
 0x86e   : > { %v5049_v40 = vpop.permute.xlu0 %5048 }
 0x86f   : > { %v5024_v29 = vpop.permute.xlu1 %5023  ;;  %v5129_v10 = vld [vmem:[#allocation8 + $0xb8] sm:$0xff] }
 0x870   : > { %v5027_v8 = vsel %vm5025_vm8, %v5022_v25, %v5024_v29  ;;  %5035 = vst.msk [vmem:[#allocation8 + $0xd8] sm:$0xff] %vm4872_vm2, %v5024_v29  ;;  %5284 = vmatprep.subr.bf16.mxu1 %v5129_v10 }
 0x871   : > { %5285 = vmatpush1.bf16.msra.mxu1 %v5000_v33 }
 0x872   : > { %v5072_v34 = vpop.permute.xlu0 %5071 }
 0x873   : > { %v5047_v44 = vpop.permute.xlu1 %5046  ;;  %v5131_v54 = vld [vmem:[#allocation8 + $0xc8] sm:$0xff] }
 0x874   : > { %v5053_v11 = vsel %vm5052_vm10, %v5045_v14, %v5047_v44  ;;  %5060 = vst.msk [vmem:[#allocation8 + $0xe8] sm:$0xff] %vm4872_vm2, %v5047_v44  ;;  %5286 = vmatprep.subr.bf16.mxu1 %v5131_v54 }
 0x875   : > { %5287 = vmatpush1.bf16.msra.mxu1 %v5026_v58 }
 0x876   : > { %v5076_v2 = vpop.permute.xlu0 %5075 }
 0x877   : > { %v5051_v55 = vpop.permute.xlu1 %5050  ;;  %v5133_v61 = vld [vmem:[#allocation8 + $0xd8] sm:$0xff] }
 0x878   : > { %v5054_v9 = vsel %vm5052_vm10, %v5049_v40, %v5051_v55  ;;  %5062 = vst.msk [vmem:[#allocation8 + $0xf8] sm:$0xff] %vm4872_vm2, %v5051_v55  ;;  %5288 = vmatprep.subr.bf16.mxu1 %v5133_v61 }
 0x879   : > { %5289 = vmatpush1.bf16.msra.mxu1 %v5027_v8 }
 0x87b   : > { %v5074_v12 = vpop.permute.xlu1 %5073  ;;  %v5135_v15 = vld [vmem:[#allocation8 + $0xe8] sm:$0xff] }
 0x87c   : > { %v5080_v16 = vsel %vm5079_vm11, %v5072_v34, %v5074_v12  ;;  %5087 = vst.msk [vmem:[#allocation8 + $0x108] sm:$0xff] %vm4872_vm2, %v5074_v12  ;;  %5290 = vmatprep.subr.bf16.mxu1 %v5135_v15 }
 0x87d   : > { %5291 = vmatpush1.bf16.msra.mxu1 %v5053_v11 }
 0x87f   : > { %v5078_v38 = vpop.permute.xlu1 %5077  ;;  %v5137_v23 = vld [vmem:[#allocation8 + $0xf8] sm:$0xff] }
 0x880   : > { %v5081_v31 = vsel %vm5079_vm11, %v5076_v2, %v5078_v38  ;;  %5089 = vst.msk [vmem:[#allocation8 + $0x118] sm:$0xff] %vm4872_vm2, %v5078_v38  ;;  %5292 = vmatprep.subr.bf16.mxu1 %v5137_v23 }
 0x881   : > { %5293 = vmatpush1.bf16.msra.mxu1 %v5054_v9 }
 0x883   : > { %v5139_v35 = vld [vmem:[#allocation8 + $0x108] sm:$0xff] }
 0x884   : > { %5295 = vmatmul.mubr.bf16.vlgmr.msra.gmra.mrb[52].mxu1 %v7858_v43  ;;  %5335 = vmatprep.subr.bf16.mxu1 %v5139_v35 }
 0x885   : > { %5336 = vmatpush1.bf16.msra.mxu1 %v5080_v16  ;;  %5304 = vmatprep.mubr.bf16.mxu1 %v7861_v21 }
 0x887   : > { %v5141_v41 = vld [vmem:[#allocation8 + $0x118] sm:$0xff]  ;;  %v5153_v3 = vpop.permute.xlu0 %5152 }
 0x888   : > { %5337 = vmatprep.subr.bf16.mxu1 %v5141_v41 }
 0x889   : > { %5338 = vmatpush1.bf16.msra.mxu1 %v5081_v31 }
 0x88b   : > { %v5163_v63 = vpop.permute.xlu0 %5162 }
 0x88c   : > { %5305 = vmatmul.mubr.bf16.gmra.mrb[56].mxu1 %v7863_v37 }
 0x88d   : > { %5314 = vmatprep.mubr.bf16.mxu1 %v7864_v28 }
 0x88f   : > { %v5173_v14 = vpop.permute.xlu0 %5172 }
 0x890   : > { %v5158_v46 = vpop.permute.xlu1 %5157 }
 0x893   : > { %v5183_v23 = vpop.permute.xlu0 %5182 }
 0x894   : > { %5315 = vmatmul.mubr.bf16.gmra.mrb[60].mxu1 %v7866_v49  ;;  %v5168_v19 = vpop.permute.xlu1 %5167 }
 0x895   : > { %5324 = vmatprep.mubr.bf16.mxu1 %v7867_v39 }
 0x898   : > { %v5178_v40 = vpop.permute.xlu1 %5177 }
 0x89c   : > { %5325 = vmatmul.mubr.bf16.gmra.mrb[64].mxu1 %v7869_v62  ;;  %v5188_v28 = vpop.permute.xlu1 %5187 }
 0x89d   : > { %5367 = vmatprep.mubr.bf16.mxu1 %v7939_v42 }
 0x8a4   : > { %7120 = vmatmul.mubr.msk.bf16.vlgmr.msra.gmra.mrb[52].mxu1 %vm2539_vm14, %v7870_v0 }
 0x8a5   : > { %5377 = vmatprep.mubr.bf16.mxu1 %v7939_v42 }
 0x8ac   : > { %7121 = vmatmul.mubr.msk.bf16.gmra.mrb[56].mxu1 %vm2539_vm14, %v7871_v30 }
 0x8ad   : > { %5387 = vmatprep.mubr.bf16.mxu1 %v7939_v42 }
 0x8b4   : > { %7122 = vmatmul.mubr.msk.bf16.gmra.mrb[60].mxu1 %vm2539_vm14, %v7872_v24 }
 0x8b5   : > { %5397 = vmatprep.mubr.bf16.mxu1 %v7939_v42 }
 0x8bc   : > { %7123 = vmatmul.mubr.msk.bf16.gmra.mrb[64].mxu1 %vm2539_vm14, %v7873_v56 }
 0x977   : > { %v5369_v26 = vpop.f32.mrb[52].mxu1 }
 0x978   : > { %v7340_v57 = vadd.f32 %v5369_v26, %v5153_v3  ;;  %v5371_v6 = vpop.f32.mrb[53].mxu1 }
 0x979   : > { %v7341_v27 = vadd.f32 %v5371_v6, %v5153_v3  ;;  %v5373_v45 = vpop.f32.mrb[54].mxu1 }
 0x97a   : > { %v7342_v7 = vadd.f32 %v5373_v45, %v5158_v46  ;;  %v5375_v32 = vpop.f32.mrb[55].mxu1  ;;  %v5408_v50 = vmax.f32 %v7340_v57, 0.0 }
 0x97b   : > { %v7343_v60 = vadd.f32 %v5375_v32, %v5158_v46  ;;  %v5409_v36 = vmax.f32 %v7341_v27, 0.0 }
 0x97c   : > { %v5410_v1 = vmax.f32 %v7342_v7, 0.0 }
 0x97d   : > { %v5411_v53 = vmax.f32 %v7343_v60, 0.0  ;;  %v7876_v60 = vld [vmem:[%s10472_s7 + $0x4] ss:$20 sps:$4 sm:$0xff]  }
 0x97e   : > { %v10049_v5 = vpack.c.bf16 %v5410_v1, %v5408_v50  ;;  %6162 = vmatprep.mubr.bf16.mxu0 %v7876_v60 }
 0x97f   : > { %v5425_v20 = vpack.c.bf16 %v5411_v53, %v5409_v36  ;;  %v5379_v51 = vpop.f32.mrb[56].mxu1 }
 0x980   : > { %v7344_v4 = vadd.f32 %v5379_v51, %v5163_v63  ;;  %v5381_v47 = vpop.f32.mrb[57].mxu1  ;;  %5473 = vrot.lane.b32.xlu0 %v10049_v5, %s7932_s22 }
 0x981   : > { %5433 = vst.msk [vmem:[#allocation9 + $0x8] sm:$0xff] %vm4872_vm2, %v5425_v20  ;;  %v7345_v17 = vadd.f32 %v5381_v47, %v5163_v63  ;;  %v5383_v22 = vpop.f32.mrb[58].mxu1 }
 0x982   : > { %v7346_v59 = vadd.f32 %v5383_v22, %v5168_v19  ;;  %v5385_v48 = vpop.f32.mrb[59].mxu1  ;;  %v5412_v25 = vmax.f32 %v7344_v4, 0.0  ;;  %v5969_v4 = vld [vmem:[%s10473_s8] sm:$0xff] }
 0x983   : > { %v7347_v18 = vadd.f32 %v5385_v48, %v5168_v19  ;;  %v5413_v13 = vmax.f32 %v7345_v17, 0.0 }
 0x984   : > { %v5414_v33 = vmax.f32 %v7346_v59, 0.0  ;;  %v5971_v59 = vld [vmem:[%s10473_s8 + $0x10] sm:$0xff] }
 0x985   : > { %v5415_v52 = vmax.f32 %v7347_v18, 0.0  ;;  %v5973_v18 = vld [vmem:[%s10473_s8 + $0x20] sm:$0xff] }
 0x986   : > { %v10054_v58 = vpack.c.bf16 %v5414_v33, %v5412_v25  ;;  %v5970_v25 = vld [vmem:[%s10473_s8 + $0x8] sm:$0xff] }
 0x987   : > { %v5427_v29 = vpack.c.bf16 %v5415_v52, %v5413_v13  ;;  %v5389_v10 = vpop.f32.mrb[60].mxu1 }
 0x988   : > { %v7348_v8 = vadd.f32 %v5389_v10, %v5173_v14  ;;  %v5391_v44 = vpop.f32.mrb[61].mxu1  ;;  %v10056_v54 = vld [vmem:[#allocation9 + $0x8] sm:$0xff]  ;;  %5477 = vrot.lane.b32.xlu0 %v10054_v58, %s7932_s22 }
 0x989   : > { %5435 = vst.msk [vmem:[#allocation9 + $0x18] sm:$0xff] %vm4872_vm2, %v5427_v29  ;;  %v7349_v11 = vadd.f32 %v5391_v44, %v5173_v14  ;;  %v5393_v55 = vpop.f32.mrb[62].mxu1  ;;  %5475 = vrot.lane.b32.xlu1 %v10056_v54, %s7932_s22  ;;  %v5975_v14 = vld [vmem:[%s10473_s8 + $0x30] sm:$0xff]  ;;  %v5972_v29 = vld [vmem:[%s10473_s8 + $0x18] sm:$0xff] }
 0x98a   : > { %5450 = vst.msk [vmem:[#allocation10 + $0x8] sm:$0xff] %vm5449_vm12, %v10056_v54  ;;  %v7350_v61 = vadd.f32 %v5393_v55, %v5178_v40  ;;  %v5395_v9 = vpop.f32.mrb[63].mxu1  ;;  %v5416_v12 = vmax.f32 %v7348_v8, 0.0 }
 0x98b   : > { %v7351_v34 = vadd.f32 %v5395_v9, %v5178_v40  ;;  %v5417_v16 = vmax.f32 %v7349_v11, 0.0  ;;  %v5976_v9 = vld [vmem:[%s10473_s8 + $0x38] sm:$0xff] }
 0x98c   : > { %v5418_v15 = vmax.f32 %v7350_v61, 0.0 }
 0x98d   : > { %v5419_v2 = vmax.f32 %v7351_v34, 0.0 }
 0x98e   : > { %v10065_v38 = vpack.c.bf16 %v5418_v15, %v5416_v12 }
 0x98f   : > { %v5429_v31 = vpack.c.bf16 %v5419_v2, %v5417_v16  ;;  %v5399_v43 = vpop.f32.mrb[64].mxu1 }
 0x990   : > { %v7352_v21 = vadd.f32 %v5399_v43, %v5183_v23  ;;  %v5401_v35 = vpop.f32.mrb[65].mxu1  ;;  %v10067_v41 = vld [vmem:[#allocation9 + $0x18] sm:$0xff]  ;;  %5481 = vrot.lane.b32.xlu0 %v10065_v38, %s7932_s22 }
 0x991   : > { %v5898_v37 = vld [vmem:[#allocation10 + $0x8] sm:$0xff]  ;;  %5437 = vst.msk [vmem:[#allocation9 + $0x28] sm:$0xff] %vm4872_vm2, %v5429_v31  ;;  %v7353_v49 = vadd.f32 %v5401_v35, %v5183_v23  ;;  %v5403_v39 = vpop.f32.mrb[66].mxu1  ;;  %5479 = vrot.lane.b32.xlu1 %v10067_v41, %s7932_s22 }
 0x992   : > { %6130 = vmatprep.subr.bf16.mxu0 %v5898_v37  ;;  %5452 = vst.msk [vmem:[#allocation10 + $0x18] sm:$0xff] %vm5449_vm12, %v10067_v41  ;;  %v7354_v62 = vadd.f32 %v5403_v39, %v5188_v28  ;;  %v5405_v0 = vpop.f32.mrb[67].mxu1  ;;  %v5420_v24 = vmax.f32 %v7352_v21, 0.0 }
 0x993   : > { %6131 = vmatpush1.bf16.msra.mxu0 %v10049_v5  ;;  %v7355_v30 = vadd.f32 %v5405_v0, %v5188_v28  ;;  %v5421_v3 = vmax.f32 %v7353_v49, 0.0 }
 0x994   : > { %v5422_v56 = vmax.f32 %v7354_v62, 0.0 }
 0x995   : > { %v5423_v26 = vmax.f32 %v7355_v30, 0.0 }
 0x996   : > { %v10077_v57 = vpack.c.bf16 %v5422_v56, %v5420_v24 }
 0x997   : > { %v5431_v6 = vpack.c.bf16 %v5423_v26, %v5421_v3 }
 0x998   : > { %v10079_v46 = vld [vmem:[#allocation9 + $0x28] sm:$0xff]  ;;  %5485 = vrot.lane.b32.xlu0 %v10077_v57, %s7932_s22 }
 0x999   : > { %v5900_v27 = vld [vmem:[#allocation10 + $0x18] sm:$0xff]  ;;  %5439 = vst.msk [vmem:[#allocation9 + $0x38] sm:$0xff] %vm4872_vm2, %v5431_v6  ;;  %5483 = vrot.lane.b32.xlu1 %v10079_v46, %s7932_s22 }
 0x99a   : > { %6132 = vmatprep.subr.bf16.mxu0 %v5900_v27  ;;  %5454 = vst.msk [vmem:[#allocation10 + $0x28] sm:$0xff] %vm5449_vm12, %v10079_v46 }
 0x99b   : > { %6133 = vmatpush1.bf16.msra.mxu0 %v10054_v58 }
 0x99c   : > { %5525 = vrot.lane.b32.xlu0 %v10049_v5, %s7931_s21 }
 0x9a0   : > { %v10091_v45 = vld [vmem:[#allocation9 + $0x38] sm:$0xff]  ;;  %5529 = vrot.lane.b32.xlu0 %v10054_v58, %s7931_s21 }
 0x9a1   : > { %v5902_v7 = vld [vmem:[#allocation10 + $0x28] sm:$0xff]  ;;  %5487 = vrot.lane.b32.xlu1 %v10091_v45, %s7932_s22  ;;  %5456 = vst.msk [vmem:[#allocation10 + $0x38] sm:$0xff] %vm5449_vm12, %v10091_v45 }
 0x9a2   : > { %6134 = vmatprep.subr.bf16.mxu0 %v5902_v7 }
 0x9a3   : > { %6135 = vmatpush1.bf16.msra.mxu0 %v10065_v38 }
 0x9a4   : > { %5533 = vrot.lane.b32.xlu0 %v10065_v38, %s7931_s21 }
 0x9a5   : > { %5527 = vrot.lane.b32.xlu1 %v10056_v54, %s7931_s21 }
 0x9a8   : > { %v5904_v32 = vld [vmem:[#allocation10 + $0x38] sm:$0xff]  ;;  %5537 = vrot.lane.b32.xlu0 %v10077_v57, %s7931_s21 }
 0x9a9   : > { %5531 = vrot.lane.b32.xlu1 %v10067_v41, %s7931_s21  ;;  %6136 = vmatprep.subr.bf16.mxu0 %v5904_v32 }
 0x9aa   : > { %6137 = vmatpush1.bf16.msra.mxu0 %v10077_v57 }
 0x9ac   : > { %5577 = vrot.lane.b32.xlu0 %v10049_v5, %s7940_s28 }
 0x9ad   : > { %5535 = vrot.lane.b32.xlu1 %v10079_v46, %s7931_s21 }
 0x9b0   : > { %5581 = vrot.lane.b32.xlu0 %v10054_v58, %s7940_s28 }
 0x9b1   : > { %5539 = vrot.lane.b32.xlu1 %v10091_v45, %s7931_s21 }
 0x9b4   : > { %5585 = vrot.lane.b32.xlu0 %v10065_v38, %s7940_s28 }
 0x9b5   : > { %5579 = vrot.lane.b32.xlu1 %v10056_v54, %s7940_s28 }
 0x9b8   : > { %5589 = vrot.lane.b32.xlu0 %v10077_v57, %s7940_s28 }
 0x9b9   : > { %5583 = vrot.lane.b32.xlu1 %v10067_v41, %s7940_s28 }
 0x9bc   : > { %5629 = vrot.lane.b32.xlu0 %v10049_v5, %s7941_s16 }
 0x9bd   : > { %5587 = vrot.lane.b32.xlu1 %v10079_v46, %s7940_s28 }
 0x9c0   : > { %5633 = vrot.lane.b32.xlu0 %v10054_v58, %s7941_s16 }
 0x9c1   : > { %5591 = vrot.lane.b32.xlu1 %v10091_v45, %s7940_s28 }
 0x9c4   : > { %5637 = vrot.lane.b32.xlu0 %v10065_v38, %s7941_s16 }
 0x9c5   : > { %5631 = vrot.lane.b32.xlu1 %v10056_v54, %s7941_s16 }
 0x9c8   : > { %5641 = vrot.lane.b32.xlu0 %v10077_v57, %s7941_s16 }
 0x9c9   : > { %5635 = vrot.lane.b32.xlu1 %v10067_v41, %s7941_s16 }
 0x9cc   : > { %5681 = vrot.lane.b32.xlu0 %v10049_v5, %s7942_s17 }
 0x9cd   : > { %5639 = vrot.lane.b32.xlu1 %v10079_v46, %s7941_s16 }
 0x9d0   : > { %5685 = vrot.lane.b32.xlu0 %v10054_v58, %s7942_s17 }
 0x9d1   : > { %5643 = vrot.lane.b32.xlu1 %v10091_v45, %s7941_s16  ;;  %s10492_s16 = smov 99  }
 0x9d4   : > { %5689 = vrot.lane.b32.xlu0 %v10065_v38, %s7942_s17 }
 0x9d5   : > { %5683 = vrot.lane.b32.xlu1 %v10056_v54, %s7942_s17 }
 0x9d8   : > { %5693 = vrot.lane.b32.xlu0 %v10077_v57, %s7942_s17 }
 0x9d9   : > { %5687 = vrot.lane.b32.xlu1 %v10067_v41, %s7942_s17 }
 0x9dc   : > { %5733 = vrot.lane.b32.xlu0 %v10049_v5, %s10491_s30 }
 0x9dd   : > { %5691 = vrot.lane.b32.xlu1 %v10079_v46, %s7942_s17 }
 0x9e0   : > { %5737 = vrot.lane.b32.xlu0 %v10054_v58, %s10491_s30 }
 0x9e1   : > { %5695 = vrot.lane.b32.xlu1 %v10091_v45, %s7942_s17  ;;  %s10493_s17 = smov 98  }
 0x9e4   : > { %5741 = vrot.lane.b32.xlu0 %v10065_v38, %s10491_s30 }
 0x9e5   : > { %5735 = vrot.lane.b32.xlu1 %v10056_v54, %s10491_s30 }
 0x9e8   : > { %5745 = vrot.lane.b32.xlu0 %v10077_v57, %s10491_s30 }
 0x9e9   : > { %5739 = vrot.lane.b32.xlu1 %v10067_v41, %s10491_s30 }
 0x9ec   : > { %5785 = vrot.lane.b32.xlu0 %v10049_v5, %s10492_s16 }
 0x9ed   : > { %5743 = vrot.lane.b32.xlu1 %v10079_v46, %s10491_s30 }
 0x9f0   : > { %5789 = vrot.lane.b32.xlu0 %v10054_v58, %s10492_s16 }
 0x9f1   : > { %5747 = vrot.lane.b32.xlu1 %v10091_v45, %s10491_s30 }
 0x9f2   : > { %v5474_v50 = vpop.permute.xlu0 %5473 }
 0x9f4   : > { %5793 = vrot.lane.b32.xlu0 %v10065_v38, %s10492_s16 }
 0x9f5   : > { %5787 = vrot.lane.b32.xlu1 %v10056_v54, %s10492_s16 }
 0x9f8   : > { %5797 = vrot.lane.b32.xlu0 %v10077_v57, %s10492_s16 }
 0x9f9   : > { %5791 = vrot.lane.b32.xlu1 %v10067_v41, %s10492_s16 }
 0x9fa   : > { %v5478_v53 = vpop.permute.xlu0 %5477 }
 0x9fb   : > { %v5476_v1 = vpop.permute.xlu1 %5475 }
 0x9fc   : > { %v5489_v36 = vsel %vm665_vm4, %v5474_v50, %v5476_v1  ;;  %5502 = vst.msk [vmem:[#allocation10 + $0x48] sm:$0xff] %vm5449_vm12, %v5476_v1  ;;  %5837 = vrot.lane.b32.xlu0 %v10049_v5, %s10493_s17  ;;  %v7874_v1 = vld [vmem:[%s10472_s7] ss:$20 sps:$4 sm:$0xff]  }
 0x9fd   : > { %5795 = vrot.lane.b32.xlu1 %v10079_v46, %s10492_s16 }
 0xa00   : > { %5841 = vrot.lane.b32.xlu0 %v10054_v58, %s10493_s17 }
 0xa01   : > { %5799 = vrot.lane.b32.xlu1 %v10091_v45, %s10492_s16 }
 0xa02   : > { %v5482_v5 = vpop.permute.xlu0 %5481 }
 0xa03   : > { %v5480_v63 = vpop.permute.xlu1 %5479  ;;  %v5906_v20 = vld [vmem:[#allocation10 + $0x48] sm:$0xff] }
 0xa04   : > { %v5490_v51 = vsel %vm665_vm4, %v5478_v53, %v5480_v63  ;;  %5504 = vst.msk [vmem:[#allocation10 + $0x58] sm:$0xff] %vm5449_vm12, %v5480_v63  ;;  %6138 = vmatprep.subr.bf16.mxu0 %v5906_v20  ;;  %5845 = vrot.lane.b32.xlu0 %v10065_v38, %s10493_s17 }
 0xa05   : > { %5839 = vrot.lane.b32.xlu1 %v10056_v54, %s10493_s17  ;;  %6139 = vmatpush1.bf16.msra.mxu0 %v5489_v36  ;;  %v5974_v54 = vld [vmem:[%s10473_s8 + $0x28] sm:$0xff] }
 0xa06   : > { %v7877_v36 = vld [vmem:[%s10472_s7 + $0x2c] ss:$20 sps:$4 sm:$0xff]  }
 0xa08   : > { %5849 = vrot.lane.b32.xlu0 %v10077_v57, %s10493_s17 }
 0xa09   : > { %5843 = vrot.lane.b32.xlu1 %v10067_v41, %s10493_s17 }
 0xa0a   : > { %v5486_v47 = vpop.permute.xlu0 %5485 }
 0xa0b   : > { %v5484_v19 = vpop.permute.xlu1 %5483  ;;  %v5908_v17 = vld [vmem:[#allocation10 + $0x58] sm:$0xff] }
 0xa0c   : > { %v5491_v22 = vsel %vm665_vm4, %v5482_v5, %v5484_v19  ;;  %5506 = vst.msk [vmem:[#allocation10 + $0x68] sm:$0xff] %vm5449_vm12, %v5484_v19  ;;  %6140 = vmatprep.subr.bf16.mxu0 %v5908_v17  ;;  %5979 = vperm.xlu0 %7517, %v5969_v4   ;;  %v7879_v17 = vld [vmem:[%s10472_s7 + $0x28] ss:$20 sps:$4 sm:$0xff]  }
 0xa0d   : > { %5847 = vrot.lane.b32.xlu1 %v10079_v46, %s10493_s17  ;;  %6141 = vmatpush1.bf16.msra.mxu0 %v5490_v51 }
 0xa0e   : > { %v5526_v48 = vpop.permute.xlu0 %5525 }
 0xa10   : > { %5989 = vperm.xlu0 %7517, %v5971_v59  }
 0xa11   : > { %5851 = vrot.lane.b32.xlu1 %v10091_v45, %s10493_s17 }
 0xa12   : > { %v5530_v33 = vpop.permute.xlu0 %5529 }
 0xa13   : > { %v5488_v13 = vpop.permute.xlu1 %5487  ;;  %v5910_v52 = vld [vmem:[#allocation10 + $0x68] sm:$0xff] }
 0xa14   : > { %v5492_v58 = vsel %vm665_vm4, %v5486_v47, %v5488_v13  ;;  %5508 = vst.msk [vmem:[#allocation10 + $0x78] sm:$0xff] %vm5449_vm12, %v5488_v13  ;;  %6142 = vmatprep.subr.bf16.mxu0 %v5910_v52  ;;  %5999 = vperm.xlu0 %7517, %v5973_v18   ;;  %vm6501_vm4 = vcmask 1044480  }
 0xa15   : > { %5984 = vperm.xlu1 %7516, %v5970_v25   ;;  %6143 = vmatpush1.bf16.msra.mxu0 %v5491_v22  ;;  %v7880_v22 = vld [vmem:[%s10472_s7 + $0x54] ss:$20 sps:$4 sm:$0xff]  }
 0xa16   : > { %v5534_v10 = vpop.permute.xlu0 %5533 }
 0xa17   : > { %v5528_v8 = vpop.permute.xlu1 %5527 }
 0xa18   : > { %v5541_v44 = vsel %vm701_vm5, %v5526_v48, %v5528_v8  ;;  %5554 = vst.msk [vmem:[#allocation10 + $0x88] sm:$0xff] %vm5449_vm12, %v5528_v8  ;;  %6009 = vperm.xlu0 %7517, %v5975_v14   ;;  %v7882_v14 = vld [vmem:[%s10472_s7 + $0x50] ss:$20 sps:$4 sm:$0xff]  }
 0xa19   : > { %5994 = vperm.xlu1 %7516, %v5972_v29   ;;  %v7883_v29 = vld [vmem:[%s10472_s7 + $0x7c] ss:$20 sps:$4 sm:$0xff]  }
 0xa1a   : > { %v5538_v40 = vpop.permute.xlu0 %5537 }
 0xa1b   : > { %v5532_v11 = vpop.permute.xlu1 %5531  ;;  %v5912_v55 = vld [vmem:[#allocation10 + $0x78] sm:$0xff] }
 0xa1c   : > { %v5542_v61 = vsel %vm701_vm5, %v5530_v33, %v5532_v11  ;;  %5556 = vst.msk [vmem:[#allocation10 + $0x98] sm:$0xff] %vm5449_vm12, %v5532_v11  ;;  %6144 = vmatprep.subr.bf16.mxu0 %v5912_v55 }
 0xa1d   : > { %6004 = vperm.xlu1 %7516, %v5974_v54   ;;  %6145 = vmatpush1.bf16.msra.mxu0 %v5492_v58 }
 0xa1e   : > { %v5578_v34 = vpop.permute.xlu0 %5577 }
 0xa1f   : > { %v5536_v12 = vpop.permute.xlu1 %5535  ;;  %v5914_v15 = vld [vmem:[#allocation10 + $0x88] sm:$0xff] }
 0xa20   : > { %v5543_v16 = vsel %vm701_vm5, %v5534_v10, %v5536_v12  ;;  %5558 = vst.msk [vmem:[#allocation10 + $0xa8] sm:$0xff] %vm5449_vm12, %v5536_v12  ;;  %6146 = vmatprep.subr.bf16.mxu0 %v5914_v15 }
 0xa21   : > { %6014 = vperm.xlu1 %7516, %v5976_v9   ;;  %6147 = vmatpush1.bf16.msra.mxu0 %v5541_v44  ;;  %v7885_v9 = vld [vmem:[%s10472_s7 + $0x78] ss:$20 sps:$4 sm:$0xff]  }
 0xa22   : > { %v5582_v2 = vpop.permute.xlu0 %5581 }
 0xa23   : > { %v5540_v38 = vpop.permute.xlu1 %5539  ;;  %v5916_v23 = vld [vmem:[#allocation10 + $0x98] sm:$0xff] }
 0xa24   : > { %v5544_v31 = vsel %vm701_vm5, %v5538_v40, %v5540_v38  ;;  %5560 = vst.msk [vmem:[#allocation10 + $0xb8] sm:$0xff] %vm5449_vm12, %v5540_v38  ;;  %6148 = vmatprep.subr.bf16.mxu0 %v5916_v23  ;;  %vm6488_vm5 = vcmask 998400  }
 0xa25   : > { %6149 = vmatpush1.bf16.msra.mxu0 %v5542_v61 }
 0xa26   : > { %v5586_v43 = vpop.permute.xlu0 %5585 }
 0xa27   : > { %v5580_v21 = vpop.permute.xlu1 %5579  ;;  %v5918_v35 = vld [vmem:[#allocation10 + $0xa8] sm:$0xff] }
 0xa28   : > { %v5593_v41 = vsel %vm4944_vm3, %v5578_v34, %v5580_v21  ;;  %5606 = vst.msk [vmem:[#allocation10 + $0xc8] sm:$0xff] %vm5449_vm12, %v5580_v21  ;;  %6150 = vmatprep.subr.bf16.mxu0 %v5918_v35  ;;  %v7888_v34 = vld [vmem:[%s10472_s7 + $0xc] ss:$20 sps:$4 sm:$0xff]  }
 0xa29   : > { %6151 = vmatpush1.bf16.msra.mxu0 %v5543_v16 }
 0xa2a   : > { %v5590_v37 = vpop.permute.xlu0 %5589 }
 0xa2b   : > { %v5584_v28 = vpop.permute.xlu1 %5583  ;;  %v5920_v49 = vld [vmem:[#allocation10 + $0xb8] sm:$0xff] }
 0xa2c   : > { %v5594_v39 = vsel %vm4944_vm3, %v5582_v2, %v5584_v28  ;;  %5608 = vst.msk [vmem:[#allocation10 + $0xd8] sm:$0xff] %vm5449_vm12, %v5584_v28  ;;  %6152 = vmatprep.subr.bf16.mxu0 %v5920_v49 }
 0xa2d   : > { %6153 = vmatpush1.bf16.msra.mxu0 %v5544_v31 }
 0xa2e   : > { %v5630_v62 = vpop.permute.xlu0 %5629 }
 0xa2f   : > { %v5588_v0 = vpop.permute.xlu1 %5587  ;;  %v5922_v30 = vld [vmem:[#allocation10 + $0xc8] sm:$0xff] }
 0xa30   : > { %v5595_v24 = vsel %vm4944_vm3, %v5586_v43, %v5588_v0  ;;  %5610 = vst.msk [vmem:[#allocation10 + $0xe8] sm:$0xff] %vm5449_vm12, %v5588_v0  ;;  %6154 = vmatprep.subr.bf16.mxu0 %v5922_v30 }
 0xa31   : > { %6155 = vmatpush1.bf16.msra.mxu0 %v5593_v41 }
 0xa32   : > { %v5634_v56 = vpop.permute.xlu0 %5633 }
 0xa33   : > { %v5592_v3 = vpop.permute.xlu1 %5591  ;;  %v5924_v26 = vld [vmem:[#allocation10 + $0xd8] sm:$0xff] }
 0xa34   : > { %v5596_v57 = vsel %vm4944_vm3, %v5590_v37, %v5592_v3  ;;  %5612 = vst.msk [vmem:[#allocation10 + $0xf8] sm:$0xff] %vm5449_vm12, %v5592_v3  ;;  %6156 = vmatprep.subr.bf16.mxu0 %v5924_v26 }
 0xa35   : > { %6157 = vmatpush1.bf16.msra.mxu0 %v5594_v39 }
 0xa36   : > { %v5638_v6 = vpop.permute.xlu0 %5637 }
 0xa37   : > { %v5632_v46 = vpop.permute.xlu1 %5631  ;;  %v5926_v27 = vld [vmem:[#allocation10 + $0xe8] sm:$0xff] }
 0xa38   : > { %v5645_v45 = vsel %vm4971_vm6, %v5630_v62, %v5632_v46  ;;  %5658 = vst.msk [vmem:[#allocation10 + $0x108] sm:$0xff] %vm5449_vm12, %v5632_v46  ;;  %6158 = vmatprep.subr.bf16.mxu0 %v5926_v27 }
 0xa39   : > { %6159 = vmatpush1.bf16.msra.mxu0 %v5595_v24 }
 0xa3a   : > { %v5642_v7 = vpop.permute.xlu0 %5641 }
 0xa3b   : > { %v5636_v32 = vpop.permute.xlu1 %5635  ;;  %v5928_v60 = vld [vmem:[#allocation10 + $0xf8] sm:$0xff] }
 0xa3c   : > { %v5646_v50 = vsel %vm4971_vm6, %v5634_v56, %v5636_v32  ;;  %5660 = vst.msk [vmem:[#allocation10 + $0x118] sm:$0xff] %vm5449_vm12, %v5636_v32  ;;  %6160 = vmatprep.subr.bf16.mxu0 %v5928_v60 }
 0xa3d   : > { %6161 = vmatpush1.bf16.msra.mxu0 %v5596_v57 }
 0xa3e   : > { %v5682_v53 = vpop.permute.xlu0 %5681 }
 0xa3f   : > { %v5640_v63 = vpop.permute.xlu1 %5639  ;;  %v5930_v20 = vld [vmem:[#allocation10 + $0x108] sm:$0xff] }
 0xa40   : > { %v5647_v51 = vsel %vm4971_vm6, %v5638_v6, %v5640_v63  ;;  %5662 = vst.msk [vmem:[#allocation10 + $0x128] sm:$0xff] %vm5449_vm12, %v5640_v63  ;;  %6203 = vmatprep.subr.bf16.mxu0 %v5930_v20  ;;  %6163 = vmatmul.mubr.bf16.vlgmr.msra.gmra.mrb[40].mxu0 %v7874_v1 }
 0xa41   : > { %6204 = vmatpush1.bf16.msra.mxu0 %v5645_v45  ;;  %6172 = vmatprep.mubr.bf16.mxu0 %v7877_v36 }
 0xa42   : > { %v5686_v5 = vpop.permute.xlu0 %5685 }
 0xa43   : > { %v5644_v4 = vpop.permute.xlu1 %5643  ;;  %v5932_v47 = vld [vmem:[#allocation10 + $0x118] sm:$0xff] }
 0xa44   : > { %v5648_v19 = vsel %vm4971_vm6, %v5642_v7, %v5644_v4  ;;  %5664 = vst.msk [vmem:[#allocation10 + $0x138] sm:$0xff] %vm5449_vm12, %v5644_v4  ;;  %6205 = vmatprep.subr.bf16.mxu0 %v5932_v47  ;;  %v7886_v4 = vld [vmem:[%s10472_s7 + $0x8] ss:$20 sps:$4 sm:$0xff]  }
 0xa45   : > { %6206 = vmatpush1.bf16.msra.mxu0 %v5646_v50 }
 0xa46   : > { %v5690_v59 = vpop.permute.xlu0 %5689 }
 0xa47   : > { %v5684_v48 = vpop.permute.xlu1 %5683  ;;  %v5934_v18 = vld [vmem:[#allocation10 + $0x128] sm:$0xff] }
 0xa48   : > { %v5697_v25 = vsel %vm4998_vm7, %v5682_v53, %v5684_v48  ;;  %5710 = vst.msk [vmem:[#allocation10 + $0x148] sm:$0xff] %vm5449_vm12, %v5684_v48  ;;  %6207 = vmatprep.subr.bf16.mxu0 %v5934_v18  ;;  %6173 = vmatmul.mubr.bf16.gmra.mrb[44].mxu0 %v7879_v17 }
 0xa49   : > { %6208 = vmatpush1.bf16.msra.mxu0 %v5647_v51  ;;  %6182 = vmatprep.mubr.bf16.mxu0 %v7880_v22 }
 0xa4a   : > { %v5694_v33 = vpop.permute.xlu0 %5693 }
 0xa4b   : > { %v5688_v13 = vpop.permute.xlu1 %5687  ;;  %v5936_v52 = vld [vmem:[#allocation10 + $0x138] sm:$0xff] }
 0xa4c   : > { %v5698_v58 = vsel %vm4998_vm7, %v5686_v5, %v5688_v13  ;;  %5712 = vst.msk [vmem:[#allocation10 + $0x158] sm:$0xff] %vm5449_vm12, %v5688_v13  ;;  %6209 = vmatprep.subr.bf16.mxu0 %v5936_v52  ;;  %v7891_v13 = vld [vmem:[%s10472_s7 + $0x30] ss:$20 sps:$4 sm:$0xff]  }
 0xa4d   : > { %6210 = vmatpush1.bf16.msra.mxu0 %v5648_v19  ;;  %v7889_v19 = vld [vmem:[%s10472_s7 + $0x34] ss:$20 sps:$4 sm:$0xff]   ;;  %v7892_v52 = vld [vmem:[%s10472_s7 + $0x5c] ss:$20 sps:$4 sm:$0xff]  }
 0xa4e   : > { %v5734_v10 = vpop.permute.xlu0 %5733 }
 0xa4f   : > { %v5692_v8 = vpop.permute.xlu1 %5691  ;;  %v5938_v44 = vld [vmem:[#allocation10 + $0x148] sm:$0xff] }
 0xa50   : > { %v5699_v54 = vsel %vm4998_vm7, %v5690_v59, %v5692_v8  ;;  %5714 = vst.msk [vmem:[#allocation10 + $0x168] sm:$0xff] %vm5449_vm12, %v5692_v8  ;;  %6211 = vmatprep.subr.bf16.mxu0 %v5938_v44  ;;  %6183 = vmatmul.mubr.bf16.gmra.mrb[48].mxu0 %v7882_v14  ;;  %v7897_v8 = vld [vmem:[%s10472_s7 + $0x80] ss:$20 sps:$4 sm:$0xff]   ;;  %v7898_v44 = vld [vmem:[%s10472_s7 + $0x10] ss:$20 sps:$4 sm:$0xff]  }
 0xa51   : > { %6212 = vmatpush1.bf16.msra.mxu0 %v5697_v25  ;;  %6192 = vmatprep.mubr.bf16.mxu0 %v7883_v29  ;;  %v7894_v29 = vld [vmem:[%s10472_s7 + $0x58] ss:$20 sps:$4 sm:$0xff]  }
 0xa52   : > { %v5738_v40 = vpop.permute.xlu0 %5737 }
 0xa53   : > { %v5696_v11 = vpop.permute.xlu1 %5695  ;;  %v5940_v55 = vld [vmem:[#allocation10 + $0x158] sm:$0xff] }
 0xa54   : > { %v5700_v61 = vsel %vm4998_vm7, %v5694_v33, %v5696_v11  ;;  %5716 = vst.msk [vmem:[#allocation10 + $0x178] sm:$0xff] %vm5449_vm12, %v5696_v11  ;;  %6213 = vmatprep.subr.bf16.mxu0 %v5940_v55  ;;  %v7901_v11 = vld [vmem:[%s10472_s7 + $0x88] ss:$20 sps:$4 sm:$0xff]   ;;  %v7902_v55 = vld [vmem:[%s10476_s11] sm:$0xff]  }
 0xa55   : > { %6214 = vmatpush1.bf16.msra.mxu0 %v5698_v58  ;;  %7260 = vmatprep.subr.bf16.mxu1 %v7902_v55 }
 0xa56   : > { %v5742_v12 = vpop.permute.xlu0 %5741  ;;  %7261 = vmatpush3.bf16.msra.mxu1 %v7902_v55 }
 0xa57   : > { %v5736_v15 = vpop.permute.xlu1 %5735  ;;  %v5942_v16 = vld [vmem:[#allocation10 + $0x168] sm:$0xff] }
 0xa58   : > { %v5749_v2 = vsel %vm5025_vm8, %v5734_v10, %v5736_v15  ;;  %5762 = vst.msk [vmem:[#allocation10 + $0x188] sm:$0xff] %vm5449_vm12, %v5736_v15  ;;  %6215 = vmatprep.subr.bf16.mxu0 %v5942_v16  ;;  %6193 = vmatmul.mubr.bf16.gmra.mrb[52].mxu0 %v7885_v9  ;;  %v7895_v10 = vld [vmem:[%s10472_s7 + $0x84] ss:$20 sps:$4 sm:$0xff]  }
 0xa59   : > { %6216 = vmatpush1.bf16.msra.mxu0 %v5699_v54  ;;  %6235 = vmatprep.mubr.bf16.mxu0 %v7888_v34  ;;  %v7899_v54 = vld [vmem:[%s10472_s7 + $0x38] ss:$20 sps:$4 sm:$0xff]   ;;  %v7906_v34 = vld [vmem:[%s10476_s11 + $0x20] sm:$0xff]  }
 0xa5a   : > { %v5746_v38 = vpop.permute.xlu0 %5745  ;;  %v7905_v9 = vld [vmem:[%s10476_s11 + $0x18] sm:$0xff]  }
 0xa5b   : > { %v5740_v23 = vpop.permute.xlu1 %5739  ;;  %v5944_v31 = vld [vmem:[#allocation10 + $0x178] sm:$0xff] }
 0xa5c   : > { %v5750_v43 = vsel %vm5025_vm8, %v5738_v40, %v5740_v23  ;;  %5764 = vst.msk [vmem:[#allocation10 + $0x198] sm:$0xff] %vm5449_vm12, %v5740_v23  ;;  %6217 = vmatprep.subr.bf16.mxu0 %v5944_v31  ;;  %v7900_v40 = vld [vmem:[%s10472_s7 + $0x60] ss:$20 sps:$4 sm:$0xff]  }
 0xa5d   : > { %6218 = vmatpush1.bf16.msra.mxu0 %v5700_v61  ;;  %v7903_v61 = vld [vmem:[%s10476_s11 + $0x8] sm:$0xff]  }
 0xa5e   : > { %v5786_v21 = vpop.permute.xlu0 %5785  ;;  %7262 = vmatprep.subr.bf16.mxu1 %v7903_v61 }
 0xa5f   : > { %v5744_v35 = vpop.permute.xlu1 %5743  ;;  %v5946_v41 = vld [vmem:[#allocation10 + $0x188] sm:$0xff]  ;;  %7263 = vmatpush3.bf16.msra.mxu1 %v7903_v61 }
 0xa60   : > { %v5751_v37 = vsel %vm5025_vm8, %v5742_v12, %v5744_v35  ;;  %5766 = vst.msk [vmem:[#allocation10 + $0x1a8] sm:$0xff] %vm5449_vm12, %v5744_v35  ;;  %6219 = vmatprep.subr.bf16.mxu0 %v5946_v41  ;;  %v7907_v12 = vld [vmem:[%s10476_s11 + $0x28] sm:$0xff]  }
 0xa61   : > { %6220 = vmatpush1.bf16.msra.mxu0 %v5749_v2 }
 0xa62   : > { %v5790_v28 = vpop.permute.xlu0 %5789 }
 0xa63   : > { %v5748_v49 = vpop.permute.xlu1 %5747  ;;  %v5948_v39 = vld [vmem:[#allocation10 + $0x198] sm:$0xff] }
 0xa64   : > { %v5752_v62 = vsel %vm5025_vm8, %v5746_v38, %v5748_v49  ;;  %5768 = vst.msk [vmem:[#allocation10 + $0x1b8] sm:$0xff] %vm5449_vm12, %v5748_v49  ;;  %6221 = vmatprep.subr.bf16.mxu0 %v5948_v39  ;;  %v7908_v49 = vld [vmem:[%s10476_s11 + $0x30] sm:$0xff]  }
 0xa65   : > { %6222 = vmatpush1.bf16.msra.mxu0 %v5750_v43 }
 0xa66   : > { %v5794_v0 = vpop.permute.xlu0 %5793 }
 0xa67   : > { %v5788_v30 = vpop.permute.xlu1 %5787  ;;  %v5950_v24 = vld [vmem:[#allocation10 + $0x1a8] sm:$0xff] }
 0xa68   : > { %v5801_v56 = vsel %vm5052_vm10, %v5786_v21, %v5788_v30  ;;  %5814 = vst.msk [vmem:[#allocation10 + $0x1c8] sm:$0xff] %vm5449_vm12, %v5788_v30  ;;  %6223 = vmatprep.subr.bf16.mxu0 %v5950_v24 }
 0xa69   : > { %6224 = vmatpush1.bf16.msra.mxu0 %v5751_v37 }
 0xa6a   : > { %v5798_v57 = vpop.permute.xlu0 %5797 }
 0xa6b   : > { %v5792_v3 = vpop.permute.xlu1 %5791  ;;  %v5952_v26 = vld [vmem:[#allocation10 + $0x1b8] sm:$0xff] }
 0xa6c   : > { %v5802_v6 = vsel %vm5052_vm10, %v5790_v28, %v5792_v3  ;;  %5816 = vst.msk [vmem:[#allocation10 + $0x1d8] sm:$0xff] %vm5449_vm12, %v5792_v3  ;;  %6225 = vmatprep.subr.bf16.mxu0 %v5952_v26  ;;  %v7909_v3 = vld [vmem:[%s10476_s11 + $0x38] sm:$0x1f]  }
 0xa6d   : > { %6226 = vmatpush1.bf16.msra.mxu0 %v5752_v62 }
 0xa6e   : > { %v5838_v7 = vpop.permute.xlu0 %5837 }
 0xa6f   : > { %v5796_v46 = vpop.permute.xlu1 %5795  ;;  %v5954_v27 = vld [vmem:[#allocation10 + $0x1c8] sm:$0xff] }
 0xa70   : > { %v5803_v45 = vsel %vm5052_vm10, %v5794_v0, %v5796_v46  ;;  %5818 = vst.msk [vmem:[#allocation10 + $0x1e8] sm:$0xff] %vm5449_vm12, %v5796_v46  ;;  %6227 = vmatprep.subr.bf16.mxu0 %v5954_v27 }
 0xa71   : > { %6228 = vmatpush1.bf16.msra.mxu0 %v5801_v56 }
 0xa72   : > { %v5842_v53 = vpop.permute.xlu0 %5841 }
 0xa73   : > { %v5800_v32 = vpop.permute.xlu1 %5799  ;;  %v5956_v60 = vld [vmem:[#allocation10 + $0x1d8] sm:$0xff] }
 0xa74   : > { %v5804_v50 = vsel %vm5052_vm10, %v5798_v57, %v5800_v32  ;;  %5820 = vst.msk [vmem:[#allocation10 + $0x1f8] sm:$0xff] %vm5449_vm12, %v5800_v32  ;;  %6229 = vmatprep.subr.bf16.mxu0 %v5956_v60 }
 0xa75   : > { %6230 = vmatpush1.bf16.msra.mxu0 %v5802_v6 }
 0xa76   : > { %v5846_v47 = vpop.permute.xlu0 %5845 }
 0xa77   : > { %v5840_v1 = vpop.permute.xlu1 %5839  ;;  %v5958_v36 = vld [vmem:[#allocation10 + $0x1e8] sm:$0xff] }
 0xa78   : > { %v5853_v63 = vsel %vm5079_vm11, %v5838_v7, %v5840_v1  ;;  %5866 = vst.msk [vmem:[#allocation10 + $0x208] sm:$0xff] %vm5449_vm12, %v5840_v1  ;;  %6231 = vmatprep.subr.bf16.mxu0 %v5958_v36  ;;  %v10399_v36 = vld [vmem:[%s10477_s12] sm:$0xff]  }
 0xa79   : > { %6232 = vmatpush1.bf16.msra.mxu0 %v5803_v45  ;;  %v6503_v45 = vsel %vm6501_vm4, %v7909_v3, 0 }
 0xa7a   : > { %v5850_v48 = vpop.permute.xlu0 %5849 }
 0xa7b   : > { %v5844_v20 = vpop.permute.xlu1 %5843  ;;  %v5960_v51 = vld [vmem:[#allocation10 + $0x1f8] sm:$0xff] }
 0xa7c   : > { %v5854_v5 = vsel %vm5079_vm11, %v5842_v53, %v5844_v20  ;;  %5868 = vst.msk [vmem:[#allocation10 + $0x218] sm:$0xff] %vm5449_vm12, %v5844_v20  ;;  %6233 = vmatprep.subr.bf16.mxu0 %v5960_v51 }
 0xa7d   : > { %6234 = vmatpush1.bf16.msra.mxu0 %v5804_v50 }
 0xa7f   : > { %v5848_v17 = vpop.permute.xlu1 %5847  ;;  %v5962_v22 = vld [vmem:[#allocation10 + $0x208] sm:$0xff] }
 0xa80   : > { %v5855_v59 = vsel %vm5079_vm11, %v5846_v47, %v5848_v17  ;;  %5870 = vst.msk [vmem:[#allocation10 + $0x228] sm:$0xff] %vm5449_vm12, %v5848_v17  ;;  %6236 = vmatmul.mubr.bf16.vlgmr.msra.gmra.mrb[40].mxu0 %v7886_v4  ;;  %6276 = vmatprep.subr.bf16.mxu0 %v5962_v22 }
 0xa81   : > { %6277 = vmatpush1.bf16.msra.mxu0 %v5853_v63  ;;  %6245 = vmatprep.mubr.bf16.mxu0 %v7889_v19 }
 0xa83   : > { %v5852_v18 = vpop.permute.xlu1 %5851  ;;  %v5964_v25 = vld [vmem:[#allocation10 + $0x218] sm:$0xff] }
 0xa84   : > { %v5856_v33 = vsel %vm5079_vm11, %v5850_v48, %v5852_v18  ;;  %5872 = vst.msk [vmem:[#allocation10 + $0x238] sm:$0xff] %vm5449_vm12, %v5852_v18  ;;  %6278 = vmatprep.subr.bf16.mxu0 %v5964_v25 }
 0xa85   : > { %6279 = vmatpush1.bf16.msra.mxu0 %v5854_v5 }
 0xa87   : > { %v5966_v58 = vld [vmem:[#allocation10 + $0x228] sm:$0xff] }
 0xa88   : > { %6246 = vmatmul.mubr.bf16.gmra.mrb[44].mxu0 %v7891_v13  ;;  %6280 = vmatprep.subr.bf16.mxu0 %v5966_v58 }
 0xa89   : > { %6281 = vmatpush1.bf16.msra.mxu0 %v5855_v59  ;;  %6255 = vmatprep.mubr.bf16.mxu0 %v7892_v52 }
 0xa8b   : > { %v5968_v14 = vld [vmem:[#allocation10 + $0x238] sm:$0xff]  ;;  %v5980_v15 = vpop.permute.xlu0 %5979 }
 0xa8c   : > { %6282 = vmatprep.subr.bf16.mxu0 %v5968_v14 }
 0xa8d   : > { %6283 = vmatpush1.bf16.msra.mxu0 %v5856_v33 }
 0xa8f   : > { %v5990_v30 = vpop.permute.xlu0 %5989 }
 0xa90   : > { %6256 = vmatmul.mubr.bf16.gmra.mrb[48].mxu0 %v7894_v29 }
 0xa91   : > { %6265 = vmatprep.mubr.bf16.mxu0 %v7895_v10 }
 0xa93   : > { %v6000_v51 = vpop.permute.xlu0 %5999 }
 0xa94   : > { %v5985_v23 = vpop.permute.xlu1 %5984 }
 0xa97   : > { %v6010_v10 = vpop.permute.xlu0 %6009 }
 0xa98   : > { %6266 = vmatmul.mubr.bf16.gmra.mrb[52].mxu0 %v7897_v8  ;;  %v5995_v6 = vpop.permute.xlu1 %5994 }
 0xa99   : > { %6308 = vmatprep.mubr.bf16.mxu0 %v7939_v42 }
 0xa9c   : > { %v6005_v22 = vpop.permute.xlu1 %6004 }
 0xaa0   : > { %7144 = vmatmul.mubr.msk.bf16.vlgmr.msra.gmra.mrb[40].mxu0 %vm845_vm9, %v7898_v44  ;;  %v6015_v55 = vpop.permute.xlu1 %6014 }
 0xaa1   : > { %6318 = vmatprep.mubr.bf16.mxu0 %v7939_v42 }
 0xaa8   : > { %7145 = vmatmul.mubr.msk.bf16.gmra.mrb[44].mxu0 %vm845_vm9, %v7899_v54 }
 0xaa9   : > { %6328 = vmatprep.mubr.bf16.mxu0 %v7939_v42 }
 0xab0   : > { %7146 = vmatmul.mubr.msk.bf16.gmra.mrb[48].mxu0 %vm845_vm9, %v7900_v40 }
 0xab1   : > { %6338 = vmatprep.mubr.bf16.mxu0 %v7939_v42  ;;  %v7904_v42 = vld [vmem:[%s10476_s11 + $0x10] sm:$0xff]  }
 0xab2   : > { %7264 = vmatprep.subr.bf16.mxu1 %v7904_v42 }
 0xab3   : > { %7265 = vmatpush3.bf16.msra.mxu1 %v7904_v42 }
 0xab4   : > { %7266 = vmatprep.subr.bf16.mxu1 %v7905_v9 }
 0xab7   : > { %7267 = vmatpush3.bf16.msra.mxu1 %v7905_v9 }
 0xab8   : > { %7147 = vmatmul.mubr.msk.bf16.gmra.mrb[52].mxu0 %vm845_vm9, %v7901_v11  ;;  %7268 = vmatprep.subr.bf16.mxu1 %v7906_v34  ;;  %vm6741_vm9 = vcmask 199680  }
 0xabb   : > { %7269 = vmatpush3.bf16.msra.mxu1 %v7906_v34 }
 0xabc   : > { %7270 = vmatprep.subr.bf16.mxu1 %v7907_v12 }
 0xabf   : > { %7271 = vmatpush3.bf16.msra.mxu1 %v7907_v12 }
 0xac0   : > { %7272 = vmatprep.subr.bf16.mxu1 %v7908_v49 }
 0xac3   : > { %7273 = vmatpush3.bf16.msra.mxu1 %v7908_v49 }
 0xac4   : > { %7484 = vmatprep.subr.msk.bf16.mxu1 %vm6501_vm4, %v7909_v3 }
 0xac7   : > { %7275 = vmatpush3.bf16.msra.mxu1 %v6503_v45 }
 0xac8   : > { %7284 = vmatprep.subr.bf16.mxu1 %v10399_v36 }
 0xb73   : > { %v6310_v16 = vpop.f32.mrb[40].mxu0 }
 0xb74   : > { %v7356_v2 = vadd.f32 %v6310_v16, %v5980_v15  ;;  %v6312_v38 = vpop.f32.mrb[41].mxu0 }
 0xb75   : > { %v7357_v31 = vadd.f32 %v6312_v38, %v5980_v15  ;;  %v6314_v43 = vpop.f32.mrb[42].mxu0 }
 0xb76   : > { %v7358_v21 = vadd.f32 %v6314_v43, %v5985_v23  ;;  %v6316_v35 = vpop.f32.mrb[43].mxu0  ;;  %v6349_v37 = vmax.f32 %v7356_v2, 0.0 }
 0xb77   : > { %v7359_v41 = vadd.f32 %v6316_v35, %v5985_v23  ;;  %v6350_v39 = vmax.f32 %v7357_v31, 0.0 }
 0xb78   : > { %v6351_v28 = vmax.f32 %v7358_v21, 0.0 }
 0xb79   : > { %v6352_v62 = vmax.f32 %v7359_v41, 0.0 }
 0xb7a   : > { %v10386_v0 = vpack.c.bf16 %v6351_v28, %v6349_v37 }
 0xb7b   : > { %v6366_v24 = vpack.c.bf16 %v6352_v62, %v6350_v39  ;;  %v6320_v56 = vpop.f32.mrb[44].mxu0 }
 0xb7c   : > { %v7360_v26 = vadd.f32 %v6320_v56, %v5990_v30  ;;  %v6322_v57 = vpop.f32.mrb[45].mxu0  ;;  %6397 = vrot.lane.b32.xlu0 %v10386_v0, %s7940_s28 }
 0xb7d   : > { %6374 = vst.msk [vmem:[#allocation11 + $0x8] sm:$0xff] %vm5449_vm12, %v6366_v24  ;;  %v7361_v46 = vadd.f32 %v6322_v57, %v5990_v30  ;;  %v6324_v27 = vpop.f32.mrb[46].mxu0  ;;  %v7911_v24 = vld [vmem:[%s10477_s12 + $0x8] sm:$0xff]  }
 0xb7e   : > { %v7362_v7 = vadd.f32 %v6324_v27, %v5995_v6  ;;  %v6326_v32 = vpop.f32.mrb[47].mxu0  ;;  %v6353_v50 = vmax.f32 %v7360_v26, 0.0 }
 0xb7f   : > { %v7363_v60 = vadd.f32 %v6326_v32, %v5995_v6  ;;  %v6354_v53 = vmax.f32 %v7361_v46, 0.0  ;;  %v7913_v6 = vld [vmem:[%s10477_s12 + $0x18] sm:$0xff]   ;;  %v7914_v46 = vld [vmem:[%s10477_s12 + $0x20] sm:$0xff]  }
 0xb80   : > { %v6355_v1 = vmax.f32 %v7362_v7, 0.0 }
 0xb81   : > { %v6356_v63 = vmax.f32 %v7363_v60, 0.0  ;;  %v7915_v60 = vld [vmem:[%s10477_s12 + $0x28] sm:$0xff]  }
 0xb82   : > { %v6367_v20 = vpack.c.bf16 %v6355_v1, %v6353_v50  ;;  %v7916_v50 = vld [vmem:[%s10477_s12 + $0x30] sm:$0xff]   ;;  %v7917_v1 = vld [vmem:[%s10477_s12 + $0x38] sm:$0x1f]  }
 0xb83   : > { %v6368_v5 = vpack.c.bf16 %v6356_v63, %v6354_v53  ;;  %v6330_v4 = vpop.f32.mrb[48].mxu0 }
 0xb84   : > { %v7364_v47 = vadd.f32 %v6330_v4, %v6000_v51  ;;  %v6332_v19 = vpop.f32.mrb[49].mxu0  ;;  %v6385_v17 = vld [vmem:[#allocation11 + $0x8] sm:$0xff]  ;;  %6401 = vrot.lane.b32.xlu0 %v6367_v20, %s7940_s28 }
 0xb85   : > { %6376 = vst.msk [vmem:[#allocation11 + $0x18] sm:$0xff] %vm5449_vm12, %v6368_v5  ;;  %v7365_v59 = vadd.f32 %v6332_v19, %v6000_v51  ;;  %v6334_v48 = vpop.f32.mrb[50].mxu0  ;;  %6399 = vrot.lane.b32.xlu1 %v6385_v17, %s7940_s28 }
 0xb86   : > { %v7366_v18 = vadd.f32 %v6334_v48, %v6005_v22  ;;  %v6336_v25 = vpop.f32.mrb[51].mxu0  ;;  %v6357_v13 = vmax.f32 %v7364_v47, 0.0 }
 0xb87   : > { %v7367_v33 = vadd.f32 %v6336_v25, %v6005_v22  ;;  %v6358_v58 = vmax.f32 %v7365_v59, 0.0 }
 0xb88   : > { %v6359_v52 = vmax.f32 %v7366_v18, 0.0 }
 0xb89   : > { %v6360_v14 = vmax.f32 %v7367_v33, 0.0 }
 0xb8a   : > { %v6369_v29 = vpack.c.bf16 %v6359_v52, %v6357_v13 }
 0xb8b   : > { %v6370_v8 = vpack.c.bf16 %v6360_v14, %v6358_v58  ;;  %v6340_v44 = vpop.f32.mrb[52].mxu0 }
 0xb8c   : > { %v7368_v54 = vadd.f32 %v6340_v44, %v6010_v10  ;;  %v6342_v40 = vpop.f32.mrb[53].mxu0  ;;  %v6386_v11 = vld [vmem:[#allocation11 + $0x18] sm:$0xff]  ;;  %6405 = vrot.lane.b32.xlu0 %v6369_v29, %s7940_s28 }
 0xb8d   : > { %6378 = vst.msk [vmem:[#allocation11 + $0x28] sm:$0xff] %vm5449_vm12, %v6370_v8  ;;  %v7369_v61 = vadd.f32 %v6342_v40, %v6010_v10  ;;  %v6344_v42 = vpop.f32.mrb[54].mxu0  ;;  %6403 = vrot.lane.b32.xlu1 %v6386_v11, %s7940_s28 }
 0xb8e   : > { %v7370_v9 = vadd.f32 %v6344_v42, %v6015_v55  ;;  %v6346_v34 = vpop.f32.mrb[55].mxu0  ;;  %v6361_v15 = vmax.f32 %v7368_v54, 0.0 }
 0xb8f   : > { %v7371_v12 = vadd.f32 %v6346_v34, %v6015_v55  ;;  %v6362_v2 = vmax.f32 %v7369_v61, 0.0 }
 0xb90   : > { %v6363_v16 = vmax.f32 %v7370_v9, 0.0 }
 0xb91   : > { %v6364_v38 = vmax.f32 %v7371_v12, 0.0 }
 0xb92   : > { %v6371_v23 = vpack.c.bf16 %v6363_v16, %v6361_v15 }
 0xb93   : > { %v6372_v31 = vpack.c.bf16 %v6364_v38, %v6362_v2 }
 0xb94   : > { %v6387_v43 = vld [vmem:[#allocation11 + $0x28] sm:$0xff]  ;;  %6409 = vrot.lane.b32.xlu0 %v6371_v23, %s7940_s28 }
 0xb95   : > { %6380 = vst.msk [vmem:[#allocation11 + $0x38] sm:$0xff] %vm5449_vm12, %v6372_v31  ;;  %6407 = vrot.lane.b32.xlu1 %v6387_v43, %s7940_s28 }
 0xb9c   : > { %v6388_v21 = vld [vmem:[#allocation11 + $0x38] sm:$0xff] }
 0xb9d   : > { %6411 = vrot.lane.b32.xlu1 %v6388_v21, %s7940_s28  ;;  %s440_s28 = scalar_lea.vmem %s10478_s13, %s10494_s29 }
 0xbee   : > { %v6398_v35 = vpop.permute.xlu0 %6397 }
 0xbf6   : > { %v6402_v49 = vpop.permute.xlu0 %6401 }
 0xbf7   : > { %v6400_v41 = vpop.permute.xlu1 %6399 }
 0xbf8   : > { %v6413_v37 = vsel %vm4944_vm3, %v6398_v35, %v6400_v41 }
 0xbf9   : > { %v6421_v28 = vmax.bf16 %v6413_v37, %v10386_v0  ;;  %v7912_v0 = vld [vmem:[%s10477_s12 + $0x10] sm:$0xff]  }
 0xbfb   : > { %7276 = vmatprep.mubr.msk.bf16.mxu1 %vm6488_vm5, %v6421_v28 }
 0xbfe   : > { %v6406_v56 = vpop.permute.xlu0 %6405 }
 0xbff   : > { %v6404_v39 = vpop.permute.xlu1 %6403 }
 0xc00   : > { %v6414_v62 = vsel %vm4944_vm3, %v6402_v49, %v6404_v39 }
 0xc01   : > { %v6422_v30 = vmax.bf16 %v6414_v62, %v6367_v20 }
 0xc03   : > { %7277 = vmatmul.mubr.msk.bf16.vlgmr.msra.gmra.mrb[68].mxu1 %vm6488_vm5, %v6422_v30 }
 0xc04   : > { %7285 = vmatpush3.bf16.msra.mxu1 %v10399_v36  ;;  %v6634_v36 = vsel %vm6501_vm4, %v7917_v1, 0 }
 0xc05   : > { %7286 = vmatprep.subr.bf16.mxu1 %v7911_v24 }
 0xc06   : > { %v6410_v27 = vpop.permute.xlu0 %6409 }
 0xc07   : > { %v6408_v3 = vpop.permute.xlu1 %6407 }
 0xc08   : > { %v6415_v26 = vsel %vm4944_vm3, %v6406_v56, %v6408_v3  ;;  %7287 = vmatpush3.bf16.msra.mxu1 %v7911_v24 }
 0xc09   : > { %v6423_v57 = vmax.bf16 %v6415_v26, %v6369_v29  ;;  %7288 = vmatprep.subr.bf16.mxu1 %v7912_v0 }
 0xc0b   : > { %7280 = vmatprep.mubr.msk.bf16.mxu1 %vm6488_vm5, %v6423_v57 }
 0xc0c   : > { %7289 = vmatpush3.bf16.msra.mxu1 %v7912_v0 }
 0xc0d   : > { %7290 = vmatprep.subr.bf16.mxu1 %v7913_v6 }
 0xc0f   : > { %v6412_v45 = vpop.permute.xlu1 %6411 }
 0xc10   : > { %v6416_v7 = vsel %vm4944_vm3, %v6410_v27, %v6412_v45  ;;  %7291 = vmatpush3.bf16.msra.mxu1 %v7913_v6 }
 0xc11   : > { %v6424_v32 = vmax.bf16 %v6416_v7, %v6371_v23  ;;  %7292 = vmatprep.subr.bf16.mxu1 %v7914_v46 }
 0xc13   : > { %7281 = vmatmul.mubr.msk.bf16.gmra.mrb[72].mxu1 %vm6488_vm5, %v6424_v32 }
 0xc14   : > { %7293 = vmatpush3.bf16.msra.mxu1 %v7914_v46  ;;  %7300 = vmatprep.mubr.msk.bf16.mxu1 %vm6488_vm5, %v6421_v28 }
 0xc15   : > { %7294 = vmatprep.subr.bf16.mxu1 %v7915_v60 }
 0xc18   : > { %7295 = vmatpush3.bf16.msra.mxu1 %v7915_v60 }
 0xc19   : > { %7296 = vmatprep.subr.bf16.mxu1 %v7916_v50 }
 0xc1c   : > { %7297 = vmatpush3.bf16.msra.mxu1 %v7916_v50 }
 0xc1d   : > { %7485 = vmatprep.subr.msk.bf16.mxu1 %vm6501_vm4, %v7917_v1 }
 0xc20   : > { %7299 = vmatpush3.bf16.msra.mxu1 %v6634_v36 }
 0xc23   : > { %7301 = vmatmul.mubr.msk.bf16.vlgmr.msra.gmra.mrb[76].mxu1 %vm6488_vm5, %v6422_v30 }
 0xc24   : > { %7304 = vmatprep.mubr.msk.bf16.mxu1 %vm6488_vm5, %v6423_v57 }
 0xc2b   : > { %7305 = vmatmul.mubr.msk.bf16.gmra.mrb[80].mxu1 %vm6488_vm5, %v6424_v32 }
 0xcd6   : > { %v7278_v53 = vpop.f32.mrb[68].mxu1 }
 0xcd7   : > { %v6539_v63 = vpop.f32.mrb[69].mxu1 }
 0xcd8   : > { %v7279_v20 = vpop.f32.mrb[70].mxu1 }
 0xcd9   : > { %v6542_v51 = vpop.f32.mrb[71].mxu1 }
 0xce6   : > { %v7282_v5 = vpop.f32.mrb[72].mxu1 }
 0xce7   : > { %v6555_v4 = vpop.f32.mrb[73].mxu1 }
 0xce8   : > { %v7283_v47 = vpop.f32.mrb[74].mxu1 }
 0xce9   : > { %v6558_v19 = vpop.f32.mrb[75].mxu1 }
 0xcf6   : > { %v7302_v17 = vpop.f32.mrb[76].mxu1 }
 0xcf7   : > { %v6703_v22 = vmax.f32 %v7278_v53, %v7302_v17  ;;  %v6670_v59 = vpop.f32.mrb[77].mxu1 }
 0xcf8   : > { %v6701_v48 = vmax.f32 %v6539_v63, %v6670_v59  ;;  %v7303_v18 = vpop.f32.mrb[78].mxu1 }
 0xcf9   : > { %v7190_v25 = vpack.c.bf16 %v6703_v22, %v6703_v22  ;;  %v6704_v33 = vmax.f32 %v7279_v20, %v7303_v18  ;;  %v6673_v13 = vpop.f32.mrb[79].mxu1 }
 0xcfa   : > { %v7188_v52 = vpack.c.bf16 %v6701_v48, %v6701_v48  ;;  %v6702_v58 = vmax.f32 %v6542_v51, %v6673_v13 }
 0xcfb   : > { %6744 = vst.msk [vmem:[%s440_s28 + $0x8] sm:$0xf] %vm6741_vm9, %v7190_v25  ;;  %v7191_v14 = vpack.c.bf16 %v6704_v33, %v6704_v33 }
 0xcfc   : > { %6742 = vst.msk [vmem:[%s440_s28] sm:$0xf] %vm6741_vm9, %v7188_v52  ;;  %v7189_v29 = vpack.c.bf16 %v6702_v58, %v6702_v58 }
 0xcfd   : > { %6745 = vst.msk [vmem:[%s440_s28 + $0xc] sm:$0xf] %vm6741_vm9, %v7191_v14 }
 0xcfe   : > { %6743 = vst.msk [vmem:[%s440_s28 + $0x4] sm:$0xf] %vm6741_vm9, %v7189_v29  ;;  %v7306_v10 = vpop.f32.mrb[80].mxu1 }
 0xcff   : > { %v6707_v8 = vmax.f32 %v7282_v5, %v7306_v10  ;;  %v6686_v44 = vpop.f32.mrb[81].mxu1 }
 0xd00   : > { %v6705_v54 = vmax.f32 %v6555_v4, %v6686_v44  ;;  %v7307_v40 = vpop.f32.mrb[82].mxu1 }
 0xd01   : > { %v7194_v11 = vpack.c.bf16 %v6707_v8, %v6707_v8  ;;  %v6708_v55 = vmax.f32 %v7283_v47, %v7307_v40  ;;  %v6689_v61 = vpop.f32.mrb[83].mxu1 }
 0xd02   : > { %v7192_v42 = vpack.c.bf16 %v6705_v54, %v6705_v54  ;;  %v6706_v9 = vmax.f32 %v6558_v19, %v6689_v61 }
 0xd03   : > { %6748 = vst.msk [vmem:[%s440_s28 + $0x18] sm:$0xf] %vm6741_vm9, %v7194_v11  ;;  %v7195_v34 = vpack.c.bf16 %v6708_v55, %v6708_v55 }
 0xd04   : > { %6746 = vst.msk [vmem:[%s440_s28 + $0x10] sm:$0xf] %vm6741_vm9, %v7192_v42  ;;  %v7193_v12 = vpack.c.bf16 %v6706_v9, %v6706_v9 }
 0xd05   : > { %6749 = vst.msk [vmem:[%s440_s28 + $0x1c] sm:$0xf] %vm6741_vm9, %v7195_v34 }
 0xd06   : > { %6747 = vst.msk [vmem:[%s440_s28 + $0x14] sm:$0xf] %vm6741_vm9, %v7193_v12 }
 0xd07 PF: > { %s23_s25 = sadd.s32 1, %s7928_s25  }
 0xd08   : > { %p20_p4 = scmp.ge.s32.totalorder %s23_s25, 4  }
 0xd0a   :  { %22 = sbr.rel (!%p20_p4) target bundleno = 1 (0x1), region = 102 }

</bundles_post_ra>
